<compile_context>
chip_gen: v5e
topology: v5e:2x2
jax: 0.10.0
libtpu: 0.0.40
codegen_flags: <defaults>
</compile_context>

<pallas_src>
import functools

import jax
import jax.numpy as jnp
import numpy as np
from jax.experimental import pallas as pl
from jax.experimental.pallas import tpu as pltpu

# Conv geometry of the 4x4 board network:
#   conv_a : 16->128, k=(1,2) -> 4x3 = 12 pos     conv_b : 16->128, k=(2,1) -> 3x4 = 12 pos
#   conv_aa: 128->128, k=(1,2) on x_a -> 4x2 = 8  conv_ab: 128->128, k=(2,1) on x_a -> 3x3 = 9
#   conv_ba: 128->128, k=(1,2) on x_b -> 3x3 = 9  conv_bb: 128->128, k=(2,1) on x_b -> 2x4 = 8
# Each second-level output position reads two 128-ch position chunks of its parent:
PAIRS_AA = [(h * 3 + w, h * 3 + w + 1) for h in range(4) for w in range(2)]
PAIRS_AB = [(h * 3 + w, (h + 1) * 3 + w) for h in range(3) for w in range(3)]
PAIRS_BA = [(h * 4 + w, h * 4 + w + 1) for h in range(3) for w in range(3)]
PAIRS_BB = [(h * 4 + w, (h + 1) * 4 + w) for h in range(2) for w in range(4)]
SEG_POSITIONS = [12, 12, 8, 9, 9, 8]          # x_a, x_b, x_aa, x_ab, x_ba, x_bb
FC1_IN = 128 * sum(SEG_POSITIONS)             # 7424


def _round_up(x, m):
    return (x + m - 1) // m * m


# ----------------------------------------------------------------------------
# Fused DQN kernel: one batch tile of `tb` rows per grid step.
# ----------------------------------------------------------------------------
def _dqn_kernel(pa_ref, pb_ref, wa_ref, wb_ref, waa_ref, wab_ref, wba_ref,
                wbb_ref, bconv_ref, w1_ref, b1_ref, w2_ref, b2_ref, out_ref,
                *, tb):
    f32 = jnp.float32
    bf16 = jnp.bfloat16

    def mm(a, b):
        return jnp.dot(a, b, preferred_element_type=f32)

    def relu_bf16(y):
        return jnp.maximum(y, 0.0).astype(bf16)

    # ---- level-1 convs: one row-stacked GEMM each.
    #      Rows are position-major (12 positions) x batch-tile; lanes = 128 out ch.
    def level1(p_ref, w_ref, brow):
        y = mm(p_ref[...], w_ref[...]) + bconv_ref[brow:brow + 1, :]
        y = relu_bf16(y)                                       # (12*tb, 128)
        return [y[p * tb:(p + 1) * tb, :] for p in range(12)]

    xa = level1(pa_ref, wa_ref, 0)      # 12 chunks of (tb, 128), position-major
    xb = level1(pb_ref, wb_ref, 1)

    # ---- level-2 convs: im2col patch = lane-concat of two parent chunks (K=256),
    #      row-stack all output positions, single GEMM against the (256,128) weight.
    def level2(chunks, pairs, w_ref, brow):
        pm = jnp.concatenate(
            [jnp.concatenate([chunks[p0], chunks[p1]], axis=1) for p0, p1 in pairs],
            axis=0)                                            # (npos*tb, 256) bf16
        y = mm(pm, w_ref[...]) + bconv_ref[brow:brow + 1, :]
        y = relu_bf16(y)                                       # (npos*tb, 128)
        return [y[i * tb:(i + 1) * tb, :] for i in range(len(pairs))]

    aa = level2(xa, PAIRS_AA, waa_ref, 2)
    ab = level2(xa, PAIRS_AB, wab_ref, 3)
    ba = level2(xb, PAIRS_BA, wba_ref, 4)
    bb = level2(xb, PAIRS_BB, wbb_ref, 5)

    # ---- fc1: accumulate per segment (avoids one huge 7424-lane concat value).
    #      w1 rows were permuted at prep time to this (segment, position, channel) order.
    acc = jnp.zeros((tb, 256), f32)
    off = 0
    for chunks in (xa, xb, aa, ab, ba, bb):
        seg = jnp.concatenate(chunks, axis=1)                  # (tb, 128*npos) bf16
        acc = acc + mm(seg, w1_ref[off:off + seg.shape[1], :])
        off += seg.shape[1]
    h1 = relu_bf16(acc + b1_ref[...])                          # (tb, 256)

    # ---- fc2 (output padded to 128 lanes for a lane-dense, unmasked store)
    out_ref[...] = mm(h1, w2_ref[...]) + b2_ref[...]           # (tb, 128) f32


# ----------------------------------------------------------------------------
# One-time parameter preparation (PyTorch layout -> kernel layout, bf16).
# ----------------------------------------------------------------------------
def prepare_params(params):
    bf16 = jnp.bfloat16

    def conv_mat(w, pad_k=None):
        # (O, C, kh, kw) -> (kh*kw*C, O), matching the kernel's patch K-order.
        o, c, kh, kw = w.shape
        m = jnp.transpose(w, (2, 3, 1, 0)).reshape(kh * kw * c, o)
        if pad_k is not None and pad_k > m.shape[0]:
            m = jnp.pad(m, ((0, pad_k - m.shape[0]), (0, 0)))
        return m.astype(bf16)

    p = {
        "wa": conv_mat(params["conv_a_w"], pad_k=128),
        "wb": conv_mat(params["conv_b_w"], pad_k=128),
        "waa": conv_mat(params["conv_aa_w"]),
        "wab": conv_mat(params["conv_ab_w"]),
        "wba": conv_mat(params["conv_ba_w"]),
        "wbb": conv_mat(params["conv_bb_w"]),
        "b_conv": jnp.stack(
            [params["conv_a_b"], params["conv_b_b"], params["conv_aa_b"],
             params["conv_ab_b"], params["conv_ba_b"], params["conv_bb_b"]],
            axis=0).astype(jnp.float32),                       # (6, 128)
        "b1": params["fc1_b"].reshape(1, 256).astype(jnp.float32),
        "w2": jnp.zeros((256, 128), jnp.float32).at[:, :4]
                 .set(params["fc2_w"]).astype(bf16),           # N padded 4 -> 128
        "b2": jnp.zeros((1, 128), jnp.float32).at[0, :4].set(params["fc2_b"]),
    }

    # fc1 row permutation: PyTorch flattens each conv output NCHW
    # (index = c*HW + p); the kernel concatenates position-major (p*128 + c).
    perm, off = [], 0
    for hw in SEG_POSITIONS:
        pos = np.arange(hw)[:, None]
        ch = np.arange(128)[None, :]
        perm.append((off + ch * hw + pos).reshape(-1))
        off += hw * 128
    perm = np.concatenate(perm)
    p["w1"] = params["fc1_w"][perm, :].astype(bf16)            # (7424, 256)
    return p


# ----------------------------------------------------------------------------
# Forward pass: one fused pallas_call, gridded over the batch.
# ----------------------------------------------------------------------------
def dqn_forward(prep, x, *, tile_b=128):
    B = x.shape[0]
    tb = min(tile_b, _round_up(B, 16))      # batch tile (multiple of 16)
    Bp = _round_up(B, tb)
    nb = Bp // tb

    # Level-1 im2col on the tiny raw input (B*256 floats), laid out
    # position-major per batch tile, channel-last, K padded 32 -> 128.
    xh = jnp.transpose(x, (0, 2, 3, 1))                                   # (B,4,4,16)
    pa = jnp.concatenate([xh[:, :, 0:3, :], xh[:, :, 1:4, :]], axis=-1)   # (B,4,3,32)
    pb = jnp.concatenate([xh[:, 0:3, :, :], xh[:, 1:4, :, :]], axis=-1)   # (B,3,4,32)
    pa = pa.reshape(B, 12, 32)
    pb = pb.reshape(B, 12, 32)

    def tileify(p):
        p = jnp.pad(p, ((0, Bp - B), (0, 0), (0, 96)))                    # (Bp,12,128)
        p = p.reshape(nb, tb, 12, 128).transpose(0, 2, 1, 3)
        return p.reshape(nb, 12 * tb, 128).astype(jnp.bfloat16)

    pa, pb = tileify(pa), tileify(pb)

    def const(shape):
        return pl.BlockSpec(shape, lambda i: (0,) * len(shape))

    out = pl.pallas_call(
        functools.partial(_dqn_kernel, tb=tb),
        out_shape=jax.ShapeDtypeStruct((Bp, 128), jnp.float32),
        grid=(nb,),
        in_specs=[
            pl.BlockSpec((None, 12 * tb, 128), lambda i: (i, 0, 0)),      # pa
            pl.BlockSpec((None, 12 * tb, 128), lambda i: (i, 0, 0)),      # pb
            const((128, 128)), const((128, 128)),                         # wa, wb
            const((256, 128)), const((256, 128)),                         # waa, wab
            const((256, 128)), const((256, 128)),                         # wba, wbb
            const((6, 128)),                                              # conv biases
            const((FC1_IN, 256)), const((1, 256)),                        # fc1
            const((256, 128)), const((1, 128)),                           # fc2 (padded)
        ],
        out_specs=pl.BlockSpec((tb, 128), lambda i: (i, 0)),
        compiler_params=pltpu.CompilerParams(
            dimension_semantics=("parallel",),
            vmem_limit_bytes=48 * 1024 * 1024),
    )(pa, pb, prep["wa"], prep["wb"], prep["waa"], prep["wab"], prep["wba"],
      prep["wbb"], prep["b_conv"], prep["w1"], prep["b1"], prep["w2"], prep["b2"])

    return out[:B, :4]


# ----------------------------------------------------------------------------
# Pure-JAX reference that mirrors the PyTorch module structure (NCHW convs,
# NCHW flatten, unpermuted fc1) with matching bf16-operand / f32-accum numerics.
# ----------------------------------------------------------------------------
def _conv_relu_ref(x, w, b):
    y = jax.lax.conv_general_dilated(
        x.astype(jnp.bfloat16), w.astype(jnp.bfloat16), (1, 1), "VALID",
        dimension_numbers=("NCHW", "OIHW", "NCHW"),
        preferred_element_type=jnp.float32)
    return jnp.maximum(y + b[None, :, None, None], 0.0)


def dqn_forward_ref(params, x):
    bf16 = jnp.bfloat16
    x_a = _conv_relu_ref(x, params["conv_a_w"], params["conv_a_b"])
    x_b = _conv_relu_ref(x, params["conv_b_w"], params["conv_b_b"])
    x_aa = _conv_relu_ref(x_a, params["conv_aa_w"], params["conv_aa_b"])
    x_ab = _conv_relu_ref(x_a, params["conv_ab_w"], params["conv_ab_b"])
    x_ba = _conv_relu_ref(x_b, params["conv_ba_w"], params["conv_ba_b"])
    x_bb = _conv_relu_ref(x_b, params["conv_bb_w"], params["conv_bb_b"])
    B = x.shape[0]
    flat = lambda t: t.reshape(B, -1).astype(bf16)
    concat = jnp.concatenate(
        [flat(x_a), flat(x_b), flat(x_aa), flat(x_ab), flat(x_ba), flat(x_bb)],
        axis=1)                                                    # (B, 7424)
    h = jnp.dot(concat, params["fc1_w"].astype(bf16),
                preferred_element_type=jnp.float32) + params["fc1_b"]
    h = jnp.maximum(h, 0.0).astype(bf16)
    return jnp.dot(h, params["fc2_w"].astype(bf16),
                   preferred_element_type=jnp.float32) + params["fc2_b"]


# ----------------------------------------------------------------------------
# Deterministic parameter init (PyTorch-default-style uniform(-1/sqrt(fan_in))).
# ----------------------------------------------------------------------------
def init_params(key):
    def uni(k, shape, fan_in):
        bound = 1.0 / np.sqrt(fan_in)
        return jax.random.uniform(k, shape, jnp.float32, -bound, bound)

    keys = jax.random.split(key, 16)
    p = {}
    conv_defs = [
        ("conv_a", 16, 128, 1, 2), ("conv_b", 16, 128, 2, 1),
        ("conv_aa", 128, 128, 1, 2), ("conv_ab", 128, 128, 2, 1),
        ("conv_ba", 128, 128, 1, 2), ("conv_bb", 128, 128, 2, 1),
    ]
    ki = 0
    for name, cin, cout, kh, kw in conv_defs:
        fan_in = cin * kh * kw
        p[name + "_w"] = uni(keys[ki], (cout, cin, kh, kw), fan_in); ki += 1
        p[name + "_b"] = uni(keys[ki], (cout,), fan_in); ki += 1
    p["fc1_w"] = uni(keys[ki], (FC1_IN, 256), FC1_IN); ki += 1
    p["fc1_b"] = uni(keys[ki], (256,), FC1_IN); ki += 1
    p["fc2_w"] = uni(keys[ki], (256, 4), 256); ki += 1
    p["fc2_b"] = uni(keys[ki], (4,), 256); ki += 1
    return p


if __name__ == "__main__":
    key = jax.random.PRNGKey(0)
    k_params, k_x = jax.random.split(key)
    params = init_params(k_params)
    prep = prepare_params(params)          # one-time weight repack (bf16, permuted fc1)

    B = 2
    x = jax.random.normal(k_x, (B, 16, 4, 4), dtype=jnp.float32)

    out = jax.block_until_ready(jax.jit(dqn_forward)(prep, x))
    assert out.shape == (B, 4), out.shape

    ref = jax.block_until_ready(jax.jit(dqn_forward_ref)(params, x))
    np.testing.assert_allclose(np.asarray(out), np.asarray(ref),
                               rtol=1e-2, atol=1e-2)

    print("KERNEL_OK")
</pallas_src>

<mosaic_0001>
module attributes {stable_mosaic.version = 11 : i64} {
  func.func @_dqn_kernel(%arg0: i32, %arg1: memref<1x192x128xbf16, #tpu.memory_space<vmem>>, %arg2: memref<1x192x128xbf16, #tpu.memory_space<vmem>>, %arg3: memref<128x128xbf16, #tpu.memory_space<vmem>>, %arg4: memref<128x128xbf16, #tpu.memory_space<vmem>>, %arg5: memref<256x128xbf16, #tpu.memory_space<vmem>>, %arg6: memref<256x128xbf16, #tpu.memory_space<vmem>>, %arg7: memref<256x128xbf16, #tpu.memory_space<vmem>>, %arg8: memref<256x128xbf16, #tpu.memory_space<vmem>>, %arg9: memref<6x128xf32, #tpu.memory_space<vmem>>, %arg10: memref<7424x256xbf16, #tpu.memory_space<vmem>>, %arg11: memref<1x256xf32, #tpu.memory_space<vmem>>, %arg12: memref<256x128xbf16, #tpu.memory_space<vmem>>, %arg13: memref<1x128xf32, #tpu.memory_space<vmem>>, %arg14: memref<16x128xf32, #tpu.memory_space<vmem>>) attributes {dimension_semantics = [#tpu.dimension_semantics<parallel>], iteration_bounds = array<i64: 1>, scalar_prefetch = 0 : i64, scratch_operands = 0 : i64, tpu.core_type = #tpu.core_type<tc>, window_params = [{transform_indices = @transform_0, window_bounds = array<i64: 1, 192, 128>}, {transform_indices = @transform_1, window_bounds = array<i64: 1, 192, 128>}, {pipeline_mode = #tpu.pipeline_mode<synchronous>, transform_indices = @transform_2, window_bounds = array<i64: 128, 128>}, {pipeline_mode = #tpu.pipeline_mode<synchronous>, transform_indices = @transform_3, window_bounds = array<i64: 128, 128>}, {pipeline_mode = #tpu.pipeline_mode<synchronous>, transform_indices = @transform_4, window_bounds = array<i64: 256, 128>}, {pipeline_mode = #tpu.pipeline_mode<synchronous>, transform_indices = @transform_5, window_bounds = array<i64: 256, 128>}, {pipeline_mode = #tpu.pipeline_mode<synchronous>, transform_indices = @transform_6, window_bounds = array<i64: 256, 128>}, {pipeline_mode = #tpu.pipeline_mode<synchronous>, transform_indices = @transform_7, window_bounds = array<i64: 256, 128>}, {pipeline_mode = #tpu.pipeline_mode<synchronous>, transform_indices = @transform_8, window_bounds = array<i64: 6, 128>}, {pipeline_mode = #tpu.pipeline_mode<synchronous>, transform_indices = @transform_9, window_bounds = array<i64: 7424, 256>}, {pipeline_mode = #tpu.pipeline_mode<synchronous>, transform_indices = @transform_10, window_bounds = array<i64: 1, 256>}, {pipeline_mode = #tpu.pipeline_mode<synchronous>, transform_indices = @transform_11, window_bounds = array<i64: 256, 128>}, {pipeline_mode = #tpu.pipeline_mode<synchronous>, transform_indices = @transform_12, window_bounds = array<i64: 1, 128>}, {transform_indices = @transform_13, window_bounds = array<i64: 16, 128>}]} {
    %c0 = arith.constant 0 : index
    %c0_0 = arith.constant 0 : index
    %c0_1 = arith.constant 0 : index
    %0 = vector.load %arg1[%c0, %c0_0, %c0_1] : memref<1x192x128xbf16, #tpu.memory_space<vmem>>, vector<1x192x128xbf16>
    %1 = vector.shape_cast %0 : vector<1x192x128xbf16> to vector<192x128xbf16>
    %c0_2 = arith.constant 0 : index
    %c0_3 = arith.constant 0 : index
    %2 = vector.load %arg3[%c0_2, %c0_3] : memref<128x128xbf16, #tpu.memory_space<vmem>>, vector<128x128xbf16>
    %cst = arith.constant dense<0.000000e+00> : vector<192x128xf32>
    %3 = tpu.matmul %1, %2, %cst {dimension_numbers = #tpu.dot_dimension_numbers<[1], [0], [0], [1], [0, 0, 1, 1], [], []>} : vector<192x128xbf16>, vector<128x128xbf16>, vector<192x128xf32> -> vector<192x128xf32>
    %c0_4 = arith.constant 0 : index
    %c0_5 = arith.constant 0 : index
    %4 = vector.load %arg9[%c0_4, %c0_5] : memref<6x128xf32, #tpu.memory_space<vmem>>, vector<1x128xf32>
    %5 = vector.broadcast %4 : vector<1x128xf32> to vector<192x128xf32>
    %6 = arith.addf %3, %5 : vector<192x128xf32>
    %cst_6 = arith.constant 0.000000e+00 : f32
    %7 = vector.broadcast %cst_6 : f32 to vector<192x128xf32>
    %8 = arith.maximumf %6, %7 : vector<192x128xf32>
    %9 = arith.truncf %8 : vector<192x128xf32> to vector<192x128xbf16>
    %10 = vector.extract_strided_slice %9 {offsets = [0, 0], sizes = [16, 128], strides = [1, 1]} : vector<192x128xbf16> to vector<16x128xbf16>
    %11 = vector.extract_strided_slice %9 {offsets = [16, 0], sizes = [16, 128], strides = [1, 1]} : vector<192x128xbf16> to vector<16x128xbf16>
    %12 = vector.extract_strided_slice %9 {offsets = [32, 0], sizes = [16, 128], strides = [1, 1]} : vector<192x128xbf16> to vector<16x128xbf16>
    %13 = vector.extract_strided_slice %9 {offsets = [48, 0], sizes = [16, 128], strides = [1, 1]} : vector<192x128xbf16> to vector<16x128xbf16>
    %14 = vector.extract_strided_slice %9 {offsets = [64, 0], sizes = [16, 128], strides = [1, 1]} : vector<192x128xbf16> to vector<16x128xbf16>
    %15 = vector.extract_strided_slice %9 {offsets = [80, 0], sizes = [16, 128], strides = [1, 1]} : vector<192x128xbf16> to vector<16x128xbf16>
    %16 = vector.extract_strided_slice %9 {offsets = [96, 0], sizes = [16, 128], strides = [1, 1]} : vector<192x128xbf16> to vector<16x128xbf16>
    %17 = vector.extract_strided_slice %9 {offsets = [112, 0], sizes = [16, 128], strides = [1, 1]} : vector<192x128xbf16> to vector<16x128xbf16>
    %18 = vector.extract_strided_slice %9 {offsets = [128, 0], sizes = [16, 128], strides = [1, 1]} : vector<192x128xbf16> to vector<16x128xbf16>
    %19 = vector.extract_strided_slice %9 {offsets = [144, 0], sizes = [16, 128], strides = [1, 1]} : vector<192x128xbf16> to vector<16x128xbf16>
    %20 = vector.extract_strided_slice %9 {offsets = [160, 0], sizes = [16, 128], strides = [1, 1]} : vector<192x128xbf16> to vector<16x128xbf16>
    %21 = vector.extract_strided_slice %9 {offsets = [176, 0], sizes = [16, 128], strides = [1, 1]} : vector<192x128xbf16> to vector<16x128xbf16>
    %c0_7 = arith.constant 0 : index
    %c0_8 = arith.constant 0 : index
    %c0_9 = arith.constant 0 : index
    %22 = vector.load %arg2[%c0_7, %c0_8, %c0_9] : memref<1x192x128xbf16, #tpu.memory_space<vmem>>, vector<1x192x128xbf16>
    %23 = vector.shape_cast %22 : vector<1x192x128xbf16> to vector<192x128xbf16>
    %c0_10 = arith.constant 0 : index
    %c0_11 = arith.constant 0 : index
    %24 = vector.load %arg4[%c0_10, %c0_11] : memref<128x128xbf16, #tpu.memory_space<vmem>>, vector<128x128xbf16>
    %cst_12 = arith.constant dense<0.000000e+00> : vector<192x128xf32>
    %25 = tpu.matmul %23, %24, %cst_12 {dimension_numbers = #tpu.dot_dimension_numbers<[1], [0], [0], [1], [0, 0, 1, 1], [], []>} : vector<192x128xbf16>, vector<128x128xbf16>, vector<192x128xf32> -> vector<192x128xf32>
    %c1 = arith.constant 1 : index
    %c0_13 = arith.constant 0 : index
    %26 = vector.load %arg9[%c1, %c0_13] : memref<6x128xf32, #tpu.memory_space<vmem>>, vector<1x128xf32>
    %27 = vector.broadcast %26 : vector<1x128xf32> to vector<192x128xf32>
    %28 = arith.addf %25, %27 : vector<192x128xf32>
    %cst_14 = arith.constant 0.000000e+00 : f32
    %29 = vector.broadcast %cst_14 : f32 to vector<192x128xf32>
    %30 = arith.maximumf %28, %29 : vector<192x128xf32>
    %31 = arith.truncf %30 : vector<192x128xf32> to vector<192x128xbf16>
    %32 = vector.extract_strided_slice %31 {offsets = [0, 0], sizes = [16, 128], strides = [1, 1]} : vector<192x128xbf16> to vector<16x128xbf16>
    %33 = vector.extract_strided_slice %31 {offsets = [16, 0], sizes = [16, 128], strides = [1, 1]} : vector<192x128xbf16> to vector<16x128xbf16>
    %34 = vector.extract_strided_slice %31 {offsets = [32, 0], sizes = [16, 128], strides = [1, 1]} : vector<192x128xbf16> to vector<16x128xbf16>
    %35 = vector.extract_strided_slice %31 {offsets = [48, 0], sizes = [16, 128], strides = [1, 1]} : vector<192x128xbf16> to vector<16x128xbf16>
    %36 = vector.extract_strided_slice %31 {offsets = [64, 0], sizes = [16, 128], strides = [1, 1]} : vector<192x128xbf16> to vector<16x128xbf16>
    %37 = vector.extract_strided_slice %31 {offsets = [80, 0], sizes = [16, 128], strides = [1, 1]} : vector<192x128xbf16> to vector<16x128xbf16>
    %38 = vector.extract_strided_slice %31 {offsets = [96, 0], sizes = [16, 128], strides = [1, 1]} : vector<192x128xbf16> to vector<16x128xbf16>
    %39 = vector.extract_strided_slice %31 {offsets = [112, 0], sizes = [16, 128], strides = [1, 1]} : vector<192x128xbf16> to vector<16x128xbf16>
    %40 = vector.extract_strided_slice %31 {offsets = [128, 0], sizes = [16, 128], strides = [1, 1]} : vector<192x128xbf16> to vector<16x128xbf16>
    %41 = vector.extract_strided_slice %31 {offsets = [144, 0], sizes = [16, 128], strides = [1, 1]} : vector<192x128xbf16> to vector<16x128xbf16>
    %42 = vector.extract_strided_slice %31 {offsets = [160, 0], sizes = [16, 128], strides = [1, 1]} : vector<192x128xbf16> to vector<16x128xbf16>
    %43 = vector.extract_strided_slice %31 {offsets = [176, 0], sizes = [16, 128], strides = [1, 1]} : vector<192x128xbf16> to vector<16x128xbf16>
    %44 = tpu.concatenate %10, %11 in 1 : vector<16x128xbf16>, vector<16x128xbf16> -> vector<16x256xbf16>
    %45 = tpu.concatenate %11, %12 in 1 : vector<16x128xbf16>, vector<16x128xbf16> -> vector<16x256xbf16>
    %46 = tpu.concatenate %13, %14 in 1 : vector<16x128xbf16>, vector<16x128xbf16> -> vector<16x256xbf16>
    %47 = tpu.concatenate %14, %15 in 1 : vector<16x128xbf16>, vector<16x128xbf16> -> vector<16x256xbf16>
    %48 = tpu.concatenate %16, %17 in 1 : vector<16x128xbf16>, vector<16x128xbf16> -> vector<16x256xbf16>
    %49 = tpu.concatenate %17, %18 in 1 : vector<16x128xbf16>, vector<16x128xbf16> -> vector<16x256xbf16>
    %50 = tpu.concatenate %19, %20 in 1 : vector<16x128xbf16>, vector<16x128xbf16> -> vector<16x256xbf16>
    %51 = tpu.concatenate %20, %21 in 1 : vector<16x128xbf16>, vector<16x128xbf16> -> vector<16x256xbf16>
    %52 = tpu.concatenate %44, %45, %46, %47, %48, %49, %50, %51 in 0 : vector<16x256xbf16>, vector<16x256xbf16>, vector<16x256xbf16>, vector<16x256xbf16>, vector<16x256xbf16>, vector<16x256xbf16>, vector<16x256xbf16>, vector<16x256xbf16> -> vector<128x256xbf16>
    %c0_15 = arith.constant 0 : index
    %c0_16 = arith.constant 0 : index
    %53 = vector.load %arg5[%c0_15, %c0_16] : memref<256x128xbf16, #tpu.memory_space<vmem>>, vector<256x128xbf16>
    %cst_17 = arith.constant dense<0.000000e+00> : vector<128x128xf32>
    %54 = tpu.matmul %52, %53, %cst_17 {dimension_numbers = #tpu.dot_dimension_numbers<[1], [0], [0], [1], [0, 0, 1, 1], [], []>} : vector<128x256xbf16>, vector<256x128xbf16>, vector<128x128xf32> -> vector<128x128xf32>
    %c2 = arith.constant 2 : index
    %c0_18 = arith.constant 0 : index
    %55 = vector.load %arg9[%c2, %c0_18] : memref<6x128xf32, #tpu.memory_space<vmem>>, vector<1x128xf32>
    %56 = vector.broadcast %55 : vector<1x128xf32> to vector<128x128xf32>
    %57 = arith.addf %54, %56 : vector<128x128xf32>
    %cst_19 = arith.constant 0.000000e+00 : f32
    %58 = vector.broadcast %cst_19 : f32 to vector<128x128xf32>
    %59 = arith.maximumf %57, %58 : vector<128x128xf32>
    %60 = arith.truncf %59 : vector<128x128xf32> to vector<128x128xbf16>
    %61 = vector.extract_strided_slice %60 {offsets = [0, 0], sizes = [16, 128], strides = [1, 1]} : vector<128x128xbf16> to vector<16x128xbf16>
    %62 = vector.extract_strided_slice %60 {offsets = [16, 0], sizes = [16, 128], strides = [1, 1]} : vector<128x128xbf16> to vector<16x128xbf16>
    %63 = vector.extract_strided_slice %60 {offsets = [32, 0], sizes = [16, 128], strides = [1, 1]} : vector<128x128xbf16> to vector<16x128xbf16>
    %64 = vector.extract_strided_slice %60 {offsets = [48, 0], sizes = [16, 128], strides = [1, 1]} : vector<128x128xbf16> to vector<16x128xbf16>
    %65 = vector.extract_strided_slice %60 {offsets = [64, 0], sizes = [16, 128], strides = [1, 1]} : vector<128x128xbf16> to vector<16x128xbf16>
    %66 = vector.extract_strided_slice %60 {offsets = [80, 0], sizes = [16, 128], strides = [1, 1]} : vector<128x128xbf16> to vector<16x128xbf16>
    %67 = vector.extract_strided_slice %60 {offsets = [96, 0], sizes = [16, 128], strides = [1, 1]} : vector<128x128xbf16> to vector<16x128xbf16>
    %68 = vector.extract_strided_slice %60 {offsets = [112, 0], sizes = [16, 128], strides = [1, 1]} : vector<128x128xbf16> to vector<16x128xbf16>
    %69 = tpu.concatenate %10, %13 in 1 : vector<16x128xbf16>, vector<16x128xbf16> -> vector<16x256xbf16>
    %70 = tpu.concatenate %11, %14 in 1 : vector<16x128xbf16>, vector<16x128xbf16> -> vector<16x256xbf16>
    %71 = tpu.concatenate %12, %15 in 1 : vector<16x128xbf16>, vector<16x128xbf16> -> vector<16x256xbf16>
    %72 = tpu.concatenate %13, %16 in 1 : vector<16x128xbf16>, vector<16x128xbf16> -> vector<16x256xbf16>
    %73 = tpu.concatenate %14, %17 in 1 : vector<16x128xbf16>, vector<16x128xbf16> -> vector<16x256xbf16>
    %74 = tpu.concatenate %15, %18 in 1 : vector<16x128xbf16>, vector<16x128xbf16> -> vector<16x256xbf16>
    %75 = tpu.concatenate %16, %19 in 1 : vector<16x128xbf16>, vector<16x128xbf16> -> vector<16x256xbf16>
    %76 = tpu.concatenate %17, %20 in 1 : vector<16x128xbf16>, vector<16x128xbf16> -> vector<16x256xbf16>
    %77 = tpu.concatenate %18, %21 in 1 : vector<16x128xbf16>, vector<16x128xbf16> -> vector<16x256xbf16>
    %78 = tpu.concatenate %69, %70, %71, %72, %73, %74, %75, %76, %77 in 0 : vector<16x256xbf16>, vector<16x256xbf16>, vector<16x256xbf16>, vector<16x256xbf16>, vector<16x256xbf16>, vector<16x256xbf16>, vector<16x256xbf16>, vector<16x256xbf16>, vector<16x256xbf16> -> vector<144x256xbf16>
    %c0_20 = arith.constant 0 : index
    %c0_21 = arith.constant 0 : index
    %79 = vector.load %arg6[%c0_20, %c0_21] : memref<256x128xbf16, #tpu.memory_space<vmem>>, vector<256x128xbf16>
    %cst_22 = arith.constant dense<0.000000e+00> : vector<144x128xf32>
    %80 = tpu.matmul %78, %79, %cst_22 {dimension_numbers = #tpu.dot_dimension_numbers<[1], [0], [0], [1], [0, 0, 1, 1], [], []>} : vector<144x256xbf16>, vector<256x128xbf16>, vector<144x128xf32> -> vector<144x128xf32>
    %c3 = arith.constant 3 : index
    %c0_23 = arith.constant 0 : index
    %81 = vector.load %arg9[%c3, %c0_23] : memref<6x128xf32, #tpu.memory_space<vmem>>, vector<1x128xf32>
    %82 = vector.broadcast %81 : vector<1x128xf32> to vector<144x128xf32>
    %83 = arith.addf %80, %82 : vector<144x128xf32>
    %cst_24 = arith.constant 0.000000e+00 : f32
    %84 = vector.broadcast %cst_24 : f32 to vector<144x128xf32>
    %85 = arith.maximumf %83, %84 : vector<144x128xf32>
    %86 = arith.truncf %85 : vector<144x128xf32> to vector<144x128xbf16>
    %87 = vector.extract_strided_slice %86 {offsets = [0, 0], sizes = [16, 128], strides = [1, 1]} : vector<144x128xbf16> to vector<16x128xbf16>
    %88 = vector.extract_strided_slice %86 {offsets = [16, 0], sizes = [16, 128], strides = [1, 1]} : vector<144x128xbf16> to vector<16x128xbf16>
    %89 = vector.extract_strided_slice %86 {offsets = [32, 0], sizes = [16, 128], strides = [1, 1]} : vector<144x128xbf16> to vector<16x128xbf16>
    %90 = vector.extract_strided_slice %86 {offsets = [48, 0], sizes = [16, 128], strides = [1, 1]} : vector<144x128xbf16> to vector<16x128xbf16>
    %91 = vector.extract_strided_slice %86 {offsets = [64, 0], sizes = [16, 128], strides = [1, 1]} : vector<144x128xbf16> to vector<16x128xbf16>
    %92 = vector.extract_strided_slice %86 {offsets = [80, 0], sizes = [16, 128], strides = [1, 1]} : vector<144x128xbf16> to vector<16x128xbf16>
    %93 = vector.extract_strided_slice %86 {offsets = [96, 0], sizes = [16, 128], strides = [1, 1]} : vector<144x128xbf16> to vector<16x128xbf16>
    %94 = vector.extract_strided_slice %86 {offsets = [112, 0], sizes = [16, 128], strides = [1, 1]} : vector<144x128xbf16> to vector<16x128xbf16>
    %95 = vector.extract_strided_slice %86 {offsets = [128, 0], sizes = [16, 128], strides = [1, 1]} : vector<144x128xbf16> to vector<16x128xbf16>
    %96 = tpu.concatenate %32, %33 in 1 : vector<16x128xbf16>, vector<16x128xbf16> -> vector<16x256xbf16>
    %97 = tpu.concatenate %33, %34 in 1 : vector<16x128xbf16>, vector<16x128xbf16> -> vector<16x256xbf16>
    %98 = tpu.concatenate %34, %35 in 1 : vector<16x128xbf16>, vector<16x128xbf16> -> vector<16x256xbf16>
    %99 = tpu.concatenate %36, %37 in 1 : vector<16x128xbf16>, vector<16x128xbf16> -> vector<16x256xbf16>
    %100 = tpu.concatenate %37, %38 in 1 : vector<16x128xbf16>, vector<16x128xbf16> -> vector<16x256xbf16>
    %101 = tpu.concatenate %38, %39 in 1 : vector<16x128xbf16>, vector<16x128xbf16> -> vector<16x256xbf16>
    %102 = tpu.concatenate %40, %41 in 1 : vector<16x128xbf16>, vector<16x128xbf16> -> vector<16x256xbf16>
    %103 = tpu.concatenate %41, %42 in 1 : vector<16x128xbf16>, vector<16x128xbf16> -> vector<16x256xbf16>
    %104 = tpu.concatenate %42, %43 in 1 : vector<16x128xbf16>, vector<16x128xbf16> -> vector<16x256xbf16>
    %105 = tpu.concatenate %96, %97, %98, %99, %100, %101, %102, %103, %104 in 0 : vector<16x256xbf16>, vector<16x256xbf16>, vector<16x256xbf16>, vector<16x256xbf16>, vector<16x256xbf16>, vector<16x256xbf16>, vector<16x256xbf16>, vector<16x256xbf16>, vector<16x256xbf16> -> vector<144x256xbf16>
    %c0_25 = arith.constant 0 : index
    %c0_26 = arith.constant 0 : index
    %106 = vector.load %arg7[%c0_25, %c0_26] : memref<256x128xbf16, #tpu.memory_space<vmem>>, vector<256x128xbf16>
    %cst_27 = arith.constant dense<0.000000e+00> : vector<144x128xf32>
    %107 = tpu.matmul %105, %106, %cst_27 {dimension_numbers = #tpu.dot_dimension_numbers<[1], [0], [0], [1], [0, 0, 1, 1], [], []>} : vector<144x256xbf16>, vector<256x128xbf16>, vector<144x128xf32> -> vector<144x128xf32>
    %c4 = arith.constant 4 : index
    %c0_28 = arith.constant 0 : index
    %108 = vector.load %arg9[%c4, %c0_28] : memref<6x128xf32, #tpu.memory_space<vmem>>, vector<1x128xf32>
    %109 = vector.broadcast %108 : vector<1x128xf32> to vector<144x128xf32>
    %110 = arith.addf %107, %109 : vector<144x128xf32>
    %cst_29 = arith.constant 0.000000e+00 : f32
    %111 = vector.broadcast %cst_29 : f32 to vector<144x128xf32>
    %112 = arith.maximumf %110, %111 : vector<144x128xf32>
    %113 = arith.truncf %112 : vector<144x128xf32> to vector<144x128xbf16>
    %114 = vector.extract_strided_slice %113 {offsets = [0, 0], sizes = [16, 128], strides = [1, 1]} : vector<144x128xbf16> to vector<16x128xbf16>
    %115 = vector.extract_strided_slice %113 {offsets = [16, 0], sizes = [16, 128], strides = [1, 1]} : vector<144x128xbf16> to vector<16x128xbf16>
    %116 = vector.extract_strided_slice %113 {offsets = [32, 0], sizes = [16, 128], strides = [1, 1]} : vector<144x128xbf16> to vector<16x128xbf16>
    %117 = vector.extract_strided_slice %113 {offsets = [48, 0], sizes = [16, 128], strides = [1, 1]} : vector<144x128xbf16> to vector<16x128xbf16>
    %118 = vector.extract_strided_slice %113 {offsets = [64, 0], sizes = [16, 128], strides = [1, 1]} : vector<144x128xbf16> to vector<16x128xbf16>
    %119 = vector.extract_strided_slice %113 {offsets = [80, 0], sizes = [16, 128], strides = [1, 1]} : vector<144x128xbf16> to vector<16x128xbf16>
    %120 = vector.extract_strided_slice %113 {offsets = [96, 0], sizes = [16, 128], strides = [1, 1]} : vector<144x128xbf16> to vector<16x128xbf16>
    %121 = vector.extract_strided_slice %113 {offsets = [112, 0], sizes = [16, 128], strides = [1, 1]} : vector<144x128xbf16> to vector<16x128xbf16>
    %122 = vector.extract_strided_slice %113 {offsets = [128, 0], sizes = [16, 128], strides = [1, 1]} : vector<144x128xbf16> to vector<16x128xbf16>
    %123 = tpu.concatenate %32, %36 in 1 : vector<16x128xbf16>, vector<16x128xbf16> -> vector<16x256xbf16>
    %124 = tpu.concatenate %33, %37 in 1 : vector<16x128xbf16>, vector<16x128xbf16> -> vector<16x256xbf16>
    %125 = tpu.concatenate %34, %38 in 1 : vector<16x128xbf16>, vector<16x128xbf16> -> vector<16x256xbf16>
    %126 = tpu.concatenate %35, %39 in 1 : vector<16x128xbf16>, vector<16x128xbf16> -> vector<16x256xbf16>
    %127 = tpu.concatenate %36, %40 in 1 : vector<16x128xbf16>, vector<16x128xbf16> -> vector<16x256xbf16>
    %128 = tpu.concatenate %37, %41 in 1 : vector<16x128xbf16>, vector<16x128xbf16> -> vector<16x256xbf16>
    %129 = tpu.concatenate %38, %42 in 1 : vector<16x128xbf16>, vector<16x128xbf16> -> vector<16x256xbf16>
    %130 = tpu.concatenate %39, %43 in 1 : vector<16x128xbf16>, vector<16x128xbf16> -> vector<16x256xbf16>
    %131 = tpu.concatenate %123, %124, %125, %126, %127, %128, %129, %130 in 0 : vector<16x256xbf16>, vector<16x256xbf16>, vector<16x256xbf16>, vector<16x256xbf16>, vector<16x256xbf16>, vector<16x256xbf16>, vector<16x256xbf16>, vector<16x256xbf16> -> vector<128x256xbf16>
    %c0_30 = arith.constant 0 : index
    %c0_31 = arith.constant 0 : index
    %132 = vector.load %arg8[%c0_30, %c0_31] : memref<256x128xbf16, #tpu.memory_space<vmem>>, vector<256x128xbf16>
    %cst_32 = arith.constant dense<0.000000e+00> : vector<128x128xf32>
    %133 = tpu.matmul %131, %132, %cst_32 {dimension_numbers = #tpu.dot_dimension_numbers<[1], [0], [0], [1], [0, 0, 1, 1], [], []>} : vector<128x256xbf16>, vector<256x128xbf16>, vector<128x128xf32> -> vector<128x128xf32>
    %c5 = arith.constant 5 : index
    %c0_33 = arith.constant 0 : index
    %134 = vector.load %arg9[%c5, %c0_33] : memref<6x128xf32, #tpu.memory_space<vmem>>, vector<1x128xf32>
    %135 = vector.broadcast %134 : vector<1x128xf32> to vector<128x128xf32>
    %136 = arith.addf %133, %135 : vector<128x128xf32>
    %cst_34 = arith.constant 0.000000e+00 : f32
    %137 = vector.broadcast %cst_34 : f32 to vector<128x128xf32>
    %138 = arith.maximumf %136, %137 : vector<128x128xf32>
    %139 = arith.truncf %138 : vector<128x128xf32> to vector<128x128xbf16>
    %140 = vector.extract_strided_slice %139 {offsets = [0, 0], sizes = [16, 128], strides = [1, 1]} : vector<128x128xbf16> to vector<16x128xbf16>
    %141 = vector.extract_strided_slice %139 {offsets = [16, 0], sizes = [16, 128], strides = [1, 1]} : vector<128x128xbf16> to vector<16x128xbf16>
    %142 = vector.extract_strided_slice %139 {offsets = [32, 0], sizes = [16, 128], strides = [1, 1]} : vector<128x128xbf16> to vector<16x128xbf16>
    %143 = vector.extract_strided_slice %139 {offsets = [48, 0], sizes = [16, 128], strides = [1, 1]} : vector<128x128xbf16> to vector<16x128xbf16>
    %144 = vector.extract_strided_slice %139 {offsets = [64, 0], sizes = [16, 128], strides = [1, 1]} : vector<128x128xbf16> to vector<16x128xbf16>
    %145 = vector.extract_strided_slice %139 {offsets = [80, 0], sizes = [16, 128], strides = [1, 1]} : vector<128x128xbf16> to vector<16x128xbf16>
    %146 = vector.extract_strided_slice %139 {offsets = [96, 0], sizes = [16, 128], strides = [1, 1]} : vector<128x128xbf16> to vector<16x128xbf16>
    %147 = vector.extract_strided_slice %139 {offsets = [112, 0], sizes = [16, 128], strides = [1, 1]} : vector<128x128xbf16> to vector<16x128xbf16>
    %cst_35 = arith.constant 0.000000e+00 : f32
    %148 = vector.broadcast %cst_35 : f32 to vector<16x256xf32>
    %149 = tpu.concatenate %10, %11, %12, %13, %14, %15, %16, %17, %18, %19, %20, %21 in 1 : vector<16x128xbf16>, vector<16x128xbf16>, vector<16x128xbf16>, vector<16x128xbf16>, vector<16x128xbf16>, vector<16x128xbf16>, vector<16x128xbf16>, vector<16x128xbf16>, vector<16x128xbf16>, vector<16x128xbf16>, vector<16x128xbf16>, vector<16x128xbf16> -> vector<16x1536xbf16>
    %c0_36 = arith.constant 0 : index
    %c0_37 = arith.constant 0 : index
    %150 = vector.load %arg10[%c0_36, %c0_37] : memref<7424x256xbf16, #tpu.memory_space<vmem>>, vector<1536x256xbf16>
    %cst_38 = arith.constant dense<0.000000e+00> : vector<16x256xf32>
    %151 = tpu.matmul %149, %150, %cst_38 {dimension_numbers = #tpu.dot_dimension_numbers<[1], [0], [0], [1], [0, 0, 1, 1], [], []>} : vector<16x1536xbf16>, vector<1536x256xbf16>, vector<16x256xf32> -> vector<16x256xf32>
    %152 = arith.addf %148, %151 : vector<16x256xf32>
    %153 = tpu.concatenate %32, %33, %34, %35, %36, %37, %38, %39, %40, %41, %42, %43 in 1 : vector<16x128xbf16>, vector<16x128xbf16>, vector<16x128xbf16>, vector<16x128xbf16>, vector<16x128xbf16>, vector<16x128xbf16>, vector<16x128xbf16>, vector<16x128xbf16>, vector<16x128xbf16>, vector<16x128xbf16>, vector<16x128xbf16>, vector<16x128xbf16> -> vector<16x1536xbf16>
    %c1536 = arith.constant 1536 : index
    %c0_39 = arith.constant 0 : index
    %154 = vector.load %arg10[%c1536, %c0_39] : memref<7424x256xbf16, #tpu.memory_space<vmem>>, vector<1536x256xbf16>
    %cst_40 = arith.constant dense<0.000000e+00> : vector<16x256xf32>
    %155 = tpu.matmul %153, %154, %cst_40 {dimension_numbers = #tpu.dot_dimension_numbers<[1], [0], [0], [1], [0, 0, 1, 1], [], []>} : vector<16x1536xbf16>, vector<1536x256xbf16>, vector<16x256xf32> -> vector<16x256xf32>
    %156 = arith.addf %152, %155 : vector<16x256xf32>
    %157 = tpu.concatenate %61, %62, %63, %64, %65, %66, %67, %68 in 1 : vector<16x128xbf16>, vector<16x128xbf16>, vector<16x128xbf16>, vector<16x128xbf16>, vector<16x128xbf16>, vector<16x128xbf16>, vector<16x128xbf16>, vector<16x128xbf16> -> vector<16x1024xbf16>
    %c3072 = arith.constant 3072 : index
    %c0_41 = arith.constant 0 : index
    %158 = vector.load %arg10[%c3072, %c0_41] : memref<7424x256xbf16, #tpu.memory_space<vmem>>, vector<1024x256xbf16>
    %cst_42 = arith.constant dense<0.000000e+00> : vector<16x256xf32>
    %159 = tpu.matmul %157, %158, %cst_42 {dimension_numbers = #tpu.dot_dimension_numbers<[1], [0], [0], [1], [0, 0, 1, 1], [], []>} : vector<16x1024xbf16>, vector<1024x256xbf16>, vector<16x256xf32> -> vector<16x256xf32>
    %160 = arith.addf %156, %159 : vector<16x256xf32>
    %161 = tpu.concatenate %87, %88, %89, %90, %91, %92, %93, %94, %95 in 1 : vector<16x128xbf16>, vector<16x128xbf16>, vector<16x128xbf16>, vector<16x128xbf16>, vector<16x128xbf16>, vector<16x128xbf16>, vector<16x128xbf16>, vector<16x128xbf16>, vector<16x128xbf16> -> vector<16x1152xbf16>
    %c4096 = arith.constant 4096 : index
    %c0_43 = arith.constant 0 : index
    %162 = vector.load %arg10[%c4096, %c0_43] : memref<7424x256xbf16, #tpu.memory_space<vmem>>, vector<1152x256xbf16>
    %cst_44 = arith.constant dense<0.000000e+00> : vector<16x256xf32>
    %163 = tpu.matmul %161, %162, %cst_44 {dimension_numbers = #tpu.dot_dimension_numbers<[1], [0], [0], [1], [0, 0, 1, 1], [], []>} : vector<16x1152xbf16>, vector<1152x256xbf16>, vector<16x256xf32> -> vector<16x256xf32>
    %164 = arith.addf %160, %163 : vector<16x256xf32>
    %165 = tpu.concatenate %114, %115, %116, %117, %118, %119, %120, %121, %122 in 1 : vector<16x128xbf16>, vector<16x128xbf16>, vector<16x128xbf16>, vector<16x128xbf16>, vector<16x128xbf16>, vector<16x128xbf16>, vector<16x128xbf16>, vector<16x128xbf16>, vector<16x128xbf16> -> vector<16x1152xbf16>
    %c5248 = arith.constant 5248 : index
    %c0_45 = arith.constant 0 : index
    %166 = vector.load %arg10[%c5248, %c0_45] : memref<7424x256xbf16, #tpu.memory_space<vmem>>, vector<1152x256xbf16>
    %cst_46 = arith.constant dense<0.000000e+00> : vector<16x256xf32>
    %167 = tpu.matmul %165, %166, %cst_46 {dimension_numbers = #tpu.dot_dimension_numbers<[1], [0], [0], [1], [0, 0, 1, 1], [], []>} : vector<16x1152xbf16>, vector<1152x256xbf16>, vector<16x256xf32> -> vector<16x256xf32>
    %168 = arith.addf %164, %167 : vector<16x256xf32>
    %169 = tpu.concatenate %140, %141, %142, %143, %144, %145, %146, %147 in 1 : vector<16x128xbf16>, vector<16x128xbf16>, vector<16x128xbf16>, vector<16x128xbf16>, vector<16x128xbf16>, vector<16x128xbf16>, vector<16x128xbf16>, vector<16x128xbf16> -> vector<16x1024xbf16>
    %c6400 = arith.constant 6400 : index
    %c0_47 = arith.constant 0 : index
    %170 = vector.load %arg10[%c6400, %c0_47] : memref<7424x256xbf16, #tpu.memory_space<vmem>>, vector<1024x256xbf16>
    %cst_48 = arith.constant dense<0.000000e+00> : vector<16x256xf32>
    %171 = tpu.matmul %169, %170, %cst_48 {dimension_numbers = #tpu.dot_dimension_numbers<[1], [0], [0], [1], [0, 0, 1, 1], [], []>} : vector<16x1024xbf16>, vector<1024x256xbf16>, vector<16x256xf32> -> vector<16x256xf32>
    %172 = arith.addf %168, %171 : vector<16x256xf32>
    %c0_49 = arith.constant 0 : index
    %c0_50 = arith.constant 0 : index
    %173 = vector.load %arg11[%c0_49, %c0_50] : memref<1x256xf32, #tpu.memory_space<vmem>>, vector<1x256xf32>
    %174 = vector.broadcast %173 : vector<1x256xf32> to vector<16x256xf32>
    %175 = arith.addf %172, %174 : vector<16x256xf32>
    %cst_51 = arith.constant 0.000000e+00 : f32
    %176 = vector.broadcast %cst_51 : f32 to vector<16x256xf32>
    %177 = arith.maximumf %175, %176 : vector<16x256xf32>
    %178 = arith.truncf %177 : vector<16x256xf32> to vector<16x256xbf16>
    %c0_52 = arith.constant 0 : index
    %c0_53 = arith.constant 0 : index
    %179 = vector.load %arg12[%c0_52, %c0_53] : memref<256x128xbf16, #tpu.memory_space<vmem>>, vector<256x128xbf16>
    %cst_54 = arith.constant dense<0.000000e+00> : vector<16x128xf32>
    %180 = tpu.matmul %178, %179, %cst_54 {dimension_numbers = #tpu.dot_dimension_numbers<[1], [0], [0], [1], [0, 0, 1, 1], [], []>} : vector<16x256xbf16>, vector<256x128xbf16>, vector<16x128xf32> -> vector<16x128xf32>
    %c0_55 = arith.constant 0 : index
    %c0_56 = arith.constant 0 : index
    %181 = vector.load %arg13[%c0_55, %c0_56] : memref<1x128xf32, #tpu.memory_space<vmem>>, vector<1x128xf32>
    %182 = vector.broadcast %181 : vector<1x128xf32> to vector<16x128xf32>
    %183 = arith.addf %180, %182 : vector<16x128xf32>
    %c0_57 = arith.constant 0 : index
    %c0_58 = arith.constant 0 : index
    %184 = vector.load %arg14[%c0_57, %c0_58] : memref<16x128xf32, #tpu.memory_space<vmem>>, vector<16x128xf32>
    tpu.vector_store %arg14[%c0_57, %c0_58], %183 {strides = array<i32>} : memref<16x128xf32, #tpu.memory_space<vmem>>, vector<16x128xf32>,
    return
  }
  func.func @transform_0(%arg0: i32) -> (i32, i32, i32) {
    %c0_i32 = arith.constant 0 : i32
    %c0_i32_0 = arith.constant 0 : i32
    %c0_i32_1 = arith.constant 0 : i32
    return %arg0, %c0_i32, %c0_i32_0 : i32, i32, i32
  }
  func.func @transform_1(%arg0: i32) -> (i32, i32, i32) {
    %c0_i32 = arith.constant 0 : i32
    %c0_i32_0 = arith.constant 0 : i32
    %c0_i32_1 = arith.constant 0 : i32
    return %arg0, %c0_i32, %c0_i32_0 : i32, i32, i32
  }
  func.func @transform_2(%arg0: i32) -> (i32, i32) {
    %c0_i32 = arith.constant 0 : i32
    %c0_i32_0 = arith.constant 0 : i32
    %c0_i32_1 = arith.constant 0 : i32
    return %c0_i32, %c0_i32_0 : i32, i32
  }
  func.func @transform_3(%arg0: i32) -> (i32, i32) {
    %c0_i32 = arith.constant 0 : i32
    %c0_i32_0 = arith.constant 0 : i32
    %c0_i32_1 = arith.constant 0 : i32
    return %c0_i32, %c0_i32_0 : i32, i32
  }
  func.func @transform_4(%arg0: i32) -> (i32, i32) {
    %c0_i32 = arith.constant 0 : i32
    %c0_i32_0 = arith.constant 0 : i32
    %c0_i32_1 = arith.constant 0 : i32
    return %c0_i32, %c0_i32_0 : i32, i32
  }
  func.func @transform_5(%arg0: i32) -> (i32, i32) {
    %c0_i32 = arith.constant 0 : i32
    %c0_i32_0 = arith.constant 0 : i32
    %c0_i32_1 = arith.constant 0 : i32
    return %c0_i32, %c0_i32_0 : i32, i32
  }
  func.func @transform_6(%arg0: i32) -> (i32, i32) {
    %c0_i32 = arith.constant 0 : i32
    %c0_i32_0 = arith.constant 0 : i32
    %c0_i32_1 = arith.constant 0 : i32
    return %c0_i32, %c0_i32_0 : i32, i32
  }
  func.func @transform_7(%arg0: i32) -> (i32, i32) {
    %c0_i32 = arith.constant 0 : i32
    %c0_i32_0 = arith.constant 0 : i32
    %c0_i32_1 = arith.constant 0 : i32
    return %c0_i32, %c0_i32_0 : i32, i32
  }
  func.func @transform_8(%arg0: i32) -> (i32, i32) {
    %c0_i32 = arith.constant 0 : i32
    %c0_i32_0 = arith.constant 0 : i32
    %c0_i32_1 = arith.constant 0 : i32
    return %c0_i32, %c0_i32_0 : i32, i32
  }
  func.func @transform_9(%arg0: i32) -> (i32, i32) {
    %c0_i32 = arith.constant 0 : i32
    %c0_i32_0 = arith.constant 0 : i32
    %c0_i32_1 = arith.constant 0 : i32
    return %c0_i32, %c0_i32_0 : i32, i32
  }
  func.func @transform_10(%arg0: i32) -> (i32, i32) {
    %c0_i32 = arith.constant 0 : i32
    %c0_i32_0 = arith.constant 0 : i32
    %c0_i32_1 = arith.constant 0 : i32
    return %c0_i32, %c0_i32_0 : i32, i32
  }
  func.func @transform_11(%arg0: i32) -> (i32, i32) {
    %c0_i32 = arith.constant 0 : i32
    %c0_i32_0 = arith.constant 0 : i32
    %c0_i32_1 = arith.constant 0 : i32
    return %c0_i32, %c0_i32_0 : i32, i32
  }
  func.func @transform_12(%arg0: i32) -> (i32, i32) {
    %c0_i32 = arith.constant 0 : i32
    %c0_i32_0 = arith.constant 0 : i32
    %c0_i32_1 = arith.constant 0 : i32
    return %c0_i32, %c0_i32_0 : i32, i32
  }
  func.func @transform_13(%arg0: i32) -> (i32, i32) {
    %c0_i32 = arith.constant 0 : i32
    %c0_i32_0 = arith.constant 0 : i32
    return %arg0, %c0_i32 : i32, i32
  }
}

</mosaic_0001>

<bundles_post_ra>
// kernel: dqn_forward.1
= control target key start
LH: loop header
LB: loop body
LE: loop exit
PB: predicated region body
PF: predicated region fallthrough
CT: control target
= control target key end

     0   :  { %18 = vsyncpa [#allocation3], 0  ;;  %s16426_s0 = inlined_call_operand.vmem [shape: bf16[1,192,128], index: 0, kind: input, shape index: {}]   ;;  %s16427_s1 = inlined_call_operand.vmem [shape: bf16[1,192,128], index: 1, kind: input, shape index: {}]   ;;  %s16428_s2 = inlined_call_operand.hbm [shape: bf16[128,128], index: 2, kind: input, shape index: {}]   ;;  %s16429_s3 = inlined_call_operand.hbm [shape: bf16[128,128], index: 3, kind: input, shape index: {}]   ;;  %s16430_s4 = inlined_call_operand.hbm [shape: bf16[256,128], index: 4, kind: input, shape index: {}]   ;;  %s16431_s5 = inlined_call_operand.hbm [shape: bf16[256,128], index: 5, kind: input, shape index: {}]   ;;  %s16432_s6 = inlined_call_operand.hbm [shape: bf16[256,128], index: 6, kind: input, shape index: {}]   ;;  %s16433_s7 = inlined_call_operand.hbm [shape: bf16[256,128], index: 7, kind: input, shape index: {}]   ;;  %s16434_s8 = inlined_call_operand.hbm [shape: f32[6,128], index: 8, kind: input, shape index: {}]   ;;  %s16435_s9 = inlined_call_operand.hbm [shape: bf16[7424,256], index: 9, kind: input, shape index: {}]   ;;  %s16436_s10 = inlined_call_operand.hbm [shape: f32[1,256], index: 10, kind: input, shape index: {}]   ;;  %s16437_s11 = inlined_call_operand.hbm [shape: bf16[256,128], index: 11, kind: input, shape index: {}]   ;;  %s16438_s12 = inlined_call_operand.hbm [shape: f32[1,128], index: 12, kind: input, shape index: {}]   ;;  %s16439_s13 = inlined_call_operand.vmem [shape: f32[16,128], index: 13, kind: output, shape index: {}]  }
   0x1   :  { %19 = vsyncpa [#allocation5], 0 }
   0x2   :  { %20 = vsyncpa [#allocation8], 0 }
   0x3   :  { %21 = vsyncpa [#allocation11], 0 }
   0x4   :  { %22 = vsyncpa [#allocation14], 0 }
   0x5   :  { %23 = vsyncpa [#allocation17], 0  ;;  %s45_s27 = sshll.u32 %s16429_s3, 4  ;;  %s15127_s28 = smov [#allocation4]   ;;  %s46_s27 = int_to_ptr.hbm [resolvable:$true] %s45_s27 }
   0x6   :  { %s47_s29 = sshll.u32 %s15127_s28, 4  ;;  %s71_s15 = sshll.u32 %s16431_s5, 4  ;;  %s48_s29 = int_to_ptr.vmem [resolvable:$true] %s47_s29  ;;  %s72_s15 = int_to_ptr.hbm [resolvable:$true] %s71_s15 }
   0x7   :  { %s15128_s16 = smov 64   ;;  %s15129_s17 = smov 4  }
   0x8   :  { %53 = dma.hbm_to_vmem [thread:$0]  %s46_s27, 1024, %s48_s29, [#allocation5], %s15128_s16, %s15128_s16, %s15129_s17  }
   0x9   :  { %s15130_s18 = smov [#allocation7]   ;;  %s97_s3 = sshll.u32 %s16433_s7, 4  ;;  %s98_s3 = int_to_ptr.hbm [resolvable:$true] %s97_s3 }
   0xa   :  { %s73_s19 = sshll.u32 %s15130_s18, 4  ;;  %s121_s23 = sshll.u32 %s16435_s9, 4  ;;  %s74_s19 = int_to_ptr.vmem [resolvable:$true] %s73_s19  ;;  %s122_s23 = int_to_ptr.hbm [resolvable:$true] %s121_s23 }
   0xb   :  { %79 = dma.hbm_to_vmem [thread:$0]  %s72_s15, 2048, %s74_s19, [#allocation8], %s15128_s16, %s15128_s16, %s15129_s17  }
   0xc   :  { %s15131_s24 = smov [#allocation10]   ;;  %s15132_s26 = smov [#allocation13]  }
   0xd   :  { %s99_s25 = sshll.u32 %s15131_s24, 4  ;;  %s123_s7 = sshll.u32 %s15132_s26, 4  ;;  %s100_s25 = int_to_ptr.vmem [resolvable:$true] %s99_s25  ;;  %s124_s7 = int_to_ptr.vmem [resolvable:$true] %s123_s7 }
   0xe   :  { %105 = dma.hbm_to_vmem [thread:$0]  %s98_s3, 2048, %s100_s25, [#allocation11], %s15128_s16, %s15128_s16, %s15129_s17  }
   0xf   :  { %s15133_s27 = smov 128   ;;  %s15134_s28 = smov 8  }
  0x10   :  { %129 = dma.hbm_to_vmem [thread:$0]  %s122_s23, 118784, %s124_s7, [#allocation14], %s15133_s27, %s15133_s27, %s15134_s28  }
  0x11   :  { %s145_s14 = sshll.u32 %s16437_s11, 4  ;;  %s15135_s9 = smov [#allocation16]   ;;  %s146_s14 = int_to_ptr.hbm [resolvable:$true] %s145_s14 }
  0x12   :  { %s147_s15 = sshll.u32 %s15135_s9, 4  ;;  %s32_s20 = sshll.u32 %s16428_s2, 4  ;;  %s148_s15 = int_to_ptr.vmem [resolvable:$true] %s147_s15  ;;  %s33_s20 = int_to_ptr.hbm [resolvable:$true] %s32_s20 }
  0x13   :  { %153 = dma.hbm_to_vmem [thread:$0]  %s146_s14, 2048, %s148_s15, [#allocation17], %s15128_s16, %s15128_s16, %s15129_s17  }
  0x14   :  { %s15136_s21 = smov [#allocation2]   ;;  %s58_s23 = sshll.u32 %s16430_s4, 4  ;;  %s59_s23 = int_to_ptr.hbm [resolvable:$true] %s58_s23 }
  0x15   :  { %s34_s3 = sshll.u32 %s15136_s21, 4  ;;  %s84_s2 = sshll.u32 %s16432_s6, 4  ;;  %s35_s3 = int_to_ptr.vmem [resolvable:$true] %s34_s3  ;;  %s85_s2 = int_to_ptr.hbm [resolvable:$true] %s84_s2 }
  0x16   :  { %40 = dma.hbm_to_vmem [thread:$0]  %s33_s20, 1024, %s35_s3, [#allocation3], %s15128_s16, %s15128_s16, %s15129_s17  }
  0x17   :  { %s15137_s25 = smov [#allocation6]   ;;  %s15138_s7 = smov [#allocation9]  }
  0x18   :  { %s60_s26 = sshll.u32 %s15137_s25, 4  ;;  %s86_s4 = sshll.u32 %s15138_s7, 4  ;;  %s61_s26 = int_to_ptr.vmem [resolvable:$true] %s60_s26  ;;  %s87_s4 = int_to_ptr.vmem [resolvable:$true] %s86_s4 }
  0x19   :  { %66 = dma.hbm_to_vmem [thread:$0]  %s59_s23, 2048, %s61_s26, [#allocation5], %s15128_s16, %s15128_s16, %s15129_s17  }
  0x1a   :  { %s111_s29 = sshll.u32 %s16434_s8, 4  ;;  %s135_s14 = sshll.u32 %s16436_s10, 4  ;;  %s112_s29 = int_to_ptr.hbm [resolvable:$true] %s111_s29  ;;  %s136_s14 = int_to_ptr.hbm [resolvable:$true] %s135_s14 }
  0x1b   :  { %92 = dma.hbm_to_vmem [thread:$0]  %s85_s2, 2048, %s87_s4, [#allocation8], %s15128_s16, %s15128_s16, %s15129_s17  }
  0x1c   :  { %s15139_s9 = smov [#allocation12]   ;;  %s15140_s18 = smov [#allocation15]  }
  0x1d   :  { %s113_s15 = sshll.u32 %s15139_s9, 4  ;;  %s137_s19 = sshll.u32 %s15140_s18, 4  ;;  %s114_s15 = int_to_ptr.vmem [resolvable:$true] %s113_s15  ;;  %s138_s19 = int_to_ptr.vmem [resolvable:$true] %s137_s19 }
  0x1e   :  { %116 = dma.hbm_to_vmem [thread:$0]  %s112_s29, 128, %s114_s15, [#allocation11]  }
  0x1f   :  { %s159_s8 = sshll.u32 %s16438_s12, 4  ;;  %s15141_s3 = smov [#allocation18]   ;;  %s160_s8 = int_to_ptr.hbm [resolvable:$true] %s159_s8 }
  0x20   :  { %140 = dma.hbm_to_vmem [thread:$0]  %s136_s14, 32, %s138_s19, [#allocation14]  }
  0x21   :  { %s161_s16 = sshll.u32 %s15141_s3, 4  ;;  %s162_s16 = int_to_ptr.vmem [resolvable:$true] %s161_s16 }
  0x22   :  { %164 = dma.hbm_to_vmem [thread:$0]  %s160_s8, 16, %s162_s16, [#allocation17]  }
  0x23   :  { %15115 = dma.done.wait [#allocation3], 1024  }
  0x24   :  { %15116 = vsyncadd [#allocation3], 4294966272 }
  0x25   :  { %15117 = dma.done.wait [#allocation5], 3072  }
  0x26   :  { %15118 = vsyncadd [#allocation5], 4294964224 }
  0x27   :  { %15119 = dma.done.wait [#allocation8], 4096  }
  0x28   :  { %15120 = vsyncadd [#allocation8], 4294963200 }
  0x29   :  { %15121 = dma.done.wait [#allocation11], 2176  }
  0x2a   :  { %15122 = vsyncadd [#allocation11], 4294965120 }
  0x2b   :  { %15123 = dma.done.wait [#allocation14], 118816  }
  0x2c   :  { %15124 = vsyncadd [#allocation14], 4294848480 }
  0x2d   :  { %15125 = dma.done.wait [#allocation17], 2064  }
  0x2e   :  { %15126 = vsyncadd [#allocation17], 4294965232  ;;  %v13790_v0 = vld [vmem:[#allocation2 + $0x38] sm:$0xff]  ;;  %v13789_v2 = vld [vmem:[#allocation2 + $0x30] sm:$0xff] }
  0x2f   :  { %v13810_v1 = vld [vmem:[#allocation4 + $0x38] sm:$0xff]  ;;  %371 = vmatpush.bf16.msra.mxu0 %v13790_v0  ;;  %v13809_v3 = vld [vmem:[#allocation4 + $0x30] sm:$0xff]  ;;  %v13788_v4 = vld [vmem:[#allocation2 + $0x28] sm:$0xff] }
  0x30   :  { %650 = vmatpush.bf16.msra.mxu1 %v13810_v1  ;;  %v13808_v5 = vld [vmem:[#allocation4 + $0x28] sm:$0xff]  ;;  %v13787_v6 = vld [vmem:[#allocation2 + $0x20] sm:$0xff]  ;;  %v13786_v8 = vld [vmem:[#allocation2 + $0x18] sm:$0xff] }
  0x31   :  { %v13807_v7 = vld [vmem:[#allocation4 + $0x20] sm:$0xff]  ;;  %v13806_v9 = vld [vmem:[#allocation4 + $0x18] sm:$0xff]  ;;  %v13785_v10 = vld [vmem:[#allocation2 + $0x10] sm:$0xff] }
  0x32   :  { %v13805_v11 = vld [vmem:[#allocation4 + $0x10] sm:$0xff]  ;;  %v13784_v12 = vld [vmem:[#allocation2 + $0x8] sm:$0xff]  ;;  %v13783_v14 = vld [vmem:[#allocation2] sm:$0xff] }
  0x33   :  { %372 = vmatpush.bf16.msra.mxu0 %v13789_v2  ;;  %v13804_v13 = vld [vmem:[#allocation4 + $0x8] sm:$0xff]  ;;  %v13803_v15 = vld [vmem:[#allocation4] sm:$0xff]  ;;  %v13773_v20 = vld [vmem:[%s16426_s0 + $0x10] sm:$0xff] }
  0x34   :  { %651 = vmatpush.bf16.msra.mxu1 %v13809_v3  ;;  %v13771_v16 = vld [vmem:[%s16426_s0] sm:$0xff]  ;;  %v13772_v18 = vld [vmem:[%s16426_s0 + $0x8] sm:$0xff]  ;;  %v13793_v21 = vld [vmem:[%s16427_s1 + $0x10] sm:$0xff] }
  0x35   :  { %v13791_v17 = vld [vmem:[%s16427_s1] sm:$0xff]  ;;  %v13792_v19 = vld [vmem:[%s16427_s1 + $0x8] sm:$0xff]  ;;  %v13774_v22 = vld [vmem:[%s16426_s0 + $0x18] sm:$0xff] }
  0x36   :  { %v13794_v23 = vld [vmem:[%s16427_s1 + $0x18] sm:$0xff]  ;;  %v13775_v24 = vld [vmem:[%s16426_s0 + $0x20] sm:$0xff]  ;;  %v13776_v26 = vld [vmem:[%s16426_s0 + $0x28] sm:$0xff] }
  0x37   :  { %373 = vmatpush.bf16.msra.mxu0 %v13788_v4  ;;  %v13795_v25 = vld [vmem:[%s16427_s1 + $0x20] sm:$0xff]  ;;  %v13796_v27 = vld [vmem:[%s16427_s1 + $0x28] sm:$0xff]  ;;  %v13818_v28 = vld [vmem:[#allocation6 + $0x38] sm:$0xff] }
  0x38   :  { %652 = vmatpush.bf16.msra.mxu1 %v13808_v5  ;;  %969 = vmatpush.bf16.msra.mxu2 %v13818_v28  ;;  %v13817_v29 = vld [vmem:[#allocation6 + $0x30] sm:$0xff]  ;;  %v13816_v30 = vld [vmem:[#allocation6 + $0x28] sm:$0xff]  ;;  %v13815_v31 = vld [vmem:[#allocation6 + $0x20] sm:$0xff] }
  0x39   :  { %v13777_v32 = vld [vmem:[%s16426_s0 + $0x30] sm:$0xff]  ;;  %v13814_v34 = vld [vmem:[#allocation6 + $0x18] sm:$0xff]  ;;  %v13812_v38 = vld [vmem:[#allocation6 + $0x8] sm:$0xff] }
  0x3a   :  { %v13797_v33 = vld [vmem:[%s16427_s1 + $0x30] sm:$0xff]  ;;  %v13826_v35 = vld [vmem:[#allocation6 + $0x78] sm:$0xff]  ;;  %v13824_v39 = vld [vmem:[#allocation6 + $0x68] sm:$0xff] }
  0x3b   :  { %374 = vmatpush.bf16.msra.mxu0 %v13787_v6  ;;  %1018 = vmatpush.bf16.msra.mxu3 %v13826_v35  ;;  %v13813_v36 = vld [vmem:[#allocation6 + $0x10] sm:$0xff]  ;;  %v13811_v40 = vld [vmem:[#allocation6] sm:$0xff]  ;;  %v13778_v42 = vld [vmem:[%s16426_s0 + $0x38] sm:$0xff] }
  0x3c   :  { %653 = vmatpush.bf16.msra.mxu1 %v13807_v7  ;;  %970 = vmatpush.bf16.msra.mxu2 %v13817_v29  ;;  %v13825_v37 = vld [vmem:[#allocation6 + $0x70] sm:$0xff]  ;;  %v13823_v41 = vld [vmem:[#allocation6 + $0x60] sm:$0xff]  ;;  %v13798_v43 = vld [vmem:[%s16427_s1 + $0x38] sm:$0xff] }
  0x3d   :  { %v13822_v44 = vld [vmem:[#allocation6 + $0x58] sm:$0xff]  ;;  %v13821_v45 = vld [vmem:[#allocation6 + $0x50] sm:$0xff]  ;;  %v13820_v46 = vld [vmem:[#allocation6 + $0x48] sm:$0xff] }
  0x3e   :  { %v15314_v47 = vld [vmem:[#allocation12] ss:$0 sm:$0xff]  ;;  %v13850_v54 = vld [vmem:[#allocation9 + $0x38] sm:$0xff]  ;;  %v13849_v57 = vld [vmem:[#allocation9 + $0x30] sm:$0xff] }
  0x3f   :  { %375 = vmatpush.bf16.msra.mxu0 %v13786_v8  ;;  %1019 = vmatpush.bf16.msra.mxu3 %v13825_v37  ;;  %v13779_v48 = vld [vmem:[%s16426_s0 + $0x40] sm:$0xff]  ;;  %v13858_v55 = vld [vmem:[#allocation9 + $0x78] sm:$0xff]  ;;  %v13857_v58 = vld [vmem:[#allocation9 + $0x70] sm:$0xff] }
  0x40   :  { %654 = vmatpush.bf16.msra.mxu1 %v13806_v9  ;;  %971 = vmatpush.bf16.msra.mxu2 %v13816_v30  ;;  %v13799_v49 = vld [vmem:[%s16427_s1 + $0x40] sm:$0xff]  ;;  %v13848_v0 = vld [vmem:[#allocation9 + $0x28] sm:$0xff]  ;;  %v13801_v29 = vld [vmem:[%s16427_s1 + $0x50] sm:$0xff] }
  0x41   :  { %v13819_v50 = vld [vmem:[#allocation6 + $0x40] sm:$0xff]  ;;  %v13856_v1 = vld [vmem:[#allocation9 + $0x68] sm:$0xff] }
  0x42   :  { %v13780_v3 = vld [vmem:[%s16426_s0 + $0x48] sm:$0xff]  ;;  %v13847_v7 = vld [vmem:[#allocation9 + $0x20] sm:$0xff] }
  0x43   :  { %376 = vmatpush.bf16.msra.mxu0 %v13785_v10  ;;  %1020 = vmatpush.bf16.msra.mxu3 %v13824_v39  ;;  %v13800_v6 = vld [vmem:[%s16427_s1 + $0x48] sm:$0xff]  ;;  %v13855_v8 = vld [vmem:[#allocation9 + $0x60] sm:$0xff] }
  0x44   :  { %655 = vmatpush.bf16.msra.mxu1 %v13805_v11  ;;  %972 = vmatpush.bf16.msra.mxu2 %v13815_v31  ;;  %v13843_v30 = vld [vmem:[#allocation9] sm:$0xff] }
  0x45   :  { %v13851_v31 = vld [vmem:[#allocation9 + $0x40] sm:$0xff] }
  0x47   :  { %377 = vmatpush.bf16.msra.mxu0 %v13784_v12  ;;  %1021 = vmatpush.bf16.msra.mxu3 %v13823_v41 }
  0x48   :  { %656 = vmatpush.bf16.msra.mxu1 %v13804_v13  ;;  %973 = vmatpush.bf16.msra.mxu2 %v13814_v34  ;;  %v13846_v13 = vld [vmem:[#allocation9 + $0x18] sm:$0xff] }
  0x4b   :  { %378 = vmatpush.bf16.msra.mxu0 %v13783_v14  ;;  %1022 = vmatpush.bf16.msra.mxu3 %v13822_v44  ;;  %v13854_v14 = vld [vmem:[#allocation9 + $0x58] sm:$0xff] }
  0x4c   :  { %657 = vmatpush.bf16.msra.mxu1 %v13803_v15  ;;  %974 = vmatpush.bf16.msra.mxu2 %v13813_v36 }
  0x4e   :  { %379 = vmatmul.bf16.vlgmr.msra.gmra.mxu0 %v13771_v16  ;;  %v13845_v16 = vld [vmem:[#allocation9 + $0x10] sm:$0xff] }
  0x4f   :  { %658 = vmatmul.bf16.vlgmr.msra.gmra.mxu1 %v13791_v17  ;;  %1023 = vmatpush.bf16.msra.mxu3 %v13821_v45  ;;  %v13853_v17 = vld [vmem:[#allocation9 + $0x50] sm:$0xff] }
  0x50   :  { %975 = vmatpush.bf16.msra.mxu2 %v13812_v38  ;;  %1575 = vmatpush.bf16.msrb.mxu0 %v13850_v54 }
  0x51   :  { %1629 = vmatpush.bf16.msrb.mxu1 %v13858_v55 }
  0x53   :  { %1024 = vmatpush.bf16.msra.mxu3 %v13820_v46 }
  0x54   :  { %976 = vmatpush.bf16.msra.mxu2 %v13811_v40  ;;  %1576 = vmatpush.bf16.msrb.mxu0 %v13849_v57  ;;  %v15351_v40 = vld [vmem:[#allocation12 + $0x1] ss:$0 sm:$0xff] }
  0x55   :  { %1630 = vmatpush.bf16.msrb.mxu1 %v13857_v58 }
  0x57   :  { %1025 = vmatpush.bf16.msra.mxu3 %v13819_v50  ;;  %v13802_v50 = vld [vmem:[%s16427_s1 + $0x58] sm:$0xff] }
  0x58   :  { %1577 = vmatpush.bf16.msrb.mxu0 %v13848_v0 }
  0x59   :  { %1631 = vmatpush.bf16.msrb.mxu1 %v13856_v1 }
  0x5c   :  { %1578 = vmatpush.bf16.msrb.mxu0 %v13847_v7 }
  0x5d   :  { %1632 = vmatpush.bf16.msrb.mxu1 %v13855_v8 }
  0x5e   :  { %384 = vmatmul.bf16.gmra.mxu0 %v13772_v18 }
  0x5f   :  { %663 = vmatmul.bf16.gmra.mxu1 %v13792_v19 }
  0x60   :  { %1579 = vmatpush.bf16.msrb.mxu0 %v13846_v13 }
  0x61   :  { %1633 = vmatpush.bf16.msrb.mxu1 %v13854_v14 }
  0x64   :  { %1580 = vmatpush.bf16.msrb.mxu0 %v13845_v16 }
  0x65   :  { %1634 = vmatpush.bf16.msrb.mxu1 %v13853_v17 }
  0x6e   :  { %389 = vmatmul.bf16.gmra.mxu0 %v13773_v20 }
  0x6f   :  { %668 = vmatmul.bf16.gmra.mxu1 %v13793_v21 }
  0x7e   :  { %394 = vmatmul.bf16.gmra.mxu0 %v13774_v22 }
  0x7f   :  { %673 = vmatmul.bf16.gmra.mxu1 %v13794_v23  ;;  %v13844_v23 = vld [vmem:[#allocation9 + $0x8] sm:$0xff] }
  0x80   :  { %1581 = vmatpush.bf16.msrb.mxu0 %v13844_v23 }
  0x84   :  { %1582 = vmatpush.bf16.msrb.mxu0 %v13843_v30 }
  0x8e   :  { %399 = vmatmul.bf16.gmra.mxu0 %v13775_v24  ;;  %v13852_v24 = vld [vmem:[#allocation9 + $0x48] sm:$0xff] }
  0x8f   :  { %678 = vmatmul.bf16.gmra.mxu1 %v13795_v25 }
  0x90   :  { %1635 = vmatpush.bf16.msrb.mxu1 %v13852_v24 }
  0x94   :  { %1636 = vmatpush.bf16.msrb.mxu1 %v13851_v31 }
  0x9e   :  { %404 = vmatmul.bf16.gmra.mxu0 %v13776_v26  ;;  %v13781_v26 = vld [vmem:[%s16426_s0 + $0x50] sm:$0xff] }
  0x9f   :  { %683 = vmatmul.bf16.gmra.mxu1 %v13796_v27 }
  0xae   :  { %409 = vmatmul.bf16.gmra.mxu0 %v13777_v32 }
  0xaf   :  { %688 = vmatmul.bf16.gmra.mxu1 %v13797_v33 }
  0xbe   :  { %414 = vmatmul.bf16.gmra.mxu0 %v13778_v42 }
  0xbf   :  { %693 = vmatmul.bf16.gmra.mxu1 %v13798_v43 }
  0xcb   :  { %v380_v51 = vpop.f32.mrf.mxu0 }
  0xcc   :  { %v15322_v52 = vpop.f32.mrf.mxu1  ;;  %v381_v53 = vadd.f32 %v15314_v47, %v380_v51 }
  0xcd   :  { %v660_v44 = vadd.f32 %v15351_v40, %v15322_v52 }
  0xce   :  { %419 = vmatmul.bf16.gmra.mxu0 %v13779_v48  ;;  %v440_v56 = vmax.f32 %v381_v53, 0.0 }
  0xcf   :  { %698 = vmatmul.bf16.gmra.mxu1 %v13799_v49  ;;  %v13782_v49 = vld [vmem:[%s16426_s0 + $0x58] sm:$0xff] }
  0xd0   :  { %v464_v62 = vpack.c.bf16 %v440_v56, %v440_v56  ;;  %v719_v56 = vmax.f32 %v660_v44, 0.0 }
  0xd2   :  { %v769_v4 = vunpack.c.l.b16 %v464_v62 }
  0xd3   :  { %v382_v59 = vpop.f32.mrf.mxu0 }
  0xd4   :  { %v15325_v60 = vpop.f32.mrf.mxu1  ;;  %v383_v61 = vadd.f32 %v15314_v47, %v382_v59 }
  0xd5   :  { %v662_v45 = vadd.f32 %v15351_v40, %v15325_v60 }
  0xd6   :  { %v441_v63 = vmax.f32 %v383_v61, 0.0  ;;  %v743_v61 = vpack.c.bf16 %v719_v56, %v719_v56 }
  0xd7   :  { %v720_v57 = vmax.f32 %v662_v45, 0.0 }
  0xd8   :  { %v465_v2 = vpack.c.bf16 %v441_v63, %v441_v63 }
  0xd9   :  { %v744_v62 = vpack.c.bf16 %v720_v57, %v720_v57 }
  0xda   :  { %v770_v5 = vunpack.c.l.b16 %v465_v2 }
  0xdb   :  { %v385_v9 = vpop.f32.mrf.mxu0 }
  0xdc   :  { %v664_v10 = vpop.f32.mrf.mxu1  ;;  %v15334_v11 = vpack.c.b16 %v770_v5, %v769_v4  ;;  %v386_v12 = vadd.f32 %v15314_v47, %v385_v9  ;;  %v1375_v5 = vunpack.c.l.b16 %v743_v61 }
  0xdd   :  { %v665_v51 = vadd.f32 %v15351_v40, %v664_v10 }
  0xde   :  { %424 = vmatmul.bf16.gmra.mxu0 %v13780_v3  ;;  %977 = vmatmul.bf16.vlgmr.msra.gmra.mxu2 %v15334_v11  ;;  %v442_v15 = vmax.f32 %v386_v12, 0.0 }
  0xdf   :  { %703 = vmatmul.bf16.gmra.mxu1 %v13800_v6  ;;  %v721_v59 = vmax.f32 %v665_v51, 0.0  ;;  %v1376_v6 = vunpack.c.l.b16 %v744_v62 }
  0xe0   :  { %v466_v21 = vpack.c.bf16 %v442_v15, %v442_v15 }
  0xe1   :  { %v745_v0 = vpack.c.bf16 %v721_v59, %v721_v59  ;;  %v15370_v13 = vpack.c.b16 %v1376_v6, %v1375_v5 }
  0xe2   :  { %v775_v27 = vunpack.c.l.b16 %v466_v21 }
  0xe3   :  { %v387_v18 = vpop.f32.mrf.mxu0  ;;  %v1381_v9 = vunpack.c.l.b16 %v745_v0 }
  0xe4   :  { %v666_v19 = vpop.f32.mrf.mxu1  ;;  %v388_v20 = vadd.f32 %v15314_v47, %v387_v18 }
  0xe5   :  { %v667_v53 = vadd.f32 %v15351_v40, %v666_v19 }
  0xe6   :  { %v443_v22 = vmax.f32 %v388_v20, 0.0 }
  0xe7   :  { %v722_v60 = vmax.f32 %v667_v53, 0.0 }
  0xe8   :  { %v467_v25 = vpack.c.bf16 %v443_v22, %v443_v22 }
  0xe9   :  { %v746_v1 = vpack.c.bf16 %v722_v60, %v722_v60 }
  0xea   :  { %v776_v28 = vunpack.c.l.b16 %v467_v25 }
  0xeb   :  { %v390_v32 = vpop.f32.mrf.mxu0  ;;  %v1382_v10 = vunpack.c.l.b16 %v746_v1 }
  0xec   :  { %v669_v33 = vpop.f32.mrf.mxu1  ;;  %v15345_v34 = vpack.c.b16 %v776_v28, %v775_v27  ;;  %v391_v35 = vadd.f32 %v15314_v47, %v390_v32 }
  0xed   :  { %v15372_v16 = vpack.c.b16 %v1382_v10, %v1381_v9  ;;  %v670_v17 = vadd.f32 %v15351_v40, %v669_v33 }
  0xee   :  { %429 = vmatmul.bf16.gmra.mxu0 %v13781_v26  ;;  %982 = vmatmul.bf16.gmra.mxu2 %v15345_v34  ;;  %v444_v36 = vmax.f32 %v391_v35, 0.0 }
  0xef   :  { %708 = vmatmul.bf16.gmra.mxu1 %v13801_v29  ;;  %1026 = vmatmul.bf16.vlgmr.msra.gmra.mxu3 %v15345_v34  ;;  %v723_v23 = vmax.f32 %v670_v17, 0.0 }
  0xf0   :  { %v468_v41 = vpack.c.bf16 %v444_v36, %v444_v36 }
  0xf1   :  { %v747_v26 = vpack.c.bf16 %v723_v23, %v723_v23 }
  0xf2   :  { %v781_v46 = vunpack.c.l.b16 %v468_v41 }
  0xf3   :  { %v392_v37 = vpop.f32.mrf.mxu0  ;;  %v1387_v33 = vunpack.c.l.b16 %v747_v26 }
  0xf4   :  { %v671_v38 = vpop.f32.mrf.mxu1  ;;  %v393_v39 = vadd.f32 %v15314_v47, %v392_v37 }
  0xf5   :  { %v672_v18 = vadd.f32 %v15351_v40, %v671_v38 }
  0xf6   :  { %v445_v42 = vmax.f32 %v393_v39, 0.0 }
  0xf7   :  { %v724_v24 = vmax.f32 %v672_v18, 0.0 }
  0xf8   :  { %v469_v43 = vpack.c.bf16 %v445_v42, %v445_v42 }
  0xf9   :  { %v748_v27 = vpack.c.bf16 %v724_v24, %v724_v24 }
  0xfa   :  { %v782_v48 = vunpack.c.l.b16 %v469_v43 }
  0xfb   :  { %v395_v54 = vpop.f32.mrf.mxu0  ;;  %v1388_v35 = vunpack.c.l.b16 %v748_v27 }
  0xfc   :  { %v674_v55 = vpop.f32.mrf.mxu1  ;;  %v15365_v52 = vpack.c.b16 %v782_v48, %v781_v46  ;;  %v396_v58 = vadd.f32 %v15314_v47, %v395_v54 }
  0xfd   :  { %v675_v37 = vadd.f32 %v15351_v40, %v674_v55  ;;  %v15385_v42 = vpack.c.b16 %v1388_v35, %v1387_v33 }
  0xfe   :  { %434 = vmatmul.bf16.gmra.mxu0 %v13782_v49  ;;  %v446_v63 = vmax.f32 %v396_v58, 0.0 }
  0xff   :  { %713 = vmatmul.bf16.gmra.mxu1 %v13802_v50  ;;  %1031 = vmatmul.bf16.gmra.mxu3 %v15365_v52  ;;  %v725_v46 = vmax.f32 %v675_v37, 0.0 }
 0x100   :  { %v470_v7 = vpack.c.bf16 %v446_v63, %v446_v63 }
 0x101   :  { %v749_v50 = vpack.c.bf16 %v725_v46, %v725_v46 }
 0x102   :  { %v787_v14 = vunpack.c.l.b16 %v470_v7 }
 0x103   :  { %v397_v2 = vpop.f32.mrf.mxu0  ;;  %v1393_v57 = vunpack.c.l.b16 %v749_v50  ;;  %v10053_v50 = vld [vmem:[#allocation13 + $0x670] sm:$0xf] }
 0x104   :  { %v676_v3 = vpop.f32.mrf.mxu1  ;;  %v398_v4 = vadd.f32 %v15314_v47, %v397_v2 }
 0x105   :  { %v677_v38 = vadd.f32 %v15351_v40, %v676_v3 }
 0x106   :  { %v447_v8 = vmax.f32 %v398_v4, 0.0 }
 0x107   :  { %v726_v48 = vmax.f32 %v677_v38, 0.0 }
 0x108   :  { %v471_v12 = vpack.c.bf16 %v447_v8, %v447_v8 }
 0x109   :  { %v750_v51 = vpack.c.bf16 %v726_v48, %v726_v48 }
 0x10a   :  { %v788_v15 = vunpack.c.l.b16 %v471_v12 }
 0x10b   :  { %v400_v19 = vpop.f32.mrf.mxu0  ;;  %v1394_v58 = vunpack.c.l.b16 %v750_v51  ;;  %v14082_v51 = vld [vmem:[#allocation13 + $0x674] sm:$0xf0] }
 0x10c   :  { %v679_v20 = vpop.f32.mrf.mxu1  ;;  %v15376_v21 = vpack.c.b16 %v788_v15, %v787_v14  ;;  %v401_v22 = vadd.f32 %v15314_v47, %v400_v19 }
 0x10d   :  { %v15395_v62 = vpack.c.b16 %v1394_v58, %v1393_v57  ;;  %v680_v1 = vadd.f32 %v15351_v40, %v679_v20  ;;  %v10054_v58 = vor.u32 %v14082_v51, %v10053_v50  ;;  %v14074_v50 = vld [vmem:[#allocation13 + $0x634] sm:$0xf0] }
 0x10e   :  { %16456 = vst [vmem:[#allocation25_spill] sm:$0xff] %v15376_v21  ;;  %987 = vmatmul.bf16.gmra.mxu2 %v15376_v21  ;;  %1583 = vmatmul.bf16.vlgmr.msrb.gmra.mxu0 %v15370_v13  ;;  %v448_v25 = vmax.f32 %v401_v22, 0.0 }
 0x10f   :  { %1637 = vmatmul.bf16.vlgmr.msrb.gmra.mxu1 %v15372_v16  ;;  %v727_v9 = vmax.f32 %v680_v1, 0.0  ;;  %3323 = vmatpush.bf16.msra.mxu0 %v10054_v58  ;;  %v10045_v1 = vld [vmem:[#allocation13 + $0x660] sm:$0xf]  ;;  %v14090_v58 = vld [vmem:[#allocation13 + $0x6b4] sm:$0xf0] }
 0x110   :  { %v472_v31 = vpack.c.bf16 %v448_v25, %v448_v25 }
 0x111   :  { %v751_v17 = vpack.c.bf16 %v727_v9, %v727_v9 }
 0x112   :  { %v793_v39 = vunpack.c.l.b16 %v472_v31 }
 0x113   :  { %v402_v28 = vpop.f32.mrf.mxu0  ;;  %v1399_v27 = vunpack.c.l.b16 %v751_v17 }
 0x114   :  { %v681_v29 = vpop.f32.mrf.mxu1  ;;  %v403_v30 = vadd.f32 %v15314_v47, %v402_v28 }
 0x115   :  { %v682_v2 = vadd.f32 %v15351_v40, %v681_v29 }
 0x116   :  { %v449_v32 = vmax.f32 %v403_v30, 0.0 }
 0x117   :  { %v728_v10 = vmax.f32 %v682_v2, 0.0  ;;  %v14080_v2 = vld [vmem:[#allocation13 + $0x664] sm:$0xf0] }
 0x118   :  { %v473_v36 = vpack.c.bf16 %v449_v32, %v449_v32 }
 0x119   :  { %v752_v18 = vpack.c.bf16 %v728_v10, %v728_v10 }
 0x11a   :  { %v794_v41 = vunpack.c.l.b16 %v473_v36 }
 0x11b   :  { %v405_v43 = vpop.f32.mrf.mxu0  ;;  %v1400_v28 = vunpack.c.l.b16 %v752_v18  ;;  %v10037_v18 = vld [vmem:[#allocation13 + $0x650] sm:$0xf] }
 0x11c   :  { %v684_v44 = vpop.f32.mrf.mxu1  ;;  %v15387_v45 = vpack.c.b16 %v794_v41, %v793_v39  ;;  %v406_v49 = vadd.f32 %v15314_v47, %v405_v43 }
 0x11d   :  { %v685_v3 = vadd.f32 %v15351_v40, %v684_v44  ;;  %v15408_v35 = vpack.c.b16 %v1400_v28, %v1399_v27 }
 0x11e   :  { %992 = vmatmul.bf16.gmra.mxu2 %v15387_v45  ;;  %1036 = vmatmul.bf16.gmra.mxu3 %v15387_v45  ;;  %v450_v53 = vmax.f32 %v406_v49, 0.0 }
 0x11f   :  { %1588 = vmatmul.bf16.gmra.mxu0 %v15372_v16  ;;  %1642 = vmatmul.bf16.gmra.mxu1 %v15385_v42  ;;  %v729_v12 = vmax.f32 %v685_v3, 0.0 }
 0x120   :  { %v474_v59 = vpack.c.bf16 %v450_v53, %v450_v53  ;;  %v10117_v53 = vld [vmem:[#allocation13 + $0x6f0] sm:$0xf] }
 0x121   :  { %v753_v19 = vpack.c.bf16 %v729_v12, %v729_v12 }
 0x122   :  { %v799_v63 = vunpack.c.l.b16 %v474_v59  ;;  %v14098_v59 = vld [vmem:[#allocation13 + $0x6f4] sm:$0xf0] }
 0x123   :  { %v407_v54 = vpop.f32.mrf.mxu0  ;;  %v1405_v29 = vunpack.c.l.b16 %v753_v19  ;;  %v14078_v19 = vld [vmem:[#allocation13 + $0x654] sm:$0xf0] }
 0x124   :  { %v686_v55 = vpop.f32.mrf.mxu1  ;;  %v408_v56 = vadd.f32 %v15314_v47, %v407_v54 }
 0x125   :  { %v687_v4 = vadd.f32 %v15351_v40, %v686_v55 }
 0x126   :  { %v451_v60 = vmax.f32 %v408_v56, 0.0 }
 0x127   :  { %v730_v14 = vmax.f32 %v687_v4, 0.0 }
 0x128   :  { %v475_v61 = vpack.c.bf16 %v451_v60, %v451_v60 }
 0x129   :  { %v754_v20 = vpack.c.bf16 %v730_v14, %v730_v14 }
 0x12a   :  { %v800_v0 = vunpack.c.l.b16 %v475_v61  ;;  %v10118_v61 = vor.u32 %v14098_v59, %v10117_v53 }
 0x12b   :  { %v410_v5 = vpop.f32.mrf.mxu0  ;;  %v1406_v30 = vunpack.c.l.b16 %v754_v20  ;;  %v10101_v20 = vld [vmem:[#allocation13 + $0x6d0] sm:$0xf] }
 0x12c   :  { %v689_v6 = vpop.f32.mrf.mxu1  ;;  %v15401_v7 = vpack.c.b16 %v800_v0, %v799_v63  ;;  %v411_v8 = vadd.f32 %v15314_v47, %v410_v5  ;;  %3337 = vmatpush.bf16.msra.mxu1 %v10118_v61  ;;  %v10046_v5 = vor.u32 %v14080_v2, %v10045_v1  ;;  %v10013_v1 = vld [vmem:[#allocation13 + $0x620] sm:$0xf] }
 0x12d   :  { %v15410_v36 = vpack.c.b16 %v1406_v30, %v1405_v29  ;;  %v690_v37 = vadd.f32 %v15351_v40, %v689_v6  ;;  %v10109_v6 = vld [vmem:[#allocation13 + $0x6e0] sm:$0xf] }
 0x12e   :  { %1041 = vmatmul.bf16.gmra.mxu3 %v15401_v7  ;;  %v452_v15 = vmax.f32 %v411_v8, 0.0  ;;  %v14096_v8 = vld [vmem:[#allocation13 + $0x6e4] sm:$0xf0]  ;;  %3324 = vmatpush.bf16.msra.mxu0 %v10046_v5  ;;  %v10077_v5 = vld [vmem:[#allocation13 + $0x6a0] sm:$0xf] }
 0x12f   :  { %1593 = vmatmul.bf16.gmra.mxu0 %v15385_v42  ;;  %1647 = vmatmul.bf16.gmra.mxu1 %v15395_v62  ;;  %v731_v46 = vmax.f32 %v690_v37, 0.0  ;;  %v10110_v10 = vor.u32 %v14096_v8, %v10109_v6  ;;  %v14076_v37 = vld [vmem:[#allocation13 + $0x644] sm:$0xf0] }
 0x130   :  { %v476_v25 = vpack.c.bf16 %v452_v15, %v452_v15  ;;  %v14088_v6 = vld [vmem:[#allocation13 + $0x6a4] sm:$0xf0] }
 0x131   :  { %v755_v54 = vpack.c.bf16 %v731_v46, %v731_v46  ;;  %3338 = vmatpush.bf16.msra.mxu1 %v10110_v10 }
 0x132   :  { %v805_v32 = vunpack.c.l.b16 %v476_v25  ;;  %v10038_v25 = vor.u32 %v14078_v19, %v10037_v18  ;;  %v13831_v18 = vld [vmem:[#allocation7 + $0x20] sm:$0xff]  ;;  %v10005_v19 = vld [vmem:[#allocation13 + $0x610] sm:$0xf] }
 0x133   :  { %v412_v22 = vpop.f32.mrf.mxu0  ;;  %v1411_v3 = vunpack.c.l.b16 %v755_v54 }
 0x134   :  { %v691_v23 = vpop.f32.mrf.mxu1  ;;  %v413_v24 = vadd.f32 %v15314_v47, %v412_v22  ;;  %3325 = vmatpush.bf16.msra.mxu0 %v10038_v25 }
 0x135   :  { %v692_v38 = vadd.f32 %v15351_v40, %v691_v23 }
 0x136   :  { %v453_v26 = vmax.f32 %v413_v24, 0.0 }
 0x137   :  { %v732_v48 = vmax.f32 %v692_v38, 0.0  ;;  %v10093_v38 = vld [vmem:[#allocation13 + $0x6c0] sm:$0xf] }
 0x138   :  { %v477_v31 = vpack.c.bf16 %v453_v26, %v453_v26  ;;  %v14094_v26 = vld [vmem:[#allocation13 + $0x6d4] sm:$0xf0] }
 0x139   :  { %v756_v55 = vpack.c.bf16 %v732_v48, %v732_v48  ;;  %v10102_v28 = vor.u32 %v14094_v26, %v10101_v20  ;;  %v13833_v48 = vld [vmem:[#allocation7 + $0x30] sm:$0xff]  ;;  %v14070_v20 = vld [vmem:[#allocation13 + $0x614] sm:$0xf0] }
 0x13a   :  { %v806_v33 = vunpack.c.l.b16 %v477_v31 }
 0x13b   :  { %v415_v39 = vpop.f32.mrf.mxu0  ;;  %v1412_v4 = vunpack.c.l.b16 %v756_v55  ;;  %3339 = vmatpush.bf16.msra.mxu1 %v10102_v28  ;;  %v10006_v28 = vor.u32 %v14070_v20, %v10005_v19  ;;  %v13828_v20 = vld [vmem:[#allocation7 + $0x8] sm:$0xff] }
 0x13c   :  { %v694_v41 = vpop.f32.mrf.mxu1  ;;  %v15414_v43 = vpack.c.b16 %v806_v33, %v805_v32  ;;  %v416_v44 = vadd.f32 %v15314_v47, %v415_v39  ;;  %v13834_v32 = vld [vmem:[#allocation7 + $0x38] sm:$0xff]  ;;  %v10029_v33 = vld [vmem:[#allocation13 + $0x640] sm:$0xf]  ;;  %v14092_v39 = vld [vmem:[#allocation13 + $0x6c4] sm:$0xf0] }
 0x13d   :  { %v695_v14 = vadd.f32 %v15351_v40, %v694_v41  ;;  %v15423_v22 = vpack.c.b16 %v1412_v4, %v1411_v3  ;;  %1229 = vmatpush.bf16.msrb.mxu2 %v13834_v32  ;;  %v10030_v41 = vor.u32 %v14076_v37, %v10029_v33  ;;  %v14072_v4 = vld [vmem:[#allocation13 + $0x624] sm:$0xf0] }
 0x13e   :  { %16457 = vst [vmem:[#allocation26_spill] sm:$0xff] %v15414_v43  ;;  %997 = vmatmul.bf16.gmra.mxu2 %v15414_v43  ;;  %v454_v49 = vmax.f32 %v416_v44, 0.0  ;;  %v10094_v44 = vor.u32 %v14092_v39, %v10093_v38 }
 0x13f   :  { %1598 = vmatmul.bf16.gmra.mxu0 %v15408_v35  ;;  %1652 = vmatmul.bf16.gmra.mxu1 %v15410_v36  ;;  %v733_v29 = vmax.f32 %v695_v14, 0.0 }
 0x140   :  { %v478_v63 = vpack.c.bf16 %v454_v49, %v454_v49  ;;  %3326 = vmatpush.bf16.msra.mxu0 %v10030_v41  ;;  %v10021_v49 = vld [vmem:[#allocation13 + $0x630] sm:$0xf]  ;;  %3340 = vmatpush.bf16.msra.mxu1 %v10094_v44 }
 0x141   :  { %v757_v51 = vpack.c.bf16 %v733_v29, %v733_v29  ;;  %1230 = vmatpush.bf16.msrb.mxu2 %v13833_v48  ;;  %v10069_v29 = vld [vmem:[#allocation13 + $0x690] sm:$0xf]  ;;  %v14068_v48 = vld [vmem:[#allocation13 + $0x604] sm:$0xf0] }
 0x142   :  { %v811_v12 = vunpack.c.l.b16 %v478_v63  ;;  %v13830_v41 = vld [vmem:[#allocation7 + $0x18] sm:$0xff] }
 0x143   :  { %v417_v56 = vpop.f32.mrf.mxu0  ;;  %v1417_v2 = vunpack.c.l.b16 %v757_v51  ;;  %v13842_v44 = vld [vmem:[#allocation7 + $0x78] sm:$0xff] }
 0x144   :  { %v696_v57 = vpop.f32.mrf.mxu1  ;;  %v418_v60 = vadd.f32 %v15314_v47, %v417_v56  ;;  %v10022_v56 = vor.u32 %v14074_v50, %v10021_v49  ;;  %v10061_v49 = vld [vmem:[#allocation13 + $0x680] sm:$0xf]  ;;  %v14084_v50 = vld [vmem:[#allocation13 + $0x684] sm:$0xf0]  ;;  %1283 = vmatpush.bf16.msrb.mxu3 %v13842_v44 }
 0x145   :  { %v697_v17 = vadd.f32 %v15351_v40, %v696_v57  ;;  %v10085_v57 = vld [vmem:[#allocation13 + $0x6b0] sm:$0xf] }
 0x146   :  { %v455_v0 = vmax.f32 %v418_v60, 0.0  ;;  %v10086_v60 = vor.u32 %v14090_v58, %v10085_v57  ;;  %3327 = vmatpush.bf16.msra.mxu0 %v10022_v56  ;;  %v10062_v56 = vor.u32 %v14084_v50, %v10061_v49  ;;  %v14130_v58 = vld [vmem:[#allocation13 + $0x7f4] sm:$0xf0] }
 0x147   :  { %v734_v30 = vmax.f32 %v697_v17, 0.0  ;;  %v13827_v50 = vld [vmem:[#allocation7] sm:$0xff] }
 0x148   :  { %v479_v9 = vpack.c.bf16 %v455_v0, %v455_v0  ;;  %v13832_v0 = vld [vmem:[#allocation7 + $0x28] sm:$0xff]  ;;  %3341 = vmatpush.bf16.msra.mxu1 %v10086_v60 }
 0x149   :  { %v758_v53 = vpack.c.bf16 %v734_v30, %v734_v30  ;;  %1231 = vmatpush.bf16.msrb.mxu2 %v13832_v0  ;;  %v14086_v30 = vld [vmem:[#allocation13 + $0x694] sm:$0xf0] }
 0x14a   :  { %v812_v15 = vunpack.c.l.b16 %v479_v9  ;;  %v10014_v9 = vor.u32 %v14072_v4, %v10013_v1  ;;  %v10070_v33 = vor.u32 %v14086_v30, %v10069_v29  ;;  %v10165_v29 = vld [vmem:[#allocation13 + $0x750] sm:$0xf]  ;;  %v14110_v30 = vld [vmem:[#allocation13 + $0x754] sm:$0xf0] }
 0x14b   :  { %v420_v23 = vpop.f32.mrf.mxu0  ;;  %v1418_v3 = vunpack.c.l.b16 %v758_v53  ;;  %v10181_v53 = vld [vmem:[#allocation13 + $0x770] sm:$0xf] }
 0x14c   :  { %v699_v24 = vpop.f32.mrf.mxu1  ;;  %v15425_v27 = vpack.c.b16 %v812_v15, %v811_v12  ;;  %v421_v31 = vadd.f32 %v15314_v47, %v420_v23  ;;  %v10078_v12 = vor.u32 %v14088_v6, %v10077_v5  ;;  %3328 = vmatpush.bf16.msra.mxu0 %v10014_v9  ;;  %v10173_v5 = vld [vmem:[#allocation13 + $0x760] sm:$0xf]  ;;  %v14112_v6 = vld [vmem:[#allocation13 + $0x764] sm:$0xf0] }
 0x14d   :  { %v700_v10 = vadd.f32 %v15351_v40, %v699_v24  ;;  %v15435_v23 = vpack.c.b16 %v1418_v3, %v1417_v2  ;;  %1232 = vmatpush.bf16.msrb.mxu2 %v13831_v18 }
 0x14e   :  { %16458 = vst [vmem:[#allocation27_spill] sm:$0xff] %v15425_v27  ;;  %1002 = vmatmul.bf16.gmra.mxu2 %v15425_v27  ;;  %1046 = vmatmul.bf16.gmra.mxu3 %v15425_v27  ;;  %v456_v46 = vmax.f32 %v421_v31, 0.0 }
 0x14f   :  { %1603 = vmatmul.bf16.gmra.mxu0 %v15410_v36  ;;  %1657 = vmatmul.bf16.gmra.mxu1 %v15423_v22  ;;  %v735_v32 = vmax.f32 %v700_v10, 0.0 }
 0x150   :  { %v480_v61 = vpack.c.bf16 %v456_v46, %v456_v46  ;;  %3342 = vmatpush.bf16.msra.mxu1 %v10078_v12  ;;  %3329 = vmatpush.bf16.msra.mxu0 %v10006_v28  ;;  %v9997_v46 = vld [vmem:[#allocation13 + $0x600] sm:$0xf]  ;;  %v10174_v12 = vor.u32 %v14112_v6, %v10173_v5  ;;  %v13838_v5 = vld [vmem:[#allocation7 + $0x58] sm:$0xff] }
 0x151   :  { %v9998_v51 = vor.u32 %v14068_v48, %v9997_v46  ;;  %1233 = vmatpush.bf16.msrb.mxu2 %v13830_v41  ;;  %v759_v0 = vpack.c.bf16 %v735_v32, %v735_v32  ;;  %v10149_v6 = vld [vmem:[#allocation13 + $0x730] sm:$0xf] }
 0x152   :  { %v817_v14 = vunpack.c.l.b16 %v480_v61  ;;  %v13829_v61 = vld [vmem:[#allocation7 + $0x10] sm:$0xff] }
 0x153   :  { %v422_v54 = vpop.f32.mrf.mxu0 }
 0x154   :  { %v701_v55 = vpop.f32.mrf.mxu1  ;;  %v423_v59 = vadd.f32 %v15314_v47, %v422_v54  ;;  %3343 = vmatpush.bf16.msra.mxu1 %v10070_v33  ;;  %v14114_v54 = vld [vmem:[#allocation13 + $0x774] sm:$0xf0]  ;;  %3330 = vmatpush.bf16.msra.mxu0 %v9998_v51 }
 0x155   :  { %v702_v17 = vadd.f32 %v15351_v40, %v701_v55  ;;  %v10245_v55 = vld [vmem:[#allocation13 + $0x7f0] sm:$0xf]  ;;  %v10182_v57 = vor.u32 %v14114_v54, %v10181_v53  ;;  %1234 = vmatpush.bf16.msrb.mxu2 %v13829_v61  ;;  %v13839_v51 = vld [vmem:[#allocation7 + $0x60] sm:$0xff] }
 0x156   :  { %v457_v63 = vmax.f32 %v423_v59, 0.0  ;;  %v10246_v60 = vor.u32 %v14130_v58, %v10245_v55  ;;  %v10221_v58 = vld [vmem:[#allocation13 + $0x7c0] sm:$0xf] }
 0x157   :  { %v736_v37 = vmax.f32 %v702_v17, 0.0 }
 0x158   :  { %v481_v8 = vpack.c.bf16 %v457_v63, %v457_v63  ;;  %v13841_v63 = vld [vmem:[#allocation7 + $0x70] sm:$0xff]  ;;  %3351 = vmatpush.bf16.msrb.mxu0 %v10182_v57  ;;  %3344 = vmatpush.bf16.msra.mxu1 %v10062_v56  ;;  %v10157_v56 = vld [vmem:[#allocation13 + $0x740] sm:$0xf] }
 0x159   :  { %v760_v1 = vpack.c.bf16 %v736_v37, %v736_v37  ;;  %1284 = vmatpush.bf16.msrb.mxu3 %v13841_v63  ;;  %1235 = vmatpush.bf16.msrb.mxu2 %v13828_v20  ;;  %v14108_v57 = vld [vmem:[#allocation13 + $0x744] sm:$0xf0] }
 0x15a   :  { %v818_v15 = vunpack.c.l.b16 %v481_v8  ;;  %v10237_v8 = vld [vmem:[#allocation13 + $0x7e0] sm:$0xf]  ;;  %v14124_v63 = vld [vmem:[#allocation13 + $0x7c4] sm:$0xf0] }
 0x15b   :  { %v425_v25 = vpop.f32.mrf.mxu0  ;;  %v1424_v28 = vunpack.c.l.b16 %v760_v1  ;;  %v10158_v1 = vor.u32 %v14108_v57, %v10157_v56 }
 0x15c   :  { %v704_v26 = vpop.f32.mrf.mxu1  ;;  %v15437_v31 = vpack.c.b16 %v818_v15, %v817_v14  ;;  %v426_v38 = vadd.f32 %v15314_v47, %v425_v25  ;;  %v14128_v14 = vld [vmem:[#allocation13 + $0x7e4] sm:$0xf0]  ;;  %3365 = vmatpush.bf16.msrb.mxu1 %v10246_v60  ;;  %v13840_v25 = vld [vmem:[#allocation7 + $0x68] sm:$0xff]  ;;  %3352 = vmatpush.bf16.msrb.mxu0 %v10174_v12  ;;  %v14122_v12 = vld [vmem:[#allocation13 + $0x7b4] sm:$0xf0] }
 0x15d   :  { %v705_v24 = vadd.f32 %v15351_v40, %v704_v26  ;;  %v10238_v15 = vor.u32 %v14128_v14, %v10237_v8  ;;  %v1423_v26 = vunpack.c.l.b16 %v759_v0  ;;  %1285 = vmatpush.bf16.msrb.mxu3 %v13840_v25  ;;  %v15453_v0 = vld [vmem:[#allocation12 + $0x2] ss:$0 sm:$0xff]  ;;  %1236 = vmatpush.bf16.msrb.mxu2 %v13827_v50  ;;  %v10133_v50 = vld [vmem:[#allocation13 + $0x710] sm:$0xf] }
 0x15e   :  { %1051 = vmatmul.bf16.gmra.mxu3 %v15437_v31  ;;  %v458_v59 = vmax.f32 %v426_v38, 0.0  ;;  %v10166_v38 = vor.u32 %v14110_v30, %v10165_v29  ;;  %v14106_v8 = vld [vmem:[#allocation13 + $0x734] sm:$0xf0]  ;;  %v10141_v29 = vld [vmem:[#allocation13 + $0x720] sm:$0xf] }
 0x15f   :  { %v737_v39 = vmax.f32 %v705_v24, 0.0  ;;  %1608 = vmatmul.bf16.gmra.mxu0 %v15423_v22  ;;  %1662 = vmatmul.bf16.gmra.mxu1 %v15435_v23  ;;  %v10229_v24 = vld [vmem:[#allocation13 + $0x7d0] sm:$0xf]  ;;  %v15446_v53 = vpack.c.b16 %v1424_v28, %v1423_v26  ;;  %v14104_v30 = vld [vmem:[#allocation13 + $0x724] sm:$0xf0] }
 0x160   :  { %v482_v17 = vpack.c.bf16 %v458_v59, %v458_v59  ;;  %3366 = vmatpush.bf16.msrb.mxu1 %v10238_v15  ;;  %3353 = vmatpush.bf16.msrb.mxu0 %v10166_v38  ;;  %v10205_v38 = vld [vmem:[#allocation13 + $0x7a0] sm:$0xf] }
 0x161   :  { %v761_v2 = vpack.c.bf16 %v737_v39, %v737_v39  ;;  %v14126_v39 = vld [vmem:[#allocation13 + $0x7d4] sm:$0xf0]  ;;  %v978_v46 = vpop.f32.mrf.mxu2  ;;  %1286 = vmatpush.bf16.msrb.mxu3 %v13839_v51 }
 0x162   :  { %v10230_v41 = vor.u32 %v14126_v39, %v10229_v24  ;;  %v823_v44 = vunpack.c.l.b16 %v482_v17  ;;  %v979_v14 = vadd.f32 %v15453_v0, %v978_v46  ;;  %v14120_v39 = vld [vmem:[#allocation13 + $0x7a4] sm:$0xf0]  ;;  %v14102_v51 = vld [vmem:[#allocation13 + $0x714] sm:$0xf0] }
 0x163   :  { %v427_v3 = vpop.f32.mrf.mxu0  ;;  %v1429_v32 = vunpack.c.l.b16 %v761_v2  ;;  %v10222_v2 = vor.u32 %v14124_v63, %v10221_v58  ;;  %v10134_v58 = vor.u32 %v14102_v51, %v10133_v50 }
 0x164   :  { %v706_v4 = vpop.f32.mrf.mxu1  ;;  %v428_v9 = vadd.f32 %v15314_v47, %v427_v3  ;;  %3367 = vmatpush.bf16.msrb.mxu1 %v10230_v41  ;;  %3354 = vmatpush.bf16.msrb.mxu0 %v10158_v1  ;;  %v10206_v41 = vor.u32 %v14120_v39, %v10205_v38 }
 0x165   :  { %v707_v10 = vadd.f32 %v15351_v40, %v706_v4  ;;  %1287 = vmatpush.bf16.msrb.mxu3 %v13838_v5  ;;  %v13835_v5 = vld [vmem:[#allocation7 + $0x40] sm:$0xff] }
 0x166   :  { %v459_v18 = vmax.f32 %v428_v9, 0.0  ;;  %v10213_v9 = vld [vmem:[#allocation13 + $0x7b0] sm:$0xf] }
 0x167   :  { %v738_v19 = vmax.f32 %v707_v10, 0.0  ;;  %v10150_v10 = vor.u32 %v14106_v8, %v10149_v6  ;;  %v10214_v15 = vor.u32 %v14122_v12, %v10213_v9  ;;  %v10125_v9 = vld [vmem:[#allocation13 + $0x700] sm:$0xf] }
 0x168   :  { %v483_v33 = vpack.c.bf16 %v459_v18, %v459_v18  ;;  %3368 = vmatpush.bf16.msrb.mxu1 %v10222_v2  ;;  %v10189_v12 = vld [vmem:[#allocation13 + $0x780] sm:$0xf] }
 0x169   :  { %v762_v37 = vpack.c.bf16 %v738_v19, %v738_v19  ;;  %v13837_v19 = vld [vmem:[#allocation7 + $0x50] sm:$0xff]  ;;  %v15462_v24 = vpop.f32.mrf.mxu2  ;;  %3355 = vmatpush.bf16.msrb.mxu0 %v10150_v10 }
 0x16a   :  { %v824_v48 = vunpack.c.l.b16 %v483_v33  ;;  %1288 = vmatpush.bf16.msrb.mxu3 %v13837_v19  ;;  %v14100_v10 = vld [vmem:[#allocation13 + $0x704] sm:$0xf0] }
 0x16b   :  { %v1430_v49 = vunpack.c.l.b16 %v762_v37  ;;  %v430_v54 = vpop.f32.mrf.mxu0  ;;  %v10142_v37 = vor.u32 %v14104_v30, %v10141_v29  ;;  %v10126_v19 = vor.u32 %v14100_v10, %v10125_v9  ;;  %v10309_v9 = vld [vmem:[#allocation13 + $0x870] sm:$0xf] }
 0x16c   :  { %v709_v55 = vpop.f32.mrf.mxu1  ;;  %v15448_v59 = vpack.c.b16 %v824_v48, %v823_v44  ;;  %v431_v3 = vadd.f32 %v15314_v47, %v430_v54  ;;  %3369 = vmatpush.bf16.msrb.mxu1 %v10214_v15  ;;  %v10197_v54 = vld [vmem:[#allocation13 + $0x790] sm:$0xf] }
 0x16d   :  { %v15450_v60 = vpack.c.b16 %v1430_v49, %v1429_v32  ;;  %v710_v61 = vadd.f32 %v15351_v40, %v709_v55  ;;  %v13836_v49 = vld [vmem:[#allocation7 + $0x48] sm:$0xff]  ;;  %3356 = vmatpush.bf16.msrb.mxu0 %v10142_v37 }
 0x16e   :  { %1007 = vmatmul.bf16.gmra.mxu2 %v15448_v59  ;;  %v460_v17 = vmax.f32 %v431_v3, 0.0  ;;  %1289 = vmatpush.bf16.msrb.mxu3 %v13836_v49 }
 0x16f   :  { %v739_v4 = vmax.f32 %v710_v61, 0.0  ;;  %1613 = vmatmul.bf16.gmra.mxu0 %v15446_v53  ;;  %1667 = vmatmul.bf16.gmra.mxu1 %v15450_v60  ;;  %v14118_v61 = vld [vmem:[#allocation13 + $0x794] sm:$0xf0] }
 0x170   :  { %v484_v44 = vpack.c.bf16 %v460_v17, %v460_v17  ;;  %3370 = vmatpush.bf16.msrb.mxu1 %v10206_v41  ;;  %v10198_v63 = vor.u32 %v14118_v61, %v10197_v54 }
 0x171   :  { %v763_v20 = vpack.c.bf16 %v739_v4, %v739_v4  ;;  %3357 = vmatpush.bf16.msrb.mxu0 %v10134_v58 }
 0x172   :  { %v1027_v18 = vpop.f32.mrf.mxu3  ;;  %v829_v1 = vunpack.c.l.b16 %v484_v44  ;;  %1290 = vmatpush.bf16.msrb.mxu3 %v13835_v5 }
 0x173   :  { %v15460_v25 = vadd.f32 %v1027_v18, %v979_v14  ;;  %v432_v26 = vpop.f32.mrf.mxu0  ;;  %v1435_v55 = vunpack.c.l.b16 %v763_v20  ;;  %v14116_v18 = vld [vmem:[#allocation13 + $0x784] sm:$0xf0] }
 0x174   :  { %v711_v28 = vpop.f32.mrf.mxu1  ;;  %v433_v32 = vadd.f32 %v15314_v47, %v432_v26  ;;  %3371 = vmatpush.bf16.msrb.mxu1 %v10198_v63  ;;  %v10190_v20 = vor.u32 %v14116_v18, %v10189_v12  ;;  %v983_v26 = vpop.f32.mrf.mxu2  ;;  %v10373_v18 = vld [vmem:[#allocation13 + $0x8f0] sm:$0xf] }
 0x175   :  { %v712_v33 = vadd.f32 %v15351_v40, %v711_v28  ;;  %3358 = vmatpush.bf16.msrb.mxu0 %v10126_v19  ;;  %v984_v30 = vadd.f32 %v15453_v0, %v983_v26  ;;  %v14162_v19 = vld [vmem:[#allocation13 + $0x8f4] sm:$0xf0] }
 0x176   :  { %v461_v46 = vmax.f32 %v433_v32, 0.0 }
 0x177   :  { %v740_v48 = vmax.f32 %v712_v33, 0.0 }
 0x178   :  { %v485_v56 = vpack.c.bf16 %v461_v46, %v461_v46  ;;  %3372 = vmatpush.bf16.msrb.mxu1 %v10190_v20 }
 0x179   :  { %v764_v57 = vpack.c.bf16 %v740_v48, %v740_v48 }
 0x17a   :  { %v830_v2 = vunpack.c.l.b16 %v485_v56  ;;  %v15466_v4 = vpop.f32.mrf.mxu3  ;;  %v15483_v56 = vld [vmem:[#allocation12 + $0x4] ss:$0 sm:$0xff] }
 0x17b   :  { %v1436_v3 = vunpack.c.l.b16 %v764_v57  ;;  %v435_v6 = vpop.f32.mrf.mxu0 }
 0x17c   :  { %v714_v8 = vpop.f32.mrf.mxu1  ;;  %v15468_v14 = vpack.c.b16 %v830_v2, %v829_v1  ;;  %v436_v28 = vadd.f32 %v15314_v47, %v435_v6  ;;  %v15496_v5 = vpop.f32.mrf.mxu2 }
 0x17d   :  { %v15470_v15 = vpack.c.b16 %v1436_v3, %v1435_v55  ;;  %v715_v17 = vadd.f32 %v15351_v40, %v714_v8 }
 0x17e   :  { %16459 = vst [vmem:[#allocation28_spill] sm:$0xff] %v15468_v14  ;;  %1012 = vmatmul.bf16.gmra.mxu2 %v15468_v14  ;;  %1056 = vmatmul.bf16.gmra.mxu3 %v15468_v14  ;;  %v462_v32 = vmax.f32 %v436_v28, 0.0 }
 0x17f   :  { %1618 = vmatmul.bf16.gmra.mxu0 %v15450_v60  ;;  %1672 = vmatmul.bf16.gmra.mxu1 %v15470_v15  ;;  %v741_v29 = vmax.f32 %v715_v17, 0.0  ;;  %v14146_v17 = vld [vmem:[#allocation13 + $0x874] sm:$0xf0] }
 0x180   :  { %v486_v48 = vpack.c.bf16 %v462_v32, %v462_v32  ;;  %v10310_v28 = vor.u32 %v14146_v17, %v10309_v9  ;;  %v10285_v9 = vld [vmem:[#allocation13 + $0x840] sm:$0xf] }
 0x181   :  { %v765_v41 = vpack.c.bf16 %v741_v29, %v741_v29  ;;  %v10374_v29 = vor.u32 %v14162_v19, %v10373_v18  ;;  %v10349_v17 = vld [vmem:[#allocation13 + $0x8c0] sm:$0xf]  ;;  %v14156_v18 = vld [vmem:[#allocation13 + $0x8c4] sm:$0xf0] }
 0x182   :  { %v1032_v33 = vpop.f32.mrf.mxu3  ;;  %v835_v57 = vunpack.c.l.b16 %v486_v48 }
 0x183   :  { %v15479_v37 = vadd.f32 %v1032_v33, %v984_v30  ;;  %v437_v38 = vpop.f32.mrf.mxu0  ;;  %v1441_v51 = vunpack.c.l.b16 %v765_v41  ;;  %v10301_v30 = vld [vmem:[#allocation13 + $0x860] sm:$0xf]  ;;  %v14144_v33 = vld [vmem:[#allocation13 + $0x864] sm:$0xf0] }
 0x184   :  { %v716_v39 = vpop.f32.mrf.mxu1  ;;  %v438_v44 = vadd.f32 %v15314_v47, %v437_v38  ;;  %v10365_v38 = vld [vmem:[#allocation13 + $0x8e0] sm:$0xf] }
 0x185   :  { %v717_v46 = vadd.f32 %v15351_v40, %v716_v39  ;;  %v14160_v39 = vld [vmem:[#allocation13 + $0x8e4] sm:$0xf0] }
 0x186   :  { %v463_v49 = vmax.f32 %v438_v44, 0.0  ;;  %v10366_v48 = vor.u32 %v14160_v39, %v10365_v38 }
 0x187   :  { %v742_v50 = vmax.f32 %v717_v46, 0.0  ;;  %v10302_v46 = vor.u32 %v14144_v33, %v10301_v30  ;;  %v10341_v30 = vld [vmem:[#allocation13 + $0x8b0] sm:$0xf] }
 0x188   :  { %v487_v54 = vpack.c.bf16 %v463_v49, %v463_v49  ;;  %v10293_v49 = vld [vmem:[#allocation13 + $0x850] sm:$0xf] }
 0x189   :  { %v766_v55 = vpack.c.bf16 %v742_v50, %v742_v50 }
 0x18a   :  { %v836_v58 = vunpack.c.l.b16 %v487_v54  ;;  %v15502_v10 = vpop.f32.mrf.mxu3  ;;  %v10357_v54 = vld [vmem:[#allocation13 + $0x8d0] sm:$0xf] }
 0x18b   :  { %v1442_v61 = vunpack.c.l.b16 %v766_v55  ;;  %v1584_v63 = vpop.f32.mrf.mxu0  ;;  %v14158_v55 = vld [vmem:[#allocation13 + $0x8d4] sm:$0xf0] }
 0x18c   :  { %v15485_v1 = vpack.c.b16 %v836_v58, %v835_v57  ;;  %v1585_v47 = vadd.f32 %v15483_v56, %v1584_v63  ;;  %v1638_v3 = vpop.f32.mrf.mxu1 }
 0x18d   :  { %v15487_v2 = vpack.c.b16 %v1442_v61, %v1441_v51  ;;  %v14142_v51 = vld [vmem:[#allocation13 + $0x854] sm:$0xf0] }
 0x18e   :  { %16460 = vst [vmem:[#allocation29_spill] sm:$0xff] %v15485_v1  ;;  %v15490_v40 = vadd.f32 %v1638_v3, %v1585_v47  ;;  %1061 = vmatmul.bf16.gmra.mxu3 %v15485_v1  ;;  %1237 = vmatmul.bf16.vlgmr.msrb.gmra.mxu2 %v15334_v11  ;;  %v10294_v47 = vor.u32 %v14142_v51, %v10293_v49  ;;  %v10333_v51 = vld [vmem:[#allocation13 + $0x8a0] sm:$0xf] }
 0x18f   :  { %1623 = vmatmul.bf16.gmra.mxu0 %v15470_v15  ;;  %1677 = vmatmul.bf16.gmra.mxu1 %v15487_v2  ;;  %v10358_v3 = vor.u32 %v14158_v55, %v10357_v54  ;;  %v14152_v54 = vld [vmem:[#allocation13 + $0x8a4] sm:$0xf0] }
 0x190   :  { %16461 = vst [vmem:[#allocation30_spill] sm:$0xff] %v15490_v40  ;;  %v14208_v40 = vld [vmem:[#allocation13 + $0xa64] sm:$0xf0] }
 0x191   :  { %v988_v12 = vpop.f32.mrf.mxu2 }
 0x192   :  { %v989_v44 = vadd.f32 %v15453_v0, %v988_v12  ;;  %v14140_v12 = vld [vmem:[#allocation13 + $0x844] sm:$0xf0] }
 0x193   :  { %v15498_v6 = vpop.f32.mrf.mxu0  ;;  %v10286_v19 = vor.u32 %v14140_v12, %v10285_v9  ;;  %v10334_v9 = vor.u32 %v14152_v54, %v10333_v51  ;;  %v10261_v12 = vld [vmem:[#allocation13 + $0x810] sm:$0xf]  ;;  %v14226_v51 = vld [vmem:[#allocation13 + $0xaf4] sm:$0xf0] }
 0x194   :  { %16462 = vst [vmem:[#allocation31_spill] sm:$0xff] %v15498_v6  ;;  %v15500_v8 = vpop.f32.mrf.mxu1  ;;  %v14224_v6 = vld [vmem:[#allocation13 + $0xae4] sm:$0xf0] }
 0x195   :  { %16463 = vst [vmem:[#allocation32_spill] sm:$0xff] %v15500_v8  ;;  %v10621_v8 = vld [vmem:[#allocation13 + $0xae0] sm:$0xf] }
 0x199   :  { %v15514_v58 = vpop.f32.mrf.mxu2 }
 0x19a   :  { %16466 = vst [vmem:[#allocation35_spill] sm:$0xff] %v15514_v58 }
 0x19c   :  { %v1589_v20 = vpop.f32.mrf.mxu0  ;;  %v1643_v26 = vpop.f32.mrf.mxu1 }
 0x19d   :  { %v1590_v32 = vadd.f32 %v15483_v56, %v1589_v20  ;;  %v10350_v20 = vor.u32 %v14156_v18, %v10349_v17  ;;  %v14134_v18 = vld [vmem:[#allocation13 + $0x814] sm:$0xf0] }
 0x19e   :  { %1242 = vmatmul.bf16.gmra.mxu2 %v15345_v34  ;;  %1291 = vmatmul.bf16.vlgmr.msrb.gmra.mxu3 %v15376_v21 }
 0x19f   :  { %v15507_v41 = vadd.f32 %v1643_v26, %v1590_v32  ;;  %3331 = vmatmul.bf16.vlgmr.msra.gmra.mxu0 %v15370_v13  ;;  %3345 = vmatmul.bf16.vlgmr.msra.gmra.mxu1 %v15372_v16  ;;  %v10277_v26 = vld [vmem:[#allocation13 + $0x830] sm:$0xf]  ;;  %v14154_v32 = vld [vmem:[#allocation13 + $0x8b4] sm:$0xf0] }
 0x1a0   :  { %3379 = vmatpush.bf16.msra.mxu0 %v10310_v28  ;;  %3393 = vmatpush.bf16.msra.mxu1 %v10374_v29  ;;  %v14138_v29 = vld [vmem:[#allocation13 + $0x834] sm:$0xf0] }
 0x1a1   :  { %16464 = vst [vmem:[#allocation33_spill] sm:$0xff] %v15507_v41  ;;  %v1037_v50 = vpop.f32.mrf.mxu3  ;;  %v10278_v39 = vor.u32 %v14138_v29, %v10277_v26  ;;  %v10622_v41 = vor.u32 %v14224_v6, %v10621_v8  ;;  %v10541_v8 = vld [vmem:[#allocation13 + $0xa40] sm:$0xf] }
 0x1a2   :  { %v15512_v57 = vadd.f32 %v1037_v50, %v989_v44  ;;  %v10342_v44 = vor.u32 %v14154_v32, %v10341_v30  ;;  %v14136_v50 = vld [vmem:[#allocation13 + $0x824] sm:$0xf0]  ;;  %v10262_v32 = vor.u32 %v14134_v18, %v10261_v12 }
 0x1a4   :  { %16465 = vst [vmem:[#allocation34_spill] sm:$0xff] %v15512_v57  ;;  %3380 = vmatpush.bf16.msra.mxu0 %v10302_v46  ;;  %3394 = vmatpush.bf16.msra.mxu1 %v10366_v48  ;;  %v15516_v61 = vpop.f32.mrf.mxu0  ;;  %v15518_v63 = vpop.f32.mrf.mxu1  ;;  %v10269_v46 = vld [vmem:[#allocation13 + $0x820] sm:$0xf]  ;;  %v10367_v57 = vld [vmem:[#allocation13 + $0x8e8] sm:$0xf0] }
 0x1a5   :  { %16467 = vst [vmem:[#allocation36_spill] sm:$0xff] %v15516_v61  ;;  %v993_v48 = vpop.f32.mrf.mxu2 }
 0x1a6   :  { %16468 = vst [vmem:[#allocation37_spill] sm:$0xff] %v15518_v63  ;;  %v14216_v63 = vld [vmem:[#allocation13 + $0xaa4] sm:$0xf0] }
 0x1a8   :  { %3381 = vmatpush.bf16.msra.mxu0 %v10294_v47  ;;  %3395 = vmatpush.bf16.msra.mxu1 %v10358_v3  ;;  %v994_v47 = vadd.f32 %v15453_v0, %v993_v48  ;;  %v10270_v3 = vor.u32 %v14136_v50, %v10269_v46  ;;  %v14148_v46 = vld [vmem:[#allocation13 + $0x884] sm:$0xf0]  ;;  %v10565_v48 = vld [vmem:[#allocation13 + $0xa70] sm:$0xf] }
 0x1a9   :  { %v15520_v28 = vpop.f32.mrf.mxu3  ;;  %v10629_v50 = vld [vmem:[#allocation13 + $0xaf0] sm:$0xf] }
 0x1aa   :  { %16469 = vst [vmem:[#allocation38_spill] sm:$0xff] %v15520_v28  ;;  %v13867_v28 = vld [vmem:[#allocation10 + $0x40] sm:$0xff] }
 0x1ac   :  { %3382 = vmatpush.bf16.msra.mxu0 %v10286_v19  ;;  %3396 = vmatpush.bf16.msra.mxu1 %v10350_v20  ;;  %v1594_v33 = vpop.f32.mrf.mxu0  ;;  %v1648_v38 = vpop.f32.mrf.mxu1  ;;  %v10325_v19 = vld [vmem:[#allocation13 + $0x890] sm:$0xf]  ;;  %v14150_v20 = vld [vmem:[#allocation13 + $0x894] sm:$0xf0] }
 0x1ad   :  { %v1595_v49 = vadd.f32 %v15483_v56, %v1594_v33  ;;  %v10326_v33 = vor.u32 %v14150_v20, %v10325_v19 }
 0x1ae   :  { %1247 = vmatmul.bf16.gmra.mxu2 %v15365_v52  ;;  %1296 = vmatmul.bf16.gmra.mxu3 %v15387_v45 }
 0x1af   :  { %v15525_v55 = vadd.f32 %v1648_v38, %v1595_v49  ;;  %3359 = vmatmul.bf16.vlgmr.msrb.gmra.mxu0 %v15385_v42  ;;  %3373 = vmatmul.bf16.vlgmr.msrb.gmra.mxu1 %v15395_v62  ;;  %v10253_v38 = vld [vmem:[#allocation13 + $0x800] sm:$0xf]  ;;  %v14210_v49 = vld [vmem:[#allocation13 + $0xa74] sm:$0xf0] }
 0x1b0   :  { %3383 = vmatpush.bf16.msra.mxu0 %v10278_v39  ;;  %3397 = vmatpush.bf16.msra.mxu1 %v10342_v44  ;;  %v14132_v39 = vld [vmem:[#allocation13 + $0x804] sm:$0xf0]  ;;  %v10317_v44 = vld [vmem:[#allocation13 + $0x880] sm:$0xf] }
 0x1b1   :  { %16470 = vst [vmem:[#allocation39_spill] sm:$0xff] %v15525_v55  ;;  %v1042_v17 = vpop.f32.mrf.mxu3  ;;  %v10254_v54 = vor.u32 %v14132_v39, %v10253_v38  ;;  %v10613_v38 = vld [vmem:[#allocation13 + $0xad0] sm:$0xf]  ;;  %v14222_v39 = vld [vmem:[#allocation13 + $0xad4] sm:$0xf0] }
 0x1b2   :  { %v15530_v26 = vadd.f32 %v1042_v17, %v994_v47  ;;  %v10318_v47 = vor.u32 %v14148_v46, %v10317_v44  ;;  %v10557_v17 = vld [vmem:[#allocation13 + $0xa60] sm:$0xf]  ;;  %v15543_v46 = vpop.f32.mrf.mxu2  ;;  %v10614_v6 = vor.u32 %v14222_v39, %v10613_v38  ;;  %v14200_v38 = vld [vmem:[#allocation13 + $0xa24] sm:$0xf0]  ;;  %v10055_v55 = vld [vmem:[#allocation13 + $0x678] sm:$0xf0] }
 0x1b3   :  { %v10558_v20 = vor.u32 %v14208_v40, %v10557_v17  ;;  %16475 = vst [vmem:[#allocation44_spill] sm:$0xff] %v15543_v46  ;;  %v14202_v17 = vld [vmem:[#allocation13 + $0xa34] sm:$0xf0]  ;;  %v10589_v39 = vld [vmem:[#allocation13 + $0xaa0] sm:$0xf] }
 0x1b4   :  { %16471 = vst [vmem:[#allocation40_spill] sm:$0xff] %v15530_v26  ;;  %3384 = vmatpush.bf16.msra.mxu0 %v10270_v3  ;;  %3398 = vmatpush.bf16.msra.mxu1 %v10334_v9  ;;  %v15532_v29 = vpop.f32.mrf.mxu0  ;;  %v15534_v30 = vpop.f32.mrf.mxu1  ;;  %v10566_v3 = vor.u32 %v14210_v49, %v10565_v48  ;;  %v10630_v9 = vor.u32 %v14226_v51, %v10629_v50  ;;  %v14204_v48 = vld [vmem:[#allocation13 + $0xa44] sm:$0xf0]  ;;  %v10605_v49 = vld [vmem:[#allocation13 + $0xac0] sm:$0xf] }
 0x1b5   :  { %16472 = vst [vmem:[#allocation41_spill] sm:$0xff] %v15532_v29  ;;  %v14220_v50 = vld [vmem:[#allocation13 + $0xac4] sm:$0xf0]  ;;  %v10311_v29 = vld [vmem:[#allocation13 + $0x878] sm:$0xf0] }
 0x1b6   :  { %16473 = vst [vmem:[#allocation42_spill] sm:$0xff] %v15534_v30  ;;  %v14077_v30 = vld [vmem:[#allocation13 + $0x654] sm:$0xf]  ;;  %v10375_v26 = vld [vmem:[#allocation13 + $0x8f8] sm:$0xf0] }
 0x1b7   :  { %v14159_v46 = vld [vmem:[#allocation13 + $0x8e4] sm:$0xf] }
 0x1b8   :  { %3385 = vmatpush.bf16.msra.mxu0 %v10262_v32  ;;  %3399 = vmatpush.bf16.msra.mxu1 %v10326_v33  ;;  %v10549_v32 = vld [vmem:[#allocation13 + $0xa50] sm:$0xf]  ;;  %v14206_v33 = vld [vmem:[#allocation13 + $0xa54] sm:$0xf0] }
 0x1b9   :  { %v10550_v40 = vor.u32 %v14206_v33, %v10549_v32  ;;  %v10525_v33 = vld [vmem:[#allocation13 + $0xa20] sm:$0xf] }
 0x1bc   :  { %3386 = vmatpush.bf16.msra.mxu0 %v10254_v54  ;;  %3400 = vmatpush.bf16.msra.mxu1 %v10318_v47  ;;  %v1599_v12 = vpop.f32.mrf.mxu0  ;;  %v1653_v18 = vpop.f32.mrf.mxu1  ;;  %v10542_v47 = vor.u32 %v14204_v48, %v10541_v8  ;;  %v10526_v8 = vor.u32 %v14200_v38, %v10525_v33  ;;  %v10590_v48 = vor.u32 %v14216_v63, %v10589_v39  ;;  %v10573_v33 = vld [vmem:[#allocation13 + $0xa80] sm:$0xf]  ;;  %v14212_v38 = vld [vmem:[#allocation13 + $0xa84] sm:$0xf0]  ;;  %v14081_v39 = vld [vmem:[#allocation13 + $0x674] sm:$0xf] }
 0x1bd   :  { %v1600_v19 = vadd.f32 %v15483_v56, %v1599_v12  ;;  %v10597_v12 = vld [vmem:[#allocation13 + $0xab0] sm:$0xf] }
 0x1be   :  { %1252 = vmatmul.bf16.gmra.mxu2 %v15376_v21  ;;  %1301 = vmatmul.bf16.gmra.mxu3 %v15401_v7 }
 0x1bf   :  { %v15539_v44 = vadd.f32 %v1653_v18, %v1600_v19  ;;  %3387 = vmatmul.bf16.vlgmr.msra.gmra.mxu0 %v15408_v35  ;;  %3401 = vmatmul.bf16.vlgmr.msra.gmra.mxu1 %v15410_v36  ;;  %v14218_v18 = vld [vmem:[#allocation13 + $0xab4] sm:$0xf0]  ;;  %v15549_v19 = vpop.f32.mrf.mxu3 }
 0x1c0   :  { %3435 = vmatpush.bf16.msrb.mxu0 %v10566_v3  ;;  %3449 = vmatpush.bf16.msrb.mxu1 %v10630_v9  ;;  %v10606_v3 = vor.u32 %v14220_v50, %v10605_v49  ;;  %v10533_v9 = vld [vmem:[#allocation13 + $0xa30] sm:$0xf]  ;;  %16478 = vst [vmem:[#allocation47_spill] sm:$0xff] %v15549_v19  ;;  %v10598_v32 = vor.u32 %v14218_v18, %v10597_v12  ;;  %v14198_v50 = vld [vmem:[#allocation13 + $0xa14] sm:$0xf0] }
 0x1c1   :  { %16474 = vst [vmem:[#allocation43_spill] sm:$0xff] %v15539_v44  ;;  %v10517_v49 = vld [vmem:[#allocation13 + $0xa10] sm:$0xf]  ;;  %v10303_v19 = vld [vmem:[#allocation13 + $0x868] sm:$0xf0] }
 0x1c4   :  { %3436 = vmatpush.bf16.msrb.mxu0 %v10558_v20  ;;  %3450 = vmatpush.bf16.msrb.mxu1 %v10622_v41  ;;  %v15545_v51 = vpop.f32.mrf.mxu0  ;;  %v15547_v54 = vpop.f32.mrf.mxu1  ;;  %v10534_v20 = vor.u32 %v14202_v17, %v10533_v9 }
 0x1c5   :  { %16476 = vst [vmem:[#allocation45_spill] sm:$0xff] %v15545_v51  ;;  %v998_v41 = vpop.f32.mrf.mxu2 }
 0x1c6   :  { %16477 = vst [vmem:[#allocation46_spill] sm:$0xff] %v15547_v54  ;;  %v999_v17 = vadd.f32 %v15453_v0, %v998_v41  ;;  %v14097_v54 = vld [vmem:[#allocation13 + $0x6f4] sm:$0xf] }
 0x1c8   :  { %3437 = vmatpush.bf16.msrb.mxu0 %v10550_v40  ;;  %3451 = vmatpush.bf16.msrb.mxu1 %v10614_v6 }
 0x1cc   :  { %3438 = vmatpush.bf16.msrb.mxu0 %v10542_v47  ;;  %3452 = vmatpush.bf16.msrb.mxu1 %v10606_v3  ;;  %v1604_v61 = vpop.f32.mrf.mxu0  ;;  %v1658_v40 = vpop.f32.mrf.mxu1  ;;  %v10581_v47 = vld [vmem:[#allocation13 + $0xa90] sm:$0xf]  ;;  %v14214_v3 = vld [vmem:[#allocation13 + $0xa94] sm:$0xf0] }
 0x1cd   :  { %v1605_v6 = vadd.f32 %v15483_v56, %v1604_v61  ;;  %v10518_v61 = vor.u32 %v14198_v50, %v10517_v49  ;;  %v10582_v18 = vor.u32 %v14214_v3, %v10581_v47  ;;  %v15559_v44 = vpop.f32.mrf.mxu2  ;;  %v10058_v49 = vor.u32 %v14081_v39, %v10055_v55  ;;  %v14079_v47 = vld [vmem:[#allocation13 + $0x664] sm:$0xf]  ;;  %v10047_v3 = vld [vmem:[#allocation13 + $0x668] sm:$0xf0] }
 0x1ce   :  { %1257 = vmatmul.bf16.gmra.mxu2 %v15387_v45  ;;  %1306 = vmatmul.bf16.gmra.mxu3 %v15414_v43  ;;  %v10050_v51 = vor.u32 %v14079_v47, %v10047_v3  ;;  %v14075_v39 = vld [vmem:[#allocation13 + $0x644] sm:$0xf] }
 0x1cf   :  { %v15554_v9 = vadd.f32 %v1658_v40, %v1605_v6  ;;  %v10119_v40 = vld [vmem:[#allocation13 + $0x6f8] sm:$0xf0] }
 0x1d0   :  { %3439 = vmatpush.bf16.msrb.mxu0 %v10534_v20  ;;  %3453 = vmatpush.bf16.msrb.mxu1 %v10598_v32  ;;  %v10509_v20 = vld [vmem:[#allocation13 + $0xa00] sm:$0xf]  ;;  %v14196_v32 = vld [vmem:[#allocation13 + $0xa04] sm:$0xf0]  ;;  %v10122_v50 = vor.u32 %v14097_v54, %v10119_v40  ;;  %v10031_v40 = vld [vmem:[#allocation13 + $0x648] sm:$0xf0] }
 0x1d1   :  { %16479 = vst [vmem:[#allocation48_spill] sm:$0xff] %v15554_v9  ;;  %v1047_v12 = vpop.f32.mrf.mxu3 }
 0x1d2   :  { %v15557_v63 = vadd.f32 %v1047_v12, %v999_v17  ;;  %v14095_v17 = vld [vmem:[#allocation13 + $0x6e4] sm:$0xf]  ;;  %v10111_v12 = vld [vmem:[#allocation13 + $0x6e8] sm:$0xf0] }
 0x1d4   :  { %3440 = vmatpush.bf16.msrb.mxu0 %v10526_v8  ;;  %3454 = vmatpush.bf16.msrb.mxu1 %v10590_v48  ;;  %v15561_v6 = vpop.f32.mrf.mxu0  ;;  %v15563_v41 = vpop.f32.mrf.mxu1  ;;  %v10510_v8 = vor.u32 %v14196_v32, %v10509_v20  ;;  %v10574_v48 = vor.u32 %v14212_v38, %v10573_v33 }
 0x1d5   :  { %16480 = vst [vmem:[#allocation49_spill] sm:$0xff] %v15561_v6  ;;  %v10114_v6 = vor.u32 %v14095_v17, %v10111_v12  ;;  %v1003_v55 = vpop.f32.mrf.mxu2  ;;  %v10023_v17 = vld [vmem:[#allocation13 + $0x638] sm:$0xf0]  ;;  %v14089_v12 = vld [vmem:[#allocation13 + $0x6b4] sm:$0xf] }
 0x1d6   :  { %16481 = vst [vmem:[#allocation50_spill] sm:$0xff] %v15563_v41  ;;  %v10039_v41 = vld [vmem:[#allocation13 + $0x658] sm:$0xf0]  ;;  %v1004_v47 = vadd.f32 %v15453_v0, %v1003_v55 }
 0x1d7   :  { %v10042_v33 = vor.u32 %v14077_v30, %v10039_v41  ;;  %v10034_v30 = vor.u32 %v14075_v39, %v10031_v40  ;;  %v14073_v41 = vld [vmem:[#allocation13 + $0x634] sm:$0xf]  ;;  %v13864_v39 = vld [vmem:[#allocation10 + $0x28] sm:$0xff] }
 0x1d8   :  { %3441 = vmatpush.bf16.msrb.mxu0 %v10518_v61  ;;  %3455 = vmatpush.bf16.msrb.mxu1 %v10582_v18  ;;  %v14093_v61 = vld [vmem:[#allocation13 + $0x6d4] sm:$0xf]  ;;  %v10103_v18 = vld [vmem:[#allocation13 + $0x6d8] sm:$0xf0]  ;;  %v10026_v55 = vor.u32 %v14073_v41, %v10023_v17 }
 0x1d9   :  { %v15565_v9 = vpop.f32.mrf.mxu3  ;;  %v10106_v38 = vor.u32 %v14093_v61, %v10103_v18  ;;  %v10087_v61 = vld [vmem:[#allocation13 + $0x6b8] sm:$0xf0]  ;;  %v13865_v18 = vld [vmem:[#allocation10 + $0x30] sm:$0xff] }
 0x1dc   :  { %3442 = vmatpush.bf16.msrb.mxu0 %v10510_v8  ;;  %3456 = vmatpush.bf16.msrb.mxu1 %v10574_v48  ;;  %v1609_v20 = vpop.f32.mrf.mxu0  ;;  %v1663_v32 = vpop.f32.mrf.mxu1  ;;  %v14091_v48 = vld [vmem:[#allocation13 + $0x6c4] sm:$0xf] }
 0x1dd   :  { %v1610_v54 = vadd.f32 %v15483_v56, %v1609_v20  ;;  %v15581_v40 = vpop.f32.mrf.mxu2 }
 0x1de   :  { %1262 = vmatmul.bf16.gmra.mxu2 %v15401_v7  ;;  %1311 = vmatmul.bf16.gmra.mxu3 %v15425_v27 }
 0x1df   :  { %3443 = vmatmul.bf16.vlgmr.msrb.gmra.mxu0 %v15446_v53  ;;  %3457 = vmatmul.bf16.vlgmr.msrb.gmra.mxu1 %v15450_v60  ;;  %v15570_v8 = vadd.f32 %v1663_v32, %v1610_v54  ;;  %v10090_v54 = vor.u32 %v14089_v12, %v10087_v61  ;;  %v14067_v12 = vld [vmem:[#allocation13 + $0x604] sm:$0xf] }
 0x1e0   :  { %3491 = vmatpush.bf16.msra.mxu0 %v10058_v49  ;;  %3505 = vmatpush.bf16.msra.mxu1 %v10122_v50  ;;  %v10095_v49 = vld [vmem:[#allocation13 + $0x6c8] sm:$0xf0]  ;;  %v13866_v50 = vld [vmem:[#allocation10 + $0x38] sm:$0xff] }
 0x1e1   :  { %16482 = vst [vmem:[#allocation51_spill] sm:$0xff] %v15570_v8  ;;  %v1052_v3 = vpop.f32.mrf.mxu3  ;;  %1849 = vmatpush.bf16.msra.mxu2 %v13866_v50  ;;  %v14087_v50 = vld [vmem:[#allocation13 + $0x6a4] sm:$0xf]  ;;  %v10007_v8 = vld [vmem:[#allocation13 + $0x618] sm:$0xf0] }
 0x1e4   :  { %3492 = vmatpush.bf16.msra.mxu0 %v10050_v51  ;;  %3506 = vmatpush.bf16.msra.mxu1 %v10114_v6  ;;  %v15575_v51 = vadd.f32 %v1052_v3, %v1004_v47  ;;  %v10098_v6 = vor.u32 %v14091_v48, %v10095_v49  ;;  %v15577_v20 = vpop.f32.mrf.mxu0  ;;  %v15579_v32 = vpop.f32.mrf.mxu1  ;;  %v10079_v47 = vld [vmem:[#allocation13 + $0x6a8] sm:$0xf0]  ;;  %v14069_v3 = vld [vmem:[#allocation13 + $0x614] sm:$0xf] }
 0x1e5   :  { %16483 = vst [vmem:[#allocation52_spill] sm:$0xff] %v15577_v20  ;;  %1850 = vmatpush.bf16.msra.mxu2 %v13865_v18  ;;  %v10082_v49 = vor.u32 %v14087_v50, %v10079_v47  ;;  %v10071_v18 = vld [vmem:[#allocation13 + $0x698] sm:$0xf0]  ;;  %v10010_v61 = vor.u32 %v14069_v3, %v10007_v8  ;;  %v13862_v50 = vld [vmem:[#allocation10 + $0x18] sm:$0xff]  ;;  %v14143_v3 = vld [vmem:[#allocation13 + $0x864] sm:$0xf] }
 0x1e6   :  { %16484 = vst [vmem:[#allocation53_spill] sm:$0xff] %v15579_v32  ;;  %v14085_v32 = vld [vmem:[#allocation13 + $0x694] sm:$0xf] }
 0x1e7   :  { %v10074_v20 = vor.u32 %v14085_v32, %v10071_v18  ;;  %v13874_v47 = vld [vmem:[#allocation10 + $0x78] sm:$0xff]  ;;  %v13861_v18 = vld [vmem:[#allocation10 + $0x10] sm:$0xff] }
 0x1e8   :  { %3493 = vmatpush.bf16.msra.mxu0 %v10042_v33  ;;  %3507 = vmatpush.bf16.msra.mxu1 %v10106_v38  ;;  %v14071_v33 = vld [vmem:[#allocation13 + $0x624] sm:$0xf]  ;;  %v10015_v38 = vld [vmem:[#allocation13 + $0x628] sm:$0xf0] }
 0x1e9   :  { %1851 = vmatpush.bf16.msra.mxu2 %v13864_v39  ;;  %v10018_v48 = vor.u32 %v14071_v33, %v10015_v38  ;;  %v9999_v39 = vld [vmem:[#allocation13 + $0x608] sm:$0xf0]  ;;  %v14145_v38 = vld [vmem:[#allocation13 + $0x874] sm:$0xf]  ;;  %1898 = vmatpush.bf16.msra.mxu3 %v13874_v47 }
 0x1ea   :  { %v10002_v8 = vor.u32 %v14067_v12, %v9999_v39  ;;  %v10370_v12 = vor.u32 %v14159_v46, %v10367_v57  ;;  %v10295_v39 = vld [vmem:[#allocation13 + $0x858] sm:$0xf0]  ;;  %v14139_v57 = vld [vmem:[#allocation13 + $0x844] sm:$0xf] }
 0x1eb   :  { %v13859_v46 = vld [vmem:[#allocation10] sm:$0xff] }
 0x1ec   :  { %3494 = vmatpush.bf16.msra.mxu0 %v10034_v30  ;;  %3508 = vmatpush.bf16.msra.mxu1 %v10098_v6  ;;  %v13863_v30 = vld [vmem:[#allocation10 + $0x20] sm:$0xff]  ;;  %v1614_v6 = vpop.f32.mrf.mxu0  ;;  %v1668_v41 = vpop.f32.mrf.mxu1 }
 0x1ed   :  { %v1615_v17 = vadd.f32 %v15483_v56, %v1614_v6  ;;  %1852 = vmatpush.bf16.msra.mxu2 %v13863_v30  ;;  %v14161_v6 = vld [vmem:[#allocation13 + $0x8f4] sm:$0xf] }
 0x1ee   :  { %1267 = vmatmul.bf16.gmra.mxu2 %v15414_v43  ;;  %1316 = vmatmul.bf16.gmra.mxu3 %v15437_v31 }
 0x1ef   :  { %v15584_v33 = vadd.f32 %v1668_v41, %v1615_v17  ;;  %v13873_v41 = vld [vmem:[#allocation10 + $0x70] sm:$0xff] }
 0x1f0   :  { %3495 = vmatpush.bf16.msra.mxu0 %v10026_v55  ;;  %3509 = vmatpush.bf16.msra.mxu1 %v10090_v54  ;;  %v14083_v55 = vld [vmem:[#allocation13 + $0x684] sm:$0xf]  ;;  %v10063_v54 = vld [vmem:[#allocation13 + $0x688] sm:$0xf0] }
 0x1f1   :  { %16485 = vst [vmem:[#allocation54_spill] sm:$0xff] %v15584_v33  ;;  %v1008_v30 = vpop.f32.mrf.mxu2  ;;  %1853 = vmatpush.bf16.msra.mxu2 %v13862_v50  ;;  %v10066_v32 = vor.u32 %v14083_v55, %v10063_v54  ;;  %1899 = vmatpush.bf16.msra.mxu3 %v13873_v41  ;;  %v14157_v55 = vld [vmem:[#allocation13 + $0x8d4] sm:$0xf]  ;;  %v10359_v54 = vld [vmem:[#allocation13 + $0x8d8] sm:$0xf0] }
 0x1f4   :  { %3496 = vmatpush.bf16.msra.mxu0 %v10018_v48  ;;  %3510 = vmatpush.bf16.msra.mxu1 %v10082_v49  ;;  %v10314_v48 = vor.u32 %v14145_v38, %v10311_v29  ;;  %v10378_v49 = vor.u32 %v14161_v6, %v10375_v26  ;;  %v15588_v17 = vpop.f32.mrf.mxu0  ;;  %v15590_v33 = vpop.f32.mrf.mxu1  ;;  %v14141_v29 = vld [vmem:[#allocation13 + $0x854] sm:$0xf]  ;;  %v13860_v26 = vld [vmem:[#allocation10 + $0x8] sm:$0xff]  ;;  %v13871_v6 = vld [vmem:[#allocation10 + $0x60] sm:$0xff] }
 0x1f5   :  { %16486 = vst [vmem:[#allocation55_spill] sm:$0xff] %v15588_v17  ;;  %1854 = vmatpush.bf16.msra.mxu2 %v13861_v18  ;;  %v15592_v38 = vpop.f32.mrf.mxu3  ;;  %v10298_v47 = vor.u32 %v14141_v29, %v10295_v39  ;;  %v14137_v29 = vld [vmem:[#allocation13 + $0x834] sm:$0xf] }
 0x1f6   :  { %16487 = vst [vmem:[#allocation56_spill] sm:$0xff] %v15590_v33  ;;  %v14153_v39 = vld [vmem:[#allocation13 + $0x8b4] sm:$0xf] }
 0x1f8   :  { %3497 = vmatpush.bf16.msra.mxu0 %v10010_v61  ;;  %3511 = vmatpush.bf16.msra.mxu1 %v10074_v20  ;;  %v10306_v20 = vor.u32 %v14143_v3, %v10303_v19  ;;  %v13872_v61 = vld [vmem:[#allocation10 + $0x68] sm:$0xff]  ;;  %v10362_v19 = vor.u32 %v14157_v55, %v10359_v54  ;;  %v10351_v3 = vld [vmem:[#allocation13 + $0x8c8] sm:$0xf0]  ;;  %v10343_v55 = vld [vmem:[#allocation13 + $0x8b8] sm:$0xf0] }
 0x1f9   :  { %v1010_v50 = vpop.f32.mrf.mxu2  ;;  %1855 = vmatpush.bf16.msra.mxu2 %v13860_v26  ;;  %1900 = vmatpush.bf16.msra.mxu3 %v13872_v61  ;;  %v10279_v26 = vld [vmem:[#allocation13 + $0x838] sm:$0xf0]  ;;  %v1009_v61 = vadd.f32 %v15453_v0, %v1008_v30  ;;  %v13870_v54 = vld [vmem:[#allocation10 + $0x58] sm:$0xff] }
 0x1fc   :  { %3498 = vmatpush.bf16.msra.mxu0 %v10002_v8  ;;  %3512 = vmatpush.bf16.msra.mxu1 %v10066_v32  ;;  %v1619_v8 = vpop.f32.mrf.mxu0  ;;  %v1673_v32 = vpop.f32.mrf.mxu1 }
 0x1fd   :  { %v1620_v18 = vadd.f32 %v15483_v56, %v1619_v8  ;;  %1856 = vmatpush.bf16.msra.mxu2 %v13859_v46  ;;  %1901 = vmatpush.bf16.msra.mxu3 %v13871_v6 }
 0x1fe   :  { %1272 = vmatmul.bf16.gmra.mxu2 %v15425_v27  ;;  %1321 = vmatmul.bf16.gmra.mxu3 %v15448_v59  ;;  %v14225_v27 = vld [vmem:[#allocation13 + $0xaf4] sm:$0xf] }
 0x1ff   :  { %3499 = vmatmul.bf16.vlgmr.msra.gmra.mxu0 %v15370_v13  ;;  %3513 = vmatmul.bf16.vlgmr.msra.gmra.mxu1 %v15372_v16  ;;  %v15597_v41 = vadd.f32 %v1673_v32, %v1620_v18  ;;  %v10271_v32 = vld [vmem:[#allocation13 + $0x828] sm:$0xf0] }
 0x200   :  { %3547 = vmatpush.bf16.msrb.mxu0 %v10314_v48  ;;  %3561 = vmatpush.bf16.msrb.mxu1 %v10378_v49  ;;  %v10287_v48 = vld [vmem:[#allocation13 + $0x848] sm:$0xf0]  ;;  %v14155_v49 = vld [vmem:[#allocation13 + $0x8c4] sm:$0xf] }
 0x201   :  { %16488 = vst [vmem:[#allocation57_spill] sm:$0xff] %v15597_v41  ;;  %v1013_v8 = vpop.f32.mrf.mxu2  ;;  %v1057_v46 = vpop.f32.mrf.mxu3  ;;  %1902 = vmatpush.bf16.msra.mxu3 %v13870_v54  ;;  %v13869_v18 = vld [vmem:[#allocation10 + $0x50] sm:$0xff]  ;;  %v10263_v54 = vld [vmem:[#allocation13 + $0x818] sm:$0xf0] }
 0x202   :  { %v1058_v6 = vadd.f32 %v1057_v46, %v1009_v61  ;;  %v14133_v61 = vld [vmem:[#allocation13 + $0x814] sm:$0xf] }
 0x204   :  { %3548 = vmatpush.bf16.msrb.mxu0 %v10306_v20  ;;  %3562 = vmatpush.bf16.msrb.mxu1 %v10370_v12  ;;  %v10290_v20 = vor.u32 %v14139_v57, %v10287_v48  ;;  %v10354_v12 = vor.u32 %v14155_v49, %v10351_v3  ;;  %v14135_v57 = vld [vmem:[#allocation13 + $0x824] sm:$0xf]  ;;  %v15602_v48 = vpop.f32.mrf.mxu0  ;;  %v15604_v30 = vpop.f32.mrf.mxu1  ;;  %v10335_v3 = vld [vmem:[#allocation13 + $0x8a8] sm:$0xf0] }
 0x205   :  { %16489 = vst [vmem:[#allocation58_spill] sm:$0xff] %v15602_v48  ;;  %v14151_v49 = vld [vmem:[#allocation13 + $0x8a4] sm:$0xf]  ;;  %1903 = vmatpush.bf16.msra.mxu3 %v13869_v18  ;;  %v10274_v41 = vor.u32 %v14135_v57, %v10271_v32  ;;  %v10266_v18 = vor.u32 %v14133_v61, %v10263_v54  ;;  %v10319_v32 = vld [vmem:[#allocation13 + $0x888] sm:$0xf0] }
 0x206   :  { %16490 = vst [vmem:[#allocation59_spill] sm:$0xff] %v15604_v30  ;;  %v10338_v33 = vor.u32 %v14151_v49, %v10335_v3  ;;  %v14131_v30 = vld [vmem:[#allocation13 + $0x804] sm:$0xf]  ;;  %v14841_v54 = vld [vmem:[#allocation12 + $0x2] ss:$0 sm:$0xff] }
 0x207   :  { %v14147_v57 = vld [vmem:[#allocation13 + $0x884] sm:$0xf] }
 0x208   :  { %3549 = vmatpush.bf16.msrb.mxu0 %v10298_v47  ;;  %3563 = vmatpush.bf16.msrb.mxu1 %v10362_v19  ;;  %v10282_v47 = vor.u32 %v14137_v29, %v10279_v26  ;;  %v10346_v19 = vor.u32 %v14153_v39, %v10343_v55  ;;  %v14149_v29 = vld [vmem:[#allocation13 + $0x894] sm:$0xf]  ;;  %v10327_v26 = vld [vmem:[#allocation13 + $0x898] sm:$0xf0]  ;;  %v13868_v39 = vld [vmem:[#allocation10 + $0x48] sm:$0xff] }
 0x209   :  { %v1015_v55 = vpop.f32.mrf.mxu2  ;;  %v1059_v46 = vpop.f32.mrf.mxu3  ;;  %1904 = vmatpush.bf16.msra.mxu3 %v13868_v39 }
 0x20c   :  { %3550 = vmatpush.bf16.msrb.mxu0 %v10290_v20  ;;  %3564 = vmatpush.bf16.msrb.mxu1 %v10354_v12  ;;  %v1011_v20 = vadd.f32 %v15453_v0, %v1010_v50  ;;  %v1079_v12 = vmax.f32 %v1058_v6, 0.0  ;;  %v1624_v17 = vpop.f32.mrf.mxu0  ;;  %v1678_v0 = vpop.f32.mrf.mxu1  ;;  %v14209_v50 = vld [vmem:[#allocation13 + $0xa74] sm:$0xf]  ;;  %v10567_v6 = vld [vmem:[#allocation13 + $0xa78] sm:$0xf0] }
 0x20d   :  { %v1625_v58 = vadd.f32 %v15483_v56, %v1624_v17  ;;  %1905 = vmatpush.bf16.msra.mxu3 %v13867_v28  ;;  %v10570_v61 = vor.u32 %v14209_v50, %v10567_v6  ;;  %v14207_v17 = vld [vmem:[#allocation13 + $0xa64] sm:$0xf]  ;;  %v10615_v50 = vld [vmem:[#allocation13 + $0xad8] sm:$0xf0]  ;;  %v1016_v6 = vadd.f32 %v14841_v54, %v1015_v55 }
 0x20e   :  { %v1060_v48 = vadd.f32 %v1059_v46, %v1011_v20  ;;  %v1095_v49 = vpack.c.bf16 %v1079_v12, %v1079_v12  ;;  %v10631_v20 = vld [vmem:[#allocation13 + $0xaf8] sm:$0xf0]  ;;  %1277 = vmatmul.bf16.gmra.mxu2 %v15437_v31  ;;  %1326 = vmatmul.bf16.gmra.mxu3 %v15468_v14  ;;  %v14223_v28 = vld [vmem:[#allocation13 + $0xae4] sm:$0xf] }
 0x20f   :  { %v10634_v56 = vor.u32 %v14225_v27, %v10631_v20  ;;  %v14205_v27 = vld [vmem:[#allocation13 + $0xa54] sm:$0xf] }
 0x210   :  { %3551 = vmatpush.bf16.msrb.mxu0 %v10282_v47  ;;  %3565 = vmatpush.bf16.msrb.mxu1 %v10346_v19  ;;  %v10330_v47 = vor.u32 %v14149_v29, %v10327_v26  ;;  %v10255_v19 = vld [vmem:[#allocation13 + $0x808] sm:$0xf0]  ;;  %v1080_v3 = vmax.f32 %v1060_v48, 0.0  ;;  %v1014_v48 = vadd.f32 %v14841_v54, %v1013_v8  ;;  %v4993_v12 = vunpack.c.l.b16 %v1095_v49  ;;  %v10551_v49 = vld [vmem:[#allocation13 + $0xa58] sm:$0xf0] }
 0x211   :  { %v10258_v39 = vor.u32 %v14131_v30, %v10255_v19  ;;  %v1062_v26 = vpop.f32.mrf.mxu3  ;;  %v10559_v30 = vld [vmem:[#allocation13 + $0xa68] sm:$0xf0] }
 0x212   :  { %v1096_v46 = vpack.c.bf16 %v1080_v3, %v1080_v3  ;;  %v1238_v3 = vpop.f32.mrf.mxu2 }
 0x214   :  { %3552 = vmatpush.bf16.msrb.mxu0 %v10274_v41  ;;  %3566 = vmatpush.bf16.msrb.mxu1 %v10338_v33  ;;  %v15608_v33 = vadd.f32 %v1678_v0, %v1625_v58  ;;  %v10322_v41 = vor.u32 %v14147_v57, %v10319_v32  ;;  %v4994_v29 = vunpack.c.l.b16 %v1096_v46  ;;  %v10623_v58 = vld [vmem:[#allocation13 + $0xae8] sm:$0xf0]  ;;  %v15614_v8 = vpop.f32.mrf.mxu0  ;;  %v10562_v57 = vor.u32 %v14207_v17, %v10559_v30  ;;  %v14221_v0 = vld [vmem:[#allocation13 + $0xad4] sm:$0xf]  ;;  %v15620_v30 = vld [vmem:[#allocation12 + $0x3] ss:$0 sm:$0xff] }
 0x215   :  { %16493 = vst [vmem:[#allocation62_spill] sm:$0xff] %v15614_v8  ;;  %v10626_v32 = vor.u32 %v14223_v28, %v10623_v58  ;;  %v10554_v46 = vor.u32 %v14205_v27, %v10551_v49  ;;  %v10607_v17 = vld [vmem:[#allocation13 + $0xac8] sm:$0xf0]  ;;  %v10535_v49 = vld [vmem:[#allocation13 + $0xa38] sm:$0xf0] }
 0x216   :  { %16491 = vst [vmem:[#allocation60_spill] sm:$0xff] %v15608_v33  ;;  %v15612_v19 = vpack.c.b16 %v4994_v29, %v4993_v12  ;;  %v10543_v29 = vld [vmem:[#allocation13 + $0xa48] sm:$0xf0] }
 0x218   :  { %3553 = vmatpush.bf16.msrb.mxu0 %v10266_v18  ;;  %3567 = vmatpush.bf16.msrb.mxu1 %v10330_v47  ;;  %16492 = vst [vmem:[#allocation61_spill] sm:$0xff] %v15612_v19  ;;  %v1063_v18 = vadd.f32 %v1062_v26, %v1014_v48  ;;  %v15616_v47 = vpop.f32.mrf.mxu1  ;;  %v14203_v48 = vld [vmem:[#allocation13 + $0xa44] sm:$0xf]  ;;  %v10877_v19 = vld [vmem:[#allocation13 + $0xe0] sm:$0xf] }
 0x219   :  { %16494 = vst [vmem:[#allocation63_spill] sm:$0xff] %v15616_v47 }
 0x21a   :  { %v1081_v20 = vmax.f32 %v1063_v18, 0.0  ;;  %v10546_v18 = vor.u32 %v14203_v48, %v10543_v29 }
 0x21c   :  { %3554 = vmatpush.bf16.msrb.mxu0 %v10258_v39  ;;  %3568 = vmatpush.bf16.msrb.mxu1 %v10322_v41  ;;  %v10618_v39 = vor.u32 %v14221_v0, %v10615_v50  ;;  %v1064_v41 = vpop.f32.mrf.mxu3  ;;  %v1097_v26 = vpack.c.bf16 %v1081_v20, %v1081_v20  ;;  %v3332_v58 = vpop.f32.mrf.mxu0  ;;  %v14217_v0 = vld [vmem:[#allocation13 + $0xab4] sm:$0xf]  ;;  %v10599_v50 = vld [vmem:[#allocation13 + $0xab8] sm:$0xf0] }
 0x21d   :  { %v1065_v12 = vadd.f32 %v1064_v41, %v1016_v6  ;;  %v1239_v41 = vadd.f32 %v15620_v30, %v1238_v3  ;;  %v10602_v48 = vor.u32 %v14217_v0, %v10599_v50 }
 0x21e   :  { %v4999_v6 = vunpack.c.l.b16 %v1097_v26  ;;  %1331 = vmatmul.bf16.gmra.mxu3 %v15485_v1  ;;  %1857 = vmatmul.bf16.vlgmr.msra.gmra.mxu2 %v15370_v13  ;;  %v10591_v26 = vld [vmem:[#allocation13 + $0xaa8] sm:$0xf0]  ;;  %v13904_v1 = vld [vmem:[#allocation13 + $0xe4] sm:$0xf0] }
 0x21f   :  { %3555 = vmatmul.bf16.vlgmr.msrb.gmra.mxu0 %v15408_v35  ;;  %3569 = vmatmul.bf16.vlgmr.msrb.gmra.mxu1 %v15410_v36  ;;  %v1082_v28 = vmax.f32 %v1065_v12, 0.0  ;;  %v14199_v12 = vld [vmem:[#allocation13 + $0xa24] sm:$0xf] }
 0x220   :  { %3603 = vmatpush.bf16.msra.mxu0 %v10570_v61  ;;  %3617 = vmatpush.bf16.msra.mxu1 %v10634_v56  ;;  %v1240_v61 = vpop.f32.mrf.mxu2  ;;  %v14219_v56 = vld [vmem:[#allocation13 + $0xac4] sm:$0xf]  ;;  %v3346_v55 = vpop.f32.mrf.mxu1 }
 0x221   :  { %v3347_v54 = vadd.f32 %v3346_v55, %v3332_v58  ;;  %v1098_v27 = vpack.c.bf16 %v1082_v28, %v1082_v28  ;;  %v14215_v28 = vld [vmem:[#allocation13 + $0xaa4] sm:$0xf] }
 0x222   :  { %v10594_v55 = vor.u32 %v14215_v28, %v10591_v26  ;;  %v10885_v28 = vld [vmem:[#allocation13 + $0xf0] sm:$0xf]  ;;  %v13906_v26 = vld [vmem:[#allocation13 + $0xf4] sm:$0xf0] }
 0x223   :  { %v5000_v33 = vunpack.c.l.b16 %v1098_v27  ;;  %v14213_v27 = vld [vmem:[#allocation13 + $0xa94] sm:$0xf] }
 0x224   :  { %3604 = vmatpush.bf16.msra.mxu0 %v10562_v57  ;;  %3618 = vmatpush.bf16.msra.mxu1 %v10626_v32  ;;  %v10610_v57 = vor.u32 %v14219_v56, %v10607_v17  ;;  %v14201_v32 = vld [vmem:[#allocation13 + $0xa34] sm:$0xf]  ;;  %v10527_v17 = vld [vmem:[#allocation13 + $0xa28] sm:$0xf0]  ;;  %v15627_v58 = vpop.f32.mrf.mxu0 }
 0x225   :  { %v15625_v29 = vpack.c.b16 %v5000_v33, %v4999_v6  ;;  %16496 = vst [vmem:[#allocation65_spill] sm:$0xff] %v15627_v58  ;;  %v10530_v13 = vor.u32 %v14199_v12, %v10527_v17  ;;  %v10511_v58 = vld [vmem:[#allocation13 + $0xa08] sm:$0xf0]  ;;  %v10821_v12 = vld [vmem:[#allocation13 + $0x70] sm:$0xf] }
 0x226   :  { %v13890_v17 = vld [vmem:[#allocation13 + $0x74] sm:$0xf0] }
 0x227   :  { %16495 = vst [vmem:[#allocation64_spill] sm:$0xff] %v15625_v29 }
 0x228   :  { %3605 = vmatpush.bf16.msra.mxu0 %v10554_v46  ;;  %3619 = vmatpush.bf16.msra.mxu1 %v10618_v39  ;;  %v1243_v20 = vpop.f32.mrf.mxu2  ;;  %v1292_v46 = vpop.f32.mrf.mxu3  ;;  %v10538_v39 = vor.u32 %v14201_v32, %v10535_v49  ;;  %v10583_v32 = vld [vmem:[#allocation13 + $0xa98] sm:$0xf0]  ;;  %v1241_v49 = vadd.f32 %v15620_v30, %v1240_v61 }
 0x229   :  { %v1293_v56 = vadd.f32 %v1292_v46, %v1239_v41  ;;  %v15629_v3 = vpop.f32.mrf.mxu1  ;;  %v10586_v41 = vor.u32 %v14213_v27, %v10583_v32  ;;  %v14195_v46 = vld [vmem:[#allocation13 + $0xa04] sm:$0xf]  ;;  %v10886_v27 = vor.u32 %v13906_v26, %v10885_v28  ;;  %v10813_v32 = vld [vmem:[#allocation13 + $0x60] sm:$0xf]  ;;  %v1244_v14 = vadd.f32 %v15620_v30, %v1243_v20  ;;  %v10869_v20 = vld [vmem:[#allocation13 + $0xd0] sm:$0xf] }
 0x22a   :  { %16497 = vst [vmem:[#allocation66_spill] sm:$0xff] %v15629_v3 }
 0x22b   :  { %v1337_v33 = vmax.f32 %v1293_v56, 0.0 }
 0x22c   :  { %3606 = vmatpush.bf16.msra.mxu0 %v10546_v18  ;;  %3620 = vmatpush.bf16.msra.mxu1 %v10610_v57  ;;  %v14197_v18 = vld [vmem:[#allocation13 + $0xa14] sm:$0xf]  ;;  %v10519_v57 = vld [vmem:[#allocation13 + $0xa18] sm:$0xf0]  ;;  %v3360_v29 = vpop.f32.mrf.mxu0 }
 0x22d   :  { %v10522_v6 = vor.u32 %v14197_v18, %v10519_v57  ;;  %v1355_v47 = vpack.c.bf16 %v1337_v33, %v1337_v33  ;;  %v3361_v56 = vadd.f32 %v3360_v29, %v3347_v54  ;;  %v10822_v57 = vor.u32 %v13890_v17, %v10821_v12  ;;  %v10797_v12 = vld [vmem:[#allocation13 + $0x40] sm:$0xf]  ;;  %v13884_v17 = vld [vmem:[#allocation13 + $0x44] sm:$0xf0] }
 0x22e   :  { %1862 = vmatmul.bf16.gmra.mxu2 %v15372_v16  ;;  %1906 = vmatmul.bf16.vlgmr.msra.gmra.mxu3 %v15408_v35 }
 0x22f   :  { %v6001_v43 = vunpack.c.l.b16 %v1355_v47  ;;  %v13902_v47 = vld [vmem:[#allocation13 + $0xd4] sm:$0xf0] }
 0x230   :  { %3607 = vmatpush.bf16.msra.mxu0 %v10538_v39  ;;  %3621 = vmatpush.bf16.msra.mxu1 %v10602_v48  ;;  %v1245_v0 = vpop.f32.mrf.mxu2  ;;  %v1294_v50 = vpop.f32.mrf.mxu3  ;;  %v14211_v39 = vld [vmem:[#allocation13 + $0xa84] sm:$0xf]  ;;  %v10575_v48 = vld [vmem:[#allocation13 + $0xa88] sm:$0xf0] }
 0x231   :  { %v1295_v3 = vadd.f32 %v1294_v50, %v1241_v49  ;;  %v3374_v61 = vpop.f32.mrf.mxu1  ;;  %v13888_v49 = vld [vmem:[#allocation13 + $0x64] sm:$0xf0] }
 0x232   :  { %v3375_v50 = vadd.f32 %v3374_v61, %v3361_v56 }
 0x233   :  { %v1338_v8 = vmax.f32 %v1295_v3, 0.0 }
 0x234   :  { %3608 = vmatpush.bf16.msra.mxu0 %v10530_v13  ;;  %3622 = vmatpush.bf16.msra.mxu1 %v10594_v55  ;;  %v10514_v13 = vor.u32 %v14195_v46, %v10511_v58  ;;  %v10578_v55 = vor.u32 %v14211_v39, %v10575_v48  ;;  %v13886_v46 = vld [vmem:[#allocation13 + $0x54] sm:$0xf0]  ;;  %v15638_v16 = vpop.f32.mrf.mxu0  ;;  %v10870_v48 = vor.u32 %v13902_v47, %v10869_v20  ;;  %v13880_v20 = vld [vmem:[#allocation13 + $0x24] sm:$0xf0] }
 0x235   :  { %v1356_v18 = vpack.c.bf16 %v1338_v8, %v1338_v8  ;;  %v10814_v8 = vor.u32 %v13888_v49, %v10813_v32  ;;  %16499 = vst [vmem:[#allocation68_spill] sm:$0xff] %v15638_v16  ;;  %v13898_v32 = vld [vmem:[#allocation13 + $0xb4] sm:$0xf0]  ;;  %v10421_v16 = vld [vmem:[#allocation13 + $0x950] sm:$0xf] }
 0x237   :  { %v6002_v33 = vunpack.c.l.b16 %v1356_v18  ;;  %v10789_v18 = vld [vmem:[#allocation13 + $0x30] sm:$0xf] }
 0x238   :  { %3609 = vmatpush.bf16.msra.mxu0 %v10522_v6  ;;  %3623 = vmatpush.bf16.msra.mxu1 %v10586_v41  ;;  %v1248_v54 = vpop.f32.mrf.mxu2  ;;  %v1297_v29 = vpop.f32.mrf.mxu3  ;;  %v10878_v6 = vor.u32 %v13904_v1, %v10877_v19  ;;  %v10805_v41 = vld [vmem:[#allocation13 + $0x50] sm:$0xf]  ;;  %v13900_v1 = vld [vmem:[#allocation13 + $0xc4] sm:$0xf0]  ;;  %v1246_v19 = vadd.f32 %v15620_v30, %v1245_v0 }
 0x239   :  { %v15635_v58 = vpack.c.b16 %v6002_v33, %v6001_v43  ;;  %v1298_v3 = vadd.f32 %v1297_v29, %v1244_v14  ;;  %v15640_v39 = vpop.f32.mrf.mxu1  ;;  %v10806_v43 = vor.u32 %v13886_v46, %v10805_v41  ;;  %v10861_v14 = vld [vmem:[#allocation13 + $0xc0] sm:$0xf] }
 0x23a   :  { %16500 = vst [vmem:[#allocation69_spill] sm:$0xff] %v15640_v39  ;;  %v10781_v46 = vld [vmem:[#allocation13 + $0x20] sm:$0xf] }
 0x23b   :  { %16498 = vst [vmem:[#allocation67_spill] sm:$0xff] %v15635_v58  ;;  %v1339_v28 = vmax.f32 %v1298_v3, 0.0  ;;  %v11133_v39 = vld [vmem:[#allocation13 + $0x2e0] sm:$0xf] }
 0x23c   :  { %3610 = vmatpush.bf16.msra.mxu0 %v10514_v13  ;;  %3624 = vmatpush.bf16.msra.mxu1 %v10578_v55  ;;  %v10798_v13 = vor.u32 %v13884_v17, %v10797_v12  ;;  %v10862_v55 = vor.u32 %v13900_v1, %v10861_v14  ;;  %v3388_v29 = vpop.f32.mrf.mxu0  ;;  %v1249_v12 = vadd.f32 %v15620_v30, %v1248_v54  ;;  %v10437_v54 = vld [vmem:[#allocation13 + $0x970] sm:$0xf] }
 0x23d   :  { %v1357_v49 = vpack.c.bf16 %v1339_v28, %v1339_v28 }
 0x23e   :  { %1867 = vmatmul.bf16.gmra.mxu2 %v15385_v42  ;;  %1911 = vmatmul.bf16.gmra.mxu3 %v15410_v36 }
 0x23f   :  { %3611 = vmatmul.bf16.vlgmr.msra.gmra.mxu0 %v15446_v53  ;;  %3625 = vmatmul.bf16.vlgmr.msra.gmra.mxu1 %v15450_v60  ;;  %v6007_v17 = vunpack.c.l.b16 %v1357_v49  ;;  %v13876_v49 = vld [vmem:[#allocation13 + $0x4] sm:$0xf0] }
 0x240   :  { %4619 = vmatpush.bf16.msrb.mxu0 %v10822_v57  ;;  %4633 = vmatpush.bf16.msrb.mxu1 %v10886_v27  ;;  %v1250_v26 = vpop.f32.mrf.mxu2  ;;  %v1299_v61 = vpop.f32.mrf.mxu3  ;;  %v13882_v57 = vld [vmem:[#allocation13 + $0x34] sm:$0xf0]  ;;  %v10853_v27 = vld [vmem:[#allocation13 + $0xb0] sm:$0xf] }
 0x241   :  { %v1300_v56 = vadd.f32 %v1299_v61, %v1246_v19  ;;  %v10790_v0 = vor.u32 %v13882_v57, %v10789_v18  ;;  %v10854_v3 = vor.u32 %v13898_v32, %v10853_v27  ;;  %v10782_v19 = vor.u32 %v13880_v20, %v10781_v46  ;;  %v10837_v18 = vld [vmem:[#allocation13 + $0x90] sm:$0xf]  ;;  %v13894_v57 = vld [vmem:[#allocation13 + $0x94] sm:$0xf0]  ;;  %v10765_v32 = vld [vmem:[#allocation13] sm:$0xf] }
 0x242   :  { %v14178_v27 = vld [vmem:[#allocation13 + $0x974] sm:$0xf0]  ;;  %v11077_v46 = vld [vmem:[#allocation13 + $0x270] sm:$0xf] }
 0x243   :  { %v1340_v33 = vmax.f32 %v1300_v56, 0.0  ;;  %v13970_v20 = vld [vmem:[#allocation13 + $0x2f4] sm:$0xf0] }
 0x244   :  { %4620 = vmatpush.bf16.msrb.mxu0 %v10814_v8  ;;  %4634 = vmatpush.bf16.msrb.mxu1 %v10878_v6  ;;  %v3402_v8 = vpop.f32.mrf.mxu1  ;;  %v3389_v6 = vadd.f32 %v3388_v29, %v3375_v50 }
 0x245   :  { %v1358_v41 = vpack.c.bf16 %v1340_v33, %v1340_v33  ;;  %v10438_v33 = vor.u32 %v14178_v27, %v10437_v54  ;;  %v13952_v27 = vld [vmem:[#allocation13 + $0x264] sm:$0xf0] }
 0x246   :  { %v15644_v47 = vadd.f32 %v3402_v8, %v3389_v6  ;;  %v10838_v8 = vor.u32 %v13894_v57, %v10837_v18  ;;  %v10829_v6 = vld [vmem:[#allocation13 + $0x80] sm:$0xf] }
 0x247   :  { %v6008_v14 = vunpack.c.l.b16 %v1358_v41  ;;  %v13892_v41 = vld [vmem:[#allocation13 + $0x84] sm:$0xf0]  ;;  %3407 = vmatpush.bf16.msrb.mxu2 %v10438_v33 }
 0x248   :  { %4621 = vmatpush.bf16.msrb.mxu0 %v10806_v43  ;;  %4635 = vmatpush.bf16.msrb.mxu1 %v10870_v48  ;;  %v10845_v43 = vld [vmem:[#allocation13 + $0xa0] sm:$0xf]  ;;  %v13896_v48 = vld [vmem:[#allocation13 + $0xa4] sm:$0xf0]  ;;  %v1253_v50 = vpop.f32.mrf.mxu2  ;;  %v1302_v1 = vpop.f32.mrf.mxu3 }
 0x249   :  { %v15649_v28 = vpack.c.b16 %v6008_v14, %v6007_v17  ;;  %v1303_v61 = vadd.f32 %v1302_v1, %v1249_v12  ;;  %v10846_v56 = vor.u32 %v13896_v48, %v10845_v43  ;;  %v1251_v43 = vadd.f32 %v15620_v30, %v1250_v26  ;;  %v10429_v12 = vld [vmem:[#allocation13 + $0x960] sm:$0xf]  ;;  %v14176_v17 = vld [vmem:[#allocation13 + $0x964] sm:$0xf0] }
 0x24a   :  { %v10430_v54 = vor.u32 %v14176_v17, %v10429_v12  ;;  %v13968_v33 = vld [vmem:[#allocation13 + $0x2e4] sm:$0xf0] }
 0x24b   :  { %16501 = vst [vmem:[#allocation70_spill] sm:$0xff] %v15649_v28  ;;  %v1341_v48 = vmax.f32 %v1303_v61, 0.0  ;;  %v14174_v28 = vld [vmem:[#allocation13 + $0x954] sm:$0xf0] }
 0x24c   :  { %4622 = vmatpush.bf16.msrb.mxu0 %v10798_v13  ;;  %4636 = vmatpush.bf16.msrb.mxu1 %v10862_v55  ;;  %v10773_v13 = vld [vmem:[#allocation13 + $0x10] sm:$0xf]  ;;  %v13878_v55 = vld [vmem:[#allocation13 + $0x14] sm:$0xf0]  ;;  %v10422_v12 = vor.u32 %v14174_v28, %v10421_v16 }
 0x24d   :  { %v10774_v29 = vor.u32 %v13878_v55, %v10773_v13  ;;  %v10830_v13 = vor.u32 %v13892_v41, %v10829_v6  ;;  %v11069_v55 = vld [vmem:[#allocation13 + $0x260] sm:$0xf]  ;;  %3408 = vmatpush.bf16.msrb.mxu2 %v10430_v54  ;;  %v1359_v26 = vpack.c.bf16 %v1341_v48, %v1341_v48  ;;  %v11125_v6 = vld [vmem:[#allocation13 + $0x2d0] sm:$0xf]  ;;  %v1254_v41 = vadd.f32 %v15620_v30, %v1253_v50  ;;  %v13948_v54 = vld [vmem:[#allocation13 + $0x244] sm:$0xf0] }
 0x24e   :  { %1872 = vmatmul.bf16.gmra.mxu2 %v15395_v62  ;;  %1916 = vmatmul.bf16.gmra.mxu3 %v15423_v22 }
 0x250   :  { %4623 = vmatpush.bf16.msrb.mxu0 %v10790_v0  ;;  %4637 = vmatpush.bf16.msrb.mxu1 %v10854_v3  ;;  %v13954_v0 = vld [vmem:[#allocation13 + $0x274] sm:$0xf0]  ;;  %v11141_v3 = vld [vmem:[#allocation13 + $0x2f0] sm:$0xf]  ;;  %v15652_v14 = vpop.f32.mrf.mxu2  ;;  %v1304_v1 = vpop.f32.mrf.mxu3 }
 0x251   :  { %v11078_v18 = vor.u32 %v13954_v0, %v11077_v46  ;;  %v11142_v57 = vor.u32 %v13970_v20, %v11141_v3  ;;  %v6013_v46 = vunpack.c.l.b16 %v1359_v26  ;;  %v13966_v3 = vld [vmem:[#allocation13 + $0x2d4] sm:$0xf0]  ;;  %v10413_v20 = vld [vmem:[#allocation13 + $0x940] sm:$0xf]  ;;  %3409 = vmatpush.bf16.msrb.mxu2 %v10422_v12 }
 0x252   :  { %v11126_v17 = vor.u32 %v13966_v3, %v11125_v6  ;;  %v15665_v6 = vpop.f32.mrf.mxu1  ;;  %v14168_v3 = vld [vmem:[#allocation13 + $0x924] sm:$0xf0] }
 0x253   :  { %16504 = vst [vmem:[#allocation73_spill] sm:$0xff] %v15665_v6  ;;  %v10485_v6 = vld [vmem:[#allocation13 + $0x9d0] sm:$0xf] }
 0x254   :  { %4624 = vmatpush.bf16.msrb.mxu0 %v10782_v19  ;;  %4638 = vmatpush.bf16.msrb.mxu1 %v10846_v56  ;;  %v1305_v19 = vadd.f32 %v1304_v1, %v1251_v43  ;;  %v10766_v56 = vor.u32 %v13876_v49, %v10765_v32  ;;  %v11134_v32 = vor.u32 %v13968_v33, %v11133_v39  ;;  %v11061_v49 = vld [vmem:[#allocation13 + $0x250] sm:$0xf]  ;;  %v14172_v43 = vld [vmem:[#allocation13 + $0x944] sm:$0xf0]  ;;  %v11053_v1 = vld [vmem:[#allocation13 + $0x240] sm:$0xf] }
 0x255   :  { %v10414_v50 = vor.u32 %v14172_v43, %v10413_v20  ;;  %v13946_v33 = vld [vmem:[#allocation13 + $0x234] sm:$0xf0]  ;;  %v11054_v12 = vor.u32 %v13948_v54, %v11053_v1  ;;  %v10493_v20 = vld [vmem:[#allocation13 + $0x9e0] sm:$0xf] }
 0x256   :  { %v1342_v61 = vmax.f32 %v1305_v19, 0.0  ;;  %v11117_v19 = vld [vmem:[#allocation13 + $0x2c0] sm:$0xf] }
 0x257   :  { %3410 = vmatpush.bf16.msrb.mxu2 %v10414_v50 }
 0x258   :  { %4625 = vmatpush.bf16.msrb.mxu0 %v10774_v29  ;;  %4639 = vmatpush.bf16.msrb.mxu1 %v10838_v8  ;;  %v1360_v58 = vpack.c.bf16 %v1342_v61, %v1342_v61  ;;  %v11070_v29 = vor.u32 %v13952_v27, %v11069_v55  ;;  %v13950_v8 = vld [vmem:[#allocation13 + $0x254] sm:$0xf0]  ;;  %v15659_v16 = vpop.f32.mrf.mxu2  ;;  %v1307_v39 = vpop.f32.mrf.mxu3  ;;  %v11045_v27 = vld [vmem:[#allocation13 + $0x230] sm:$0xf] }
 0x259   :  { %v1308_v48 = vadd.f32 %v1307_v39, %v1254_v41  ;;  %v14170_v55 = vld [vmem:[#allocation13 + $0x934] sm:$0xf0]  ;;  %v11046_v54 = vor.u32 %v13946_v33, %v11045_v27 }
 0x25a   :  { %v6014_v0 = vunpack.c.l.b16 %v1360_v58  ;;  %v11062_v58 = vor.u32 %v13950_v8, %v11061_v49  ;;  %v13962_v49 = vld [vmem:[#allocation13 + $0x2b4] sm:$0xf0]  ;;  %v15663_v8 = vpop.f32.mrf.mxu0 }
 0x25b   :  { %v1343_v41 = vmax.f32 %v1308_v48, 0.0  ;;  %16503 = vst [vmem:[#allocation72_spill] sm:$0xff] %v15663_v8  ;;  %v14192_v48 = vld [vmem:[#allocation13 + $0x9e4] sm:$0xf0]  ;;  %v14190_v8 = vld [vmem:[#allocation13 + $0x9d4] sm:$0xf0] }
 0x25c   :  { %4626 = vmatpush.bf16.msrb.mxu0 %v10766_v56  ;;  %4640 = vmatpush.bf16.msrb.mxu1 %v10830_v13  ;;  %v15661_v28 = vpack.c.b16 %v6014_v0, %v6013_v46  ;;  %v13964_v56 = vld [vmem:[#allocation13 + $0x2c4] sm:$0xf0]  ;;  %v10405_v13 = vld [vmem:[#allocation13 + $0x930] sm:$0xf]  ;;  %v1256_v46 = vadd.f32 %v15620_v30, %v15652_v14  ;;  %v10397_v0 = vld [vmem:[#allocation13 + $0x920] sm:$0xf]  ;;  %v10494_v1 = vor.u32 %v14192_v48, %v10493_v20 }
 0x25d   :  { %v10406_v26 = vor.u32 %v14170_v55, %v10405_v13  ;;  %v11101_v13 = vld [vmem:[#allocation13 + $0x2a0] sm:$0xf]  ;;  %v13960_v14 = vld [vmem:[#allocation13 + $0x2a4] sm:$0xf0]  ;;  %v1361_v55 = vpack.c.bf16 %v1343_v41, %v1343_v41  ;;  %v13942_v33 = vld [vmem:[#allocation13 + $0x214] sm:$0xf0]  ;;  %v1259_v48 = vadd.f32 %v15620_v30, %v15659_v16 }
 0x25e   :  { %16502 = vst [vmem:[#allocation71_spill] sm:$0xff] %v15661_v28  ;;  %v11102_v27 = vor.u32 %v13960_v14, %v11101_v13  ;;  %1877 = vmatmul.bf16.gmra.mxu2 %v15408_v35  ;;  %1921 = vmatmul.bf16.gmra.mxu3 %v15435_v23  ;;  %v14164_v20 = vld [vmem:[#allocation13 + $0x904] sm:$0xf0] }
 0x25f   :  { %4627 = vmatmul.bf16.vlgmr.msrb.gmra.mxu0 %v15334_v11  ;;  %4641 = vmatmul.bf16.vlgmr.msrb.gmra.mxu1 %v15345_v34 }
 0x260   :  { %4675 = vmatpush.bf16.msra.mxu0 %v11078_v18  ;;  %4689 = vmatpush.bf16.msra.mxu1 %v11142_v57  ;;  %v10501_v18 = vld [vmem:[#allocation13 + $0x9f0] sm:$0xf]  ;;  %v14194_v57 = vld [vmem:[#allocation13 + $0x9f4] sm:$0xf0]  ;;  %v15669_v43 = vpop.f32.mrf.mxu2  ;;  %v1309_v39 = vpop.f32.mrf.mxu3 }
 0x261   :  { %v10502_v61 = vor.u32 %v14194_v57, %v10501_v18  ;;  %v1310_v50 = vadd.f32 %v1309_v39, %v1256_v46  ;;  %3411 = vmatpush.bf16.msrb.mxu2 %v10406_v26  ;;  %v10389_v57 = vld [vmem:[#allocation13 + $0x910] sm:$0xf]  ;;  %v10477_v39 = vld [vmem:[#allocation13 + $0x9c0] sm:$0xf] }
 0x262   :  { %v11029_v46 = vld [vmem:[#allocation13 + $0x210] sm:$0xf] }
 0x263   :  { %3421 = vmatpush.bf16.msrb.mxu3 %v10502_v61  ;;  %v1344_v18 = vmax.f32 %v1310_v50, 0.0  ;;  %v14166_v61 = vld [vmem:[#allocation13 + $0x914] sm:$0xf0]  ;;  %v14188_v50 = vld [vmem:[#allocation13 + $0x9c4] sm:$0xf0]  ;;  %v11030_v13 = vor.u32 %v13942_v33, %v11029_v46 }
 0x264   :  { %4676 = vmatpush.bf16.msra.mxu0 %v11070_v29  ;;  %4690 = vmatpush.bf16.msra.mxu1 %v11134_v32  ;;  %v11118_v29 = vor.u32 %v13964_v56, %v11117_v19  ;;  %v11109_v32 = vld [vmem:[#allocation13 + $0x2b0] sm:$0xf]  ;;  %v13944_v56 = vld [vmem:[#allocation13 + $0x224] sm:$0xf0]  ;;  %v10390_v26 = vor.u32 %v14166_v61, %v10389_v57 }
 0x265   :  { %v11110_v19 = vor.u32 %v13962_v49, %v11109_v32  ;;  %v1362_v28 = vpack.c.bf16 %v1344_v18, %v1344_v18  ;;  %v13958_v32 = vld [vmem:[#allocation13 + $0x294] sm:$0xf0]  ;;  %v6019_v49 = vunpack.c.l.b16 %v1361_v55  ;;  %v13940_v55 = vld [vmem:[#allocation13 + $0x204] sm:$0xf0]  ;;  %v11085_v18 = vld [vmem:[#allocation13 + $0x280] sm:$0xf] }
 0x266   :  { %v13956_v57 = vld [vmem:[#allocation13 + $0x284] sm:$0xf0]  ;;  %v11333_v61 = vld [vmem:[#allocation13 + $0x470] sm:$0xf] }
 0x267   :  { %3422 = vmatpush.bf16.msrb.mxu3 %v10494_v1  ;;  %v6020_v41 = vunpack.c.l.b16 %v1362_v28  ;;  %v11086_v46 = vor.u32 %v13956_v57, %v11085_v18  ;;  %v10453_v18 = vld [vmem:[#allocation13 + $0x990] sm:$0xf]  ;;  %v14182_v57 = vld [vmem:[#allocation13 + $0x994] sm:$0xf0] }
 0x268   :  { %4677 = vmatpush.bf16.msra.mxu0 %v11062_v58  ;;  %4691 = vmatpush.bf16.msra.mxu1 %v11126_v17  ;;  %v11037_v58 = vld [vmem:[#allocation13 + $0x220] sm:$0xf]  ;;  %v10398_v17 = vor.u32 %v14168_v3, %v10397_v0  ;;  %v10486_v0 = vor.u32 %v14190_v8, %v10485_v6  ;;  %v15675_v8 = vpop.f32.mrf.mxu0  ;;  %v15677_v6 = vpop.f32.mrf.mxu1 }
 0x269   :  { %v10381_v3 = vld [vmem:[#allocation13 + $0x900] sm:$0xf]  ;;  %16505 = vst [vmem:[#allocation74_spill] sm:$0xff] %v15675_v8  ;;  %v15679_v1 = vpack.c.b16 %v6020_v41, %v6019_v49  ;;  %v15681_v28 = vpop.f32.mrf.mxu2  ;;  %v1312_v35 = vpop.f32.mrf.mxu3  ;;  %v14186_v49 = vld [vmem:[#allocation13 + $0x9b4] sm:$0xf0] }
 0x26a   :  { %3412 = vmatpush.bf16.msrb.mxu2 %v10398_v17  ;;  %16506 = vst [vmem:[#allocation75_spill] sm:$0xff] %v15677_v6  ;;  %v14242_v17 = vld [vmem:[#allocation13 + $0xb74] sm:$0xf0]  ;;  %v1313_v16 = vadd.f32 %v1312_v35, %v1259_v48  ;;  %v10469_v6 = vld [vmem:[#allocation13 + $0x9b0] sm:$0xf]  ;;  %v1261_v48 = vadd.f32 %v15620_v30, %v15669_v43 }
 0x26b   :  { %3423 = vmatpush.bf16.msrb.mxu3 %v10486_v0  ;;  %16507 = vst [vmem:[#allocation76_spill] sm:$0xff] %v15679_v1  ;;  %v14018_v41 = vld [vmem:[#allocation13 + $0x474] sm:$0xf0]  ;;  %v11397_v1 = vld [vmem:[#allocation13 + $0x4f0] sm:$0xf]  ;;  %v10470_v21 = vor.u32 %v14186_v49, %v10469_v6 }
 0x26c   :  { %4678 = vmatpush.bf16.msra.mxu0 %v11054_v12  ;;  %4692 = vmatpush.bf16.msra.mxu1 %v11118_v29  ;;  %v11038_v12 = vor.u32 %v13944_v56, %v11037_v58  ;;  %v11093_v29 = vld [vmem:[#allocation13 + $0x290] sm:$0xf]  ;;  %v10478_v56 = vor.u32 %v14188_v50, %v10477_v39  ;;  %v14034_v8 = vld [vmem:[#allocation13 + $0x4f4] sm:$0xf0]  ;;  %v11334_v33 = vor.u32 %v14018_v41, %v11333_v61  ;;  %v10461_v39 = vld [vmem:[#allocation13 + $0x9a0] sm:$0xf] }
 0x26d   :  { %v10693_v58 = vld [vmem:[#allocation13 + $0xb70] sm:$0xf]  ;;  %v11094_v14 = vor.u32 %v13958_v32, %v11093_v29  ;;  %v11398_v29 = vor.u32 %v14034_v8, %v11397_v1  ;;  %v14016_v32 = vld [vmem:[#allocation13 + $0x464] sm:$0xf0]  ;;  %v1345_v50 = vmax.f32 %v1313_v16, 0.0 }
 0x26e   :  { %3413 = vmatpush.bf16.msrb.mxu2 %v10390_v26  ;;  %v10694_v0 = vor.u32 %v14242_v17, %v10693_v58  ;;  %v10685_v26 = vld [vmem:[#allocation13 + $0xb60] sm:$0xf]  ;;  %v14032_v58 = vld [vmem:[#allocation13 + $0x4e4] sm:$0xf0]  ;;  %v11317_v8 = vld [vmem:[#allocation13 + $0x450] sm:$0xf]  ;;  %1926 = vmatmul.bf16.gmra.mxu3 %v15446_v53 }
 0x26f   :  { %3424 = vmatpush.bf16.msrb.mxu3 %v10478_v56  ;;  %v14184_v17 = vld [vmem:[#allocation13 + $0x9a4] sm:$0xf0]  ;;  %v10677_v1 = vld [vmem:[#allocation13 + $0xb50] sm:$0xf]  ;;  %v1363_v61 = vpack.c.bf16 %v1345_v50, %v1345_v50  ;;  %v14030_v41 = vld [vmem:[#allocation13 + $0x4d4] sm:$0xf0]  ;;  %1882 = vmatmul.bf16.gmra.mxu2 %v15410_v36 }
 0x270   :  { %4679 = vmatpush.bf16.msra.mxu0 %v11046_v54  ;;  %4693 = vmatpush.bf16.msra.mxu1 %v11110_v19  ;;  %v11021_v54 = vld [vmem:[#allocation13 + $0x200] sm:$0xf]  ;;  %v10382_v19 = vor.u32 %v14164_v20, %v10381_v3  ;;  %v14240_v3 = vld [vmem:[#allocation13 + $0xb64] sm:$0xf0]  ;;  %v15689_v43 = vpop.f32.mrf.mxu1  ;;  %v11381_v49 = vld [vmem:[#allocation13 + $0x4d0] sm:$0xf] }
 0x271   :  { %v11389_v20 = vld [vmem:[#allocation13 + $0x4e0] sm:$0xf]  ;;  %v10686_v6 = vor.u32 %v14240_v3, %v10685_v26  ;;  %v15685_v35 = vpop.f32.mrf.mxu2  ;;  %16509 = vst [vmem:[#allocation78_spill] sm:$0xff] %v15689_v43  ;;  %v10454_v3 = vor.u32 %v14182_v57, %v10453_v18  ;;  %v6025_v50 = vunpack.c.l.b16 %v1363_v61  ;;  %v14258_v18 = vld [vmem:[#allocation13 + $0xbf4] sm:$0xf0] }
 0x272   :  { %3414 = vmatpush.bf16.msrb.mxu2 %v10382_v19  ;;  %v1314_v19 = vpop.f32.mrf.mxu3  ;;  %v11301_v57 = vld [vmem:[#allocation13 + $0x430] sm:$0xf]  ;;  %v11023_v43 = vld [vmem:[#allocation13 + $0x208] sm:$0xf0] }
 0x273   :  { %3425 = vmatpush.bf16.msrb.mxu3 %v10470_v21  ;;  %v1315_v56 = vadd.f32 %v1314_v19, %v1261_v48  ;;  %v11390_v21 = vor.u32 %v14032_v58, %v11389_v20  ;;  %v14012_v20 = vld [vmem:[#allocation13 + $0x444] sm:$0xf0]  ;;  %v1264_v48 = vadd.f32 %v15620_v30, %v15681_v28 }
 0x274   :  { %4680 = vmatpush.bf16.msra.mxu0 %v11038_v12  ;;  %4694 = vmatpush.bf16.msra.mxu1 %v11102_v27  ;;  %v11022_v12 = vor.u32 %v13940_v55, %v11021_v54  ;;  %v11325_v27 = vld [vmem:[#allocation13 + $0x460] sm:$0xf]  ;;  %v10462_v54 = vor.u32 %v14184_v17, %v10461_v39  ;;  %v14014_v55 = vld [vmem:[#allocation13 + $0x454] sm:$0xf0]  ;;  %v14180_v19 = vld [vmem:[#allocation13 + $0x984] sm:$0xf0] }
 0x275   :  { %v11326_v16 = vor.u32 %v14016_v32, %v11325_v27  ;;  %v11318_v27 = vor.u32 %v14014_v55, %v11317_v8  ;;  %v11309_v32 = vld [vmem:[#allocation13 + $0x440] sm:$0xf]  ;;  %v14234_v55 = vld [vmem:[#allocation13 + $0xb34] sm:$0xf0] }
 0x276   :  { %3463 = vmatpush.bf16.msra.mxu2 %v10694_v0  ;;  %v1346_v0 = vmax.f32 %v1315_v56, 0.0  ;;  %v11373_v39 = vld [vmem:[#allocation13 + $0x4c0] sm:$0xf]  ;;  %v11310_v36 = vor.u32 %v14012_v20, %v11309_v32 }
 0x277   :  { %3426 = vmatpush.bf16.msrb.mxu3 %v10462_v54  ;;  %v10445_v17 = vld [vmem:[#allocation13 + $0x980] sm:$0xf] }
 0x278   :  { %4681 = vmatpush.bf16.msra.mxu0 %v11030_v13  ;;  %4695 = vmatpush.bf16.msra.mxu1 %v11094_v14  ;;  %v14238_v13 = vld [vmem:[#allocation13 + $0xb54] sm:$0xf0]  ;;  %v15687_v14 = vpop.f32.mrf.mxu0  ;;  %v11293_v20 = vld [vmem:[#allocation13 + $0x420] sm:$0xf] }
 0x279   :  { %16508 = vst [vmem:[#allocation77_spill] sm:$0xff] %v15687_v14  ;;  %v10678_v26 = vor.u32 %v14238_v13, %v10677_v1  ;;  %v15697_v54 = vpop.f32.mrf.mxu2  ;;  %v10446_v1 = vor.u32 %v14180_v19, %v10445_v17  ;;  %v10757_v13 = vld [vmem:[#allocation13 + $0xbf0] sm:$0xf]  ;;  %v11357_v19 = vld [vmem:[#allocation13 + $0x4a0] sm:$0xf] }
 0x27a   :  { %3464 = vmatpush.bf16.msra.mxu2 %v10686_v6  ;;  %v14028_v6 = vld [vmem:[#allocation13 + $0x4c4] sm:$0xf0]  ;;  %v1317_v56 = vpop.f32.mrf.mxu3  ;;  %v10758_v61 = vor.u32 %v14258_v18, %v10757_v13  ;;  %v10645_v18 = vld [vmem:[#allocation13 + $0xb10] sm:$0xf]  ;;  %v13955_v14 = vld [vmem:[#allocation13 + $0x284] sm:$0xf] }
 0x27b   :  { %3427 = vmatpush.bf16.msrb.mxu3 %v10454_v3  ;;  %v1318_v28 = vadd.f32 %v1317_v56, %v1264_v48  ;;  %v11374_v53 = vor.u32 %v14028_v6, %v11373_v39  ;;  %v10653_v48 = vld [vmem:[#allocation13 + $0xb20] sm:$0xf]  ;;  %v14008_v39 = vld [vmem:[#allocation13 + $0x424] sm:$0xf0]  ;;  %v1266_v6 = vadd.f32 %v15620_v30, %v15685_v35  ;;  %v14006_v35 = vld [vmem:[#allocation13 + $0x414] sm:$0xf0] }
 0x27c   :  { %4682 = vmatpush.bf16.msra.mxu0 %v11022_v12  ;;  %4696 = vmatpush.bf16.msra.mxu1 %v11086_v46  ;;  %v1364_v12 = vpack.c.bf16 %v1346_v0, %v1346_v0  ;;  %v10669_v46 = vld [vmem:[#allocation13 + $0xb40] sm:$0xf]  ;;  %v14010_v0 = vld [vmem:[#allocation13 + $0x434] sm:$0xf0]  ;;  %v3514_v3 = vpop.f32.mrf.mxu1  ;;  %v14024_v56 = vld [vmem:[#allocation13 + $0x4a4] sm:$0xf0] }
 0x27d   :  { %v1347_v17 = vmax.f32 %v1318_v28, 0.0 }
 0x27e   :  { %v6026_v58 = vunpack.c.l.b16 %v1364_v12  ;;  %3465 = vmatpush.bf16.msra.mxu2 %v10678_v26  ;;  %1931 = vmatmul.bf16.gmra.mxu3 %v15450_v60 }
 0x27f   :  { %4683 = vmatmul.bf16.vlgmr.msra.gmra.mxu0 %v15387_v45  ;;  %4697 = vmatmul.bf16.vlgmr.msra.gmra.mxu1 %v15401_v7 }
 0x280   :  { %4731 = vmatpush.bf16.msrb.mxu0 %v11334_v33  ;;  %4745 = vmatpush.bf16.msrb.mxu1 %v11398_v29  ;;  %v14236_v33 = vld [vmem:[#allocation13 + $0xb44] sm:$0xf0]  ;;  %v11382_v29 = vor.u32 %v14030_v41, %v11381_v49  ;;  %v11365_v49 = vld [vmem:[#allocation13 + $0x4b0] sm:$0xf]  ;;  %v14026_v41 = vld [vmem:[#allocation13 + $0x4b4] sm:$0xf0]  ;;  %v3500_v26 = vpop.f32.mrf.mxu0 }
 0x281   :  { %v10670_v8 = vor.u32 %v14236_v33, %v10669_v46  ;;  %3428 = vmatpush.bf16.msrb.mxu3 %v10446_v1  ;;  %v10749_v46 = vld [vmem:[#allocation13 + $0xbe0] sm:$0xf]  ;;  %v15701_v33 = vadd.f32 %v3514_v3, %v3500_v26  ;;  %v11366_v32 = vor.u32 %v14026_v41, %v11365_v49  ;;  %v1365_v49 = vpack.c.bf16 %v1347_v17, %v1347_v17  ;;  %v11349_v26 = vld [vmem:[#allocation13 + $0x490] sm:$0xf]  ;;  %v14022_v3 = vld [vmem:[#allocation13 + $0x494] sm:$0xf0] }
 0x282   :  { %v1319_v1 = vpop.f32.mrf.mxu3  ;;  %1887 = vmatmul.bf16.gmra.mxu2 %v15423_v22 }
 0x283   :  { %3466 = vmatpush.bf16.msra.mxu2 %v10670_v8  ;;  %v15705_v8 = vpop.f32.mrf.mxu2 }
 0x284   :  { %4732 = vmatpush.bf16.msrb.mxu0 %v11326_v16  ;;  %4746 = vmatpush.bf16.msrb.mxu1 %v11390_v21  ;;  %v15699_v16 = vpack.c.b16 %v6026_v58, %v6025_v50  ;;  %v10661_v21 = vld [vmem:[#allocation13 + $0xb30] sm:$0xf]  ;;  %v14232_v50 = vld [vmem:[#allocation13 + $0xb24] sm:$0xf0] }
 0x285   :  { %v10662_v12 = vor.u32 %v14234_v55, %v10661_v21  ;;  %3477 = vmatpush.bf16.msra.mxu3 %v10758_v61  ;;  %v10654_v13 = vor.u32 %v14232_v50, %v10653_v48  ;;  %v10741_v21 = vld [vmem:[#allocation13 + $0xbd0] sm:$0xf]  ;;  %v1320_v55 = vadd.f32 %v1319_v1, %v1266_v6  ;;  %v11358_v61 = vor.u32 %v14024_v56, %v11357_v19  ;;  %v10637_v50 = vld [vmem:[#allocation13 + $0xb00] sm:$0xf]  ;;  %v14020_v1 = vld [vmem:[#allocation13 + $0x484] sm:$0xf0] }
 0x286   :  { %v6031_v19 = vunpack.c.l.b16 %v1365_v49  ;;  %v11341_v56 = vld [vmem:[#allocation13 + $0x480] sm:$0xf]  ;;  %v14250_v49 = vld [vmem:[#allocation13 + $0xbb4] sm:$0xf0] }
 0x287   :  { %3467 = vmatpush.bf16.msra.mxu2 %v10662_v12  ;;  %v1348_v41 = vmax.f32 %v1320_v55, 0.0  ;;  %v10823_v55 = vld [vmem:[#allocation13 + $0x78] sm:$0xf0] }
 0x288   :  { %4733 = vmatpush.bf16.msrb.mxu0 %v11318_v27  ;;  %4747 = vmatpush.bf16.msrb.mxu1 %v11382_v29  ;;  %v14256_v27 = vld [vmem:[#allocation13 + $0xbe4] sm:$0xf0]  ;;  %v11302_v29 = vor.u32 %v14010_v0, %v11301_v57  ;;  %v11294_v57 = vor.u32 %v14008_v39, %v11293_v20  ;;  %v11285_v0 = vld [vmem:[#allocation13 + $0x410] sm:$0xf]  ;;  %v11277_v20 = vld [vmem:[#allocation13 + $0x400] sm:$0xf] }
 0x289   :  { %v10750_v58 = vor.u32 %v14256_v27, %v10749_v46  ;;  %v10733_v46 = vld [vmem:[#allocation13 + $0xbc0] sm:$0xf]  ;;  %v1366_v48 = vpack.c.bf16 %v1348_v41, %v1348_v41  ;;  %v14228_v27 = vld [vmem:[#allocation13 + $0xb04] sm:$0xf0]  ;;  %v11342_v41 = vor.u32 %v14020_v1, %v11341_v56  ;;  %v13901_v56 = vld [vmem:[#allocation13 + $0xd4] sm:$0xf] }
 0x28a   :  { %v14004_v39 = vld [vmem:[#allocation13 + $0x404] sm:$0xf0] }
 0x28b   :  { %3478 = vmatpush.bf16.msra.mxu3 %v10750_v58  ;;  %3468 = vmatpush.bf16.msra.mxu2 %v10654_v13  ;;  %v14252_v58 = vld [vmem:[#allocation13 + $0xbc4] sm:$0xf0]  ;;  %v6032_v17 = vunpack.c.l.b16 %v1366_v48  ;;  %v13889_v13 = vld [vmem:[#allocation13 + $0x74] sm:$0xf]  ;;  %v10815_v48 = vld [vmem:[#allocation13 + $0x68] sm:$0xf0] }
 0x28c   :  { %4734 = vmatpush.bf16.msrb.mxu0 %v11310_v36  ;;  %4748 = vmatpush.bf16.msrb.mxu1 %v11374_v53  ;;  %v14230_v36 = vld [vmem:[#allocation13 + $0xb14] sm:$0xf0]  ;;  %v10734_v6 = vor.u32 %v14252_v58, %v10733_v46  ;;  %v13887_v46 = vld [vmem:[#allocation13 + $0x64] sm:$0xf] }
 0x28d   :  { %v14254_v53 = vld [vmem:[#allocation13 + $0xbd4] sm:$0xf0]  ;;  %v10646_v12 = vor.u32 %v14230_v36, %v10645_v18  ;;  %v13905_v18 = vld [vmem:[#allocation13 + $0xf4] sm:$0xf]  ;;  %v10887_v36 = vld [vmem:[#allocation13 + $0xf8] sm:$0xf0] }
 0x28e   :  { %v10742_v28 = vor.u32 %v14254_v53, %v10741_v21  ;;  %v1269_v21 = vadd.f32 %v15620_v30, %v15697_v54  ;;  %v10638_v53 = vor.u32 %v14228_v27, %v10637_v50  ;;  %v10890_v54 = vor.u32 %v13905_v18, %v10887_v36  ;;  %v13903_v58 = vld [vmem:[#allocation13 + $0xe4] sm:$0xf]  ;;  %v10717_v50 = vld [vmem:[#allocation13 + $0xba0] sm:$0xf]  ;;  %v14248_v27 = vld [vmem:[#allocation13 + $0xba4] sm:$0xf0]  ;;  %1936 = vmatmul.bf16.gmra.mxu3 %v15470_v15 }
 0x28f   :  { %3469 = vmatpush.bf16.msra.mxu2 %v10646_v12  ;;  %v10879_v12 = vld [vmem:[#allocation13 + $0xe8] sm:$0xf0]  ;;  %v14246_v18 = vld [vmem:[#allocation13 + $0xb94] sm:$0xf0] }
 0x290   :  { %4735 = vmatpush.bf16.msrb.mxu0 %v11302_v29  ;;  %4749 = vmatpush.bf16.msrb.mxu1 %v11366_v32  ;;  %v11286_v29 = vor.u32 %v14006_v35, %v11285_v0  ;;  %v11350_v32 = vor.u32 %v14022_v3, %v11349_v26  ;;  %v1322_v0 = vpop.f32.mrf.mxu3  ;;  %v11278_v35 = vor.u32 %v14004_v39, %v11277_v20 }
 0x291   :  { %3479 = vmatpush.bf16.msra.mxu3 %v10742_v28  ;;  %v10725_v28 = vld [vmem:[#allocation13 + $0xbb0] sm:$0xf]  ;;  %v1323_v60 = vadd.f32 %v1322_v0, %v1269_v21  ;;  %v10826_v3 = vor.u32 %v13889_v13, %v10823_v55  ;;  %v10818_v20 = vor.u32 %v13887_v46, %v10815_v48  ;;  %v10882_v39 = vor.u32 %v13903_v58, %v10879_v12  ;;  %v10871_v21 = vld [vmem:[#allocation13 + $0xd8] sm:$0xf0]  ;;  %v13883_v0 = vld [vmem:[#allocation13 + $0x44] sm:$0xf] }
 0x292   :  { %v10726_v26 = vor.u32 %v14250_v49, %v10725_v28  ;;  %v10709_v55 = vld [vmem:[#allocation13 + $0xb90] sm:$0xf]  ;;  %v10874_v28 = vor.u32 %v13901_v56, %v10871_v21  ;;  %v10799_v49 = vld [vmem:[#allocation13 + $0x48] sm:$0xf0]  ;;  %1892 = vmatmul.bf16.gmra.mxu2 %v15435_v23  ;;  %v14842_v58 = vld [vmem:[#allocation12 + $0x3] ss:$0 sm:$0xff] }
 0x293   :  { %3470 = vmatpush.bf16.msra.mxu2 %v10638_v53  ;;  %v10710_v53 = vor.u32 %v14246_v18, %v10709_v55  ;;  %v10802_v48 = vor.u32 %v13883_v0, %v10799_v49  ;;  %v10783_v18 = vld [vmem:[#allocation13 + $0x28] sm:$0xf0] }
 0x294   :  { %4736 = vmatpush.bf16.msrb.mxu0 %v11294_v57  ;;  %4750 = vmatpush.bf16.msrb.mxu1 %v11358_v61  ;;  %v15711_v57 = vpack.c.b16 %v6032_v17, %v6031_v19  ;;  %v1273_v61 = vpop.f32.mrf.mxu2  ;;  %v1349_v19 = vmax.f32 %v1323_v60, 0.0  ;;  %v10807_v17 = vld [vmem:[#allocation13 + $0x58] sm:$0xf0]  ;;  %v13899_v60 = vld [vmem:[#allocation13 + $0xc4] sm:$0xf] }
 0x295   :  { %3480 = vmatpush.bf16.msra.mxu3 %v10734_v6  ;;  %v1271_v6 = vadd.f32 %v15620_v30, %v15705_v8  ;;  %v1274_v12 = vadd.f32 %v14842_v58, %v1273_v61  ;;  %v13879_v61 = vld [vmem:[#allocation13 + $0x24] sm:$0xf] }
 0x298   :  { %4737 = vmatpush.bf16.msrb.mxu0 %v11286_v29  ;;  %4751 = vmatpush.bf16.msrb.mxu1 %v11350_v32  ;;  %v13885_v29 = vld [vmem:[#allocation13 + $0x54] sm:$0xf]  ;;  %v10718_v32 = vor.u32 %v14248_v27, %v10717_v50  ;;  %v1324_v13 = vpop.f32.mrf.mxu3 }
 0x299   :  { %3481 = vmatpush.bf16.msra.mxu3 %v10726_v26  ;;  %v1325_v36 = vadd.f32 %v1324_v13, %v1271_v6  ;;  %v10810_v8 = vor.u32 %v13885_v29, %v10807_v17  ;;  %v10701_v26 = vld [vmem:[#allocation13 + $0xb80] sm:$0xf]  ;;  %v10791_v6 = vld [vmem:[#allocation13 + $0x38] sm:$0xf0] }
 0x29a   :  { %v10855_v17 = vld [vmem:[#allocation13 + $0xb8] sm:$0xf0] }
 0x29b   :  { %v1350_v30 = vmax.f32 %v1325_v36, 0.0  ;;  %v13895_v36 = vld [vmem:[#allocation13 + $0xa4] sm:$0xf] }
 0x29c   :  { %4738 = vmatpush.bf16.msrb.mxu0 %v11278_v35  ;;  %4752 = vmatpush.bf16.msrb.mxu1 %v11342_v41  ;;  %v1275_v1 = vpop.f32.mrf.mxu2  ;;  %v1367_v35 = vpack.c.bf16 %v1349_v19, %v1349_v19  ;;  %v10863_v41 = vld [vmem:[#allocation13 + $0xc8] sm:$0xf0]  ;;  %v13897_v19 = vld [vmem:[#allocation13 + $0xb4] sm:$0xf] }
 0x29d   :  { %3482 = vmatpush.bf16.msra.mxu3 %v10718_v32  ;;  %v10858_v55 = vor.u32 %v13897_v19, %v10855_v17  ;;  %v1276_v0 = vadd.f32 %v14842_v58, %v1275_v1  ;;  %v10767_v19 = vld [vmem:[#allocation13 + $0x8] sm:$0xf0]  ;;  %v13891_v17 = vld [vmem:[#allocation13 + $0x84] sm:$0xf] }
 0x29e   :  { %v6037_v50 = vunpack.c.l.b16 %v1367_v35  ;;  %1941 = vmatmul.bf16.gmra.mxu3 %v15487_v2 }
 0x29f   :  { %4739 = vmatmul.bf16.vlgmr.msrb.gmra.mxu0 %v15437_v31  ;;  %4753 = vmatmul.bf16.vlgmr.msrb.gmra.mxu1 %v15448_v59 }
 0x2a0   :  { %4787 = vmatpush.bf16.msra.mxu0 %v10826_v3  ;;  %4801 = vmatpush.bf16.msra.mxu1 %v10890_v54  ;;  %v14244_v3 = vld [vmem:[#allocation13 + $0xb84] sm:$0xf0]  ;;  %v1368_v54 = vpack.c.bf16 %v1350_v30, %v1350_v30  ;;  %v1327_v32 = vpop.f32.mrf.mxu3  ;;  %v10786_v30 = vor.u32 %v13879_v61, %v10783_v18  ;;  %v11079_v61 = vld [vmem:[#allocation13 + $0x278] sm:$0xf0] }
 0x2a1   :  { %3483 = vmatpush.bf16.msra.mxu3 %v10710_v53  ;;  %v10702_v46 = vor.u32 %v14244_v3, %v10701_v26  ;;  %v1328_v13 = vadd.f32 %v1327_v32, %v1274_v12  ;;  %v10847_v53 = vld [vmem:[#allocation13 + $0xa8] sm:$0xf0]  ;;  %v13877_v26 = vld [vmem:[#allocation13 + $0x14] sm:$0xf]  ;;  %v10775_v3 = vld [vmem:[#allocation13 + $0x18] sm:$0xf0] }
 0x2a2   :  { %v6038_v27 = vunpack.c.l.b16 %v1368_v54  ;;  %3415 = vmatmul.bf16.vlgmr.msrb.gmra.mxu2 %v15423_v22 }
 0x2a3   :  { %v1351_v35 = vmax.f32 %v1328_v13, 0.0 }
 0x2a4   :  { %4788 = vmatpush.bf16.msra.mxu0 %v10818_v20  ;;  %4802 = vmatpush.bf16.msra.mxu1 %v10882_v39  ;;  %v10866_v20 = vor.u32 %v13899_v60, %v10863_v41  ;;  %v13881_v39 = vld [vmem:[#allocation13 + $0x34] sm:$0xf]  ;;  %v1278_v29 = vpop.f32.mrf.mxu2  ;;  %v15719_v56 = vpack.c.b16 %v6038_v27, %v6037_v50  ;;  %v10183_v41 = vld [vmem:[#allocation13 + $0x778] sm:$0xf0]  ;;  %v10778_v27 = vor.u32 %v13877_v26, %v10775_v3 }
 0x2a5   :  { %3484 = vmatpush.bf16.msra.mxu3 %v10702_v46  ;;  %v10794_v21 = vor.u32 %v13881_v39, %v10791_v6  ;;  %v13893_v46 = vld [vmem:[#allocation13 + $0x94] sm:$0xf]  ;;  %v1369_v12 = vpack.c.bf16 %v1351_v35, %v1351_v35  ;;  %v10175_v39 = vld [vmem:[#allocation13 + $0x768] sm:$0xf0]  ;;  %v13875_v6 = vld [vmem:[#allocation13 + $0x4] sm:$0xf] }
 0x2a6   :  { %v14109_v3 = vld [vmem:[#allocation13 + $0x754] sm:$0xf] }
 0x2a7   :  { %v6043_v35 = vunpack.c.l.b16 %v1369_v12 }
 0x2a8   :  { %4789 = vmatpush.bf16.msra.mxu0 %v10810_v8  ;;  %4803 = vmatpush.bf16.msra.mxu1 %v10874_v28  ;;  %v10850_v8 = vor.u32 %v13895_v36, %v10847_v53  ;;  %v14113_v28 = vld [vmem:[#allocation13 + $0x774] sm:$0xf]  ;;  %v1329_v60 = vpop.f32.mrf.mxu3  ;;  %v11143_v53 = vld [vmem:[#allocation13 + $0x2f8] sm:$0xf0] }
 0x2a9   :  { %v1330_v54 = vadd.f32 %v1329_v60, %v1276_v0  ;;  %v10186_v1 = vor.u32 %v14113_v28, %v10183_v41  ;;  %v13969_v36 = vld [vmem:[#allocation13 + $0x2f4] sm:$0xf]  ;;  %v1279_v0 = vadd.f32 %v14842_v58, %v1278_v29  ;;  %v13967_v58 = vld [vmem:[#allocation13 + $0x2e4] sm:$0xf]  ;;  %v11135_v29 = vld [vmem:[#allocation13 + $0x2e8] sm:$0xf0] }
 0x2ab   :  { %v1352_v50 = vmax.f32 %v1330_v54, 0.0  ;;  %3519 = vmatpush.bf16.msrb.mxu2 %v10186_v1  ;;  %v10167_v54 = vld [vmem:[#allocation13 + $0x758] sm:$0xf0] }
 0x2ac   :  { %4790 = vmatpush.bf16.msra.mxu0 %v10802_v48  ;;  %4804 = vmatpush.bf16.msra.mxu1 %v10866_v20  ;;  %v15721_v49 = vpop.f32.mrf.mxu2  ;;  %v10839_v48 = vld [vmem:[#allocation13 + $0x98] sm:$0xf0]  ;;  %v14111_v20 = vld [vmem:[#allocation13 + $0x764] sm:$0xf]  ;;  %v10170_v12 = vor.u32 %v14109_v3, %v10167_v54 }
 0x2ad   :  { %v10842_v32 = vor.u32 %v13893_v46, %v10839_v48  ;;  %v1370_v13 = vpack.c.bf16 %v1352_v50, %v1352_v50  ;;  %v10178_v18 = vor.u32 %v14111_v20, %v10175_v39  ;;  %v11146_v50 = vor.u32 %v13969_v36, %v11143_v53  ;;  %v13951_v20 = vld [vmem:[#allocation13 + $0x264] sm:$0xf]  ;;  %v11071_v39 = vld [vmem:[#allocation13 + $0x268] sm:$0xf0]  ;;  %v15735_v3 = vld [vmem:[#allocation12 + $0x5] ss:$0 sm:$0xff] }
 0x2ae   :  { %v11074_v1 = vor.u32 %v13951_v20, %v11071_v39  ;;  %v10143_v39 = vld [vmem:[#allocation13 + $0x728] sm:$0xf0]  ;;  %3429 = vmatmul.bf16.vlgmr.msrb.gmra.mxu3 %v15435_v23 }
 0x2af   :  { %3520 = vmatpush.bf16.msrb.mxu2 %v10178_v18 }
 0x2b0   :  { %4791 = vmatpush.bf16.msra.mxu0 %v10794_v21  ;;  %4805 = vmatpush.bf16.msra.mxu1 %v10858_v55  ;;  %v10831_v21 = vld [vmem:[#allocation13 + $0x88] sm:$0xf0]  ;;  %v13953_v55 = vld [vmem:[#allocation13 + $0x274] sm:$0xf]  ;;  %v1332_v28 = vpop.f32.mrf.mxu3 }
 0x2b1   :  { %v10834_v41 = vor.u32 %v13891_v17, %v10831_v21  ;;  %v11082_v26 = vor.u32 %v13953_v55, %v11079_v61  ;;  %v15727_v48 = vadd.f32 %v1332_v28, %v1279_v0  ;;  %v11063_v17 = vld [vmem:[#allocation13 + $0x258] sm:$0xf0]  ;;  %v14105_v61 = vld [vmem:[#allocation13 + $0x734] sm:$0xf]  ;;  %v13947_v28 = vld [vmem:[#allocation13 + $0x244] sm:$0xf] }
 0x2b2   :  { %v11127_v21 = vld [vmem:[#allocation13 + $0x2d8] sm:$0xf0]  ;;  %3471 = vmatmul.bf16.vlgmr.msra.gmra.mxu2 %v15470_v15 }
 0x2b3   :  { %3521 = vmatpush.bf16.msrb.mxu2 %v10170_v12  ;;  %v10151_v0 = vld [vmem:[#allocation13 + $0x738] sm:$0xf0] }
 0x2b4   :  { %4792 = vmatpush.bf16.msra.mxu0 %v10786_v30  ;;  %4806 = vmatpush.bf16.msra.mxu1 %v10850_v8  ;;  %v6044_v30 = vunpack.c.l.b16 %v1370_v13  ;;  %v10770_v8 = vor.u32 %v13875_v6, %v10767_v19  ;;  %v1858_v60 = vpop.f32.mrf.mxu2  ;;  %v11138_v6 = vor.u32 %v13967_v58, %v11135_v29  ;;  %v13949_v19 = vld [vmem:[#allocation13 + $0x254] sm:$0xf]  ;;  %v14127_v58 = vld [vmem:[#allocation13 + $0x7e4] sm:$0xf]  ;;  %v10239_v29 = vld [vmem:[#allocation13 + $0x7e8] sm:$0xf0] }
 0x2b5   :  { %v13965_v13 = vld [vmem:[#allocation13 + $0x2d4] sm:$0xf]  ;;  %v11066_v53 = vor.u32 %v13949_v19, %v11063_v17  ;;  %v1859_v19 = vadd.f32 %v15735_v3, %v1858_v60  ;;  %v13959_v60 = vld [vmem:[#allocation13 + $0x2a4] sm:$0xf] }
 0x2b6   :  { %v15725_v46 = vpack.c.b16 %v6044_v30, %v6043_v35  ;;  %v14129_v35 = vld [vmem:[#allocation13 + $0x7f4] sm:$0xf]  ;;  %v10247_v30 = vld [vmem:[#allocation13 + $0x7f8] sm:$0xf0] }
 0x2b7   :  { %v10250_v54 = vor.u32 %v14129_v35, %v10247_v30  ;;  %v14125_v35 = vld [vmem:[#allocation13 + $0x7d4] sm:$0xf]  ;;  %v10231_v30 = vld [vmem:[#allocation13 + $0x7d8] sm:$0xf0] }
 0x2b8   :  { %4793 = vmatpush.bf16.msra.mxu0 %v10778_v27  ;;  %4807 = vmatpush.bf16.msra.mxu1 %v10842_v32  ;;  %v14107_v27 = vld [vmem:[#allocation13 + $0x744] sm:$0xf]  ;;  %v10159_v32 = vld [vmem:[#allocation13 + $0x748] sm:$0xf0]  ;;  %v15731_v18 = vpop.f32.mrf.mxu3 }
 0x2b9   :  { %v10162_v55 = vor.u32 %v14107_v27, %v10159_v32  ;;  %v11047_v27 = vld [vmem:[#allocation13 + $0x238] sm:$0xf0]  ;;  %v13961_v32 = vld [vmem:[#allocation13 + $0x2b4] sm:$0xf]  ;;  %3533 = vmatpush.bf16.msrb.mxu3 %v10250_v54  ;;  %v10234_v54 = vor.u32 %v14125_v35, %v10231_v30 }
 0x2bb   :  { %3522 = vmatpush.bf16.msrb.mxu2 %v10162_v55 }
 0x2bc   :  { %4794 = vmatpush.bf16.msra.mxu0 %v10770_v8  ;;  %4808 = vmatpush.bf16.msra.mxu1 %v10834_v41  ;;  %v15733_v36 = vpop.f32.mrf.mxu2  ;;  %v11130_v8 = vor.u32 %v13965_v13, %v11127_v21  ;;  %v13963_v41 = vld [vmem:[#allocation13 + $0x2c4] sm:$0xf]  ;;  %v10242_v13 = vor.u32 %v14127_v58, %v10239_v29  ;;  %v14101_v21 = vld [vmem:[#allocation13 + $0x714] sm:$0xf]  ;;  %v10223_v29 = vld [vmem:[#allocation13 + $0x7c8] sm:$0xf0] }
 0x2bd   :  { %v14123_v58 = vld [vmem:[#allocation13 + $0x7c4] sm:$0xf] }
 0x2be   :  { %3534 = vmatpush.bf16.msrb.mxu3 %v10242_v13  ;;  %v10226_v13 = vor.u32 %v14123_v58, %v10223_v29  ;;  %v11399_v58 = vld [vmem:[#allocation13 + $0x4f8] sm:$0xf0] }
 0x2bf   :  { %4795 = vmatmul.bf16.vlgmr.msra.gmra.mxu0 %v15334_v11  ;;  %4809 = vmatmul.bf16.vlgmr.msra.gmra.mxu1 %v15345_v34  ;;  %v11055_v11 = vld [vmem:[#allocation13 + $0x248] sm:$0xf0]  ;;  %v10154_v34 = vor.u32 %v14105_v61, %v10151_v0  ;;  %v10135_v0 = vld [vmem:[#allocation13 + $0x718] sm:$0xf0] }
 0x2c0   :  { %4843 = vmatpush.bf16.msrb.mxu0 %v11082_v26  ;;  %4857 = vmatpush.bf16.msrb.mxu1 %v11146_v50  ;;  %v11119_v26 = vld [vmem:[#allocation13 + $0x2c8] sm:$0xf0]  ;;  %v14103_v50 = vld [vmem:[#allocation13 + $0x724] sm:$0xf]  ;;  %v11058_v20 = vor.u32 %v13947_v28, %v11055_v11  ;;  %v1907_v61 = vpop.f32.mrf.mxu3 }
 0x2c1   :  { %v11122_v12 = vor.u32 %v13963_v41, %v11119_v26  ;;  %3523 = vmatpush.bf16.msrb.mxu2 %v10154_v34  ;;  %v10146_v17 = vor.u32 %v14103_v50, %v10143_v39  ;;  %v13943_v11 = vld [vmem:[#allocation13 + $0x224] sm:$0xf]  ;;  %v11039_v41 = vld [vmem:[#allocation13 + $0x228] sm:$0xf0]  ;;  %v10138_v34 = vor.u32 %v14101_v21, %v10135_v0  ;;  %v14121_v21 = vld [vmem:[#allocation13 + $0x7b4] sm:$0xf]  ;;  %3485 = vmatmul.bf16.vlgmr.msra.gmra.mxu3 %v15487_v2 }
 0x2c2   :  { %v11103_v26 = vld [vmem:[#allocation13 + $0x2a8] sm:$0xf0]  ;;  %v14099_v50 = vld [vmem:[#allocation13 + $0x704] sm:$0xf]  ;;  %v11042_v39 = vor.u32 %v13943_v11, %v11039_v41  ;;  %3535 = vmatpush.bf16.msrb.mxu3 %v10234_v54  ;;  %v10215_v11 = vld [vmem:[#allocation13 + $0x7b8] sm:$0xf0] }
 0x2c3   :  { %v10431_v41 = vld [vmem:[#allocation13 + $0x968] sm:$0xf0]  ;;  %v14017_v54 = vld [vmem:[#allocation13 + $0x474] sm:$0xf] }
 0x2c4   :  { %4844 = vmatpush.bf16.msrb.mxu0 %v11074_v1  ;;  %4858 = vmatpush.bf16.msrb.mxu1 %v11138_v6  ;;  %v13945_v1 = vld [vmem:[#allocation13 + $0x234] sm:$0xf]  ;;  %v11111_v6 = vld [vmem:[#allocation13 + $0x2b8] sm:$0xf0]  ;;  %v15740_v55 = vpop.f32.mrf.mxu2 }
 0x2c5   :  { %v11114_v28 = vor.u32 %v13961_v32, %v11111_v6  ;;  %3524 = vmatpush.bf16.msrb.mxu2 %v10146_v17  ;;  %v11031_v32 = vld [vmem:[#allocation13 + $0x218] sm:$0xf0]  ;;  %v13957_v6 = vld [vmem:[#allocation13 + $0x294] sm:$0xf] }
 0x2c6   :  { %3536 = vmatpush.bf16.msrb.mxu3 %v10226_v13  ;;  %v14015_v13 = vld [vmem:[#allocation13 + $0x464] sm:$0xf] }
 0x2c8   :  { %4845 = vmatpush.bf16.msrb.mxu0 %v11066_v53  ;;  %4859 = vmatpush.bf16.msrb.mxu1 %v11130_v8  ;;  %v11050_v53 = vor.u32 %v13945_v1, %v11047_v27  ;;  %v15742_v8 = vadd.f32 %v1907_v61, %v1859_v19  ;;  %v14177_v1 = vld [vmem:[#allocation13 + $0x974] sm:$0xf]  ;;  %v10439_v27 = vld [vmem:[#allocation13 + $0x978] sm:$0xf0] }
 0x2c9   :  { %v13941_v19 = vld [vmem:[#allocation13 + $0x214] sm:$0xf]  ;;  %v11095_v61 = vld [vmem:[#allocation13 + $0x298] sm:$0xf0]  ;;  %3525 = vmatpush.bf16.msrb.mxu2 %v10138_v34  ;;  %v10442_v35 = vor.u32 %v14177_v1, %v10439_v27  ;;  %v11087_v34 = vld [vmem:[#allocation13 + $0x288] sm:$0xf0] }
 0x2ca   :  { %v11034_v30 = vor.u32 %v13941_v19, %v11031_v32  ;;  %v14119_v27 = vld [vmem:[#allocation13 + $0x7a4] sm:$0xf]  ;;  %v10207_v19 = vld [vmem:[#allocation13 + $0x7a8] sm:$0xf0] }
 0x2cc   :  { %4846 = vmatpush.bf16.msrb.mxu0 %v11058_v20  ;;  %4860 = vmatpush.bf16.msrb.mxu1 %v11122_v12  ;;  %v10127_v20 = vld [vmem:[#allocation13 + $0x708] sm:$0xf0]  ;;  %v11106_v12 = vor.u32 %v13959_v60, %v11103_v26  ;;  %v15744_v0 = vpop.f32.mrf.mxu2  ;;  %v11098_v60 = vor.u32 %v13957_v6, %v11095_v61  ;;  %v13939_v26 = vld [vmem:[#allocation13 + $0x204] sm:$0xf]  ;;  %v14173_v6 = vld [vmem:[#allocation13 + $0x954] sm:$0xf] }
 0x2cd   :  { %v10130_v17 = vor.u32 %v14099_v50, %v10127_v20  ;;  %v11335_v50 = vld [vmem:[#allocation13 + $0x478] sm:$0xf0]  ;;  %v10218_v20 = vor.u32 %v14121_v21, %v10215_v11  ;;  %v11026_v1 = vor.u32 %v13939_v26, %v11023_v43  ;;  %v11327_v21 = vld [vmem:[#allocation13 + $0x468] sm:$0xf0]  ;;  %v14031_v43 = vld [vmem:[#allocation13 + $0x4e4] sm:$0xf] }
 0x2ce   :  { %v11338_v32 = vor.u32 %v14017_v54, %v11335_v50  ;;  %v10423_v61 = vld [vmem:[#allocation13 + $0x958] sm:$0xf0]  ;;  %v11391_v11 = vld [vmem:[#allocation13 + $0x4e8] sm:$0xf0]  ;;  %v14171_v54 = vld [vmem:[#allocation13 + $0x944] sm:$0xf] }
 0x2cf   :  { %3526 = vmatpush.bf16.msrb.mxu2 %v10130_v17  ;;  %3537 = vmatpush.bf16.msrb.mxu3 %v10218_v20  ;;  %v10199_v26 = vld [vmem:[#allocation13 + $0x798] sm:$0xf0]  ;;  %v10415_v50 = vld [vmem:[#allocation13 + $0x948] sm:$0xf0]  ;;  %v14013_v20 = vld [vmem:[#allocation13 + $0x454] sm:$0xf] }
 0x2d0   :  { %4847 = vmatpush.bf16.msrb.mxu0 %v11050_v53  ;;  %4861 = vmatpush.bf16.msrb.mxu1 %v11114_v28  ;;  %v15746_v53 = vpop.f32.mrf.mxu3  ;;  %v14175_v28 = vld [vmem:[#allocation13 + $0x964] sm:$0xf] }
 0x2d1   :  { %v10434_v29 = vor.u32 %v14175_v28, %v10431_v41  ;;  %v10426_v41 = vor.u32 %v14173_v6, %v10423_v61  ;;  %v10407_v61 = vld [vmem:[#allocation13 + $0x938] sm:$0xf0] }
 0x2d2   :  { %3527 = vmatmul.bf16.vlgmr.msrb.gmra.mxu2 %v15385_v42 }
 0x2d3   :  { %3575 = vmatpush.bf16.msra.mxu2 %v10442_v35  ;;  %v1864_v35 = vadd.f32 %v15735_v3, %v15740_v55  ;;  %v11394_v55 = vor.u32 %v14031_v43, %v11391_v11  ;;  %v14027_v43 = vld [vmem:[#allocation13 + $0x4c4] sm:$0xf]  ;;  %v11375_v11 = vld [vmem:[#allocation13 + $0x4c8] sm:$0xf0] }
 0x2d4   :  { %4848 = vmatpush.bf16.msrb.mxu0 %v11042_v39  ;;  %4862 = vmatpush.bf16.msrb.mxu1 %v11106_v12  ;;  %v14033_v39 = vld [vmem:[#allocation13 + $0x4f4] sm:$0xf]  ;;  %v11090_v12 = vor.u32 %v13955_v14, %v11087_v34  ;;  %v15752_v14 = vpop.f32.mrf.mxu2  ;;  %v11330_v34 = vor.u32 %v14015_v13, %v11327_v21  ;;  %v10503_v13 = vld [vmem:[#allocation13 + $0x9f8] sm:$0xf0] }
 0x2d5   :  { %v11402_v17 = vor.u32 %v14033_v39, %v11399_v58  ;;  %v11319_v39 = vld [vmem:[#allocation13 + $0x458] sm:$0xf0] }
 0x2d6   :  { %v11322_v6 = vor.u32 %v14013_v20, %v11319_v39  ;;  %v11378_v20 = vor.u32 %v14027_v43, %v11375_v11  ;;  %v14009_v39 = vld [vmem:[#allocation13 + $0x434] sm:$0xf]  ;;  %v11359_v43 = vld [vmem:[#allocation13 + $0x4a8] sm:$0xf0] }
 0x2d7   :  { %3576 = vmatpush.bf16.msra.mxu2 %v10434_v29  ;;  %v14029_v29 = vld [vmem:[#allocation13 + $0x4d4] sm:$0xf] }
 0x2d8   :  { %4849 = vmatpush.bf16.msrb.mxu0 %v11034_v30  ;;  %4863 = vmatpush.bf16.msrb.mxu1 %v11098_v60  ;;  %v10210_v30 = vor.u32 %v14119_v27, %v10207_v19  ;;  %v1912_v28 = vpop.f32.mrf.mxu3  ;;  %v14117_v60 = vld [vmem:[#allocation13 + $0x794] sm:$0xf]  ;;  %v10418_v27 = vor.u32 %v14171_v54, %v10415_v50  ;;  %v14115_v19 = vld [vmem:[#allocation13 + $0x784] sm:$0xf]  ;;  %v10399_v54 = vld [vmem:[#allocation13 + $0x928] sm:$0xf0] }
 0x2d9   :  { %v15754_v42 = vadd.f32 %v1912_v28, %v1864_v35  ;;  %v10202_v58 = vor.u32 %v14117_v60, %v10199_v26  ;;  %v14011_v35 = vld [vmem:[#allocation13 + $0x444] sm:$0xf] }
 0x2da   :  { %3538 = vmatpush.bf16.msrb.mxu3 %v10210_v30  ;;  %v11311_v30 = vld [vmem:[#allocation13 + $0x448] sm:$0xf0]  ;;  %v14167_v26 = vld [vmem:[#allocation13 + $0x924] sm:$0xf] }
 0x2db   :  { %16510 = vst [vmem:[#allocation79_spill] sm:$0xff] %v15754_v42  ;;  %3577 = vmatpush.bf16.msra.mxu2 %v10426_v41  ;;  %v14191_v50 = vld [vmem:[#allocation13 + $0x9e4] sm:$0xf]  ;;  %v14274_v42 = vld [vmem:[#allocation13 + $0xc74] sm:$0xf0] }
 0x2dc   :  { %4850 = vmatpush.bf16.msrb.mxu0 %v11026_v1  ;;  %4864 = vmatpush.bf16.msrb.mxu1 %v11090_v12  ;;  %v11383_v1 = vld [vmem:[#allocation13 + $0x4d8] sm:$0xf0]  ;;  %v10191_v12 = vld [vmem:[#allocation13 + $0x788] sm:$0xf0] }
 0x2dd   :  { %v11386_v21 = vor.u32 %v14029_v29, %v11383_v1  ;;  %v14025_v29 = vld [vmem:[#allocation13 + $0x4b4] sm:$0xf]  ;;  %v11367_v1 = vld [vmem:[#allocation13 + $0x4b8] sm:$0xf0] }
 0x2de   :  { %3539 = vmatpush.bf16.msrb.mxu3 %v10202_v58  ;;  %v11303_v58 = vld [vmem:[#allocation13 + $0x438] sm:$0xf0] }
 0x2df   :  { %4851 = vmatmul.bf16.vlgmr.msrb.gmra.mxu0 %v15387_v45  ;;  %4865 = vmatmul.bf16.vlgmr.msrb.gmra.mxu1 %v15401_v7  ;;  %v10194_v45 = vor.u32 %v14115_v19, %v10191_v12  ;;  %v15758_v7 = vpop.f32.mrf.mxu2  ;;  %v14165_v12 = vld [vmem:[#allocation13 + $0x914] sm:$0xf] }
 0x2e0   :  { %4899 = vmatpush.bf16.msra.mxu0 %v11338_v32  ;;  %4913 = vmatpush.bf16.msra.mxu1 %v11402_v17  ;;  %v14169_v32 = vld [vmem:[#allocation13 + $0x934] sm:$0xf]  ;;  %16511 = vst [vmem:[#allocation80_spill] sm:$0xff] %v15758_v7  ;;  %v15760_v28 = vpop.f32.mrf.mxu3  ;;  %v11589_v7 = vld [vmem:[#allocation13 + $0xc70] sm:$0xf] }
 0x2e1   :  { %v14193_v17 = vld [vmem:[#allocation13 + $0x9f4] sm:$0xf]  ;;  %3578 = vmatpush.bf16.msra.mxu2 %v10418_v27  ;;  %v10410_v41 = vor.u32 %v14169_v32, %v10407_v61  ;;  %v10402_v27 = vor.u32 %v14167_v26, %v10399_v54  ;;  %v11306_v32 = vor.u32 %v14009_v39, %v11303_v58  ;;  %v10391_v61 = vld [vmem:[#allocation13 + $0x918] sm:$0xf0]  ;;  %v10383_v54 = vld [vmem:[#allocation13 + $0x908] sm:$0xf0] }
 0x2e2   :  { %v10506_v60 = vor.u32 %v14193_v17, %v10503_v13  ;;  %3540 = vmatpush.bf16.msrb.mxu3 %v10194_v45  ;;  %v10487_v17 = vld [vmem:[#allocation13 + $0x9d8] sm:$0xf0]  ;;  %v11370_v13 = vor.u32 %v14025_v29, %v11367_v1  ;;  %v14023_v45 = vld [vmem:[#allocation13 + $0x4a4] sm:$0xf]  ;;  %v14241_v39 = vld [vmem:[#allocation13 + $0xb74] sm:$0xf] }
 0x2e3   :  { %v10695_v58 = vld [vmem:[#allocation13 + $0xb78] sm:$0xf0]  ;;  %v14005_v29 = vld [vmem:[#allocation13 + $0x414] sm:$0xf] }
 0x2e4   :  { %4900 = vmatpush.bf16.msra.mxu0 %v11330_v34  ;;  %4914 = vmatpush.bf16.msra.mxu1 %v11394_v55  ;;  %v11314_v34 = vor.u32 %v14011_v35, %v11311_v30  ;;  %v10495_v55 = vld [vmem:[#allocation13 + $0x9e8] sm:$0xf0]  ;;  %v1869_v30 = vadd.f32 %v15735_v3, %v15752_v14  ;;  %v11362_v14 = vor.u32 %v14023_v45, %v11359_v43  ;;  %v11287_v1 = vld [vmem:[#allocation13 + $0x418] sm:$0xf0]  ;;  %v14019_v43 = vld [vmem:[#allocation13 + $0x484] sm:$0xf] }
 0x2e5   :  { %3579 = vmatpush.bf16.msra.mxu2 %v10410_v41  ;;  %v10498_v19 = vor.u32 %v14191_v50, %v10495_v55  ;;  %3541 = vmatmul.bf16.vlgmr.msrb.gmra.mxu3 %v15395_v62  ;;  %v11295_v35 = vld [vmem:[#allocation13 + $0x428] sm:$0xf0]  ;;  %v14187_v55 = vld [vmem:[#allocation13 + $0x9c4] sm:$0xf] }
 0x2e6   :  { %3589 = vmatpush.bf16.msra.mxu3 %v10506_v60  ;;  %v10394_v60 = vor.u32 %v14165_v12, %v10391_v61  ;;  %v11279_v45 = vld [vmem:[#allocation13 + $0x408] sm:$0xf0] }
 0x2e7   :  { %v15765_v11 = vpop.f32.mrf.mxu2 }
 0x2e8   :  { %4901 = vmatpush.bf16.msra.mxu0 %v11322_v6  ;;  %4915 = vmatpush.bf16.msra.mxu1 %v11386_v21  ;;  %v14189_v6 = vld [vmem:[#allocation13 + $0x9d4] sm:$0xf]  ;;  %v14007_v21 = vld [vmem:[#allocation13 + $0x424] sm:$0xf]  ;;  %v1917_v41 = vpop.f32.mrf.mxu3 }
 0x2e9   :  { %3580 = vmatpush.bf16.msra.mxu2 %v10402_v27  ;;  %v10490_v26 = vor.u32 %v14189_v6, %v10487_v17  ;;  %v15767_v50 = vadd.f32 %v1917_v41, %v1869_v30  ;;  %v11298_v62 = vor.u32 %v14007_v21, %v11295_v35  ;;  %v14021_v27 = vld [vmem:[#allocation13 + $0x494] sm:$0xf]  ;;  %v11290_v17 = vor.u32 %v14005_v29, %v11287_v1  ;;  %v10471_v30 = vld [vmem:[#allocation13 + $0x9b8] sm:$0xf0]  ;;  %v14239_v21 = vld [vmem:[#allocation13 + $0xb64] sm:$0xf] }
 0x2ea   :  { %3590 = vmatpush.bf16.msra.mxu3 %v10498_v19  ;;  %v11351_v19 = vld [vmem:[#allocation13 + $0x498] sm:$0xf0]  ;;  %v14185_v6 = vld [vmem:[#allocation13 + $0x9b4] sm:$0xf]  ;;  %v10687_v35 = vld [vmem:[#allocation13 + $0xb68] sm:$0xf0]  ;;  %v11590_v29 = vor.u32 %v14274_v42, %v11589_v7 }
 0x2eb   :  { %16512 = vst [vmem:[#allocation81_spill] sm:$0xff] %v15767_v50  ;;  %v11354_v41 = vor.u32 %v14021_v27, %v11351_v19  ;;  %v11343_v50 = vld [vmem:[#allocation13 + $0x488] sm:$0xf0]  ;;  %v14237_v1 = vld [vmem:[#allocation13 + $0xb54] sm:$0xf] }
 0x2ec   :  { %4902 = vmatpush.bf16.msra.mxu0 %v11314_v34  ;;  %4916 = vmatpush.bf16.msra.mxu1 %v11378_v20  ;;  %v14163_v34 = vld [vmem:[#allocation13 + $0x904] sm:$0xf]  ;;  %v10479_v20 = vld [vmem:[#allocation13 + $0x9c8] sm:$0xf0]  ;;  %v10679_v27 = vld [vmem:[#allocation13 + $0xb58] sm:$0xf0] }
 0x2ed   :  { %3581 = vmatpush.bf16.msra.mxu2 %v10394_v60  ;;  %v10386_v12 = vor.u32 %v14163_v34, %v10383_v54  ;;  %v10482_v61 = vor.u32 %v14187_v55, %v10479_v20  ;;  %v10474_v34 = vor.u32 %v14185_v6, %v10471_v30  ;;  %v11653_v54 = vld [vmem:[#allocation13 + $0xcf0] sm:$0xf]  ;;  %v10690_v55 = vor.u32 %v14239_v21, %v10687_v35  ;;  %v11645_v30 = vld [vmem:[#allocation13 + $0xce0] sm:$0xf]  ;;  %v10455_v21 = vld [vmem:[#allocation13 + $0x998] sm:$0xf0] }
 0x2ee   :  { %3591 = vmatpush.bf16.msra.mxu3 %v10490_v26  ;;  %v14235_v42 = vld [vmem:[#allocation13 + $0xb44] sm:$0xf]  ;;  %v10671_v7 = vld [vmem:[#allocation13 + $0xb48] sm:$0xf0] }
 0x2ef   :  { %v15769_v60 = vpop.f32.mrf.mxu2 }
 0x2f0   :  { %4903 = vmatpush.bf16.msra.mxu0 %v11306_v32  ;;  %4917 = vmatpush.bf16.msra.mxu1 %v11370_v13  ;;  %v10698_v32 = vor.u32 %v14241_v39, %v10695_v58  ;;  %v14003_v13 = vld [vmem:[#allocation13 + $0x404] sm:$0xf]  ;;  %16513 = vst [vmem:[#allocation82_spill] sm:$0xff] %v15769_v60  ;;  %v15771_v26 = vpop.f32.mrf.mxu3  ;;  %v11346_v58 = vor.u32 %v14019_v43, %v11343_v50  ;;  %v14288_v60 = vld [vmem:[#allocation13 + $0xce4] sm:$0xf0] }
 0x2f1   :  { %3582 = vmatpush.bf16.msra.mxu2 %v10386_v12  ;;  %16514 = vst [vmem:[#allocation83_spill] sm:$0xff] %v15771_v26  ;;  %v11282_v20 = vor.u32 %v14003_v13, %v11279_v45  ;;  %v14183_v39 = vld [vmem:[#allocation13 + $0x9a4] sm:$0xf]  ;;  %v11581_v12 = vld [vmem:[#allocation13 + $0xc60] sm:$0xf]  ;;  %v11646_v35 = vor.u32 %v14288_v60, %v11645_v30 }
 0x2f2   :  { %3592 = vmatpush.bf16.msra.mxu3 %v10482_v61  ;;  %v14272_v61 = vld [vmem:[#allocation13 + $0xc64] sm:$0xf0]  ;;  %v14270_v13 = vld [vmem:[#allocation13 + $0xc54] sm:$0xf0]  ;;  %v14233_v60 = vld [vmem:[#allocation13 + $0xb34] sm:$0xf] }
 0x2f3   :  { %v11582_v50 = vor.u32 %v14272_v61, %v11581_v12  ;;  %v11565_v12 = vld [vmem:[#allocation13 + $0xc40] sm:$0xf]  ;;  %v14284_v30 = vld [vmem:[#allocation13 + $0xcc4] sm:$0xf0] }
 0x2f4   :  { %4904 = vmatpush.bf16.msra.mxu0 %v11298_v62  ;;  %4918 = vmatpush.bf16.msra.mxu1 %v11362_v14  ;;  %v14290_v62 = vld [vmem:[#allocation13 + $0xcf4] sm:$0xf0]  ;;  %v10463_v14 = vld [vmem:[#allocation13 + $0x9a8] sm:$0xf0] }
 0x2f5   :  { %3631 = vmatpush.bf16.msrb.mxu2 %v10698_v32  ;;  %v11654_v19 = vor.u32 %v14290_v62, %v11653_v54  ;;  %v10466_v6 = vor.u32 %v14183_v39, %v10463_v14  ;;  %v10682_v32 = vor.u32 %v14237_v1, %v10679_v27  ;;  %v11637_v54 = vld [vmem:[#allocation13 + $0xcd0] sm:$0xf]  ;;  %v14286_v62 = vld [vmem:[#allocation13 + $0xcd4] sm:$0xf0]  ;;  %v10447_v39 = vld [vmem:[#allocation13 + $0x988] sm:$0xf0]  ;;  %v15782_v14 = vpop.f32.mrf.mxu0 }
 0x2f6   :  { %3583 = vmatmul.bf16.vlgmr.msra.gmra.mxu2 %v15423_v22  ;;  %3593 = vmatpush.bf16.msra.mxu3 %v10474_v34  ;;  %v1874_v22 = vadd.f32 %v15735_v3, %v15765_v11  ;;  %v14179_v11 = vld [vmem:[#allocation13 + $0x984] sm:$0xf]  ;;  %16516 = vst [vmem:[#allocation85_spill] sm:$0xff] %v15782_v14  ;;  %v14257_v1 = vld [vmem:[#allocation13 + $0xbf4] sm:$0xf] }
 0x2f7   :  { %v15777_v45 = vpop.f32.mrf.mxu2  ;;  %v10759_v27 = vld [vmem:[#allocation13 + $0xbf8] sm:$0xf0]  ;;  %v10450_v61 = vor.u32 %v14179_v11, %v10447_v39 }
 0x2f8   :  { %4905 = vmatpush.bf16.msra.mxu0 %v11290_v17  ;;  %4919 = vmatpush.bf16.msra.mxu1 %v11354_v41  ;;  %v14181_v17 = vld [vmem:[#allocation13 + $0x994] sm:$0xf]  ;;  %v11573_v41 = vld [vmem:[#allocation13 + $0xc50] sm:$0xf]  ;;  %v1922_v43 = vpop.f32.mrf.mxu3 }
 0x2f9   :  { %3632 = vmatpush.bf16.msrb.mxu2 %v10690_v55  ;;  %v10458_v34 = vor.u32 %v14181_v17, %v10455_v21  ;;  %v15780_v55 = vadd.f32 %v1922_v43, %v1874_v22  ;;  %v10762_v17 = vor.u32 %v14257_v1, %v10759_v27  ;;  %v14231_v21 = vld [vmem:[#allocation13 + $0xb24] sm:$0xf]  ;;  %v10751_v22 = vld [vmem:[#allocation13 + $0xbe8] sm:$0xf0]  ;;  %v11557_v43 = vld [vmem:[#allocation13 + $0xc30] sm:$0xf] }
 0x2fa   :  { %3594 = vmatpush.bf16.msra.mxu3 %v10466_v6  ;;  %v11629_v6 = vld [vmem:[#allocation13 + $0xcc0] sm:$0xf] }
 0x2fb   :  { %16515 = vst [vmem:[#allocation84_spill] sm:$0xff] %v15780_v55 }
 0x2fc   :  { %4906 = vmatpush.bf16.msra.mxu0 %v11282_v20  ;;  %4920 = vmatpush.bf16.msra.mxu1 %v11346_v58  ;;  %v10674_v20 = vor.u32 %v14235_v42, %v10671_v7  ;;  %v15784_v58 = vpop.f32.mrf.mxu1  ;;  %v10655_v7 = vld [vmem:[#allocation13 + $0xb28] sm:$0xf0] }
 0x2fd   :  { %3633 = vmatpush.bf16.msrb.mxu2 %v10682_v32  ;;  %16517 = vst [vmem:[#allocation86_spill] sm:$0xff] %v15784_v58  ;;  %v15797_v1 = vpop.f32.mrf.mxu0  ;;  %v14262_v58 = vld [vmem:[#allocation13 + $0xc14] sm:$0xf0] }
 0x2fe   :  { %3595 = vmatpush.bf16.msra.mxu3 %v10458_v34  ;;  %v14266_v34 = vld [vmem:[#allocation13 + $0xc34] sm:$0xf0] }
 0x2ff   :  { %4907 = vmatmul.bf16.vlgmr.msra.gmra.mxu0 %v15437_v31  ;;  %4921 = vmatmul.bf16.vlgmr.msra.gmra.mxu1 %v15448_v59  ;;  %v11574_v31 = vor.u32 %v14270_v13, %v11573_v41  ;;  %v14268_v59 = vld [vmem:[#allocation13 + $0xc44] sm:$0xf0]  ;;  %v15786_v41 = vld [vmem:[#allocation12 + $0x2] ss:$0 sm:$0xff]  ;;  %v11630_v13 = vor.u32 %v14284_v30, %v11629_v6  ;;  %v15791_v11 = vpop.f32.mrf.mxu2  ;;  %v11549_v6 = vld [vmem:[#allocation13 + $0xc20] sm:$0xf] }
 0x300   :  { %5771 = vmatpush.bf16.msrb.mxu0 %v11590_v29  ;;  %5785 = vmatpush.bf16.msrb.mxu1 %v11654_v19  ;;  %v10663_v29 = vld [vmem:[#allocation13 + $0xb38] sm:$0xf0]  ;;  %v11638_v19 = vor.u32 %v14286_v62, %v11637_v54  ;;  %v11566_v42 = vor.u32 %v14268_v59, %v11565_v12  ;;  %v11621_v54 = vld [vmem:[#allocation13 + $0xcb0] sm:$0xf]  ;;  %v14282_v62 = vld [vmem:[#allocation13 + $0xcb4] sm:$0xf0]  ;;  %v15793_v39 = vpop.f32.mrf.mxu3 }
 0x301   :  { %3634 = vmatpush.bf16.msrb.mxu2 %v10674_v20  ;;  %v10666_v32 = vor.u32 %v14233_v60, %v10663_v29  ;;  %16518 = vst [vmem:[#allocation87_spill] sm:$0xff] %v15793_v39  ;;  %v10658_v60 = vor.u32 %v14231_v21, %v10655_v7  ;;  %v14229_v29 = vld [vmem:[#allocation13 + $0xb14] sm:$0xf]  ;;  %v10647_v12 = vld [vmem:[#allocation13 + $0xb18] sm:$0xf0] }
 0x302   :  { %3596 = vmatpush.bf16.msra.mxu3 %v10450_v61  ;;  %v10743_v59 = vld [vmem:[#allocation13 + $0xbd8] sm:$0xf0]  ;;  %v11622_v61 = vor.u32 %v14282_v62, %v11621_v54  ;;  %v14264_v30 = vld [vmem:[#allocation13 + $0xc24] sm:$0xf0]  ;;  %v10650_v7 = vor.u32 %v14229_v29, %v10647_v12  ;;  %v13922_v54 = vld [vmem:[#allocation13 + $0x174] sm:$0xf0] }
 0x303   :  { %v14280_v21 = vld [vmem:[#allocation13 + $0xca4] sm:$0xf0]  ;;  %v11541_v62 = vld [vmem:[#allocation13 + $0xc10] sm:$0xf]  ;;  %v1067_v29 = vmax.f32 %v15460_v25, 0.0 }
 0x304   :  { %5772 = vmatpush.bf16.msrb.mxu0 %v11582_v50  ;;  %5786 = vmatpush.bf16.msrb.mxu1 %v11646_v35  ;;  %v14255_v50 = vld [vmem:[#allocation13 + $0xbe4] sm:$0xf]  ;;  %v981_v35 = vadd.f32 %v15786_v41, %v15462_v24  ;;  %v986_v24 = vadd.f32 %v15786_v41, %v15496_v5  ;;  %v15799_v27 = vpop.f32.mrf.mxu1 }
 0x305   :  { %3635 = vmatpush.bf16.msrb.mxu2 %v10666_v32  ;;  %3597 = vmatmul.bf16.vlgmr.msra.gmra.mxu3 %v15435_v23  ;;  %v15811_v39 = vpop.f32.mrf.mxu0 }
 0x306   :  { %v1030_v20 = vadd.f32 %v15466_v4, %v981_v35  ;;  %3645 = vmatpush.bf16.msrb.mxu3 %v10762_v17  ;;  %v14253_v4 = vld [vmem:[#allocation13 + $0xbd4] sm:$0xf]  ;;  %v1035_v32 = vadd.f32 %v15502_v10, %v986_v24  ;;  %v11613_v17 = vld [vmem:[#allocation13 + $0xca0] sm:$0xf]  ;;  %v11550_v35 = vor.u32 %v14264_v30, %v11549_v6  ;;  %v1069_v24 = vmax.f32 %v15479_v37, 0.0  ;;  %16520 = vst [vmem:[#allocation89_spill] sm:$0xff] %v15811_v39 }
 0x307   :  { %v11614_v23 = vor.u32 %v14280_v21, %v11613_v17  ;;  %v10941_v17 = vld [vmem:[#allocation13 + $0x160] sm:$0xf]  ;;  %v13920_v21 = vld [vmem:[#allocation13 + $0x164] sm:$0xf0]  ;;  %v13918_v39 = vld [vmem:[#allocation13 + $0x154] sm:$0xf0] }
 0x308   :  { %5773 = vmatpush.bf16.msrb.mxu0 %v11574_v31  ;;  %5787 = vmatpush.bf16.msrb.mxu1 %v11638_v19  ;;  %v10754_v31 = vor.u32 %v14255_v50, %v10751_v22  ;;  %v11558_v19 = vor.u32 %v14266_v34, %v11557_v43  ;;  %v1068_v5 = vmax.f32 %v1030_v20, 0.0  ;;  %v10746_v50 = vor.u32 %v14253_v4, %v10743_v59  ;;  %v10639_v22 = vld [vmem:[#allocation13 + $0xb08] sm:$0xf0]  ;;  %v14251_v43 = vld [vmem:[#allocation13 + $0xbc4] sm:$0xf]  ;;  %v1927_v12 = vpop.f32.mrf.mxu3 }
 0x309   :  { %3636 = vmatpush.bf16.msrb.mxu2 %v10658_v60  ;;  %v10949_v34 = vld [vmem:[#allocation13 + $0x170] sm:$0xf]  ;;  %v1070_v10 = vmax.f32 %v1035_v32, 0.0  ;;  %v1879_v20 = vadd.f32 %v15735_v3, %v15777_v45  ;;  %v11542_v32 = vor.u32 %v14262_v58, %v11541_v62  ;;  %v10727_v45 = vld [vmem:[#allocation13 + $0xbb8] sm:$0xf0] }
 0x30a   :  { %3646 = vmatpush.bf16.msrb.mxu3 %v10754_v31  ;;  %v11605_v60 = vld [vmem:[#allocation13 + $0xc90] sm:$0xf]  ;;  %v14278_v31 = vld [vmem:[#allocation13 + $0xc94] sm:$0xf0]  ;;  %v10950_v30 = vor.u32 %v13922_v54, %v10949_v34  ;;  %v1084_v14 = vpack.c.bf16 %v1068_v5, %v1068_v5  ;;  %v11533_v37 = vld [vmem:[#allocation13 + $0xc00] sm:$0xf]  ;;  %v1085_v5 = vpack.c.bf16 %v1069_v24, %v1069_v24 }
 0x30b   :  { %v15809_v6 = vadd.f32 %v1927_v12, %v1879_v20  ;;  %v11606_v25 = vor.u32 %v14278_v31, %v11605_v60  ;;  %v1086_v55 = vpack.c.bf16 %v1070_v10, %v1070_v10  ;;  %v11909_v34 = vld [vmem:[#allocation13 + $0xef0] sm:$0xf]  ;;  %v14354_v54 = vld [vmem:[#allocation13 + $0xef4] sm:$0xf0]  ;;  %v14247_v20 = vld [vmem:[#allocation13 + $0xba4] sm:$0xf] }
 0x30c   :  { %5774 = vmatpush.bf16.msrb.mxu0 %v11566_v42  ;;  %5788 = vmatpush.bf16.msrb.mxu1 %v11630_v13  ;;  %v14227_v42 = vld [vmem:[#allocation13 + $0xb04] sm:$0xf]  ;;  %v10735_v13 = vld [vmem:[#allocation13 + $0xbc8] sm:$0xf0]  ;;  %v4958_v60 = vunpack.c.l.b16 %v1084_v14  ;;  %v14352_v14 = vld [vmem:[#allocation13 + $0xee4] sm:$0xf0] }
 0x30d   :  { %3637 = vmatpush.bf16.msrb.mxu2 %v10650_v7  ;;  %v10642_v4 = vor.u32 %v14227_v42, %v10639_v22  ;;  %v10738_v59 = vor.u32 %v14251_v43, %v10735_v13  ;;  %16519 = vst [vmem:[#allocation88_spill] sm:$0xff] %v15809_v6  ;;  %v14260_v7 = vld [vmem:[#allocation13 + $0xc04] sm:$0xf0]  ;;  %v15813_v42 = vpop.f32.mrf.mxu1  ;;  %v11845_v43 = vld [vmem:[#allocation13 + $0xe70] sm:$0xf]  ;;  %v4964_v26 = vunpack.c.l.b16 %v1086_v55 }
 0x30e   :  { %3647 = vmatpush.bf16.msrb.mxu3 %v10746_v50  ;;  %v11597_v50 = vld [vmem:[#allocation13 + $0xc80] sm:$0xf]  ;;  %16521 = vst [vmem:[#allocation90_spill] sm:$0xff] %v15813_v42  ;;  %v14276_v22 = vld [vmem:[#allocation13 + $0xc84] sm:$0xf0]  ;;  %v11534_v62 = vor.u32 %v14260_v7, %v11533_v37 }
 0x30f   :  { %v14338_v13 = vld [vmem:[#allocation13 + $0xe74] sm:$0xf0]  ;;  %v10719_v10 = vld [vmem:[#allocation13 + $0xba8] sm:$0xf0]  ;;  %v11598_v31 = vor.u32 %v14276_v22, %v11597_v50  ;;  %v10933_v42 = vld [vmem:[#allocation13 + $0x150] sm:$0xf] }
 0x310   :  { %5775 = vmatpush.bf16.msrb.mxu0 %v11558_v19  ;;  %5789 = vmatpush.bf16.msrb.mxu1 %v11622_v61  ;;  %v15807_v19 = vpop.f32.mrf.mxu2  ;;  %v14249_v61 = vld [vmem:[#allocation13 + $0xbb4] sm:$0xf]  ;;  %v11846_v12 = vor.u32 %v14338_v13, %v11845_v43  ;;  %v10711_v55 = vld [vmem:[#allocation13 + $0xb98] sm:$0xf0]  ;;  %v10925_v7 = vld [vmem:[#allocation13 + $0x140] sm:$0xf]  ;;  %v15824_v43 = vpop.f32.mrf.mxu0 }
 0x311   :  { %3638 = vmatpush.bf16.msrb.mxu2 %v10642_v4  ;;  %v10730_v58 = vor.u32 %v14249_v61, %v10727_v45  ;;  %v11837_v4 = vld [vmem:[#allocation13 + $0xe60] sm:$0xf]  ;;  %v13916_v50 = vld [vmem:[#allocation13 + $0x144] sm:$0xf0]  ;;  %v11189_v6 = vld [vmem:[#allocation13 + $0x350] sm:$0xf] }
 0x312   :  { %3648 = vmatpush.bf16.msrb.mxu3 %v10738_v59  ;;  %v14336_v59 = vld [vmem:[#allocation13 + $0xe64] sm:$0xf0]  ;;  %v11901_v45 = vld [vmem:[#allocation13 + $0xee0] sm:$0xf] }
 0x314   :  { %5776 = vmatpush.bf16.msrb.mxu0 %v11550_v35  ;;  %5790 = vmatpush.bf16.msrb.mxu1 %v11614_v23  ;;  %v1083_v35 = vpack.c.bf16 %v1067_v29, %v1067_v29  ;;  %v10942_v23 = vor.u32 %v13920_v21, %v10941_v17  ;;  %v11910_v29 = vor.u32 %v14354_v54, %v11909_v34  ;;  %v4963_v17 = vunpack.c.l.b16 %v1085_v5  ;;  %v14334_v34 = vld [vmem:[#allocation13 + $0xe54] sm:$0xf0] }
 0x315   :  { %4647 = vmatpush.bf16.msra.mxu2 %v10950_v30  ;;  %v15818_v30 = vpop.f32.mrf.mxu3  ;;  %v10934_v21 = vor.u32 %v13918_v39, %v10933_v42  ;;  %v15826_v13 = vpop.f32.mrf.mxu1  ;;  %v11893_v42 = vld [vmem:[#allocation13 + $0xed0] sm:$0xf]  ;;  %v14350_v54 = vld [vmem:[#allocation13 + $0xed4] sm:$0xf0]  ;;  %v10926_v5 = vor.u32 %v13916_v50, %v10925_v7  ;;  %v13936_v50 = vld [vmem:[#allocation13 + $0x1e4] sm:$0xf0] }
 0x316   :  { %3639 = vmatmul.bf16.vlgmr.msrb.gmra.mxu2 %v15470_v15  ;;  %v4957_v61 = vunpack.c.l.b16 %v1083_v35  ;;  %3649 = vmatpush.bf16.msrb.mxu3 %v10730_v58  ;;  %v11838_v15 = vor.u32 %v14336_v59, %v11837_v4  ;;  %v15822_v22 = vpack.c.b16 %v4964_v26, %v4963_v17  ;;  %v11902_v35 = vor.u32 %v14352_v14, %v11901_v45  ;;  %v11829_v58 = vld [vmem:[#allocation13 + $0xe50] sm:$0xf]  ;;  %v14243_v26 = vld [vmem:[#allocation13 + $0xb84] sm:$0xf]  ;;  %v11821_v4 = vld [vmem:[#allocation13 + $0xe40] sm:$0xf] }
 0x317   :  { %v14332_v59 = vld [vmem:[#allocation13 + $0xe44] sm:$0xf0]  ;;  %v11885_v14 = vld [vmem:[#allocation13 + $0xec0] sm:$0xf] }
 0x318   :  { %5777 = vmatpush.bf16.msrb.mxu0 %v11542_v32  ;;  %5791 = vmatpush.bf16.msrb.mxu1 %v11606_v25  ;;  %v15816_v24 = vpop.f32.mrf.mxu2  ;;  %v10722_v32 = vor.u32 %v14247_v20, %v10719_v10  ;;  %v14245_v25 = vld [vmem:[#allocation13 + $0xb94] sm:$0xf]  ;;  %v15820_v37 = vpack.c.b16 %v4958_v60, %v4957_v61  ;;  %v11830_v20 = vor.u32 %v14334_v34, %v11829_v58  ;;  %v13914_v10 = vld [vmem:[#allocation13 + $0x134] sm:$0xf0]  ;;  %v11013_v60 = vld [vmem:[#allocation13 + $0x1f0] sm:$0xf] }
 0x319   :  { %16522 = vst [vmem:[#allocation91_spill] sm:$0xff] %v15816_v24  ;;  %4648 = vmatpush.bf16.msra.mxu2 %v10942_v23  ;;  %v10714_v39 = vor.u32 %v14245_v25, %v10711_v55  ;;  %v10703_v23 = vld [vmem:[#allocation13 + $0xb88] sm:$0xf0]  ;;  %v14348_v17 = vld [vmem:[#allocation13 + $0xec4] sm:$0xf0]  ;;  %v11822_v7 = vor.u32 %v14332_v59, %v11821_v4 }
 0x31a   :  { %3650 = vmatpush.bf16.msrb.mxu3 %v10722_v32  ;;  %v10706_v45 = vor.u32 %v14243_v26, %v10703_v23  ;;  %v11886_v58 = vor.u32 %v14348_v17, %v11885_v14  ;;  %v11813_v34 = vld [vmem:[#allocation13 + $0xe30] sm:$0xf]  ;;  %v15839_v26 = vpop.f32.mrf.mxu0  ;;  %v11805_v4 = vld [vmem:[#allocation13 + $0xe20] sm:$0xf]  ;;  %v14328_v59 = vld [vmem:[#allocation13 + $0xe24] sm:$0xf0] }
 0x31b   :  { %16524 = vst [vmem:[#allocation93_spill] sm:$0xff] %v15839_v26  ;;  %v11869_v17 = vld [vmem:[#allocation13 + $0xea0] sm:$0xf] }
 0x31c   :  { %5778 = vmatpush.bf16.msrb.mxu0 %v11534_v62  ;;  %5792 = vmatpush.bf16.msrb.mxu1 %v11598_v31  ;;  %v10917_v62 = vld [vmem:[#allocation13 + $0x130] sm:$0xf]  ;;  %v13938_v31 = vld [vmem:[#allocation13 + $0x1f4] sm:$0xf0]  ;;  %v12349_v24 = vld [vmem:[#allocation13 + $0x1260] sm:$0xf] }
 0x31d   :  { %4649 = vmatpush.bf16.msra.mxu2 %v10934_v21  ;;  %v1932_v32 = vpop.f32.mrf.mxu3  ;;  %v10918_v25 = vor.u32 %v13914_v10, %v10917_v62  ;;  %v11014_v55 = vor.u32 %v13938_v31, %v11013_v60  ;;  %v15841_v23 = vpop.f32.mrf.mxu1  ;;  %v10901_v10 = vld [vmem:[#allocation13 + $0x110] sm:$0xf]  ;;  %v13910_v31 = vld [vmem:[#allocation13 + $0x114] sm:$0xf0] }
 0x31e   :  { %3651 = vmatpush.bf16.msrb.mxu3 %v10714_v39  ;;  %v14330_v39 = vld [vmem:[#allocation13 + $0xe34] sm:$0xf0]  ;;  %16525 = vst [vmem:[#allocation94_spill] sm:$0xff] %v15841_v23  ;;  %v13928_v23 = vld [vmem:[#allocation13 + $0x1a4] sm:$0xf0] }
 0x31f   :  { %5779 = vmatmul.bf16.vlgmr.msrb.gmra.mxu0 %v15820_v37  ;;  %5793 = vmatmul.bf16.vlgmr.msrb.gmra.mxu1 %v15822_v22  ;;  %v11814_v60 = vor.u32 %v14330_v39, %v11813_v34  ;;  %v14326_v34 = vld [vmem:[#allocation13 + $0xe14] sm:$0xf0] }
 0x320   :  { %5827 = vmatpush.bf16.msra.mxu0 %v11846_v12  ;;  %5841 = vmatpush.bf16.msra.mxu1 %v11910_v29  ;;  %v1884_v12 = vadd.f32 %v15735_v3, %v15807_v19  ;;  %v11894_v29 = vor.u32 %v14350_v54, %v11893_v42  ;;  %v15832_v61 = vpop.f32.mrf.mxu2  ;;  %v13912_v3 = vld [vmem:[#allocation13 + $0x124] sm:$0xf0]  ;;  %v11005_v19 = vld [vmem:[#allocation13 + $0x1e0] sm:$0xf]  ;;  %v11877_v42 = vld [vmem:[#allocation13 + $0xeb0] sm:$0xf] }
 0x321   :  { %4650 = vmatpush.bf16.msra.mxu2 %v10926_v5  ;;  %v14346_v54 = vld [vmem:[#allocation13 + $0xeb4] sm:$0xf0] }
 0x322   :  { %v15834_v21 = vadd.f32 %v1932_v32, %v1884_v12  ;;  %3652 = vmatpush.bf16.msrb.mxu3 %v10706_v45  ;;  %v10997_v12 = vld [vmem:[#allocation13 + $0x1d0] sm:$0xf] }
 0x324   :  { %5828 = vmatpush.bf16.msra.mxu0 %v11838_v15  ;;  %5842 = vmatpush.bf16.msra.mxu1 %v11902_v35  ;;  %16523 = vst [vmem:[#allocation92_spill] sm:$0xff] %v15834_v21  ;;  %v10909_v15 = vld [vmem:[#allocation13 + $0x120] sm:$0xf]  ;;  %v1001_v35 = vadd.f32 %v15786_v41, %v15559_v44  ;;  %v1006_v44 = vadd.f32 %v15786_v41, %v15581_v40 }
 0x325   :  { %4651 = vmatpush.bf16.msra.mxu2 %v10918_v25  ;;  %v10910_v62 = vor.u32 %v13912_v3, %v10909_v15  ;;  %3653 = vmatmul.bf16.vlgmr.msrb.gmra.mxu3 %v15487_v2  ;;  %v15849_v14 = vpop.f32.mrf.mxu3  ;;  %v14344_v25 = vld [vmem:[#allocation13 + $0xea4] sm:$0xf0]  ;;  %v10902_v41 = vor.u32 %v13910_v31, %v10901_v10  ;;  %v10893_v15 = vld [vmem:[#allocation13 + $0x100] sm:$0xf]  ;;  %v11806_v2 = vor.u32 %v14328_v59, %v11805_v4  ;;  %v15855_v10 = vpop.f32.mrf.mxu1  ;;  %v10981_v31 = vld [vmem:[#allocation13 + $0x1b0] sm:$0xf] }
 0x326   :  { %v1050_v5 = vadd.f32 %v15565_v9, %v1001_v35  ;;  %4661 = vmatpush.bf16.msra.mxu3 %v11014_v55  ;;  %v11878_v9 = vor.u32 %v14346_v54, %v11877_v42  ;;  %v1055_v32 = vadd.f32 %v15592_v38, %v1006_v44  ;;  %16527 = vst [vmem:[#allocation96_spill] sm:$0xff] %v15849_v14  ;;  %v10989_v3 = vld [vmem:[#allocation13 + $0x1c0] sm:$0xf]  ;;  %v13986_v35 = vld [vmem:[#allocation13 + $0x374] sm:$0xf0] }
 0x327   :  { %v11870_v38 = vor.u32 %v14344_v25, %v11869_v17  ;;  %v11861_v42 = vld [vmem:[#allocation13 + $0xe90] sm:$0xf]  ;;  %v14342_v54 = vld [vmem:[#allocation13 + $0xe94] sm:$0xf0]  ;;  %v11197_v4 = vld [vmem:[#allocation13 + $0x360] sm:$0xf] }
 0x328   :  { %5829 = vmatpush.bf16.msra.mxu0 %v11830_v20  ;;  %5843 = vmatpush.bf16.msra.mxu1 %v11894_v29  ;;  %v11006_v20 = vor.u32 %v13936_v50, %v11005_v19  ;;  %v13934_v29 = vld [vmem:[#allocation13 + $0x1d4] sm:$0xf0]  ;;  %v15847_v45 = vpop.f32.mrf.mxu2  ;;  %v1076_v40 = vmax.f32 %v1050_v5, 0.0  ;;  %v13932_v19 = vld [vmem:[#allocation13 + $0x1c4] sm:$0xf0]  ;;  %v1078_v39 = vmax.f32 %v1055_v32, 0.0 }
 0x329   :  { %16526 = vst [vmem:[#allocation95_spill] sm:$0xff] %v15847_v45  ;;  %4652 = vmatpush.bf16.msra.mxu2 %v10910_v62  ;;  %v10998_v55 = vor.u32 %v13934_v29, %v10997_v12  ;;  %v11205_v50 = vld [vmem:[#allocation13 + $0x370] sm:$0xf]  ;;  %v1075_v5 = vmax.f32 %v15557_v63, 0.0  ;;  %v1077_v62 = vmax.f32 %v15575_v51, 0.0  ;;  %v11862_v51 = vor.u32 %v14342_v54, %v11861_v42 }
 0x32a   :  { %4662 = vmatpush.bf16.msra.mxu3 %v11006_v20  ;;  %v15853_v20 = vpop.f32.mrf.mxu0  ;;  %v11206_v12 = vor.u32 %v13986_v35, %v11205_v50  ;;  %v13984_v59 = vld [vmem:[#allocation13 + $0x364] sm:$0xf0]  ;;  %v1092_v32 = vpack.c.bf16 %v1076_v40, %v1076_v40  ;;  %v15857_v17 = vld [vmem:[#allocation12 + $0x5] ss:$0 sm:$0xff]  ;;  %v11789_v25 = vld [vmem:[#allocation13 + $0xe00] sm:$0xf] }
 0x32b   :  { %v1889_v63 = vadd.f32 %v15857_v17, %v15832_v61  ;;  %v11591_v50 = vld [vmem:[#allocation13 + $0xc78] sm:$0xf0]  ;;  %v1091_v35 = vpack.c.bf16 %v1075_v5, %v1075_v5  ;;  %v11198_v42 = vor.u32 %v13984_v59, %v11197_v4  ;;  %v13982_v5 = vld [vmem:[#allocation13 + $0x354] sm:$0xf0]  ;;  %v12101_v14 = vld [vmem:[#allocation13 + $0x1070] sm:$0xf] }
 0x32c   :  { %5830 = vmatpush.bf16.msra.mxu0 %v11822_v7  ;;  %5844 = vmatpush.bf16.msra.mxu1 %v11886_v58  ;;  %v13908_v7 = vld [vmem:[#allocation13 + $0x104] sm:$0xf0]  ;;  %v11797_v58 = vld [vmem:[#allocation13 + $0xe10] sm:$0xf]  ;;  %v11655_v61 = vld [vmem:[#allocation13 + $0xcf8] sm:$0xf0]  ;;  %v4982_v26 = vunpack.c.l.b16 %v1092_v32  ;;  %v11190_v59 = vor.u32 %v13982_v5, %v11189_v6 }
 0x32d   :  { %4653 = vmatpush.bf16.msra.mxu2 %v10902_v41  ;;  %v10894_v44 = vor.u32 %v13908_v7, %v10893_v15  ;;  %v11798_v29 = vor.u32 %v14326_v34, %v11797_v58  ;;  %v14324_v41 = vld [vmem:[#allocation13 + $0xe04] sm:$0xf0]  ;;  %v1094_v15 = vpack.c.bf16 %v1078_v39, %v1078_v39  ;;  %v14289_v34 = vld [vmem:[#allocation13 + $0xcf4] sm:$0xf]  ;;  %v10973_v39 = vld [vmem:[#allocation13 + $0x1a0] sm:$0xf] }
 0x32e   :  { %4663 = vmatpush.bf16.msra.mxu3 %v10998_v55  ;;  %v11853_v55 = vld [vmem:[#allocation13 + $0xe80] sm:$0xf]  ;;  %v11790_v54 = vor.u32 %v14324_v41, %v11789_v25  ;;  %v10965_v32 = vld [vmem:[#allocation13 + $0x190] sm:$0xf] }
 0x32f   :  { %v11269_v5 = vld [vmem:[#allocation13 + $0x3f0] sm:$0xf] }
 0x330   :  { %5831 = vmatpush.bf16.msra.mxu0 %v11814_v60  ;;  %5845 = vmatpush.bf16.msra.mxu1 %v11878_v9  ;;  %v10990_v60 = vor.u32 %v13932_v19, %v10989_v3  ;;  %v13930_v9 = vld [vmem:[#allocation13 + $0x1b4] sm:$0xf0]  ;;  %v15861_v7 = vpop.f32.mrf.mxu2  ;;  %v14340_v3 = vld [vmem:[#allocation13 + $0xe84] sm:$0xf0]  ;;  %v14273_v19 = vld [vmem:[#allocation13 + $0xc74] sm:$0xf] }
 0x331   :  { %4654 = vmatpush.bf16.msra.mxu2 %v10894_v44  ;;  %v10982_v40 = vor.u32 %v13930_v9, %v10981_v31  ;;  %v11854_v45 = vor.u32 %v14340_v3, %v11853_v55  ;;  %v11594_v21 = vor.u32 %v14273_v19, %v11591_v50  ;;  %v11658_v44 = vor.u32 %v14289_v34, %v11655_v61  ;;  %v11583_v31 = vld [vmem:[#allocation13 + $0xc68] sm:$0xf0]  ;;  %v15870_v55 = vpop.f32.mrf.mxu1  ;;  %v13980_v3 = vld [vmem:[#allocation13 + $0x344] sm:$0xf0]  ;;  %v14285_v34 = vld [vmem:[#allocation13 + $0xcd4] sm:$0xf] }
 0x332   :  { %4664 = vmatpush.bf16.msra.mxu3 %v10990_v60  ;;  %v14271_v60 = vld [vmem:[#allocation13 + $0xc64] sm:$0xf]  ;;  %v4981_v9 = vunpack.c.l.b16 %v1091_v35  ;;  %v15868_v41 = vpop.f32.mrf.mxu0  ;;  %16530 = vst [vmem:[#allocation99_spill] sm:$0xff] %v15870_v55  ;;  %v14269_v35 = vld [vmem:[#allocation13 + $0xc54] sm:$0xf] }
 0x333   :  { %16529 = vst [vmem:[#allocation98_spill] sm:$0xff] %v15868_v41  ;;  %v10957_v61 = vld [vmem:[#allocation13 + $0x180] sm:$0xf]  ;;  %v11599_v55 = vld [vmem:[#allocation13 + $0xc88] sm:$0xf0] }
 0x334   :  { %5832 = vmatpush.bf16.msra.mxu0 %v11806_v2  ;;  %5846 = vmatpush.bf16.msra.mxu1 %v11870_v38  ;;  %v1937_v2 = vpop.f32.mrf.mxu3  ;;  %v1093_v38 = vpack.c.bf16 %v1077_v62, %v1077_v62  ;;  %v10974_v62 = vor.u32 %v13928_v23, %v10973_v39  ;;  %v15866_v25 = vpack.c.b16 %v4982_v26, %v4981_v9  ;;  %v11575_v26 = vld [vmem:[#allocation13 + $0xc58] sm:$0xf0]  ;;  %v13978_v39 = vld [vmem:[#allocation13 + $0x334] sm:$0xf0] }
 0x335   :  { %v15863_v58 = vadd.f32 %v1937_v2, %v1889_v63  ;;  %4703 = vmatpush.bf16.msrb.mxu2 %v11206_v12  ;;  %v4988_v63 = vunpack.c.l.b16 %v1094_v15  ;;  %v14287_v12 = vld [vmem:[#allocation13 + $0xce4] sm:$0xf]  ;;  %v11586_v15 = vor.u32 %v14271_v60, %v11583_v31  ;;  %v11181_v2 = vld [vmem:[#allocation13 + $0x340] sm:$0xf]  ;;  %v11567_v31 = vld [vmem:[#allocation13 + $0xc48] sm:$0xf0] }
 0x336   :  { %4655 = vmatmul.bf16.vlgmr.msra.gmra.mxu2 %v15365_v52  ;;  %4665 = vmatpush.bf16.msra.mxu3 %v10982_v40  ;;  %v4987_v4 = vunpack.c.l.b16 %v1093_v38  ;;  %v13924_v38 = vld [vmem:[#allocation13 + $0x184] sm:$0xf0]  ;;  %v14267_v60 = vld [vmem:[#allocation13 + $0xc44] sm:$0xf]  ;;  %v11847_v41 = vld [vmem:[#allocation13 + $0xe78] sm:$0xf0] }
 0x337   :  { %16528 = vst [vmem:[#allocation97_spill] sm:$0xff] %v15863_v58  ;;  %v10958_v9 = vor.u32 %v13924_v38, %v10957_v61  ;;  %v14337_v58 = vld [vmem:[#allocation13 + $0xe74] sm:$0xf] }
 0x338   :  { %5833 = vmatpush.bf16.msra.mxu0 %v11798_v29  ;;  %5847 = vmatpush.bf16.msra.mxu1 %v11862_v51  ;;  %v11647_v29 = vld [vmem:[#allocation13 + $0xce8] sm:$0xf0]  ;;  %v13926_v51 = vld [vmem:[#allocation13 + $0x194] sm:$0xf0]  ;;  %v15872_v23 = vpack.c.b16 %v4988_v63, %v4987_v4  ;;  %v15874_v19 = vpop.f32.mrf.mxu2 }
 0x339   :  { %4704 = vmatpush.bf16.msrb.mxu2 %v11198_v42  ;;  %16531 = vst [vmem:[#allocation100_spill] sm:$0xff] %v15874_v19  ;;  %v11650_v6 = vor.u32 %v14287_v12, %v11647_v29  ;;  %v10966_v40 = vor.u32 %v13926_v51, %v10965_v32  ;;  %v11173_v42 = vld [vmem:[#allocation13 + $0x330] sm:$0xf]  ;;  %v14002_v63 = vld [vmem:[#allocation13 + $0x3f4] sm:$0xf0]  ;;  %v15882_v51 = vpop.f32.mrf.mxu1 }
 0x33a   :  { %4666 = vmatpush.bf16.msra.mxu3 %v10974_v62  ;;  %v14283_v62 = vld [vmem:[#allocation13 + $0xcc4] sm:$0xf]  ;;  %v11631_v12 = vld [vmem:[#allocation13 + $0xcc8] sm:$0xf0]  ;;  %v11174_v29 = vor.u32 %v13978_v39, %v11173_v42  ;;  %v11270_v4 = vor.u32 %v14002_v63, %v11269_v5  ;;  %v15880_v32 = vpop.f32.mrf.mxu0  ;;  %v14281_v42 = vld [vmem:[#allocation13 + $0xcb4] sm:$0xf] }
 0x33b   :  { %v11623_v39 = vld [vmem:[#allocation13 + $0xcb8] sm:$0xf0]  ;;  %v13974_v63 = vld [vmem:[#allocation13 + $0x314] sm:$0xf0]  ;;  %v11535_v19 = vld [vmem:[#allocation13 + $0xc08] sm:$0xf0] }
 0x33c   :  { %5834 = vmatpush.bf16.msra.mxu0 %v11790_v54  ;;  %5848 = vmatpush.bf16.msra.mxu1 %v11854_v45  ;;  %v15876_v50 = vpop.f32.mrf.mxu3  ;;  %v11639_v45 = vld [vmem:[#allocation13 + $0xcd8] sm:$0xf0]  ;;  %v11578_v54 = vor.u32 %v14269_v35, %v11575_v26  ;;  %v14000_v35 = vld [vmem:[#allocation13 + $0x3e4] sm:$0xf0] }
 0x33d   :  { %16532 = vst [vmem:[#allocation101_spill] sm:$0xff] %v15876_v50  ;;  %4705 = vmatpush.bf16.msrb.mxu2 %v11190_v59  ;;  %v11165_v59 = vld [vmem:[#allocation13 + $0x320] sm:$0xf]  ;;  %v14341_v50 = vld [vmem:[#allocation13 + $0xe94] sm:$0xf] }
 0x33e   :  { %4667 = vmatpush.bf16.msra.mxu3 %v10966_v40 }
 0x33f   :  { %5835 = vmatmul.bf16.vlgmr.msra.gmra.mxu0 %v15866_v25  ;;  %5849 = vmatmul.bf16.vlgmr.msra.gmra.mxu1 %v15872_v23 }
 0x340   :  { %5883 = vmatpush.bf16.msrb.mxu0 %v11594_v21  ;;  %5897 = vmatpush.bf16.msrb.mxu1 %v11658_v44  ;;  %v11182_v21 = vor.u32 %v13980_v3, %v11181_v2  ;;  %v11642_v44 = vor.u32 %v14285_v34, %v11639_v45  ;;  %v11570_v2 = vor.u32 %v14267_v60, %v11567_v31  ;;  %v13976_v3 = vld [vmem:[#allocation13 + $0x324] sm:$0xf0]  ;;  %v3416_v40 = vpop.f32.mrf.mxu2  ;;  %v14265_v45 = vld [vmem:[#allocation13 + $0xc34] sm:$0xf]  ;;  %v13998_v60 = vld [vmem:[#allocation13 + $0x3d4] sm:$0xf0] }
 0x341   :  { %v11634_v34 = vor.u32 %v14283_v62, %v11631_v12  ;;  %v15889_v38 = vadd.f32 %v3416_v40, %v15644_v47  ;;  %v16534_v31 = vld [vmem:[#allocation25_spill] sm:$0xff]  ;;  %v11626_v62 = vor.u32 %v14281_v42, %v11623_v39  ;;  %v11551_v47 = vld [vmem:[#allocation13 + $0xc28] sm:$0xf0]  ;;  %v14261_v42 = vld [vmem:[#allocation13 + $0xc14] sm:$0xf] }
 0x342   :  { %4706 = vmatpush.bf16.msrb.mxu2 %v11182_v21  ;;  %v11559_v21 = vld [vmem:[#allocation13 + $0xc38] sm:$0xf0]  ;;  %4668 = vmatpush.bf16.msra.mxu3 %v10958_v9  ;;  %v14263_v12 = vld [vmem:[#allocation13 + $0xc24] sm:$0xf]  ;;  %v11615_v9 = vld [vmem:[#allocation13 + $0xca8] sm:$0xf0] }
 0x343   :  { %v11562_v5 = vor.u32 %v14265_v45, %v11559_v21  ;;  %v14050_v21 = vld [vmem:[#allocation13 + $0x574] sm:$0xf0]  ;;  %v11543_v39 = vld [vmem:[#allocation13 + $0xc18] sm:$0xf0] }
 0x344   :  { %5884 = vmatpush.bf16.msrb.mxu0 %v11586_v15  ;;  %5898 = vmatpush.bf16.msrb.mxu1 %v11650_v6  ;;  %v1894_v15 = vadd.f32 %v15857_v17, %v15861_v7  ;;  %v11261_v6 = vld [vmem:[#allocation13 + $0x3e0] sm:$0xf]  ;;  %v1942_v26 = vpop.f32.mrf.mxu3  ;;  %v11166_v17 = vor.u32 %v13976_v3, %v11165_v59  ;;  %v13972_v3 = vld [vmem:[#allocation13 + $0x304] sm:$0xf0] }
 0x345   :  { %v11262_v7 = vor.u32 %v14000_v35, %v11261_v6  ;;  %4669 = vmatmul.bf16.vlgmr.msra.gmra.mxu3 %v16534_v31  ;;  %v11149_v59 = vld [vmem:[#allocation13 + $0x300] sm:$0xf]  ;;  %v13996_v35 = vld [vmem:[#allocation13 + $0x3c4] sm:$0xf0] }
 0x346   :  { %v15886_v61 = vadd.f32 %v1942_v26, %v1894_v15  ;;  %4707 = vmatpush.bf16.msrb.mxu2 %v11174_v29  ;;  %4717 = vmatpush.bf16.msrb.mxu3 %v11270_v4  ;;  %v14279_v15 = vld [vmem:[#allocation13 + $0xca4] sm:$0xf]  ;;  %v11245_v6 = vld [vmem:[#allocation13 + $0x3c0] sm:$0xf]  ;;  %v11461_v26 = vld [vmem:[#allocation13 + $0x570] sm:$0xf] }
 0x347   :  { %v11618_v45 = vor.u32 %v14279_v15, %v11615_v9  ;;  %v14048_v15 = vld [vmem:[#allocation13 + $0x564] sm:$0xf0] }
 0x348   :  { %5885 = vmatpush.bf16.msrb.mxu0 %v11578_v54  ;;  %5899 = vmatpush.bf16.msrb.mxu1 %v11642_v44  ;;  %16533 = vst [vmem:[#allocation102_spill] sm:$0xff] %v15886_v61  ;;  %v11157_v54 = vld [vmem:[#allocation13 + $0x310] sm:$0xf]  ;;  %v11453_v61 = vld [vmem:[#allocation13 + $0x560] sm:$0xf] }
 0x349   :  { %v11253_v44 = vld [vmem:[#allocation13 + $0x3d0] sm:$0xf]  ;;  %v11158_v29 = vor.u32 %v13974_v63, %v11157_v54  ;;  %v11607_v54 = vld [vmem:[#allocation13 + $0xc98] sm:$0xf0]  ;;  %v15898_v63 = vpop.f32.mrf.mxu1 }
 0x34a   :  { %4708 = vmatpush.bf16.msrb.mxu2 %v11166_v17  ;;  %4718 = vmatpush.bf16.msrb.mxu3 %v11262_v7  ;;  %v11254_v4 = vor.u32 %v13998_v60, %v11253_v44  ;;  %v15896_v17 = vpop.f32.mrf.mxu0  ;;  %v14277_v7 = vld [vmem:[#allocation13 + $0xc94] sm:$0xf]  ;;  %16538 = vst [vmem:[#allocation105_spill] sm:$0xff] %v15898_v63  ;;  %v11246_v44 = vor.u32 %v13996_v35, %v11245_v6  ;;  %v11237_v60 = vld [vmem:[#allocation13 + $0x3b0] sm:$0xf] }
 0x34b   :  { %16537 = vst [vmem:[#allocation104_spill] sm:$0xff] %v15896_v17  ;;  %v11610_v9 = vor.u32 %v14277_v7, %v11607_v54  ;;  %v14275_v17 = vld [vmem:[#allocation13 + $0xc84] sm:$0xf]  ;;  %v11229_v6 = vld [vmem:[#allocation13 + $0x3a0] sm:$0xf] }
 0x34c   :  { %5886 = vmatpush.bf16.msrb.mxu0 %v11570_v2  ;;  %5900 = vmatpush.bf16.msrb.mxu1 %v11634_v34  ;;  %v11554_v2 = vor.u32 %v14263_v12, %v11551_v47  ;;  %v15892_v40 = vpop.f32.mrf.mxu3  ;;  %v15894_v34 = vpop.f32.mrf.mxu2  ;;  %v11546_v12 = vor.u32 %v14261_v42, %v11543_v39  ;;  %v13994_v47 = vld [vmem:[#allocation13 + $0x3b4] sm:$0xf0]  ;;  %v13992_v35 = vld [vmem:[#allocation13 + $0x3a4] sm:$0xf0]  ;;  %v11850_v42 = vor.u32 %v14337_v58, %v11847_v41  ;;  %v11445_v39 = vld [vmem:[#allocation13 + $0x550] sm:$0xf] }
 0x34d   :  { %16535 = vst [vmem:[#allocation25_spill] sm:$0xff] %v15892_v40  ;;  %v14259_v40 = vld [vmem:[#allocation13 + $0xc04] sm:$0xf]  ;;  %v14046_v7 = vld [vmem:[#allocation13 + $0x554] sm:$0xf0] }
 0x34e   :  { %16536 = vst [vmem:[#allocation103_spill] sm:$0xff] %v15894_v34  ;;  %4709 = vmatpush.bf16.msrb.mxu2 %v11158_v29  ;;  %4719 = vmatpush.bf16.msrb.mxu3 %v11254_v4  ;;  %v11238_v29 = vor.u32 %v13994_v47, %v11237_v60  ;;  %v14353_v4 = vld [vmem:[#allocation13 + $0xef4] sm:$0xf]  ;;  %v11903_v47 = vld [vmem:[#allocation13 + $0xee8] sm:$0xf0]  ;;  %v11446_v58 = vor.u32 %v14046_v7, %v11445_v39 }
 0x34f   :  { %v11221_v41 = vld [vmem:[#allocation13 + $0x390] sm:$0xf]  ;;  %v13988_v7 = vld [vmem:[#allocation13 + $0x384] sm:$0xf0]  ;;  %v11855_v34 = vld [vmem:[#allocation13 + $0xe88] sm:$0xf0] }
 0x350   :  { %5887 = vmatpush.bf16.msrb.mxu0 %v11562_v5  ;;  %5901 = vmatpush.bf16.msrb.mxu1 %v11626_v62  ;;  %v11150_v5 = vor.u32 %v13972_v3, %v11149_v59  ;;  %v11462_v62 = vor.u32 %v14050_v21, %v11461_v26  ;;  %v11911_v59 = vld [vmem:[#allocation13 + $0xef8] sm:$0xf0]  ;;  %v11454_v3 = vor.u32 %v14048_v15, %v11453_v61  ;;  %v16540_v15 = vld [vmem:[#allocation74_spill] sm:$0xff] }
 0x351   :  { %v11602_v21 = vor.u32 %v14275_v17, %v11599_v55  ;;  %v11914_v60 = vor.u32 %v14353_v4, %v11911_v59  ;;  %v15904_v61 = vpop.f32.mrf.mxu1  ;;  %v13990_v17 = vld [vmem:[#allocation13 + $0x394] sm:$0xf0]  ;;  %v14044_v4 = vld [vmem:[#allocation13 + $0x544] sm:$0xf0] }
 0x352   :  { %4710 = vmatpush.bf16.msrb.mxu2 %v11150_v5  ;;  %4720 = vmatpush.bf16.msrb.mxu3 %v11246_v44  ;;  %v15900_v54 = vpop.f32.mrf.mxu0  ;;  %v16539_v44 = vld [vmem:[#allocation26_spill] sm:$0xff]  ;;  %v16541_v59 = vld [vmem:[#allocation75_spill] sm:$0xff] }
 0x354   :  { %5888 = vmatpush.bf16.msrb.mxu0 %v11554_v2  ;;  %5902 = vmatpush.bf16.msrb.mxu1 %v11618_v45  ;;  %v11538_v2 = vor.u32 %v14259_v40, %v11535_v19  ;;  %v3430_v26 = vpop.f32.mrf.mxu3  ;;  %v3472_v45 = vpop.f32.mrf.mxu2  ;;  %v11230_v19 = vor.u32 %v13992_v35, %v11229_v6  ;;  %v14351_v40 = vld [vmem:[#allocation13 + $0xee4] sm:$0xf]  ;;  %v11831_v6 = vld [vmem:[#allocation13 + $0xe58] sm:$0xf0]  ;;  %v11222_v35 = vor.u32 %v13990_v17, %v11221_v41 }
 0x355   :  { %v3431_v5 = vadd.f32 %v3430_v26, %v15889_v38  ;;  %4711 = vmatmul.bf16.vlgmr.msrb.gmra.mxu2 %v16539_v44  ;;  %v11906_v63 = vor.u32 %v14351_v40, %v11903_v47  ;;  %v11525_v40 = vld [vmem:[#allocation13 + $0x5f0] sm:$0xf] }
 0x356   :  { %4759 = vmatpush.bf16.msra.mxu2 %v11462_v62  ;;  %v14335_v62 = vld [vmem:[#allocation13 + $0xe64] sm:$0xf]  ;;  %4721 = vmatpush.bf16.msrb.mxu3 %v11238_v29  ;;  %v14333_v29 = vld [vmem:[#allocation13 + $0xe54] sm:$0xf] }
 0x357   :  { %v3445_v55 = vadd.f32 %v16540_v15, %v3431_v5  ;;  %v11429_v5 = vld [vmem:[#allocation13 + $0x530] sm:$0xf]  ;;  %v14331_v15 = vld [vmem:[#allocation13 + $0xe44] sm:$0xf] }
 0x358   :  { %5889 = vmatpush.bf16.msrb.mxu0 %v11546_v12  ;;  %5903 = vmatpush.bf16.msrb.mxu1 %v11610_v9  ;;  %v11839_v12 = vld [vmem:[#allocation13 + $0xe68] sm:$0xf0]  ;;  %v11437_v9 = vld [vmem:[#allocation13 + $0x540] sm:$0xf] }
 0x359   :  { %v11842_v38 = vor.u32 %v14335_v62, %v11839_v12  ;;  %v3459_v26 = vadd.f32 %v16541_v59, %v3445_v55  ;;  %v11834_v12 = vor.u32 %v14333_v29, %v11831_v6  ;;  %v14347_v55 = vld [vmem:[#allocation13 + $0xec4] sm:$0xf]  ;;  %v11517_v29 = vld [vmem:[#allocation13 + $0x5e0] sm:$0xf] }
 0x35a   :  { %4760 = vmatpush.bf16.msra.mxu2 %v11454_v3  ;;  %4722 = vmatpush.bf16.msrb.mxu3 %v11230_v19  ;;  %v14349_v3 = vld [vmem:[#allocation13 + $0xed4] sm:$0xf]  ;;  %v14042_v19 = vld [vmem:[#allocation13 + $0x534] sm:$0xf0]  ;;  %v15914_v41 = vpop.f32.mrf.mxu0 }
 0x35b   :  { %v3473_v39 = vadd.f32 %v3472_v45, %v3459_v26  ;;  %v11823_v45 = vld [vmem:[#allocation13 + $0xe48] sm:$0xf0]  ;;  %16544 = vst [vmem:[#allocation75_spill] sm:$0xff] %v15914_v41  ;;  %v11430_v17 = vor.u32 %v14042_v19, %v11429_v5  ;;  %v14040_v26 = vld [vmem:[#allocation13 + $0x524] sm:$0xf0] }
 0x35c   :  { %5890 = vmatpush.bf16.msrb.mxu0 %v11538_v2  ;;  %5904 = vmatpush.bf16.msrb.mxu1 %v11602_v21  ;;  %v11895_v2 = vld [vmem:[#allocation13 + $0xed8] sm:$0xf0]  ;;  %v11438_v21 = vor.u32 %v14044_v4, %v11437_v9  ;;  %v15910_v62 = vpop.f32.mrf.mxu3  ;;  %v11421_v9 = vld [vmem:[#allocation13 + $0x520] sm:$0xf]  ;;  %v15916_v4 = vpop.f32.mrf.mxu1  ;;  %v11826_v59 = vor.u32 %v14331_v15, %v11823_v45  ;;  %v11413_v5 = vld [vmem:[#allocation13 + $0x510] sm:$0xf] }
 0x35d   :  { %16542 = vst [vmem:[#allocation26_spill] sm:$0xff] %v15910_v62  ;;  %v11898_v47 = vor.u32 %v14349_v3, %v11895_v2  ;;  %v14329_v3 = vld [vmem:[#allocation13 + $0xe34] sm:$0xf]  ;;  %v14062_v15 = vld [vmem:[#allocation13 + $0x5d4] sm:$0xf0] }
 0x35e   :  { %4761 = vmatpush.bf16.msra.mxu2 %v11446_v58  ;;  %4723 = vmatpush.bf16.msrb.mxu3 %v11222_v35  ;;  %v11887_v58 = vld [vmem:[#allocation13 + $0xec8] sm:$0xf0]  ;;  %16545 = vst [vmem:[#allocation106_spill] sm:$0xff] %v15916_v4  ;;  %v11815_v35 = vld [vmem:[#allocation13 + $0xe38] sm:$0xf0] }
 0x35f   :  { %5891 = vmatmul.bf16.vlgmr.msrb.gmra.mxu0 %v15820_v37  ;;  %5905 = vmatmul.bf16.vlgmr.msrb.gmra.mxu1 %v15822_v22  ;;  %v14066_v37 = vld [vmem:[#allocation13 + $0x5f4] sm:$0xf0]  ;;  %v11890_v6 = vor.u32 %v14347_v55, %v11887_v58  ;;  %v14345_v2 = vld [vmem:[#allocation13 + $0xeb4] sm:$0xf]  ;;  %v14327_v58 = vld [vmem:[#allocation13 + $0xe24] sm:$0xf] }
 0x360   :  { %5939 = vmatpush.bf16.msra.mxu0 %v11850_v42  ;;  %5953 = vmatpush.bf16.msra.mxu1 %v11914_v60  ;;  %v11213_v42 = vld [vmem:[#allocation13 + $0x380] sm:$0xf]  ;;  %v15912_v60 = vpop.f32.mrf.mxu2  ;;  %v16546_v55 = vld [vmem:[#allocation27_spill] sm:$0xff]  ;;  %v11807_v4 = vld [vmem:[#allocation13 + $0xe28] sm:$0xf0] }
 0x361   :  { %16543 = vst [vmem:[#allocation74_spill] sm:$0xff] %v15912_v60  ;;  %v11214_v22 = vor.u32 %v13988_v7, %v11213_v42  ;;  %v11879_v42 = vld [vmem:[#allocation13 + $0xeb8] sm:$0xf0]  ;;  %v14339_v62 = vld [vmem:[#allocation13 + $0xe84] sm:$0xf] }
 0x362   :  { %4762 = vmatpush.bf16.msra.mxu2 %v11438_v21  ;;  %v11422_v21 = vor.u32 %v14040_v26, %v11421_v9  ;;  %v11871_v9 = vld [vmem:[#allocation13 + $0xea8] sm:$0xf0]  ;;  %v11799_v41 = vld [vmem:[#allocation13 + $0xe18] sm:$0xf0] }
 0x363   :  { %4724 = vmatpush.bf16.msrb.mxu3 %v11214_v22  ;;  %v11882_v22 = vor.u32 %v14345_v2, %v11879_v42  ;;  %v14060_v2 = vld [vmem:[#allocation13 + $0x5c4] sm:$0xf0]  ;;  %v13921_v42 = vld [vmem:[#allocation13 + $0x174] sm:$0xf]  ;;  %v11863_v60 = vld [vmem:[#allocation13 + $0xe98] sm:$0xf0] }
 0x364   :  { %5940 = vmatpush.bf16.msra.mxu0 %v11842_v38  ;;  %5954 = vmatpush.bf16.msra.mxu1 %v11906_v63  ;;  %v11526_v38 = vor.u32 %v14066_v37, %v11525_v40  ;;  %v14064_v63 = vld [vmem:[#allocation13 + $0x5e4] sm:$0xf0]  ;;  %v3486_v19 = vpop.f32.mrf.mxu3  ;;  %v11818_v40 = vor.u32 %v14329_v3, %v11815_v35  ;;  %v11509_v37 = vld [vmem:[#allocation13 + $0x5d0] sm:$0xf]  ;;  %v11810_v3 = vor.u32 %v14327_v58, %v11807_v4  ;;  %v11501_v35 = vld [vmem:[#allocation13 + $0x5c0] sm:$0xf] }
 0x365   :  { %v11518_v7 = vor.u32 %v14064_v63, %v11517_v29  ;;  %v15918_v45 = vadd.f32 %v3486_v19, %v3473_v39  ;;  %v11510_v29 = vor.u32 %v14062_v15, %v11509_v37  ;;  %v11405_v63 = vld [vmem:[#allocation13 + $0x500] sm:$0xf]  ;;  %v14036_v39 = vld [vmem:[#allocation13 + $0x504] sm:$0xf0]  ;;  %v10951_v19 = vld [vmem:[#allocation13 + $0x178] sm:$0xf0] }
 0x366   :  { %4763 = vmatpush.bf16.msra.mxu2 %v11430_v17  ;;  %4725 = vmatmul.bf16.vlgmr.msrb.gmra.mxu3 %v16546_v55  ;;  %v14058_v37 = vld [vmem:[#allocation13 + $0x5b4] sm:$0xf0]  ;;  %v13919_v15 = vld [vmem:[#allocation13 + $0x164] sm:$0xf]  ;;  %v10943_v58 = vld [vmem:[#allocation13 + $0x168] sm:$0xf0] }
 0x367   :  { %4773 = vmatpush.bf16.msra.mxu3 %v11526_v38  ;;  %v14343_v38 = vld [vmem:[#allocation13 + $0xea4] sm:$0xf] }
 0x368   :  { %5941 = vmatpush.bf16.msra.mxu0 %v11834_v12  ;;  %5955 = vmatpush.bf16.msra.mxu1 %v11898_v47  ;;  %v14038_v12 = vld [vmem:[#allocation13 + $0x514] sm:$0xf0]  ;;  %v3528_v47 = vpop.f32.mrf.mxu2 }
 0x369   :  { %v15922_v17 = vadd.f32 %v3528_v47, %v15701_v33  ;;  %v11414_v26 = vor.u32 %v14038_v12, %v11413_v5  ;;  %v11874_v33 = vor.u32 %v14343_v38, %v11871_v9  ;;  %v14325_v47 = vld [vmem:[#allocation13 + $0xe14] sm:$0xf]  ;;  %v11493_v5 = vld [vmem:[#allocation13 + $0x5b0] sm:$0xf]  ;;  %v14323_v38 = vld [vmem:[#allocation13 + $0xe04] sm:$0xf] }
 0x36a   :  { %4764 = vmatpush.bf16.msra.mxu2 %v11422_v21  ;;  %v11406_v21 = vor.u32 %v14036_v39, %v11405_v63  ;;  %v11802_v4 = vor.u32 %v14325_v47, %v11799_v41  ;;  %v11791_v9 = vld [vmem:[#allocation13 + $0xe08] sm:$0xf0]  ;;  %v12165_v63 = vld [vmem:[#allocation13 + $0x10f0] sm:$0xf]  ;;  %v14418_v39 = vld [vmem:[#allocation13 + $0x10f4] sm:$0xf0] }
 0x36b   :  { %4774 = vmatpush.bf16.msra.mxu3 %v11518_v7  ;;  %v11502_v7 = vor.u32 %v14060_v2, %v11501_v35  ;;  %v11794_v41 = vor.u32 %v14323_v38, %v11791_v9  ;;  %v11485_v35 = vld [vmem:[#allocation13 + $0x5a0] sm:$0xf]  ;;  %v14056_v2 = vld [vmem:[#allocation13 + $0x5a4] sm:$0xf0]  ;;  %v13915_v9 = vld [vmem:[#allocation13 + $0x144] sm:$0xf] }
 0x36c   :  { %5942 = vmatpush.bf16.msra.mxu0 %v11826_v59  ;;  %5956 = vmatpush.bf16.msra.mxu1 %v11890_v6  ;;  %v15924_v59 = vpop.f32.mrf.mxu0  ;;  %v15926_v6 = vpop.f32.mrf.mxu1 }
 0x36d   :  { %v15928_v12 = vpop.f32.mrf.mxu3 }
 0x36e   :  { %4765 = vmatpush.bf16.msra.mxu2 %v11414_v26  ;;  %16547 = vst [vmem:[#allocation27_spill] sm:$0xff] %v15928_v12  ;;  %v14402_v26 = vld [vmem:[#allocation13 + $0x1074] sm:$0xf0] }
 0x36f   :  { %4775 = vmatpush.bf16.msra.mxu3 %v11510_v29  ;;  %v11494_v29 = vor.u32 %v14058_v37, %v11493_v5  ;;  %v12093_v5 = vld [vmem:[#allocation13 + $0x1060] sm:$0xf]  ;;  %v14400_v37 = vld [vmem:[#allocation13 + $0x1064] sm:$0xf0] }
 0x370   :  { %5943 = vmatpush.bf16.msra.mxu0 %v11818_v40  ;;  %5957 = vmatpush.bf16.msra.mxu1 %v11882_v22  ;;  %v10954_v40 = vor.u32 %v13921_v42, %v10951_v19  ;;  %v11866_v22 = vor.u32 %v14341_v50, %v11863_v60  ;;  %v11858_v50 = vor.u32 %v14339_v62, %v11855_v34  ;;  %v10935_v19 = vld [vmem:[#allocation13 + $0x158] sm:$0xf0]  ;;  %v14054_v34 = vld [vmem:[#allocation13 + $0x594] sm:$0xf0] }
 0x371   :  { %v12102_v60 = vor.u32 %v14402_v26, %v12101_v14  ;;  %v12094_v62 = vor.u32 %v14400_v37, %v12093_v5  ;;  %v10927_v26 = vld [vmem:[#allocation13 + $0x148] sm:$0xf0]  ;;  %v10919_v5 = vld [vmem:[#allocation13 + $0x138] sm:$0xf0]  ;;  %v13937_v37 = vld [vmem:[#allocation13 + $0x1f4] sm:$0xf] }
 0x372   :  { %4766 = vmatpush.bf16.msra.mxu2 %v11406_v21  ;;  %v16550_v21 = vld [vmem:[#allocation28_spill] sm:$0xff] }
 0x373   :  { %4776 = vmatpush.bf16.msra.mxu3 %v11502_v7  ;;  %v12166_v7 = vor.u32 %v14418_v39, %v12165_v63  ;;  %v12085_v39 = vld [vmem:[#allocation13 + $0x1050] sm:$0xf] }
 0x374   :  { %5944 = vmatpush.bf16.msra.mxu0 %v11810_v3  ;;  %5958 = vmatpush.bf16.msra.mxu1 %v11874_v33  ;;  %v10946_v3 = vor.u32 %v13919_v15, %v10943_v58  ;;  %v15930_v42 = vpop.f32.mrf.mxu0  ;;  %v13917_v33 = vld [vmem:[#allocation13 + $0x154] sm:$0xf]  ;;  %v15932_v47 = vpop.f32.mrf.mxu1  ;;  %v14416_v15 = vld [vmem:[#allocation13 + $0x10e4] sm:$0xf0] }
 0x375   :  { %16548 = vst [vmem:[#allocation107_spill] sm:$0xff] %v15930_v42  ;;  %4767 = vmatmul.bf16.vlgmr.msra.gmra.mxu2 %v16550_v21  ;;  %v3542_v58 = vpop.f32.mrf.mxu3  ;;  %v10938_v38 = vor.u32 %v13917_v33, %v10935_v19  ;;  %v15940_v19 = vpop.f32.mrf.mxu2  ;;  %v11007_v42 = vld [vmem:[#allocation13 + $0x1e8] sm:$0xf0] }
 0x376   :  { %4815 = vmatpush.bf16.msrb.mxu2 %v10954_v40  ;;  %16549 = vst [vmem:[#allocation108_spill] sm:$0xff] %v15932_v47  ;;  %v11486_v40 = vor.u32 %v14056_v2, %v11485_v35  ;;  %v3543_v14 = vadd.f32 %v3542_v58, %v15922_v17  ;;  %v14414_v35 = vld [vmem:[#allocation13 + $0x10d4] sm:$0xf0]  ;;  %v10930_v2 = vor.u32 %v13915_v9, %v10927_v26  ;;  %v14052_v17 = vld [vmem:[#allocation13 + $0x584] sm:$0xf0] }
 0x377   :  { %4777 = vmatpush.bf16.msra.mxu3 %v11494_v29  ;;  %v14398_v29 = vld [vmem:[#allocation13 + $0x1054] sm:$0xf0]  ;;  %16551 = vst [vmem:[#allocation28_spill] sm:$0xff] %v15940_v19  ;;  %v13935_v47 = vld [vmem:[#allocation13 + $0x1e4] sm:$0xf] }
 0x378   :  { %5945 = vmatpush.bf16.msra.mxu0 %v11802_v4  ;;  %5959 = vmatpush.bf16.msra.mxu1 %v11866_v22  ;;  %v12157_v4 = vld [vmem:[#allocation13 + $0x10e0] sm:$0xf]  ;;  %v11477_v22 = vld [vmem:[#allocation13 + $0x590] sm:$0xf] }
 0x379   :  { %v12158_v63 = vor.u32 %v14416_v15, %v12157_v4  ;;  %v12077_v15 = vld [vmem:[#allocation13 + $0x1040] sm:$0xf] }
 0x37a   :  { %4816 = vmatpush.bf16.msrb.mxu2 %v10946_v3  ;;  %v11478_v3 = vor.u32 %v14054_v34, %v11477_v22  ;;  %v14412_v22 = vld [vmem:[#allocation13 + $0x10c4] sm:$0xf0]  ;;  %v3557_v34 = vadd.f32 %v15797_v1, %v3543_v14 }
 0x37b   :  { %4778 = vmatpush.bf16.msra.mxu3 %v11486_v40  ;;  %v11015_v40 = vld [vmem:[#allocation13 + $0x1f8] sm:$0xf0] }
 0x37c   :  { %5946 = vmatpush.bf16.msra.mxu0 %v11794_v41  ;;  %5960 = vmatpush.bf16.msra.mxu1 %v11858_v50  ;;  %v12149_v41 = vld [vmem:[#allocation13 + $0x10d0] sm:$0xf]  ;;  %v11469_v50 = vld [vmem:[#allocation13 + $0x580] sm:$0xf]  ;;  %v15938_v33 = vpop.f32.mrf.mxu0  ;;  %v11018_v26 = vor.u32 %v13937_v37, %v11015_v40  ;;  %v3571_v1 = vadd.f32 %v15799_v27, %v3557_v34  ;;  %v13933_v37 = vld [vmem:[#allocation13 + $0x1d4] sm:$0xf] }
 0x37d   :  { %v12150_v4 = vor.u32 %v14414_v35, %v12149_v41  ;;  %v11470_v58 = vor.u32 %v14052_v17, %v11469_v50  ;;  %v12069_v41 = vld [vmem:[#allocation13 + $0x1030] sm:$0xf]  ;;  %v14394_v35 = vld [vmem:[#allocation13 + $0x1034] sm:$0xf0]  ;;  %v13909_v17 = vld [vmem:[#allocation13 + $0x114] sm:$0xf] }
 0x37e   :  { %4817 = vmatpush.bf16.msrb.mxu2 %v10938_v38  ;;  %v12141_v38 = vld [vmem:[#allocation13 + $0x10c0] sm:$0xf]  ;;  %v14410_v50 = vld [vmem:[#allocation13 + $0x10b4] sm:$0xf0]  ;;  %v10999_v40 = vld [vmem:[#allocation13 + $0x1d8] sm:$0xf0] }
 0x37f   :  { %5947 = vmatmul.bf16.vlgmr.msra.gmra.mxu0 %v15866_v25  ;;  %5961 = vmatmul.bf16.vlgmr.msra.gmra.mxu1 %v15872_v23  ;;  %v15942_v25 = vpop.f32.mrf.mxu1  ;;  %v14396_v23 = vld [vmem:[#allocation13 + $0x1044] sm:$0xf0]  ;;  %v12125_v27 = vld [vmem:[#allocation13 + $0x10a0] sm:$0xf] }
 0x380   :  { %6917 = vmatpush.bf16.msrb.mxu0 %v12102_v60  ;;  %6931 = vmatpush.bf16.msrb.mxu1 %v12166_v7  ;;  %v13913_v60 = vld [vmem:[#allocation13 + $0x134] sm:$0xf]  ;;  %v12086_v7 = vor.u32 %v14398_v29, %v12085_v39  ;;  %v12078_v39 = vor.u32 %v14396_v23, %v12077_v15  ;;  %v10911_v29 = vld [vmem:[#allocation13 + $0x128] sm:$0xf0]  ;;  %v16552_v15 = vld [vmem:[#allocation29_spill] sm:$0xff] }
 0x381   :  { %4779 = vmatpush.bf16.msra.mxu3 %v11478_v3  ;;  %v10922_v9 = vor.u32 %v13913_v60, %v10919_v5  ;;  %v12133_v3 = vld [vmem:[#allocation13 + $0x10b0] sm:$0xf]  ;;  %v3584_v60 = vpop.f32.mrf.mxu2  ;;  %v10903_v5 = vld [vmem:[#allocation13 + $0x118] sm:$0xf0]  ;;  %v14408_v34 = vld [vmem:[#allocation13 + $0x10a4] sm:$0xf0] }
 0x382   :  { %4818 = vmatpush.bf16.msrb.mxu2 %v10930_v2  ;;  %v11010_v2 = vor.u32 %v13935_v47, %v11007_v42  ;;  %v12134_v23 = vor.u32 %v14410_v50, %v12133_v3  ;;  %v10906_v47 = vor.u32 %v13909_v17, %v10903_v5  ;;  %v11207_v3 = vld [vmem:[#allocation13 + $0x378] sm:$0xf0]  ;;  %v12053_v50 = vld [vmem:[#allocation13 + $0x1010] sm:$0xf]  ;;  %v13929_v17 = vld [vmem:[#allocation13 + $0x1b4] sm:$0xf]  ;;  %v15953_v5 = vpop.f32.mrf.mxu3 }
 0x383   :  { %16555 = vst [vmem:[#allocation110_spill] sm:$0xff] %v15953_v5  ;;  %v11191_v5 = vld [vmem:[#allocation13 + $0x358] sm:$0xf0] }
 0x384   :  { %6918 = vmatpush.bf16.msrb.mxu0 %v12094_v62  ;;  %6932 = vmatpush.bf16.msrb.mxu1 %v12158_v63  ;;  %v13911_v62 = vld [vmem:[#allocation13 + $0x124] sm:$0xf]  ;;  %v12142_v63 = vor.u32 %v14412_v22, %v12141_v38  ;;  %v14392_v38 = vld [vmem:[#allocation13 + $0x1024] sm:$0xf0]  ;;  %v15949_v22 = vpop.f32.mrf.mxu0 }
 0x385   :  { %4780 = vmatpush.bf16.msra.mxu3 %v11470_v58  ;;  %v10914_v14 = vor.u32 %v13911_v62, %v10911_v29  ;;  %v12061_v58 = vld [vmem:[#allocation13 + $0x1020] sm:$0xf]  ;;  %16553 = vst [vmem:[#allocation29_spill] sm:$0xff] %v15949_v22  ;;  %v10895_v62 = vld [vmem:[#allocation13 + $0x108] sm:$0xf0] }
 0x386   :  { %4819 = vmatpush.bf16.msrb.mxu2 %v10922_v9  ;;  %v11002_v9 = vor.u32 %v13933_v37, %v10999_v40  ;;  %v13931_v29 = vld [vmem:[#allocation13 + $0x1c4] sm:$0xf]  ;;  %v14406_v22 = vld [vmem:[#allocation13 + $0x1094] sm:$0xf0]  ;;  %v10983_v40 = vld [vmem:[#allocation13 + $0x1b8] sm:$0xf0] }
 0x387   :  { %v15951_v42 = vpop.f32.mrf.mxu1 }
 0x388   :  { %6919 = vmatpush.bf16.msrb.mxu0 %v12086_v7  ;;  %6933 = vmatpush.bf16.msrb.mxu1 %v12150_v4  ;;  %v12070_v7 = vor.u32 %v14394_v35, %v12069_v41  ;;  %v15946_v4 = vadd.f32 %v3584_v60, %v3571_v1  ;;  %16554 = vst [vmem:[#allocation109_spill] sm:$0xff] %v15951_v42  ;;  %v13985_v41 = vld [vmem:[#allocation13 + $0x374] sm:$0xf]  ;;  %v14390_v1 = vld [vmem:[#allocation13 + $0x1014] sm:$0xf0] }
 0x389   :  { %4829 = vmatpush.bf16.msrb.mxu3 %v11018_v26  ;;  %v13907_v26 = vld [vmem:[#allocation13 + $0x104] sm:$0xf]  ;;  %v12126_v35 = vor.u32 %v14408_v34, %v12125_v27  ;;  %v12117_v60 = vld [vmem:[#allocation13 + $0x1090] sm:$0xf]  ;;  %v12054_v37 = vor.u32 %v14390_v1, %v12053_v50  ;;  %v12045_v27 = vld [vmem:[#allocation13 + $0x1000] sm:$0xf] }
 0x38a   :  { %4781 = vmatmul.bf16.vlgmr.msra.gmra.mxu3 %v16552_v15  ;;  %4820 = vmatpush.bf16.msrb.mxu2 %v10914_v14  ;;  %v10898_v14 = vor.u32 %v13907_v26, %v10895_v62  ;;  %v14388_v34 = vld [vmem:[#allocation13 + $0x1004] sm:$0xf0]  ;;  %v12109_v42 = vld [vmem:[#allocation13 + $0x1080] sm:$0xf]  ;;  %v14466_v26 = vld [vmem:[#allocation13 + $0x1274] sm:$0xf0] }
 0x38c   :  { %6920 = vmatpush.bf16.msrb.mxu0 %v12078_v39  ;;  %6934 = vmatpush.bf16.msrb.mxu1 %v12142_v63  ;;  %v12062_v39 = vor.u32 %v14392_v38, %v12061_v58  ;;  %v10991_v63 = vld [vmem:[#allocation13 + $0x1c8] sm:$0xf0]  ;;  %v13983_v58 = vld [vmem:[#allocation13 + $0x364] sm:$0xf]  ;;  %v15955_v19 = vpop.f32.mrf.mxu0 }
 0x38d   :  { %4830 = vmatpush.bf16.msrb.mxu3 %v11010_v2  ;;  %v10994_v2 = vor.u32 %v13931_v29, %v10991_v63  ;;  %v11199_v38 = vld [vmem:[#allocation13 + $0x368] sm:$0xf0]  ;;  %v12421_v29 = vld [vmem:[#allocation13 + $0x12f0] sm:$0xf]  ;;  %v14482_v63 = vld [vmem:[#allocation13 + $0x12f4] sm:$0xf0] }
 0x38e   :  { %4821 = vmatpush.bf16.msrb.mxu2 %v10906_v47  ;;  %v14404_v47 = vld [vmem:[#allocation13 + $0x1084] sm:$0xf0]  ;;  %v12422_v12 = vor.u32 %v14482_v63, %v12421_v29  ;;  %v12405_v29 = vld [vmem:[#allocation13 + $0x12d0] sm:$0xf]  ;;  %v14478_v63 = vld [vmem:[#allocation13 + $0x12d4] sm:$0xf0] }
 0x38f   :  { %v15957_v62 = vpop.f32.mrf.mxu1  ;;  %v12110_v50 = vor.u32 %v14404_v47, %v12109_v42  ;;  %v12341_v47 = vld [vmem:[#allocation13 + $0x1250] sm:$0xf] }
 0x390   :  { %6921 = vmatpush.bf16.msrb.mxu0 %v12070_v7  ;;  %6935 = vmatpush.bf16.msrb.mxu1 %v12134_v23  ;;  %v11210_v7 = vor.u32 %v13985_v41, %v11207_v3  ;;  %v12118_v23 = vor.u32 %v14406_v22, %v12117_v60  ;;  %v11202_v41 = vor.u32 %v13983_v58, %v11199_v38  ;;  %v13927_v22 = vld [vmem:[#allocation13 + $0x1a4] sm:$0xf]  ;;  %v10975_v3 = vld [vmem:[#allocation13 + $0x1a8] sm:$0xf0]  ;;  %v13981_v60 = vld [vmem:[#allocation13 + $0x354] sm:$0xf] }
 0x391   :  { %4831 = vmatpush.bf16.msrb.mxu3 %v11002_v9  ;;  %v12357_v9 = vld [vmem:[#allocation13 + $0x1270] sm:$0xf]  ;;  %v13925_v58 = vld [vmem:[#allocation13 + $0x194] sm:$0xf]  ;;  %v10967_v38 = vld [vmem:[#allocation13 + $0x198] sm:$0xf0] }
 0x392   :  { %4822 = vmatpush.bf16.msrb.mxu2 %v10898_v14  ;;  %v12358_v1 = vor.u32 %v14466_v26, %v12357_v9  ;;  %v14464_v14 = vld [vmem:[#allocation13 + $0x1264] sm:$0xf0]  ;;  %v14462_v9 = vld [vmem:[#allocation13 + $0x1254] sm:$0xf0] }
 0x393   :  { %v16556_v26 = vld [vmem:[#allocation67_spill] sm:$0xff] }
 0x394   :  { %6922 = vmatpush.bf16.msrb.mxu0 %v12062_v39  ;;  %6936 = vmatpush.bf16.msrb.mxu1 %v12126_v35  ;;  %v10986_v39 = vor.u32 %v13929_v17, %v10983_v40  ;;  %v12046_v35 = vor.u32 %v14388_v34, %v12045_v27  ;;  %v12413_v17 = vld [vmem:[#allocation13 + $0x12e0] sm:$0xf]  ;;  %v14480_v40 = vld [vmem:[#allocation13 + $0x12e4] sm:$0xf0]  ;;  %v13979_v27 = vld [vmem:[#allocation13 + $0x344] sm:$0xf] }
 0x395   :  { %4832 = vmatpush.bf16.msrb.mxu3 %v10994_v2  ;;  %4823 = vmatmul.bf16.vlgmr.msrb.gmra.mxu2 %v15365_v52  ;;  %v10978_v2 = vor.u32 %v13927_v22, %v10975_v3  ;;  %v11183_v52 = vld [vmem:[#allocation13 + $0x348] sm:$0xf0]  ;;  %v12414_v34 = vor.u32 %v14480_v40, %v12413_v17  ;;  %v13977_v22 = vld [vmem:[#allocation13 + $0x334] sm:$0xf]  ;;  %v12333_v17 = vld [vmem:[#allocation13 + $0x1240] sm:$0xf] }
 0x396   :  { %4871 = vmatpush.bf16.msra.mxu2 %v11210_v7  ;;  %v3598_v7 = vpop.f32.mrf.mxu3  ;;  %v14460_v40 = vld [vmem:[#allocation13 + $0x1244] sm:$0xf0] }
 0x397   :  { %v3599_v42 = vadd.f32 %v3598_v7, %v15946_v4  ;;  %v11186_v4 = vor.u32 %v13979_v27, %v11183_v52  ;;  %v15965_v3 = vpop.f32.mrf.mxu1 }
 0x398   :  { %6923 = vmatpush.bf16.msrb.mxu0 %v12054_v37  ;;  %6937 = vmatpush.bf16.msrb.mxu1 %v12118_v23  ;;  %v11194_v37 = vor.u32 %v13981_v60, %v11191_v5  ;;  %v12350_v23 = vor.u32 %v14464_v14, %v12349_v24  ;;  %v15962_v5 = vpop.f32.mrf.mxu0  ;;  %v10959_v24 = vld [vmem:[#allocation13 + $0x188] sm:$0xf0]  ;;  %v14001_v60 = vld [vmem:[#allocation13 + $0x3f4] sm:$0xf]  ;;  %v11271_v14 = vld [vmem:[#allocation13 + $0x3f8] sm:$0xf0] }
 0x399   :  { %4833 = vmatpush.bf16.msrb.mxu3 %v10986_v39  ;;  %v10970_v39 = vor.u32 %v13925_v58, %v10967_v38  ;;  %16557 = vst [vmem:[#allocation67_spill] sm:$0xff] %v15962_v5  ;;  %v14476_v58 = vld [vmem:[#allocation13 + $0x12c4] sm:$0xf0]  ;;  %v3613_v38 = vadd.f32 %v15824_v43, %v3599_v42  ;;  %v11274_v52 = vor.u32 %v14001_v60, %v11271_v14  ;;  %v11263_v5 = vld [vmem:[#allocation13 + $0x3e8] sm:$0xf0] }
 0x39a   :  { %4872 = vmatpush.bf16.msra.mxu2 %v11202_v41  ;;  %v16558_v41 = vld [vmem:[#allocation70_spill] sm:$0xff]  ;;  %v11159_v14 = vld [vmem:[#allocation13 + $0x318] sm:$0xf0] }
 0x39b   :  { %16559 = vst [vmem:[#allocation70_spill] sm:$0xff] %v15965_v3  ;;  %v13975_v3 = vld [vmem:[#allocation13 + $0x324] sm:$0xf]  ;;  %v3627_v43 = vadd.f32 %v15826_v13, %v3613_v38  ;;  %v14456_v13 = vld [vmem:[#allocation13 + $0x1224] sm:$0xf0] }
 0x39c   :  { %6924 = vmatpush.bf16.msrb.mxu0 %v12046_v35  ;;  %6938 = vmatpush.bf16.msrb.mxu1 %v12110_v50  ;;  %v13923_v35 = vld [vmem:[#allocation13 + $0x184] sm:$0xf]  ;;  %v12342_v50 = vor.u32 %v14462_v9, %v12341_v47  ;;  %v11167_v47 = vld [vmem:[#allocation13 + $0x328] sm:$0xf0] }
 0x39d   :  { %4834 = vmatpush.bf16.msrb.mxu3 %v10978_v2  ;;  %v12406_v2 = vor.u32 %v14478_v63, %v12405_v29  ;;  %v10962_v7 = vor.u32 %v13923_v35, %v10959_v24  ;;  %v13999_v9 = vld [vmem:[#allocation13 + $0x3e4] sm:$0xf]  ;;  %v12325_v29 = vld [vmem:[#allocation13 + $0x1230] sm:$0xf]  ;;  %v14458_v63 = vld [vmem:[#allocation13 + $0x1234] sm:$0xf0]  ;;  %v11170_v42 = vor.u32 %v13975_v3, %v11167_v47 }
 0x39e   :  { %4873 = vmatpush.bf16.msra.mxu2 %v11194_v37  ;;  %v12397_v37 = vld [vmem:[#allocation13 + $0x12c0] sm:$0xf]  ;;  %v14474_v35 = vld [vmem:[#allocation13 + $0x12b4] sm:$0xf0]  ;;  %v12326_v60 = vor.u32 %v14458_v63, %v12325_v29  ;;  %v11247_v29 = vld [vmem:[#allocation13 + $0x3c8] sm:$0xf0] }
 0x39f   :  { %6925 = vmatmul.bf16.vlgmr.msrb.gmra.mxu0 %v16556_v26  ;;  %6939 = vmatmul.bf16.vlgmr.msrb.gmra.mxu1 %v16558_v41  ;;  %v12381_v3 = vld [vmem:[#allocation13 + $0x12a0] sm:$0xf]  ;;  %v14049_v63 = vld [vmem:[#allocation13 + $0x574] sm:$0xf] }
 0x3a0   :  { %6973 = vmatpush.bf16.msra.mxu0 %v12358_v1  ;;  %6987 = vmatpush.bf16.msra.mxu1 %v12422_v12  ;;  %v15967_v12 = vpop.f32.mrf.mxu2  ;;  %v11175_v1 = vld [vmem:[#allocation13 + $0x338] sm:$0xf0]  ;;  %v5780_v24 = vpop.f32.mrf.mxu0 }
 0x3a1   :  { %16560 = vst [vmem:[#allocation111_spill] sm:$0xff] %v15967_v12  ;;  %4835 = vmatpush.bf16.msrb.mxu3 %v10970_v39  ;;  %v11178_v27 = vor.u32 %v13977_v22, %v11175_v1  ;;  %v12389_v39 = vld [vmem:[#allocation13 + $0x12b0] sm:$0xf]  ;;  %v13973_v22 = vld [vmem:[#allocation13 + $0x314] sm:$0xf] }
 0x3a2   :  { %4874 = vmatpush.bf16.msra.mxu2 %v11186_v4  ;;  %v11266_v4 = vor.u32 %v13999_v9, %v11263_v5  ;;  %v14472_v5 = vld [vmem:[#allocation13 + $0x12a4] sm:$0xf0]  ;;  %v11162_v38 = vor.u32 %v13973_v22, %v11159_v14  ;;  %v13995_v9 = vld [vmem:[#allocation13 + $0x3c4] sm:$0xf]  ;;  %v13993_v22 = vld [vmem:[#allocation13 + $0x3b4] sm:$0xf] }
 0x3a3   :  { %v11239_v14 = vld [vmem:[#allocation13 + $0x3b8] sm:$0xf0]  ;;  %v12613_v12 = vld [vmem:[#allocation13 + $0x1470] sm:$0xf] }
 0x3a4   :  { %6974 = vmatpush.bf16.msra.mxu0 %v12350_v23  ;;  %6988 = vmatpush.bf16.msra.mxu1 %v12414_v34  ;;  %v12334_v23 = vor.u32 %v14460_v40, %v12333_v17  ;;  %v12398_v34 = vor.u32 %v14476_v58, %v12397_v37  ;;  %v11255_v17 = vld [vmem:[#allocation13 + $0x3d8] sm:$0xf0]  ;;  %v12390_v37 = vor.u32 %v14474_v35, %v12389_v39  ;;  %v12317_v58 = vld [vmem:[#allocation13 + $0x1220] sm:$0xf]  ;;  %v14454_v39 = vld [vmem:[#allocation13 + $0x1214] sm:$0xf0] }
 0x3a5   :  { %4836 = vmatpush.bf16.msrb.mxu3 %v10962_v7  ;;  %v12318_v47 = vor.u32 %v14456_v13, %v12317_v58  ;;  %v12373_v35 = vld [vmem:[#allocation13 + $0x1290] sm:$0xf]  ;;  %v12301_v58 = vld [vmem:[#allocation13 + $0x1200] sm:$0xf]  ;;  %v14452_v13 = vld [vmem:[#allocation13 + $0x1204] sm:$0xf0] }
 0x3a6   :  { %4875 = vmatpush.bf16.msra.mxu2 %v11178_v27 }
 0x3a8   :  { %6975 = vmatpush.bf16.msra.mxu0 %v12342_v50  ;;  %6989 = vmatpush.bf16.msra.mxu1 %v12406_v2  ;;  %v5794_v50 = vpop.f32.mrf.mxu1  ;;  %v3640_v1 = vpop.f32.mrf.mxu2  ;;  %v13997_v2 = vld [vmem:[#allocation13 + $0x3d4] sm:$0xf] }
 0x3a9   :  { %4885 = vmatpush.bf16.msra.mxu3 %v11274_v52  ;;  %v15971_v40 = vadd.f32 %v5794_v50, %v5780_v24  ;;  %v15973_v7 = vadd.f32 %v3640_v1, %v3627_v43  ;;  %v11258_v27 = vor.u32 %v13997_v2, %v11255_v17  ;;  %v13971_v52 = vld [vmem:[#allocation13 + $0x304] sm:$0xf]  ;;  %v11463_v24 = vld [vmem:[#allocation13 + $0x578] sm:$0xf0]  ;;  %v14470_v43 = vld [vmem:[#allocation13 + $0x1294] sm:$0xf0]  ;;  %v15976_v50 = vpop.f32.mrf.mxu3 }
 0x3aa   :  { %4837 = vmatmul.bf16.vlgmr.msrb.gmra.mxu3 %v16534_v31  ;;  %4876 = vmatpush.bf16.msra.mxu2 %v11170_v42  ;;  %v12309_v31 = vld [vmem:[#allocation13 + $0x1210] sm:$0xf]  ;;  %16561 = vst [vmem:[#allocation112_spill] sm:$0xff] %v15976_v50  ;;  %v11466_v1 = vor.u32 %v14049_v63, %v11463_v24  ;;  %v14047_v2 = vld [vmem:[#allocation13 + $0x564] sm:$0xf] }
 0x3ab   :  { %v11455_v17 = vld [vmem:[#allocation13 + $0x568] sm:$0xf0] }
 0x3ac   :  { %6976 = vmatpush.bf16.msra.mxu0 %v12334_v23  ;;  %6990 = vmatpush.bf16.msra.mxu1 %v12398_v34  ;;  %v11151_v23 = vld [vmem:[#allocation13 + $0x308] sm:$0xf0]  ;;  %v12382_v34 = vor.u32 %v14472_v5, %v12381_v3  ;;  %v12365_v3 = vld [vmem:[#allocation13 + $0x1280] sm:$0xf]  ;;  %v14468_v5 = vld [vmem:[#allocation13 + $0x1284] sm:$0xf0] }
 0x3ad   :  { %4886 = vmatpush.bf16.msra.mxu3 %v11266_v4  ;;  %v11154_v42 = vor.u32 %v13971_v52, %v11151_v23  ;;  %v11250_v4 = vor.u32 %v13995_v9, %v11247_v29  ;;  %v14401_v52 = vld [vmem:[#allocation13 + $0x1074] sm:$0xf]  ;;  %v12103_v23 = vld [vmem:[#allocation13 + $0x1078] sm:$0xf0]  ;;  %v12302_v9 = vor.u32 %v14452_v13, %v12301_v58  ;;  %v13991_v29 = vld [vmem:[#allocation13 + $0x3a4] sm:$0xf] }
 0x3ae   :  { %4877 = vmatpush.bf16.msra.mxu2 %v11162_v38  ;;  %v14530_v38 = vld [vmem:[#allocation13 + $0x1474] sm:$0xf0]  ;;  %v11231_v63 = vld [vmem:[#allocation13 + $0x3a8] sm:$0xf0] }
 0x3af   :  { %v12614_v24 = vor.u32 %v14530_v38, %v12613_v12  ;;  %v11439_v58 = vld [vmem:[#allocation13 + $0x548] sm:$0xf0] }
 0x3b0   :  { %6977 = vmatpush.bf16.msra.mxu0 %v12326_v60  ;;  %6991 = vmatpush.bf16.msra.mxu1 %v12390_v37  ;;  %v12310_v60 = vor.u32 %v14454_v39, %v12309_v31  ;;  %v12374_v37 = vor.u32 %v14470_v43, %v12373_v35  ;;  %v14045_v31 = vld [vmem:[#allocation13 + $0x554] sm:$0xf]  ;;  %v11447_v39 = vld [vmem:[#allocation13 + $0x558] sm:$0xf0]  ;;  %v12106_v35 = vor.u32 %v14401_v52, %v12103_v23  ;;  %v12605_v43 = vld [vmem:[#allocation13 + $0x1460] sm:$0xf] }
 0x3b1   :  { %4887 = vmatpush.bf16.msra.mxu3 %v11258_v27  ;;  %v11242_v27 = vor.u32 %v13993_v22, %v11239_v14  ;;  %v14399_v22 = vld [vmem:[#allocation13 + $0x1064] sm:$0xf]  ;;  %v12095_v14 = vld [vmem:[#allocation13 + $0x1068] sm:$0xf0]  ;;  %v12087_v52 = vld [vmem:[#allocation13 + $0x1058] sm:$0xf0] }
 0x3b2   :  { %4878 = vmatpush.bf16.msra.mxu2 %v11154_v42  ;;  %v14528_v42 = vld [vmem:[#allocation13 + $0x1464] sm:$0xf0]  ;;  %v12098_v13 = vor.u32 %v14399_v22, %v12095_v14  ;;  %v13987_v23 = vld [vmem:[#allocation13 + $0x384] sm:$0xf]  ;;  %v12079_v22 = vld [vmem:[#allocation13 + $0x1048] sm:$0xf0]  ;;  %v4629_v14 = vadd.f32 %v15853_v20, %v15918_v45 }
 0x3b3   :  { %v12606_v12 = vor.u32 %v14528_v42, %v12605_v43  ;;  %v14524_v43 = vld [vmem:[#allocation13 + $0x1444] sm:$0xf0]  ;;  %v14393_v20 = vld [vmem:[#allocation13 + $0x1034] sm:$0xf]  ;;  %v12071_v45 = vld [vmem:[#allocation13 + $0x1038] sm:$0xf0] }
 0x3b4   :  { %6978 = vmatpush.bf16.msra.mxu0 %v12318_v47  ;;  %6992 = vmatpush.bf16.msra.mxu1 %v12382_v34  ;;  %v11458_v47 = vor.u32 %v14047_v2, %v11455_v17  ;;  %v12366_v34 = vor.u32 %v14468_v5, %v12365_v3  ;;  %v13989_v2 = vld [vmem:[#allocation13 + $0x394] sm:$0xf]  ;;  %v11223_v17 = vld [vmem:[#allocation13 + $0x398] sm:$0xf0]  ;;  %v12597_v3 = vld [vmem:[#allocation13 + $0x1450] sm:$0xf] }
 0x3b5   :  { %4888 = vmatpush.bf16.msra.mxu3 %v11250_v4  ;;  %4879 = vmatmul.bf16.vlgmr.msra.gmra.mxu2 %v16539_v44  ;;  %v11234_v4 = vor.u32 %v13991_v29, %v11231_v63  ;;  %v14043_v44 = vld [vmem:[#allocation13 + $0x544] sm:$0xf]  ;;  %v14526_v5 = vld [vmem:[#allocation13 + $0x1454] sm:$0xf0]  ;;  %v11226_v38 = vor.u32 %v13989_v2, %v11223_v17  ;;  %v15984_v29 = vpop.f32.mrf.mxu2 }
 0x3b6   :  { %4927 = vmatpush.bf16.msrb.mxu2 %v11466_v1  ;;  %v3654_v1 = vpop.f32.mrf.mxu3  ;;  %16562 = vst [vmem:[#allocation113_spill] sm:$0xff] %v15984_v29  ;;  %v12598_v63 = vor.u32 %v14526_v5, %v12597_v3  ;;  %v14039_v2 = vld [vmem:[#allocation13 + $0x524] sm:$0xf]  ;;  %v14845_v17 = vld [vmem:[#allocation12 + $0x3] ss:$0 sm:$0xff] }
 0x3b7   :  { %v11519_v3 = vld [vmem:[#allocation13 + $0x5e8] sm:$0xf0]  ;;  %v14296_v29 = vld [vmem:[#allocation13 + $0xd24] sm:$0xf0] }
 0x3b8   :  { %6979 = vmatpush.bf16.msra.mxu0 %v12310_v60  ;;  %6993 = vmatpush.bf16.msra.mxu1 %v12374_v37  ;;  %v11450_v60 = vor.u32 %v14045_v31, %v11447_v39  ;;  %v15980_v37 = vadd.f32 %v3654_v1, %v15973_v7  ;;  %v11442_v7 = vor.u32 %v14043_v44, %v11439_v58  ;;  %v11527_v31 = vld [vmem:[#allocation13 + $0x5f8] sm:$0xf0]  ;;  %v11423_v58 = vld [vmem:[#allocation13 + $0x528] sm:$0xf0] }
 0x3b9   :  { %4889 = vmatpush.bf16.msra.mxu3 %v11242_v27  ;;  %v14397_v27 = vld [vmem:[#allocation13 + $0x1054] sm:$0xf] }
 0x3ba   :  { %4928 = vmatpush.bf16.msrb.mxu2 %v11458_v47  ;;  %v11215_v47 = vld [vmem:[#allocation13 + $0x388] sm:$0xf0]  ;;  %v12090_v39 = vor.u32 %v14397_v27, %v12087_v52  ;;  %v14522_v27 = vld [vmem:[#allocation13 + $0x1434] sm:$0xf0] }
 0x3bb   :  { %v11218_v42 = vor.u32 %v13987_v23, %v11215_v47  ;;  %v11426_v23 = vor.u32 %v14039_v2, %v11423_v58  ;;  %v14037_v47 = vld [vmem:[#allocation13 + $0x514] sm:$0xf]  ;;  %v14035_v2 = vld [vmem:[#allocation13 + $0x504] sm:$0xf]  ;;  %v11717_v58 = vld [vmem:[#allocation13 + $0xd70] sm:$0xf] }
 0x3bc   :  { %6980 = vmatpush.bf16.msra.mxu0 %v12302_v9  ;;  %6994 = vmatpush.bf16.msra.mxu1 %v12366_v34  ;;  %v14041_v9 = vld [vmem:[#allocation13 + $0x534] sm:$0xf]  ;;  %v11431_v34 = vld [vmem:[#allocation13 + $0x538] sm:$0xf0] }
 0x3bd   :  { %4890 = vmatpush.bf16.msra.mxu3 %v11234_v4  ;;  %v14395_v4 = vld [vmem:[#allocation13 + $0x1044] sm:$0xf]  ;;  %v11434_v1 = vor.u32 %v14041_v9, %v11431_v34  ;;  %v4656_v9 = vpop.f32.mrf.mxu2  ;;  %v11415_v34 = vld [vmem:[#allocation13 + $0x518] sm:$0xf0] }
 0x3be   :  { %4929 = vmatpush.bf16.msrb.mxu2 %v11450_v60  ;;  %v12082_v5 = vor.u32 %v14395_v4, %v12079_v22  ;;  %v12063_v4 = vld [vmem:[#allocation13 + $0x1028] sm:$0xf0] }
 0x3bf   :  { %6981 = vmatmul.bf16.vlgmr.msra.gmra.mxu0 %v15699_v16  ;;  %6995 = vmatmul.bf16.vlgmr.msra.gmra.mxu1 %v15711_v57 }
 0x3c0   :  { %7029 = vmatpush.bf16.msrb.mxu0 %v12614_v24  ;;  %7043 = vmatpush.bf16.msrb.mxu1 %v12106_v35  ;;  %v14065_v24 = vld [vmem:[#allocation13 + $0x5f4] sm:$0xf]  ;;  %v12589_v35 = vld [vmem:[#allocation13 + $0x1440] sm:$0xf] }
 0x3c1   :  { %4891 = vmatpush.bf16.msra.mxu3 %v11226_v38  ;;  %v11530_v60 = vor.u32 %v14065_v24, %v11527_v31  ;;  %v12590_v44 = vor.u32 %v14524_v43, %v12589_v35  ;;  %v12581_v38 = vld [vmem:[#allocation13 + $0x1430] sm:$0xf]  ;;  %v14061_v24 = vld [vmem:[#allocation13 + $0x5d4] sm:$0xf]  ;;  %v11511_v31 = vld [vmem:[#allocation13 + $0x5d8] sm:$0xf0] }
 0x3c2   :  { %4930 = vmatpush.bf16.msrb.mxu2 %v11442_v7  ;;  %v4643_v7 = vadd.f32 %v15855_v10, %v4629_v14  ;;  %v12573_v35 = vld [vmem:[#allocation13 + $0x1420] sm:$0xf]  ;;  %v14520_v43 = vld [vmem:[#allocation13 + $0x1424] sm:$0xf0]  ;;  %v14391_v10 = vld [vmem:[#allocation13 + $0x1024] sm:$0xf]  ;;  %v15996_v14 = vpop.f32.mrf.mxu1 }
 0x3c3   :  { %16564 = vst [vmem:[#allocation115_spill] sm:$0xff] %v15996_v14 }
 0x3c4   :  { %7030 = vmatpush.bf16.msrb.mxu0 %v12606_v12  ;;  %7044 = vmatpush.bf16.msrb.mxu1 %v12098_v13  ;;  %v1281_v12 = vadd.f32 %v14845_v17, %v15721_v49  ;;  %v14063_v13 = vld [vmem:[#allocation13 + $0x5e4] sm:$0xf]  ;;  %v11407_v17 = vld [vmem:[#allocation13 + $0x508] sm:$0xf0] }
 0x3c5   :  { %4892 = vmatpush.bf16.msra.mxu3 %v11218_v42  ;;  %v11522_v49 = vor.u32 %v14063_v13, %v11519_v3  ;;  %v15994_v42 = vpop.f32.mrf.mxu0  ;;  %v12066_v13 = vor.u32 %v14391_v10, %v12063_v4  ;;  %v14306_v3 = vld [vmem:[#allocation13 + $0xd74] sm:$0xf0]  ;;  %v14387_v10 = vld [vmem:[#allocation13 + $0x1004] sm:$0xf]  ;;  %v12047_v4 = vld [vmem:[#allocation13 + $0x1008] sm:$0xf0] }
 0x3c6   :  { %v1335_v52 = vadd.f32 %v15731_v18, %v1281_v12  ;;  %4931 = vmatpush.bf16.msrb.mxu2 %v11434_v1  ;;  %v12074_v18 = vor.u32 %v14393_v20, %v12071_v45  ;;  %16563 = vst [vmem:[#allocation114_spill] sm:$0xff] %v15994_v42  ;;  %v11418_v1 = vor.u32 %v14037_v47, %v11415_v34  ;;  %v1353_v20 = vmax.f32 %v15727_v48, 0.0  ;;  %v11709_v34 = vld [vmem:[#allocation13 + $0xd60] sm:$0xf]  ;;  %v14564_v42 = vld [vmem:[#allocation13 + $0x1584] sm:$0xf0] }
 0x3c7   :  { %v12574_v12 = vor.u32 %v14520_v43, %v12573_v35  ;;  %v11410_v45 = vor.u32 %v14035_v2, %v11407_v17  ;;  %v11718_v47 = vor.u32 %v14306_v3, %v11717_v58  ;;  %v12557_v35 = vld [vmem:[#allocation13 + $0x1400] sm:$0xf]  ;;  %v14516_v43 = vld [vmem:[#allocation13 + $0x1404] sm:$0xf0]  ;;  %v11487_v3 = vld [vmem:[#allocation13 + $0x5a8] sm:$0xf0] }
 0x3c8   :  { %7031 = vmatpush.bf16.msrb.mxu0 %v12598_v63  ;;  %7045 = vmatpush.bf16.msrb.mxu1 %v12090_v39  ;;  %v12582_v63 = vor.u32 %v14522_v27, %v12581_v38  ;;  %v15991_v39 = vadd.f32 %v4656_v9, %v4643_v7  ;;  %v1354_v22 = vmax.f32 %v1335_v52, 0.0  ;;  %v14518_v38 = vld [vmem:[#allocation13 + $0x1414] sm:$0xf0]  ;;  %v14389_v27 = vld [vmem:[#allocation13 + $0x1014] sm:$0xf]  ;;  %v1371_v2 = vpack.c.bf16 %v1353_v20, %v1353_v20 }
 0x3c9   :  { %4941 = vmatpush.bf16.msrb.mxu3 %v11530_v60  ;;  %v11514_v60 = vor.u32 %v14061_v24, %v11511_v31  ;;  %v12055_v52 = vld [vmem:[#allocation13 + $0x1018] sm:$0xf0]  ;;  %v14304_v24 = vld [vmem:[#allocation13 + $0xd64] sm:$0xf0]  ;;  %v12558_v58 = vor.u32 %v14516_v43, %v12557_v35 }
 0x3ca   :  { %4893 = vmatmul.bf16.vlgmr.msra.gmra.mxu3 %v16546_v55  ;;  %4932 = vmatpush.bf16.msrb.mxu2 %v11426_v23  ;;  %v11503_v55 = vld [vmem:[#allocation13 + $0x5c8] sm:$0xf0]  ;;  %v14057_v23 = vld [vmem:[#allocation13 + $0x5b4] sm:$0xf]  ;;  %v1372_v31 = vpack.c.bf16 %v1354_v22, %v1354_v22  ;;  %v16003_v17 = vpop.f32.mrf.mxu1  ;;  %v11710_v22 = vor.u32 %v14304_v24, %v11709_v34 }
 0x3cc   :  { %7032 = vmatpush.bf16.msrb.mxu0 %v12590_v44  ;;  %7046 = vmatpush.bf16.msrb.mxu1 %v12082_v5  ;;  %v14059_v44 = vld [vmem:[#allocation13 + $0x5c4] sm:$0xf]  ;;  %v12565_v5 = vld [vmem:[#allocation13 + $0x1410] sm:$0xf] }
 0x3cd   :  { %4942 = vmatpush.bf16.msrb.mxu3 %v11522_v49  ;;  %v11506_v7 = vor.u32 %v14059_v44, %v11503_v55  ;;  %v15999_v49 = vpop.f32.mrf.mxu3  ;;  %v12566_v9 = vor.u32 %v14518_v38, %v12565_v5  ;;  %v16001_v48 = vpop.f32.mrf.mxu0  ;;  %v14465_v44 = vld [vmem:[#allocation13 + $0x1274] sm:$0xf]  ;;  %v12359_v55 = vld [vmem:[#allocation13 + $0x1278] sm:$0xf0]  ;;  %v6050_v5 = vunpack.c.l.b16 %v1372_v31  ;;  %v12050_v38 = vor.u32 %v14387_v10, %v12047_v4  ;;  %v11693_v10 = vld [vmem:[#allocation13 + $0xd40] sm:$0xf] }
 0x3ce   :  { %4933 = vmatpush.bf16.msrb.mxu2 %v11418_v1  ;;  %16565 = vst [vmem:[#allocation116_spill] sm:$0xff] %v15999_v49  ;;  %v14449_v1 = vld [vmem:[#allocation13 + $0x11f4] sm:$0xf]  ;;  %v14302_v49 = vld [vmem:[#allocation13 + $0xd54] sm:$0xf0]  ;;  %v12362_v20 = vor.u32 %v14465_v44, %v12359_v55 }
 0x3cf   :  { %v14053_v31 = vld [vmem:[#allocation13 + $0x594] sm:$0xf]  ;;  %v14300_v4 = vld [vmem:[#allocation13 + $0xd44] sm:$0xf0]  ;;  %v12343_v44 = vld [vmem:[#allocation13 + $0x1258] sm:$0xf0] }
 0x3d0   :  { %7033 = vmatpush.bf16.msrb.mxu0 %v12582_v63  ;;  %7047 = vmatpush.bf16.msrb.mxu1 %v12074_v18  ;;  %v11495_v63 = vld [vmem:[#allocation13 + $0x5b8] sm:$0xf0]  ;;  %v12058_v18 = vor.u32 %v14389_v27, %v12055_v52  ;;  %v11701_v52 = vld [vmem:[#allocation13 + $0xd50] sm:$0xf] }
 0x3d1   :  { %4943 = vmatpush.bf16.msrb.mxu3 %v11514_v60  ;;  %v12295_v60 = vld [vmem:[#allocation13 + $0x11f8] sm:$0xf0]  ;;  %v11702_v24 = vor.u32 %v14302_v49, %v11701_v52  ;;  %v14461_v49 = vld [vmem:[#allocation13 + $0x1254] sm:$0xf]  ;;  %v11781_v52 = vld [vmem:[#allocation13 + $0xdf0] sm:$0xf] }
 0x3d2   :  { %4934 = vmatpush.bf16.msrb.mxu2 %v11410_v45  ;;  %v12298_v27 = vor.u32 %v14449_v1, %v12295_v60  ;;  %v14447_v45 = vld [vmem:[#allocation13 + $0x11e4] sm:$0xf]  ;;  %v14445_v60 = vld [vmem:[#allocation13 + $0x11d4] sm:$0xf] }
 0x3d4   :  { %7034 = vmatpush.bf16.msrb.mxu0 %v12574_v12  ;;  %7048 = vmatpush.bf16.msrb.mxu1 %v12066_v13  ;;  %v11498_v12 = vor.u32 %v14057_v23, %v11495_v63  ;;  %v14055_v13 = vld [vmem:[#allocation13 + $0x5a4] sm:$0xf]  ;;  %v6049_v23 = vunpack.c.l.b16 %v1371_v2  ;;  %v12279_v2 = vld [vmem:[#allocation13 + $0x11d8] sm:$0xf0] }
 0x3d5   :  { %4944 = vmatpush.bf16.msrb.mxu3 %v11506_v7  ;;  %4935 = vmatmul.bf16.vlgmr.msrb.gmra.mxu2 %v16550_v21  ;;  %v12287_v7 = vld [vmem:[#allocation13 + $0x11e8] sm:$0xf0]  ;;  %v11490_v63 = vor.u32 %v14055_v13, %v11487_v3  ;;  %v4670_v34 = vpop.f32.mrf.mxu3  ;;  %v16010_v55 = vpop.f32.mrf.mxu0  ;;  %v11685_v13 = vld [vmem:[#allocation13 + $0xd30] sm:$0xf] }
 0x3d6   :  { %5799 = vmatpush.bf16.msra.mxu2 %v11718_v47  ;;  %v14463_v47 = vld [vmem:[#allocation13 + $0x1264] sm:$0xf]  ;;  %v16006_v35 = vpack.c.b16 %v6050_v5, %v6049_v23  ;;  %v4671_v43 = vadd.f32 %v4670_v34, %v15991_v39  ;;  %v12290_v21 = vor.u32 %v14447_v45, %v12287_v7  ;;  %16566 = vst [vmem:[#allocation117_spill] sm:$0xff] %v16010_v55  ;;  %v16013_v3 = vpop.f32.mrf.mxu1  ;;  %v16015_v5 = vpop.f32.mrf.mxu2  ;;  %v16017_v45 = vld [vmem:[#allocation12 + $0x2] ss:$0 sm:$0xff] }
 0x3d7   :  { %v11694_v39 = vor.u32 %v14300_v4, %v11693_v10  ;;  %16567 = vst [vmem:[#allocation118_spill] sm:$0xff] %v16013_v3  ;;  %v16569_v7 = vld [vmem:[#allocation35_spill] sm:$0xff]  ;;  %v14459_v34 = vld [vmem:[#allocation13 + $0x1244] sm:$0xf]  ;;  %v12797_v55 = vld [vmem:[#allocation13 + $0x15e0] sm:$0xf] }
 0x3d8   :  { %7035 = vmatpush.bf16.msrb.mxu0 %v12566_v9  ;;  %7049 = vmatpush.bf16.msrb.mxu1 %v12058_v18  ;;  %v12351_v9 = vld [vmem:[#allocation13 + $0x1268] sm:$0xf0]  ;;  %v11479_v18 = vld [vmem:[#allocation13 + $0x598] sm:$0xf0]  ;;  %16568 = vst [vmem:[#allocation119_spill] sm:$0xff] %v16015_v5  ;;  %v991_v23 = vadd.f32 %v16017_v45, %v16569_v7 }
 0x3d9   :  { %4945 = vmatpush.bf16.msrb.mxu3 %v11498_v12  ;;  %v12354_v1 = vor.u32 %v14463_v47, %v12351_v9  ;;  %v11482_v12 = vor.u32 %v14053_v31, %v11479_v18  ;;  %v12271_v47 = vld [vmem:[#allocation13 + $0x11c8] sm:$0xf0]  ;;  %v11773_v7 = vld [vmem:[#allocation13 + $0xde0] sm:$0xf]  ;;  %v14366_v3 = vld [vmem:[#allocation13 + $0xf54] sm:$0xf0] }
 0x3da   :  { %5800 = vmatpush.bf16.msra.mxu2 %v11710_v22  ;;  %v14051_v22 = vld [vmem:[#allocation13 + $0x584] sm:$0xf]  ;;  %v16570_v31 = vld [vmem:[#allocation38_spill] sm:$0xff] }
 0x3db   :  { %v1040_v18 = vadd.f32 %v16570_v31, %v991_v23  ;;  %v14294_v23 = vld [vmem:[#allocation13 + $0xd14] sm:$0xf0] }
 0x3dc   :  { %7036 = vmatpush.bf16.msrb.mxu0 %v12558_v58  ;;  %7050 = vmatpush.bf16.msrb.mxu1 %v12050_v38  ;;  %v11471_v58 = vld [vmem:[#allocation13 + $0x588] sm:$0xf0]  ;;  %v12282_v38 = vor.u32 %v14445_v60, %v12279_v2  ;;  %v11677_v60 = vld [vmem:[#allocation13 + $0xd20] sm:$0xf] }
 0x3dd   :  { %4946 = vmatpush.bf16.msrb.mxu3 %v11490_v63  ;;  %v14443_v63 = vld [vmem:[#allocation13 + $0x11c4] sm:$0xf]  ;;  %v11474_v9 = vor.u32 %v14051_v22, %v11471_v58  ;;  %v14457_v22 = vld [vmem:[#allocation13 + $0x1234] sm:$0xf]  ;;  %v12327_v58 = vld [vmem:[#allocation13 + $0x1238] sm:$0xf0] }
 0x3de   :  { %5801 = vmatpush.bf16.msra.mxu2 %v11702_v24  ;;  %v12335_v24 = vld [vmem:[#allocation13 + $0x1248] sm:$0xf0]  ;;  %v12274_v2 = vor.u32 %v14443_v63, %v12271_v47  ;;  %v1072_v50 = vmax.f32 %v1040_v18, 0.0  ;;  %v14318_v63 = vld [vmem:[#allocation13 + $0xdd4] sm:$0xf0] }
 0x3df   :  { %7037 = vmatmul.bf16.vlgmr.msrb.gmra.mxu0 %v16006_v35  ;;  %7051 = vmatmul.bf16.vlgmr.msrb.gmra.mxu1 %v16556_v26  ;;  %v12346_v26 = vor.u32 %v14461_v49, %v12343_v44  ;;  %v12338_v49 = vor.u32 %v14459_v34, %v12335_v24  ;;  %v14441_v44 = vld [vmem:[#allocation13 + $0x11b4] sm:$0xf]  ;;  %v12330_v34 = vor.u32 %v14457_v22, %v12327_v58  ;;  %v14439_v24 = vld [vmem:[#allocation13 + $0x11a4] sm:$0xf]  ;;  %v14370_v22 = vld [vmem:[#allocation13 + $0xf74] sm:$0xf0] }
 0x3e0   :  { %7085 = vmatpush.bf16.msra.mxu0 %v12298_v27  ;;  %7099 = vmatpush.bf16.msra.mxu1 %v12362_v20  ;;  %v14298_v27 = vld [vmem:[#allocation13 + $0xd34] sm:$0xf0]  ;;  %v14455_v18 = vld [vmem:[#allocation13 + $0x1224] sm:$0xf]  ;;  %v14437_v58 = vld [vmem:[#allocation13 + $0x1194] sm:$0xf] }
 0x3e1   :  { %v14322_v20 = vld [vmem:[#allocation13 + $0xdf4] sm:$0xf0]  ;;  %4947 = vmatpush.bf16.msrb.mxu3 %v11482_v12  ;;  %v11686_v10 = vor.u32 %v14298_v27, %v11685_v13  ;;  %v12263_v12 = vld [vmem:[#allocation13 + $0x11b8] sm:$0xf0]  ;;  %v5906_v27 = vpop.f32.mrf.mxu1 }
 0x3e2   :  { %5802 = vmatpush.bf16.msra.mxu2 %v11694_v39  ;;  %v11782_v4 = vor.u32 %v14322_v20, %v11781_v52  ;;  %v11678_v39 = vor.u32 %v14296_v29, %v11677_v60  ;;  %v4712_v52 = vpop.f32.mrf.mxu2  ;;  %v12266_v20 = vor.u32 %v14441_v44, %v12263_v12  ;;  %v16571_v29 = vld [vmem:[#allocation34_spill] sm:$0xff]  ;;  %v11661_v60 = vld [vmem:[#allocation13 + $0xd00] sm:$0xf] }
 0x3e3   :  { %v1071_v31 = vmax.f32 %v16571_v29, 0.0  ;;  %v11757_v44 = vld [vmem:[#allocation13 + $0xdc0] sm:$0xf]  ;;  %v11973_v12 = vld [vmem:[#allocation13 + $0xf70] sm:$0xf] }
 0x3e4   :  { %7086 = vmatpush.bf16.msra.mxu0 %v12290_v21  ;;  %7100 = vmatpush.bf16.msra.mxu1 %v12354_v1  ;;  %v4685_v21 = vadd.f32 %v15880_v32, %v4671_v43  ;;  %v14320_v1 = vld [vmem:[#allocation13 + $0xde4] sm:$0xf0]  ;;  %v5892_v32 = vpop.f32.mrf.mxu0 }
 0x3e5   :  { %4948 = vmatpush.bf16.msrb.mxu3 %v11474_v9  ;;  %v11774_v13 = vor.u32 %v14320_v1, %v11773_v7  ;;  %v16024_v47 = vadd.f32 %v5906_v27, %v5892_v32  ;;  %v1088_v7 = vpack.c.bf16 %v1072_v50, %v1072_v50  ;;  %v12247_v32 = vld [vmem:[#allocation13 + $0x1198] sm:$0xf0]  ;;  %v14453_v27 = vld [vmem:[#allocation13 + $0x1214] sm:$0xf]  ;;  %v16030_v50 = vpop.f32.mrf.mxu3 }
 0x3e6   :  { %5803 = vmatpush.bf16.msra.mxu2 %v11686_v10  ;;  %v4699_v43 = vadd.f32 %v15882_v51, %v4685_v21  ;;  %v12255_v51 = vld [vmem:[#allocation13 + $0x11a8] sm:$0xf0]  ;;  %16572 = vst [vmem:[#allocation35_spill] sm:$0xff] %v16030_v50  ;;  %v12813_v50 = vld [vmem:[#allocation13 + $0x1600] sm:$0xf] }
 0x3e7   :  { %v12319_v21 = vld [vmem:[#allocation13 + $0x1228] sm:$0xf0]  ;;  %v12258_v1 = vor.u32 %v14439_v24, %v12255_v51  ;;  %v14368_v24 = vld [vmem:[#allocation13 + $0xf64] sm:$0xf0]  ;;  %v16573_v51 = vld [vmem:[#allocation44_spill] sm:$0xff] }
 0x3e8   :  { %7087 = vmatpush.bf16.msra.mxu0 %v12282_v38  ;;  %7101 = vmatpush.bf16.msra.mxu1 %v12346_v26  ;;  %v11669_v38 = vld [vmem:[#allocation13 + $0xd10] sm:$0xf]  ;;  %v16026_v9 = vadd.f32 %v4712_v52, %v4699_v43  ;;  %v1087_v43 = vpack.c.bf16 %v1071_v31, %v1071_v31  ;;  %v12311_v52 = vld [vmem:[#allocation13 + $0x1218] sm:$0xf0]  ;;  %v996_v29 = vadd.f32 %v16017_v45, %v16573_v51 }
 0x3e9   :  { %5813 = vmatpush.bf16.msra.mxu3 %v11782_v4  ;;  %v11765_v26 = vld [vmem:[#allocation13 + $0xdd0] sm:$0xf]  ;;  %v11670_v10 = vor.u32 %v14294_v23, %v11669_v38  ;;  %v4970_v23 = vunpack.c.l.b16 %v1088_v7  ;;  %v12314_v31 = vor.u32 %v14453_v27, %v12311_v52  ;;  %v12551_v7 = vld [vmem:[#allocation13 + $0x13f8] sm:$0xf0]  ;;  %v14312_v27 = vld [vmem:[#allocation13 + $0xda4] sm:$0xf0] }
 0x3ea   :  { %4949 = vmatmul.bf16.vlgmr.msrb.gmra.mxu3 %v16552_v15  ;;  %5804 = vmatpush.bf16.msra.mxu2 %v11678_v39  ;;  %v11766_v4 = vor.u32 %v14318_v63, %v11765_v26  ;;  %v12322_v15 = vor.u32 %v14455_v18, %v12319_v21  ;;  %v11749_v38 = vld [vmem:[#allocation13 + $0xdb0] sm:$0xf]  ;;  %v12250_v26 = vor.u32 %v14437_v58, %v12247_v32  ;;  %v14314_v63 = vld [vmem:[#allocation13 + $0xdb4] sm:$0xf0]  ;;  %v14435_v18 = vld [vmem:[#allocation13 + $0x1184] sm:$0xf] }
 0x3eb   :  { %v12239_v21 = vld [vmem:[#allocation13 + $0x1188] sm:$0xf0]  ;;  %v11741_v32 = vld [vmem:[#allocation13 + $0xda0] sm:$0xf]  ;;  %v11957_v51 = vld [vmem:[#allocation13 + $0xf50] sm:$0xf] }
 0x3ec   :  { %7088 = vmatpush.bf16.msra.mxu0 %v12274_v2  ;;  %7102 = vmatpush.bf16.msra.mxu1 %v12338_v49  ;;  %v14292_v2 = vld [vmem:[#allocation13 + $0xd04] sm:$0xf0] }
 0x3ed   :  { %5814 = vmatpush.bf16.msra.mxu3 %v11774_v13  ;;  %v14316_v49 = vld [vmem:[#allocation13 + $0xdc4] sm:$0xf0]  ;;  %v11662_v39 = vor.u32 %v14292_v2, %v11661_v60  ;;  %v12303_v60 = vld [vmem:[#allocation13 + $0x1208] sm:$0xf0]  ;;  %v14513_v2 = vld [vmem:[#allocation13 + $0x13f4] sm:$0xf] }
 0x3ee   :  { %5805 = vmatpush.bf16.msra.mxu2 %v11670_v10  ;;  %v11758_v13 = vor.u32 %v14316_v49, %v11757_v44  ;;  %v14451_v10 = vld [vmem:[#allocation13 + $0x1204] sm:$0xf]  ;;  %v16574_v44 = vld [vmem:[#allocation47_spill] sm:$0xff]  ;;  %v12554_v52 = vor.u32 %v14513_v2, %v12551_v7  ;;  %v14364_v2 = vld [vmem:[#allocation13 + $0xf44] sm:$0xf0] }
 0x3ef   :  { %v1045_v49 = vadd.f32 %v16574_v44, %v996_v29  ;;  %v14527_v29 = vld [vmem:[#allocation13 + $0x1464] sm:$0xf]  ;;  %v14509_v44 = vld [vmem:[#allocation13 + $0x13d4] sm:$0xf] }
 0x3f0   :  { %7089 = vmatpush.bf16.msra.mxu0 %v12266_v20  ;;  %7103 = vmatpush.bf16.msra.mxu1 %v12330_v34  ;;  %v11974_v20 = vor.u32 %v14370_v22, %v11973_v12  ;;  %v11965_v34 = vld [vmem:[#allocation13 + $0xf60] sm:$0xf]  ;;  %v14529_v12 = vld [vmem:[#allocation13 + $0x1474] sm:$0xf]  ;;  %v12615_v22 = vld [vmem:[#allocation13 + $0x1478] sm:$0xf0] }
 0x3f1   :  { %5815 = vmatpush.bf16.msra.mxu3 %v11766_v4  ;;  %v4969_v4 = vunpack.c.l.b16 %v1087_v43  ;;  %v11966_v45 = vor.u32 %v14368_v24, %v11965_v34  ;;  %v12306_v43 = vor.u32 %v14451_v10, %v12303_v60  ;;  %v11958_v34 = vor.u32 %v14366_v3, %v11957_v51  ;;  %v11733_v24 = vld [vmem:[#allocation13 + $0xd90] sm:$0xf]  ;;  %v11949_v60 = vld [vmem:[#allocation13 + $0xf40] sm:$0xf] }
 0x3f2   :  { %5806 = vmatpush.bf16.msra.mxu2 %v11662_v39  ;;  %v12618_v39 = vor.u32 %v14529_v12, %v12615_v22  ;;  %v16576_v12 = vld [vmem:[#allocation76_spill] sm:$0xff]  ;;  %v14525_v22 = vld [vmem:[#allocation13 + $0x1454] sm:$0xf] }
 0x3f3   :  { %v16035_v58 = vpack.c.b16 %v4970_v23, %v4969_v4  ;;  %v11742_v23 = vor.u32 %v14312_v27, %v11741_v32  ;;  %v14308_v32 = vld [vmem:[#allocation13 + $0xd84] sm:$0xf0]  ;;  %v11941_v27 = vld [vmem:[#allocation13 + $0xf30] sm:$0xf] }
 0x3f4   :  { %7090 = vmatpush.bf16.msra.mxu0 %v12258_v1  ;;  %7104 = vmatpush.bf16.msra.mxu1 %v12322_v15  ;;  %v11750_v1 = vor.u32 %v14314_v63, %v11749_v38  ;;  %v12242_v15 = vor.u32 %v14435_v18, %v12239_v21  ;;  %v12543_v38 = vld [vmem:[#allocation13 + $0x13e8] sm:$0xf0]  ;;  %v1074_v63 = vmax.f32 %v1045_v49, 0.0  ;;  %v16575_v18 = vld [vmem:[#allocation40_spill] sm:$0xff] }
 0x3f5   :  { %5816 = vmatpush.bf16.msra.mxu3 %v11758_v13  ;;  %5807 = vmatmul.bf16.vlgmr.msra.gmra.mxu2 %v16035_v58  ;;  %v14511_v13 = vld [vmem:[#allocation13 + $0x13e4] sm:$0xf]  ;;  %v1073_v21 = vmax.f32 %v16575_v18, 0.0  ;;  %v12535_v49 = vld [vmem:[#allocation13 + $0x13d8] sm:$0xf0] }
 0x3f6   :  { %5855 = vmatpush.bf16.msrb.mxu2 %v11974_v20  ;;  %v12607_v20 = vld [vmem:[#allocation13 + $0x1468] sm:$0xf0]  ;;  %v12546_v4 = vor.u32 %v14511_v13, %v12543_v38  ;;  %v12538_v51 = vor.u32 %v14509_v44, %v12535_v49  ;;  %v12037_v13 = vld [vmem:[#allocation13 + $0xff0] sm:$0xf]  ;;  %v14386_v38 = vld [vmem:[#allocation13 + $0xff4] sm:$0xf0] }
 0x3f7   :  { %v12610_v7 = vor.u32 %v14527_v29, %v12607_v20  ;;  %v12527_v29 = vld [vmem:[#allocation13 + $0x13c8] sm:$0xf0]  ;;  %v12038_v18 = vor.u32 %v14386_v38, %v12037_v13  ;;  %v12029_v44 = vld [vmem:[#allocation13 + $0xfe0] sm:$0xf]  ;;  %v14382_v13 = vld [vmem:[#allocation13 + $0xfd4] sm:$0xf0] }
 0x3f8   :  { %7091 = vmatpush.bf16.msra.mxu0 %v12250_v26  ;;  %7105 = vmatpush.bf16.msra.mxu1 %v12314_v31  ;;  %v4726_v26 = vpop.f32.mrf.mxu3  ;;  %v14310_v31 = vld [vmem:[#allocation13 + $0xd94] sm:$0xf0] }
 0x3f9   :  { %5817 = vmatpush.bf16.msra.mxu3 %v11750_v1  ;;  %v4727_v10 = vadd.f32 %v4726_v26, %v16026_v9  ;;  %v1090_v1 = vpack.c.bf16 %v1074_v63, %v1074_v63  ;;  %v11734_v3 = vor.u32 %v14310_v31, %v11733_v24  ;;  %v11950_v9 = vor.u32 %v14364_v2, %v11949_v60  ;;  %v14523_v26 = vld [vmem:[#allocation13 + $0x1444] sm:$0xf]  ;;  %v14360_v2 = vld [vmem:[#allocation13 + $0xf24] sm:$0xf0] }
 0x3fa   :  { %5856 = vmatpush.bf16.msrb.mxu2 %v11966_v45  ;;  %v12599_v45 = vld [vmem:[#allocation13 + $0x1458] sm:$0xf0] }
 0x3fb   :  { %v12602_v63 = vor.u32 %v14525_v22, %v12599_v45  ;;  %v4976_v20 = vunpack.c.l.b16 %v1090_v1  ;;  %v4741_v24 = vadd.f32 %v15900_v54, %v4727_v10  ;;  %v14505_v22 = vld [vmem:[#allocation13 + $0x13b4] sm:$0xf]  ;;  %v12519_v1 = vld [vmem:[#allocation13 + $0x13b8] sm:$0xf0] }
 0x3fc   :  { %7092 = vmatpush.bf16.msra.mxu0 %v12242_v15  ;;  %7106 = vmatpush.bf16.msra.mxu1 %v12306_v43  ;;  %v11725_v15 = vld [vmem:[#allocation13 + $0xd80] sm:$0xf]  ;;  %v1089_v43 = vpack.c.bf16 %v1073_v21, %v1073_v21  ;;  %v14521_v45 = vld [vmem:[#allocation13 + $0x1434] sm:$0xf] }
 0x3fd   :  { %5818 = vmatpush.bf16.msra.mxu3 %v11742_v23  ;;  %v14507_v23 = vld [vmem:[#allocation13 + $0x13c4] sm:$0xf]  ;;  %v11933_v21 = vld [vmem:[#allocation13 + $0xf20] sm:$0xf]  ;;  %v4755_v54 = vadd.f32 %v15904_v61, %v4741_v24 }
 0x3fe   :  { %5857 = vmatpush.bf16.msrb.mxu2 %v11958_v34  ;;  %v12591_v34 = vld [vmem:[#allocation13 + $0x1448] sm:$0xf0]  ;;  %v12530_v60 = vor.u32 %v14507_v23, %v12527_v29  ;;  %v11934_v10 = vor.u32 %v14360_v2, %v11933_v21  ;;  %v14503_v23 = vld [vmem:[#allocation13 + $0x13a4] sm:$0xf]  ;;  %v14305_v2 = vld [vmem:[#allocation13 + $0xd74] sm:$0xf] }
 0x3ff   :  { %7093 = vmatmul.bf16.vlgmr.msra.gmra.mxu0 %v16576_v12  ;;  %7107 = vmatmul.bf16.vlgmr.msra.gmra.mxu1 %v15699_v16  ;;  %v11726_v16 = vor.u32 %v14308_v32, %v11725_v15  ;;  %v12594_v49 = vor.u32 %v14523_v26, %v12591_v34  ;;  %v12583_v15 = vld [vmem:[#allocation13 + $0x1438] sm:$0xf0]  ;;  %v11925_v32 = vld [vmem:[#allocation13 + $0xf10] sm:$0xf]  ;;  %v12511_v29 = vld [vmem:[#allocation13 + $0x13a8] sm:$0xf0]  ;;  %v16053_v26 = vpop.f32.mrf.mxu1 }
 0x400   :  { %7141 = vmatpush.bf16.msrb.mxu0 %v12554_v52  ;;  %7155 = vmatpush.bf16.msrb.mxu1 %v12618_v39  ;;  %v16042_v52 = vpop.f32.mrf.mxu2  ;;  %v14362_v39 = vld [vmem:[#allocation13 + $0xf34] sm:$0xf0]  ;;  %v14519_v61 = vld [vmem:[#allocation13 + $0x1424] sm:$0xf]  ;;  %16579 = vst [vmem:[#allocation44_spill] sm:$0xff] %v16053_v26  ;;  %v12514_v21 = vor.u32 %v14503_v23, %v12511_v29 }
 0x401   :  { %16577 = vst [vmem:[#allocation38_spill] sm:$0xff] %v16042_v52  ;;  %5819 = vmatpush.bf16.msra.mxu3 %v11734_v3  ;;  %v11942_v31 = vor.u32 %v14362_v39, %v11941_v27  ;;  %v12021_v39 = vld [vmem:[#allocation13 + $0xfd0] sm:$0xf]  ;;  %v12495_v23 = vld [vmem:[#allocation13 + $0x1388] sm:$0xf0]  ;;  %v16581_v26 = vld [vmem:[#allocation61_spill] sm:$0xff] }
 0x402   :  { %5858 = vmatpush.bf16.msrb.mxu2 %v11950_v9  ;;  %v12022_v24 = vor.u32 %v14382_v13, %v12021_v39  ;;  %v11711_v39 = vld [vmem:[#allocation13 + $0xd68] sm:$0xf0]  ;;  %v14515_v29 = vld [vmem:[#allocation13 + $0x1404] sm:$0xf]  ;;  %v16591_v52 = vld [vmem:[#allocation43_spill] sm:$0xff] }
 0x404   :  { %7142 = vmatpush.bf16.msrb.mxu0 %v12546_v4  ;;  %7156 = vmatpush.bf16.msrb.mxu1 %v12610_v7  ;;  %v4975_v4 = vunpack.c.l.b16 %v1089_v43  ;;  %v14384_v7 = vld [vmem:[#allocation13 + $0xfe4] sm:$0xf0]  ;;  %v12522_v43 = vor.u32 %v14505_v22, %v12519_v1  ;;  %v12503_v22 = vld [vmem:[#allocation13 + $0x1398] sm:$0xf0]  ;;  %v14517_v1 = vld [vmem:[#allocation13 + $0x1414] sm:$0xf] }
 0x405   :  { %5820 = vmatpush.bf16.msra.mxu3 %v11726_v16  ;;  %v12030_v9 = vor.u32 %v14384_v7, %v12029_v44  ;;  %v12575_v16 = vld [vmem:[#allocation13 + $0x1428] sm:$0xf0]  ;;  %v11719_v7 = vld [vmem:[#allocation13 + $0xd78] sm:$0xf0] }
 0x406   :  { %v16045_v3 = vpack.c.b16 %v4976_v20, %v4975_v4  ;;  %5859 = vmatpush.bf16.msrb.mxu2 %v11942_v31  ;;  %v16051_v20 = vpop.f32.mrf.mxu0  ;;  %v11917_v31 = vld [vmem:[#allocation13 + $0xf00] sm:$0xf]  ;;  %v12578_v44 = vor.u32 %v14519_v61, %v12575_v16  ;;  %v12559_v16 = vld [vmem:[#allocation13 + $0x1408] sm:$0xf0] }
 0x407   :  { %16578 = vst [vmem:[#allocation34_spill] sm:$0xff] %v16051_v20  ;;  %v12013_v4 = vld [vmem:[#allocation13 + $0xfc0] sm:$0xf] }
 0x408   :  { %7143 = vmatpush.bf16.msrb.mxu0 %v12538_v51  ;;  %7157 = vmatpush.bf16.msrb.mxu1 %v12602_v63  ;;  %v4768_v27 = vpop.f32.mrf.mxu2  ;;  %v14358_v51 = vld [vmem:[#allocation13 + $0xf14] sm:$0xf0]  ;;  %v12586_v63 = vor.u32 %v14521_v45, %v12583_v15  ;;  %v12567_v45 = vld [vmem:[#allocation13 + $0x1418] sm:$0xf0] }
 0x409   :  { %5869 = vmatpush.bf16.msrb.mxu3 %v12038_v18  ;;  %v16048_v38 = vadd.f32 %v4768_v27, %v4755_v54  ;;  %v11926_v34 = vor.u32 %v14358_v51, %v11925_v32  ;;  %v14356_v18 = vld [vmem:[#allocation13 + $0xf04] sm:$0xf0]  ;;  %v11722_v32 = vor.u32 %v14305_v2, %v11719_v7  ;;  %v14303_v51 = vld [vmem:[#allocation13 + $0xd64] sm:$0xf]  ;;  %v12570_v13 = vor.u32 %v14517_v1, %v12567_v45  ;;  %v14301_v1 = vld [vmem:[#allocation13 + $0xd54] sm:$0xf] }
 0x40a   :  { %5821 = vmatmul.bf16.vlgmr.msra.gmra.mxu3 %v16045_v3  ;;  %5860 = vmatpush.bf16.msrb.mxu2 %v11934_v10  ;;  %v11918_v15 = vor.u32 %v14356_v18, %v11917_v31  ;;  %v12005_v10 = vld [vmem:[#allocation13 + $0xfb0] sm:$0xf]  ;;  %v16059_v31 = vpop.f32.mrf.mxu1  ;;  %v14376_v7 = vld [vmem:[#allocation13 + $0xfa4] sm:$0xf0]  ;;  %v11703_v45 = vld [vmem:[#allocation13 + $0xd58] sm:$0xf0] }
 0x40c   :  { %7144 = vmatpush.bf16.msrb.mxu0 %v12530_v60  ;;  %7158 = vmatpush.bf16.msrb.mxu1 %v12594_v49  ;;  %v14380_v60 = vld [vmem:[#allocation13 + $0xfc4] sm:$0xf0]  ;;  %v14501_v49 = vld [vmem:[#allocation13 + $0x1394] sm:$0xf] }
 0x40d   :  { %5870 = vmatpush.bf16.msrb.mxu3 %v12030_v9  ;;  %v12014_v54 = vor.u32 %v14380_v60, %v12013_v4  ;;  %v16055_v9 = vpop.f32.mrf.mxu3  ;;  %v12506_v27 = vor.u32 %v14501_v49, %v12503_v22  ;;  %v14594_v4 = vld [vmem:[#allocation13 + $0x1674] sm:$0xf0]  ;;  %v11714_v60 = vor.u32 %v14303_v51, %v11711_v39  ;;  %v12562_v49 = vor.u32 %v14515_v29, %v12559_v16  ;;  %v11989_v51 = vld [vmem:[#allocation13 + $0xf90] sm:$0xf]  ;;  %v11695_v29 = vld [vmem:[#allocation13 + $0xd48] sm:$0xf0] }
 0x40e   :  { %5861 = vmatpush.bf16.msrb.mxu2 %v11926_v34  ;;  %16580 = vst [vmem:[#allocation47_spill] sm:$0xff] %v16055_v9  ;;  %v16057_v61 = vpop.f32.mrf.mxu0  ;;  %v12805_v34 = vld [vmem:[#allocation13 + $0x15f0] sm:$0xf]  ;;  %v14374_v39 = vld [vmem:[#allocation13 + $0xf94] sm:$0xf0] }
 0x40f   :  { %v14566_v9 = vld [vmem:[#allocation13 + $0x1594] sm:$0xf0] }
 0x410   :  { %7145 = vmatpush.bf16.msrb.mxu0 %v12522_v43  ;;  %7159 = vmatpush.bf16.msrb.mxu1 %v12586_v63  ;;  %v14378_v43 = vld [vmem:[#allocation13 + $0xfb4] sm:$0xf0]  ;;  %v14499_v63 = vld [vmem:[#allocation13 + $0x1384] sm:$0xf] }
 0x411   :  { %5871 = vmatpush.bf16.msrb.mxu3 %v12022_v24  ;;  %v14578_v24 = vld [vmem:[#allocation13 + $0x15f4] sm:$0xf0]  ;;  %v12006_v18 = vor.u32 %v14378_v43, %v12005_v10  ;;  %v12498_v2 = vor.u32 %v14499_v63, %v12495_v23  ;;  %v12861_v10 = vld [vmem:[#allocation13 + $0x1660] sm:$0xf]  ;;  %v14592_v43 = vld [vmem:[#allocation13 + $0x1664] sm:$0xf0] }
 0x412   :  { %5862 = vmatpush.bf16.msrb.mxu2 %v11918_v15  ;;  %v12806_v22 = vor.u32 %v14578_v24, %v12805_v34  ;;  %v14576_v15 = vld [vmem:[#allocation13 + $0x15e4] sm:$0xf0]  ;;  %v14299_v23 = vld [vmem:[#allocation13 + $0xd44] sm:$0xf]  ;;  %v12862_v16 = vor.u32 %v14592_v43, %v12861_v10  ;;  %v12789_v34 = vld [vmem:[#allocation13 + $0x15d0] sm:$0xf] }
 0x413   :  { %v12798_v63 = vor.u32 %v14576_v15, %v12797_v55  ;;  %v14574_v24 = vld [vmem:[#allocation13 + $0x15d4] sm:$0xf0]  ;;  %v14372_v55 = vld [vmem:[#allocation13 + $0xf84] sm:$0xf0]  ;;  %v16073_v43 = vld [vmem:[#allocation12 + $0x4] ss:$0 sm:$0xff] }
 0x414   :  { %7146 = vmatpush.bf16.msrb.mxu0 %v12514_v21  ;;  %7160 = vmatpush.bf16.msrb.mxu1 %v12578_v44  ;;  %v12869_v21 = vld [vmem:[#allocation13 + $0x1670] sm:$0xf]  ;;  %v11997_v44 = vld [vmem:[#allocation13 + $0xfa0] sm:$0xf]  ;;  %v14572_v10 = vld [vmem:[#allocation13 + $0x15c4] sm:$0xf0] }
 0x415   :  { %5872 = vmatpush.bf16.msrb.mxu3 %v12014_v54  ;;  %5863 = vmatmul.bf16.vlgmr.msrb.gmra.mxu2 %v16581_v26  ;;  %v12870_v20 = vor.u32 %v14594_v4, %v12869_v21  ;;  %v11998_v54 = vor.u32 %v14376_v7, %v11997_v44  ;;  %v12853_v21 = vld [vmem:[#allocation13 + $0x1650] sm:$0xf]  ;;  %v14590_v4 = vld [vmem:[#allocation13 + $0x1654] sm:$0xf0]  ;;  %v14297_v44 = vld [vmem:[#allocation13 + $0xd34] sm:$0xf]  ;;  %v16069_v7 = vpop.f32.mrf.mxu1 }
 0x416   :  { %5911 = vmatpush.bf16.msra.mxu2 %v11722_v32  ;;  %v4782_v32 = vpop.f32.mrf.mxu3  ;;  %16583 = vst [vmem:[#allocation76_spill] sm:$0xff] %v16069_v7  ;;  %v12854_v15 = vor.u32 %v14590_v4, %v12853_v21  ;;  %v14319_v21 = vld [vmem:[#allocation13 + $0xde4] sm:$0xf]  ;;  %v11775_v4 = vld [vmem:[#allocation13 + $0xde8] sm:$0xf0] }
 0x418   :  { %7147 = vmatpush.bf16.msrb.mxu0 %v12506_v27  ;;  %7161 = vmatpush.bf16.msrb.mxu1 %v12570_v13  ;;  %v11706_v27 = vor.u32 %v14301_v1, %v11703_v45  ;;  %v16063_v13 = vadd.f32 %v4782_v32, %v16048_v38  ;;  %v11698_v38 = vor.u32 %v14299_v23, %v11695_v29  ;;  %v14321_v1 = vld [vmem:[#allocation13 + $0xdf4] sm:$0xf]  ;;  %v11783_v45 = vld [vmem:[#allocation13 + $0xdf8] sm:$0xf0] }
 0x419   :  { %5873 = vmatpush.bf16.msrb.mxu3 %v12006_v18  ;;  %v11990_v18 = vor.u32 %v14374_v39, %v11989_v51  ;;  %v12845_v51 = vld [vmem:[#allocation13 + $0x1640] sm:$0xf]  ;;  %v14588_v39 = vld [vmem:[#allocation13 + $0x1644] sm:$0xf0]  ;;  %v11786_v29 = vor.u32 %v14321_v1, %v11783_v45  ;;  %v14293_v1 = vld [vmem:[#allocation13 + $0xd14] sm:$0xf] }
 0x41a   :  { %5912 = vmatpush.bf16.msra.mxu2 %v11714_v60  ;;  %v16066_v60 = vpop.f32.mrf.mxu0  ;;  %v12846_v7 = vor.u32 %v14588_v39, %v12845_v51  ;;  %v11767_v51 = vld [vmem:[#allocation13 + $0xdd8] sm:$0xf0] }
 0x41b   :  { %16582 = vst [vmem:[#allocation40_spill] sm:$0xff] %v16066_v60  ;;  %v12773_v60 = vld [vmem:[#allocation13 + $0x15b0] sm:$0xf] }
 0x41c   :  { %7148 = vmatpush.bf16.msrb.mxu0 %v12498_v2  ;;  %7162 = vmatpush.bf16.msrb.mxu1 %v12562_v49  ;;  %v11981_v2 = vld [vmem:[#allocation13 + $0xf80] sm:$0xf]  ;;  %v12790_v49 = vor.u32 %v14574_v24, %v12789_v34  ;;  %v14295_v34 = vld [vmem:[#allocation13 + $0xd24] sm:$0xf]  ;;  %v11679_v24 = vld [vmem:[#allocation13 + $0xd28] sm:$0xf0] }
 0x41d   :  { %5874 = vmatpush.bf16.msrb.mxu3 %v11998_v54  ;;  %v12781_v54 = vld [vmem:[#allocation13 + $0x15c0] sm:$0xf]  ;;  %v6940_v45 = vpop.f32.mrf.mxu1 }
 0x41e   :  { %5913 = vmatpush.bf16.msra.mxu2 %v11706_v27  ;;  %v11982_v27 = vor.u32 %v14372_v55, %v11981_v2  ;;  %v16587_v55 = vld [vmem:[#allocation45_spill] sm:$0xff] }
 0x41f   :  { %7149 = vmatmul.bf16.vlgmr.msrb.gmra.mxu0 %v15725_v46  ;;  %7163 = vmatmul.bf16.vlgmr.msrb.gmra.mxu1 %v16006_v35  ;;  %v16585_v35 = vld [vmem:[#allocation41_spill] sm:$0xff] }
 0x420   :  { %8119 = vmatpush.bf16.msra.mxu0 %v12806_v22  ;;  %8133 = vmatpush.bf16.msra.mxu1 %v12870_v20  ;;  %v16071_v20 = vpop.f32.mrf.mxu2  ;;  %v11687_v22 = vld [vmem:[#allocation13 + $0xd38] sm:$0xf0]  ;;  %v1597_v32 = vadd.f32 %v16073_v43, %v16585_v35  ;;  %v14570_v35 = vld [vmem:[#allocation13 + $0x15b4] sm:$0xf0] }
 0x421   :  { %16584 = vst [vmem:[#allocation61_spill] sm:$0xff] %v16071_v20  ;;  %5875 = vmatpush.bf16.msrb.mxu3 %v11990_v18  ;;  %v11690_v23 = vor.u32 %v14297_v44, %v11687_v22  ;;  %v16586_v18 = vld [vmem:[#allocation42_spill] sm:$0xff]  ;;  %v1602_v20 = vadd.f32 %v16073_v43, %v16587_v55  ;;  %v11778_v22 = vor.u32 %v14319_v21, %v11775_v4  ;;  %v14584_v21 = vld [vmem:[#allocation13 + $0x1624] sm:$0xf0]  ;;  %v16590_v4 = vld [vmem:[#allocation39_spill] sm:$0xff] }
 0x422   :  { %5914 = vmatpush.bf16.msra.mxu2 %v11698_v38  ;;  %v16080_v2 = vadd.f32 %v16586_v18, %v1597_v32  ;;  %v6926_v38 = vpop.f32.mrf.mxu0  ;;  %v14317_v32 = vld [vmem:[#allocation13 + $0xdd4] sm:$0xf]  ;;  %v12765_v18 = vld [vmem:[#allocation13 + $0x15a0] sm:$0xf] }
 0x423   :  { %v16085_v39 = vadd.f32 %v6940_v45, %v6926_v38  ;;  %v11770_v55 = vor.u32 %v14317_v32, %v11767_v51  ;;  %v14291_v38 = vld [vmem:[#allocation13 + $0xd04] sm:$0xf] }
 0x424   :  { %8120 = vmatpush.bf16.msra.mxu0 %v12798_v63  ;;  %8134 = vmatpush.bf16.msra.mxu1 %v12862_v16  ;;  %v4797_v63 = vadd.f32 %v15924_v59, %v15980_v37  ;;  %v12782_v16 = vor.u32 %v14572_v10, %v12781_v54  ;;  %v12837_v59 = vld [vmem:[#allocation13 + $0x1630] sm:$0xf]  ;;  %v14586_v37 = vld [vmem:[#allocation13 + $0x1634] sm:$0xf0]  ;;  %v12774_v54 = vor.u32 %v14570_v35, %v12773_v60  ;;  %v11671_v10 = vld [vmem:[#allocation13 + $0xd18] sm:$0xf0] }
 0x425   :  { %5876 = vmatpush.bf16.msrb.mxu3 %v11982_v27  ;;  %v1688_v60 = vmax.f32 %v16080_v2, 0.0  ;;  %v11674_v35 = vor.u32 %v14293_v1, %v11671_v10  ;;  %v14315_v45 = vld [vmem:[#allocation13 + $0xdc4] sm:$0xf]  ;;  %v12821_v2 = vld [vmem:[#allocation13 + $0x1610] sm:$0xf] }
 0x426   :  { %5915 = vmatpush.bf16.msra.mxu2 %v11690_v23  ;;  %v4811_v44 = vadd.f32 %v15926_v6, %v4797_v63  ;;  %v16588_v23 = vld [vmem:[#allocation64_spill] sm:$0xff]  ;;  %v14568_v6 = vld [vmem:[#allocation13 + $0x15a4] sm:$0xf0]  ;;  %v16589_v63 = vld [vmem:[#allocation46_spill] sm:$0xff] }
 0x427   :  { %v14313_v10 = vld [vmem:[#allocation13 + $0xdb4] sm:$0xf] }
 0x428   :  { %8121 = vmatpush.bf16.msra.mxu0 %v12790_v49  ;;  %8135 = vmatpush.bf16.msra.mxu1 %v12854_v15  ;;  %v11682_v49 = vor.u32 %v14295_v34, %v11679_v24  ;;  %v4824_v15 = vpop.f32.mrf.mxu2  ;;  %v1656_v34 = vadd.f32 %v16589_v63, %v1602_v20  ;;  %v12829_v24 = vld [vmem:[#allocation13 + $0x1620] sm:$0xf]  ;;  %v11975_v20 = vld [vmem:[#allocation13 + $0xf78] sm:$0xf0]  ;;  %v12757_v63 = vld [vmem:[#allocation13 + $0x1590] sm:$0xf] }
 0x429   :  { %5925 = vmatpush.bf16.msra.mxu3 %v11786_v29  ;;  %v16087_v27 = vadd.f32 %v4824_v15, %v4811_v44  ;;  %v12838_v29 = vor.u32 %v14586_v37, %v12837_v59  ;;  %v11663_v44 = vld [vmem:[#allocation13 + $0xd08] sm:$0xf0]  ;;  %v14369_v37 = vld [vmem:[#allocation13 + $0xf74] sm:$0xf]  ;;  %v12830_v15 = vor.u32 %v14584_v21, %v12829_v24  ;;  %v12758_v51 = vor.u32 %v14566_v9, %v12757_v63  ;;  %v14658_v9 = vld [vmem:[#allocation13 + $0x1874] sm:$0xf0] }
 0x42a   :  { %5877 = vmatmul.bf16.vlgmr.msrb.gmra.mxu3 %v16588_v23  ;;  %5916 = vmatpush.bf16.msra.mxu2 %v11682_v49  ;;  %v11759_v59 = vld [vmem:[#allocation13 + $0xdc8] sm:$0xf0]  ;;  %v1690_v14 = vmax.f32 %v1656_v34, 0.0  ;;  %v14582_v49 = vld [vmem:[#allocation13 + $0x1614] sm:$0xf0]  ;;  %v11978_v32 = vor.u32 %v14369_v37, %v11975_v20  ;;  %v1706_v21 = vpack.c.bf16 %v1688_v60, %v1688_v60 }
 0x42b   :  { %v11762_v1 = vor.u32 %v14315_v45, %v11759_v59  ;;  %v12749_v34 = vld [vmem:[#allocation13 + $0x1580] sm:$0xf]  ;;  %v14642_v45 = vld [vmem:[#allocation13 + $0x17f4] sm:$0xf0]  ;;  %v13125_v59 = vld [vmem:[#allocation13 + $0x1870] sm:$0xf] }
 0x42c   :  { %8122 = vmatpush.bf16.msra.mxu0 %v12782_v16  ;;  %8136 = vmatpush.bf16.msra.mxu1 %v12846_v7  ;;  %v1687_v16 = vmax.f32 %v16590_v4, 0.0  ;;  %v12766_v7 = vor.u32 %v14568_v6, %v12765_v18  ;;  %v1689_v4 = vmax.f32 %v16591_v52, 0.0  ;;  %v14367_v18 = vld [vmem:[#allocation13 + $0xf64] sm:$0xf]  ;;  %v11967_v6 = vld [vmem:[#allocation13 + $0xf68] sm:$0xf0]  ;;  %v12822_v52 = vor.u32 %v14582_v49, %v12821_v2 }
 0x42d   :  { %5926 = vmatpush.bf16.msra.mxu3 %v11778_v22  ;;  %v11666_v22 = vor.u32 %v14291_v38, %v11663_v44  ;;  %v14580_v38 = vld [vmem:[#allocation13 + $0x1604] sm:$0xf0]  ;;  %v13061_v44 = vld [vmem:[#allocation13 + $0x17f0] sm:$0xf]  ;;  %v11970_v37 = vor.u32 %v14367_v18, %v11967_v6  ;;  %v14311_v60 = vld [vmem:[#allocation13 + $0xda4] sm:$0xf]  ;;  %v7188_v63 = vunpack.c.l.b16 %v1706_v21 }
 0x42e   :  { %5917 = vmatpush.bf16.msra.mxu2 %v11674_v35  ;;  %v1705_v24 = vpack.c.bf16 %v1687_v16, %v1687_v16  ;;  %v1707_v35 = vpack.c.bf16 %v1689_v4, %v1689_v4  ;;  %v12750_v16 = vor.u32 %v14564_v42, %v12749_v34  ;;  %v12814_v2 = vor.u32 %v14580_v38, %v12813_v50  ;;  %v11959_v49 = vld [vmem:[#allocation13 + $0xf58] sm:$0xf0]  ;;  %v14656_v42 = vld [vmem:[#allocation13 + $0x1864] sm:$0xf0]  ;;  %v14309_v6 = vld [vmem:[#allocation13 + $0xd94] sm:$0xf] }
 0x42f   :  { %v13062_v4 = vor.u32 %v14642_v45, %v13061_v44  ;;  %v11735_v50 = vld [vmem:[#allocation13 + $0xd98] sm:$0xf0]  ;;  %v11951_v34 = vld [vmem:[#allocation13 + $0xf48] sm:$0xf0]  ;;  %v13045_v38 = vld [vmem:[#allocation13 + $0x17d0] sm:$0xf] }
 0x430   :  { %8123 = vmatpush.bf16.msra.mxu0 %v12774_v54  ;;  %8137 = vmatpush.bf16.msra.mxu1 %v12838_v29  ;;  %v16094_v54 = vpop.f32.mrf.mxu3  ;;  %v11751_v29 = vld [vmem:[#allocation13 + $0xdb8] sm:$0xf0]  ;;  %v7187_v20 = vunpack.c.l.b16 %v1705_v24  ;;  %v14638_v44 = vld [vmem:[#allocation13 + $0x17d4] sm:$0xf0]  ;;  %v11738_v45 = vor.u32 %v14309_v6, %v11735_v50  ;;  %v11935_v6 = vld [vmem:[#allocation13 + $0xf28] sm:$0xf0] }
 0x431   :  { %5927 = vmatpush.bf16.msra.mxu3 %v11770_v55  ;;  %16592 = vst [vmem:[#allocation41_spill] sm:$0xff] %v16094_v54  ;;  %v1708_v55 = vpack.c.bf16 %v1690_v14, %v1690_v14  ;;  %v14365_v14 = vld [vmem:[#allocation13 + $0xf54] sm:$0xf]  ;;  %v7193_v54 = vunpack.c.l.b16 %v1707_v35  ;;  %v14383_v50 = vld [vmem:[#allocation13 + $0xfe4] sm:$0xf] }
 0x432   :  { %5918 = vmatpush.bf16.msra.mxu2 %v11666_v22  ;;  %v13126_v22 = vor.u32 %v14658_v9, %v13125_v59  ;;  %v11962_v18 = vor.u32 %v14365_v14, %v11959_v49  ;;  %v16097_v24 = vpack.c.b16 %v7188_v63, %v7187_v20  ;;  %v14654_v59 = vld [vmem:[#allocation13 + $0x1854] sm:$0xf0]  ;;  %v14307_v9 = vld [vmem:[#allocation13 + $0xd84] sm:$0xf]  ;;  %v12039_v20 = vld [vmem:[#allocation13 + $0xff8] sm:$0xf0] }
 0x433   :  { %v7194_v5 = vunpack.c.l.b16 %v1708_v55  ;;  %v16593_v14 = vld [vmem:[#allocation55_spill] sm:$0xff] }
 0x434   :  { %8124 = vmatpush.bf16.msra.mxu0 %v12766_v7  ;;  %8138 = vmatpush.bf16.msra.mxu1 %v12830_v15  ;;  %v11754_v7 = vor.u32 %v14313_v10, %v11751_v29  ;;  %v11743_v15 = vld [vmem:[#allocation13 + $0xda8] sm:$0xf0]  ;;  %v14640_v10 = vld [vmem:[#allocation13 + $0x17e4] sm:$0xf0]  ;;  %v1617_v49 = vadd.f32 %v16073_v43, %v16593_v14 }
 0x435   :  { %5928 = vmatpush.bf16.msra.mxu3 %v11762_v1  ;;  %5919 = vmatmul.bf16.vlgmr.msra.gmra.mxu2 %v16035_v58  ;;  %v13053_v1 = vld [vmem:[#allocation13 + $0x17e0] sm:$0xf]  ;;  %v16100_v35 = vpack.c.b16 %v7194_v5, %v7193_v54  ;;  %v13046_v5 = vor.u32 %v14638_v44, %v13045_v38  ;;  %v11943_v54 = vld [vmem:[#allocation13 + $0xf38] sm:$0xf0]  ;;  %v14632_v14 = vld [vmem:[#allocation13 + $0x17a4] sm:$0xf0] }
 0x436   :  { %5967 = vmatpush.bf16.msrb.mxu2 %v11978_v32  ;;  %v11746_v32 = vor.u32 %v14311_v60, %v11743_v15  ;;  %v13054_v58 = vor.u32 %v14640_v10, %v13053_v1  ;;  %v16104_v60 = vpop.f32.mrf.mxu2  ;;  %v14385_v15 = vld [vmem:[#allocation13 + $0xff4] sm:$0xf]  ;;  %v13101_v1 = vld [vmem:[#allocation13 + $0x1840] sm:$0xf]  ;;  %v14652_v10 = vld [vmem:[#allocation13 + $0x1844] sm:$0xf0] }
 0x437   :  { %v16594_v38 = vld [vmem:[#allocation56_spill] sm:$0xff] }
 0x438   :  { %8125 = vmatpush.bf16.msra.mxu0 %v12758_v51  ;;  %8139 = vmatpush.bf16.msra.mxu1 %v12822_v52  ;;  %v13117_v51 = vld [vmem:[#allocation13 + $0x1860] sm:$0xf]  ;;  %v4838_v29 = vpop.f32.mrf.mxu3  ;;  %v14363_v52 = vld [vmem:[#allocation13 + $0xf44] sm:$0xf]  ;;  %v1671_v44 = vadd.f32 %v16594_v38, %v1617_v49  ;;  %v16596_v49 = vld [vmem:[#allocation59_spill] sm:$0xff] }
 0x439   :  { %5929 = vmatpush.bf16.msra.mxu3 %v11754_v7  ;;  %v4839_v21 = vadd.f32 %v4838_v29, %v16087_v27  ;;  %v13118_v55 = vor.u32 %v14656_v42, %v13117_v51  ;;  %v13109_v7 = vld [vmem:[#allocation13 + $0x1850] sm:$0xf]  ;;  %v11954_v27 = vor.u32 %v14363_v52, %v11951_v34  ;;  %v12042_v42 = vor.u32 %v14385_v15, %v12039_v20  ;;  %v14359_v29 = vld [vmem:[#allocation13 + $0xf24] sm:$0xf]  ;;  %v14381_v15 = vld [vmem:[#allocation13 + $0xfd4] sm:$0xf] }
 0x43a   :  { %5968 = vmatpush.bf16.msrb.mxu2 %v11970_v37  ;;  %v11727_v37 = vld [vmem:[#allocation13 + $0xd88] sm:$0xf0]  ;;  %v13110_v63 = vor.u32 %v14654_v59, %v13109_v7  ;;  %v13102_v52 = vor.u32 %v14652_v10, %v13101_v1  ;;  %v13029_v34 = vld [vmem:[#allocation13 + $0x17b0] sm:$0xf]  ;;  %v12023_v20 = vld [vmem:[#allocation13 + $0xfd8] sm:$0xf0] }
 0x43b   :  { %v14648_v1 = vld [vmem:[#allocation13 + $0x1824] sm:$0xf0]  ;;  %v16597_v10 = vld [vmem:[#allocation54_spill] sm:$0xff] }
 0x43c   :  { %8126 = vmatpush.bf16.msra.mxu0 %v12750_v16  ;;  %8140 = vmatpush.bf16.msra.mxu1 %v12814_v2  ;;  %v14361_v16 = vld [vmem:[#allocation13 + $0xf34] sm:$0xf]  ;;  %v13037_v2 = vld [vmem:[#allocation13 + $0x17c0] sm:$0xf]  ;;  %v13013_v38 = vld [vmem:[#allocation13 + $0x1790] sm:$0xf] }
 0x43d   :  { %5930 = vmatpush.bf16.msra.mxu3 %v11746_v32  ;;  %v4853_v32 = vadd.f32 %v15938_v33, %v4839_v21  ;;  %v11946_v51 = vor.u32 %v14361_v16, %v11943_v54  ;;  %v13093_v33 = vld [vmem:[#allocation13 + $0x1830] sm:$0xf]  ;;  %v14650_v21 = vld [vmem:[#allocation13 + $0x1834] sm:$0xf0]  ;;  %v11927_v54 = vld [vmem:[#allocation13 + $0xf18] sm:$0xf0] }
 0x43e   :  { %5969 = vmatpush.bf16.msrb.mxu2 %v11962_v18  ;;  %v4880_v16 = vpop.f32.mrf.mxu2 }
 0x43f   :  { %8127 = vmatmul.bf16.vlgmr.msra.gmra.mxu0 %v16097_v24  ;;  %8141 = vmatmul.bf16.vlgmr.msra.gmra.mxu1 %v16100_v35  ;;  %v4867_v59 = vadd.f32 %v15942_v25, %v4853_v32  ;;  %v13085_v25 = vld [vmem:[#allocation13 + $0x1820] sm:$0xf]  ;;  %v1695_v32 = vmax.f32 %v16597_v10, 0.0 }
 0x440   :  { %8175 = vmatpush.bf16.msrb.mxu0 %v13062_v4  ;;  %8189 = vmatpush.bf16.msrb.mxu1 %v13126_v22  ;;  %v14636_v4 = vld [vmem:[#allocation13 + $0x17c4] sm:$0xf0]  ;;  %v11730_v22 = vor.u32 %v14307_v9, %v11727_v37  ;;  %v14357_v37 = vld [vmem:[#allocation13 + $0xf14] sm:$0xf] }
 0x441   :  { %5931 = vmatpush.bf16.msra.mxu3 %v11738_v45  ;;  %v13038_v18 = vor.u32 %v14636_v4, %v13037_v2  ;;  %v16595_v45 = vld [vmem:[#allocation58_spill] sm:$0xff]  ;;  %v13094_v2 = vor.u32 %v14650_v21, %v13093_v33  ;;  %v13021_v4 = vld [vmem:[#allocation13 + $0x17a0] sm:$0xf] }
 0x442   :  { %5970 = vmatpush.bf16.msrb.mxu2 %v11954_v27  ;;  %v1622_v7 = vadd.f32 %v16073_v43, %v16595_v45  ;;  %v11938_v27 = vor.u32 %v14359_v29, %v11935_v6  ;;  %v12026_v29 = vor.u32 %v14381_v15, %v12023_v20  ;;  %v11919_v6 = vld [vmem:[#allocation13 + $0xf08] sm:$0xf0]  ;;  %v14630_v45 = vld [vmem:[#allocation13 + $0x1794] sm:$0xf0]  ;;  %v12007_v15 = vld [vmem:[#allocation13 + $0xfb8] sm:$0xf0] }
 0x443   :  { %v12221_v20 = vld [vmem:[#allocation13 + $0x1160] sm:$0xf] }
 0x444   :  { %8176 = vmatpush.bf16.msrb.mxu0 %v13054_v58  ;;  %8190 = vmatpush.bf16.msrb.mxu1 %v13118_v55  ;;  %v12031_v58 = vld [vmem:[#allocation13 + $0xfe8] sm:$0xf0]  ;;  %v14634_v55 = vld [vmem:[#allocation13 + $0x17b4] sm:$0xf0] }
 0x445   :  { %5932 = vmatpush.bf16.msra.mxu3 %v11730_v22  ;;  %v12034_v9 = vor.u32 %v14383_v50, %v12031_v58  ;;  %v1676_v22 = vadd.f32 %v16596_v49, %v1622_v7  ;;  %v13022_v50 = vor.u32 %v14632_v14, %v13021_v4  ;;  %v14379_v58 = vld [vmem:[#allocation13 + $0xfc4] sm:$0xf]  ;;  %v1713_v4 = vpack.c.bf16 %v1695_v32, %v1695_v32 }
 0x446   :  { %5971 = vmatpush.bf16.msrb.mxu2 %v11946_v51  ;;  %v1696_v51 = vmax.f32 %v1671_v44, 0.0  ;;  %v16598_v7 = vld [vmem:[#allocation57_spill] sm:$0xff]  ;;  %v13077_v44 = vld [vmem:[#allocation13 + $0x1810] sm:$0xf] }
 0x447   :  { %v1697_v33 = vmax.f32 %v16598_v7, 0.0  ;;  %v1698_v21 = vmax.f32 %v1676_v22, 0.0  ;;  %v13005_v22 = vld [vmem:[#allocation13 + $0x1780] sm:$0xf] }
 0x448   :  { %8177 = vmatpush.bf16.msrb.mxu0 %v13046_v5  ;;  %8191 = vmatpush.bf16.msrb.mxu1 %v13110_v63  ;;  %v13030_v5 = vor.u32 %v14634_v55, %v13029_v34  ;;  %v16113_v63 = vadd.f32 %v4880_v16, %v4867_v59  ;;  %v13086_v34 = vor.u32 %v14648_v1, %v13085_v25  ;;  %v14434_v55 = vld [vmem:[#allocation13 + $0x1174] sm:$0xf0]  ;;  %v16119_v16 = vpop.f32.mrf.mxu3  ;;  %v14628_v25 = vld [vmem:[#allocation13 + $0x1784] sm:$0xf0]  ;;  %v13069_v1 = vld [vmem:[#allocation13 + $0x1800] sm:$0xf] }
 0x449   :  { %5981 = vmatpush.bf16.msrb.mxu3 %v12042_v42  ;;  %v11930_v42 = vor.u32 %v14357_v37, %v11927_v54  ;;  %v14646_v59 = vld [vmem:[#allocation13 + $0x1814] sm:$0xf0]  ;;  %v14377_v37 = vld [vmem:[#allocation13 + $0xfb4] sm:$0xf]  ;;  %v13014_v54 = vor.u32 %v14630_v45, %v13013_v38  ;;  %v1714_v14 = vpack.c.bf16 %v1696_v51, %v1696_v51  ;;  %v1715_v10 = vpack.c.bf16 %v1697_v33, %v1697_v33  ;;  %v14375_v51 = vld [vmem:[#allocation13 + $0xfa4] sm:$0xf] }
 0x44a   :  { %5933 = vmatmul.bf16.vlgmr.msra.gmra.mxu3 %v16045_v3  ;;  %5972 = vmatpush.bf16.msrb.mxu2 %v11938_v27  ;;  %v12015_v3 = vld [vmem:[#allocation13 + $0xfc8] sm:$0xf0]  ;;  %v13078_v49 = vor.u32 %v14646_v59, %v13077_v44  ;;  %v13006_v32 = vor.u32 %v14628_v25, %v13005_v22  ;;  %v12213_v33 = vld [vmem:[#allocation13 + $0x1150] sm:$0xf]  ;;  %v12205_v25 = vld [vmem:[#allocation13 + $0x1140] sm:$0xf] }
 0x44b   :  { %v7212_v38 = vunpack.c.l.b16 %v1714_v14  ;;  %v7217_v44 = vunpack.c.l.b16 %v1715_v10  ;;  %v11991_v14 = vld [vmem:[#allocation13 + $0xf98] sm:$0xf0] }
 0x44c   :  { %8178 = vmatpush.bf16.msrb.mxu0 %v13038_v18  ;;  %8192 = vmatpush.bf16.msrb.mxu1 %v13102_v52  ;;  %v14355_v18 = vld [vmem:[#allocation13 + $0xf04] sm:$0xf]  ;;  %v12229_v52 = vld [vmem:[#allocation13 + $0x1170] sm:$0xf] }
 0x44d   :  { %5982 = vmatpush.bf16.msrb.mxu3 %v12034_v9  ;;  %v11922_v27 = vor.u32 %v14355_v18, %v11919_v6  ;;  %v12018_v9 = vor.u32 %v14379_v58, %v12015_v3  ;;  %v14561_v18 = vld [vmem:[#allocation13 + $0x1574] sm:$0xf]  ;;  %v12743_v6 = vld [vmem:[#allocation13 + $0x1578] sm:$0xf0] }
 0x44e   :  { %5973 = vmatpush.bf16.msrb.mxu2 %v11930_v42  ;;  %v1716_v42 = vpack.c.bf16 %v1698_v21, %v1698_v21  ;;  %v14577_v58 = vld [vmem:[#allocation13 + $0x15f4] sm:$0xf]  ;;  %v12807_v3 = vld [vmem:[#allocation13 + $0x15f8] sm:$0xf0]  ;;  %v12746_v7 = vor.u32 %v14561_v18, %v12743_v6  ;;  %v14430_v21 = vld [vmem:[#allocation13 + $0x1154] sm:$0xf0] }
 0x44f   :  { %v12727_v18 = vld [vmem:[#allocation13 + $0x1558] sm:$0xf0] }
 0x450   :  { %8179 = vmatpush.bf16.msrb.mxu0 %v13030_v5  ;;  %8193 = vmatpush.bf16.msrb.mxu1 %v13094_v2  ;;  %v12230_v5 = vor.u32 %v14434_v55, %v12229_v52  ;;  %v14432_v2 = vld [vmem:[#allocation13 + $0x1164] sm:$0xf0]  ;;  %v7211_v55 = vunpack.c.l.b16 %v1713_v4  ;;  %v7218_v59 = vunpack.c.l.b16 %v1716_v42  ;;  %v14373_v4 = vld [vmem:[#allocation13 + $0xf94] sm:$0xf] }
 0x451   :  { %5983 = vmatpush.bf16.msrb.mxu3 %v12026_v29  ;;  %v14644_v29 = vld [vmem:[#allocation13 + $0x1804] sm:$0xf0]  ;;  %v12222_v52 = vor.u32 %v14432_v2, %v12221_v20  ;;  %v4894_v20 = vpop.f32.mrf.mxu3  ;;  %v12214_v2 = vor.u32 %v14430_v21, %v12213_v33  ;;  %v11994_v6 = vor.u32 %v14373_v4, %v11991_v14  ;;  %v14555_v33 = vld [vmem:[#allocation13 + $0x1544] sm:$0xf]  ;;  %v12719_v21 = vld [vmem:[#allocation13 + $0x1548] sm:$0xf0] }
 0x452   :  { %5974 = vmatpush.bf16.msrb.mxu2 %v11922_v27  ;;  %v13070_v45 = vor.u32 %v14644_v29, %v13069_v1  ;;  %v12810_v27 = vor.u32 %v14577_v58, %v12807_v3  ;;  %v4895_v22 = vadd.f32 %v4894_v20, %v16113_v63  ;;  %v14428_v1 = vld [vmem:[#allocation13 + $0x1144] sm:$0xf0]  ;;  %v16125_v10 = vpack.c.b16 %v7218_v59, %v7217_v44  ;;  %v14557_v29 = vld [vmem:[#allocation13 + $0x1554] sm:$0xf]  ;;  %v12791_v58 = vld [vmem:[#allocation13 + $0x15d8] sm:$0xf0] }
 0x453   :  { %v12206_v63 = vor.u32 %v14428_v1, %v12205_v25  ;;  %v14371_v3 = vld [vmem:[#allocation13 + $0xf84] sm:$0xf]  ;;  %v16599_v44 = vld [vmem:[#allocation36_spill] sm:$0xff]  ;;  %v14424_v4 = vld [vmem:[#allocation13 + $0x1124] sm:$0xf0] }
 0x454   :  { %8180 = vmatpush.bf16.msrb.mxu0 %v13022_v50  ;;  %8194 = vmatpush.bf16.msrb.mxu1 %v13086_v34  ;;  %v12010_v50 = vor.u32 %v14377_v37, %v12007_v15  ;;  %v11999_v34 = vld [vmem:[#allocation13 + $0xfa8] sm:$0xf0]  ;;  %v1592_v59 = vadd.f32 %v16073_v43, %v16599_v44  ;;  %v12189_v20 = vld [vmem:[#allocation13 + $0x1120] sm:$0xf]  ;;  %v14553_v1 = vld [vmem:[#allocation13 + $0x1534] sm:$0xf] }
 0x455   :  { %5984 = vmatpush.bf16.msrb.mxu3 %v12018_v9  ;;  %5975 = vmatmul.bf16.vlgmr.msrb.gmra.mxu2 %v16581_v26  ;;  %v14559_v9 = vld [vmem:[#allocation13 + $0x1564] sm:$0xf]  ;;  %v12735_v37 = vld [vmem:[#allocation13 + $0x1568] sm:$0xf0]  ;;  %v12285_v14 = vld [vmem:[#allocation13 + $0x11e0] sm:$0xf] }
 0x456   :  { %6945 = vmatpush.bf16.msra.mxu2 %v12230_v5  ;;  %v12002_v5 = vor.u32 %v14375_v51, %v11999_v34  ;;  %v12799_v15 = vld [vmem:[#allocation13 + $0x15e8] sm:$0xf0]  ;;  %v12738_v26 = vor.u32 %v14559_v9, %v12735_v37  ;;  %v16129_v51 = vpop.f32.mrf.mxu2  ;;  %v12730_v34 = vor.u32 %v14557_v29, %v12727_v18  ;;  %v14571_v9 = vld [vmem:[#allocation13 + $0x15c4] sm:$0xf] }
 0x457   :  { %v12783_v37 = vld [vmem:[#allocation13 + $0x15c8] sm:$0xf0]  ;;  %v16600_v29 = vld [vmem:[#allocation37_spill] sm:$0xff] }
 0x458   :  { %8181 = vmatpush.bf16.msrb.mxu0 %v13014_v54  ;;  %8195 = vmatpush.bf16.msrb.mxu1 %v13078_v49  ;;  %v14575_v54 = vld [vmem:[#allocation13 + $0x15e4] sm:$0xf]  ;;  %v16122_v49 = vpack.c.b16 %v7212_v38, %v7211_v55  ;;  %v14426_v55 = vld [vmem:[#allocation13 + $0x1134] sm:$0xf0]  ;;  %v12293_v38 = vld [vmem:[#allocation13 + $0x11f0] sm:$0xf]  ;;  %v12786_v25 = vor.u32 %v14571_v9, %v12783_v37  ;;  %v1646_v18 = vadd.f32 %v16600_v29, %v1592_v59 }
 0x459   :  { %5985 = vmatpush.bf16.msrb.mxu3 %v12010_v50  ;;  %v12802_v42 = vor.u32 %v14575_v54, %v12799_v15  ;;  %v14573_v50 = vld [vmem:[#allocation13 + $0x15d4] sm:$0xf]  ;;  %v12767_v44 = vld [vmem:[#allocation13 + $0x15a8] sm:$0xf0] }
 0x45a   :  { %6946 = vmatpush.bf16.msra.mxu2 %v12222_v52  ;;  %v11983_v52 = vld [vmem:[#allocation13 + $0xf88] sm:$0xf0] }
 0x45c   :  { %8182 = vmatpush.bf16.msrb.mxu0 %v13006_v32  ;;  %8196 = vmatpush.bf16.msrb.mxu1 %v13070_v45  ;;  %v12197_v32 = vld [vmem:[#allocation13 + $0x1130] sm:$0xf]  ;;  %v14450_v45 = vld [vmem:[#allocation13 + $0x11f4] sm:$0xf0] }
 0x45d   :  { %5986 = vmatpush.bf16.msrb.mxu3 %v12002_v5  ;;  %v4909_v5 = vadd.f32 %v15955_v19, %v4895_v22  ;;  %v12198_v54 = vor.u32 %v14426_v55, %v12197_v32  ;;  %v12294_v15 = vor.u32 %v14450_v45, %v12293_v38  ;;  %v12190_v22 = vor.u32 %v14424_v4, %v12189_v20  ;;  %v14422_v32 = vld [vmem:[#allocation13 + $0x1114] sm:$0xf0]  ;;  %v12269_v20 = vld [vmem:[#allocation13 + $0x11c0] sm:$0xf]  ;;  %v12485_v4 = vld [vmem:[#allocation13 + $0x1370] sm:$0xf] }
 0x45e   :  { %6947 = vmatpush.bf16.msra.mxu2 %v12214_v2  ;;  %v12722_v2 = vor.u32 %v14555_v33, %v12719_v21  ;;  %v14446_v55 = vld [vmem:[#allocation13 + $0x11d4] sm:$0xf0]  ;;  %v12703_v33 = vld [vmem:[#allocation13 + $0x1528] sm:$0xf0]  ;;  %v14567_v21 = vld [vmem:[#allocation13 + $0x15a4] sm:$0xf] }
 0x45f   :  { %8183 = vmatmul.bf16.vlgmr.msrb.gmra.mxu0 %v16122_v49  ;;  %8197 = vmatmul.bf16.vlgmr.msrb.gmra.mxu1 %v16125_v10  ;;  %v4923_v19 = vadd.f32 %v15957_v62, %v4909_v5  ;;  %v16601_v62 = vld [vmem:[#allocation33_spill] sm:$0xff]  ;;  %v12173_v5 = vld [vmem:[#allocation13 + $0x1100] sm:$0xf] }
 0x460   :  { %8231 = vmatpush.bf16.msra.mxu0 %v12746_v7  ;;  %8245 = vmatpush.bf16.msra.mxu1 %v12810_v27  ;;  %v12794_v7 = vor.u32 %v14573_v50, %v12791_v58  ;;  %v11986_v27 = vor.u32 %v14371_v3, %v11983_v52  ;;  %v12775_v50 = vld [vmem:[#allocation13 + $0x15b8] sm:$0xf0]  ;;  %v4936_v3 = vpop.f32.mrf.mxu2  ;;  %v1685_v59 = vmax.f32 %v16601_v62, 0.0 }
 0x461   :  { %5987 = vmatpush.bf16.msrb.mxu3 %v11994_v6  ;;  %v14569_v6 = vld [vmem:[#allocation13 + $0x15b4] sm:$0xf]  ;;  %v16136_v38 = vadd.f32 %v4936_v3, %v4923_v19  ;;  %v14496_v3 = vld [vmem:[#allocation13 + $0x1364] sm:$0xf0] }
 0x462   :  { %6948 = vmatpush.bf16.msra.mxu2 %v12206_v63  ;;  %v12181_v63 = vld [vmem:[#allocation13 + $0x1110] sm:$0xf]  ;;  %v12778_v45 = vor.u32 %v14569_v6, %v12775_v50  ;;  %v16140_v50 = vpop.f32.mrf.mxu3 }
 0x463   :  { %v12182_v9 = vor.u32 %v14422_v32, %v12181_v63  ;;  %v12261_v6 = vld [vmem:[#allocation13 + $0x11b0] sm:$0xf]  ;;  %v12477_v63 = vld [vmem:[#allocation13 + $0x1360] sm:$0xf] }
 0x464   :  { %8232 = vmatpush.bf16.msra.mxu0 %v12738_v26  ;;  %8246 = vmatpush.bf16.msra.mxu1 %v12802_v42  ;;  %v14448_v26 = vld [vmem:[#allocation13 + $0x11e4] sm:$0xf0]  ;;  %v12711_v42 = vld [vmem:[#allocation13 + $0x1538] sm:$0xf0] }
 0x465   :  { %5988 = vmatpush.bf16.msrb.mxu3 %v11986_v27  ;;  %v12286_v58 = vor.u32 %v14448_v26, %v12285_v14  ;;  %v12714_v52 = vor.u32 %v14553_v1, %v12711_v42  ;;  %v1686_v27 = vmax.f32 %v1646_v18, 0.0  ;;  %v14498_v14 = vld [vmem:[#allocation13 + $0x1374] sm:$0xf0]  ;;  %v14549_v26 = vld [vmem:[#allocation13 + $0x1514] sm:$0xf] }
 0x466   :  { %6949 = vmatpush.bf16.msra.mxu2 %v12198_v54  ;;  %v14420_v54 = vld [vmem:[#allocation13 + $0x1104] sm:$0xf0]  ;;  %v14565_v1 = vld [vmem:[#allocation13 + $0x1594] sm:$0xf]  ;;  %v12759_v42 = vld [vmem:[#allocation13 + $0x1598] sm:$0xf0]  ;;  %v12486_v19 = vor.u32 %v14498_v14, %v12485_v4 }
 0x467   :  { %v12174_v29 = vor.u32 %v14420_v54, %v12173_v5  ;;  %v1704_v32 = vpack.c.bf16 %v1686_v27, %v1686_v27  ;;  %v12478_v5 = vor.u32 %v14496_v3, %v12477_v63  ;;  %v14494_v14 = vld [vmem:[#allocation13 + $0x1354] sm:$0xf0] }
 0x468   :  { %8233 = vmatpush.bf16.msra.mxu0 %v12730_v34  ;;  %8247 = vmatpush.bf16.msra.mxu1 %v12794_v7  ;;  %v12277_v34 = vld [vmem:[#allocation13 + $0x11d0] sm:$0xf]  ;;  %v14551_v7 = vld [vmem:[#allocation13 + $0x1524] sm:$0xf]  ;;  %v14438_v63 = vld [vmem:[#allocation13 + $0x1194] sm:$0xf0] }
 0x469   :  { %6959 = vmatpush.bf16.msra.mxu3 %v12294_v15  ;;  %v12278_v37 = vor.u32 %v14446_v55, %v12277_v34  ;;  %v12706_v15 = vor.u32 %v14551_v7, %v12703_v33  ;;  %v12762_v34 = vor.u32 %v14565_v1, %v12759_v42  ;;  %v14547_v55 = vld [vmem:[#allocation13 + $0x1504] sm:$0xf]  ;;  %v12751_v33 = vld [vmem:[#allocation13 + $0x1588] sm:$0xf0] }
 0x46a   :  { %5989 = vmatmul.bf16.vlgmr.msrb.gmra.mxu3 %v16588_v23  ;;  %6950 = vmatpush.bf16.msra.mxu2 %v12190_v22  ;;  %v12770_v23 = vor.u32 %v14567_v21, %v12767_v44  ;;  %v14563_v7 = vld [vmem:[#allocation13 + $0x1584] sm:$0xf]  ;;  %v14625_v21 = vld [vmem:[#allocation13 + $0x1774] sm:$0xf]  ;;  %v12999_v44 = vld [vmem:[#allocation13 + $0x1778] sm:$0xf0] }
 0x46b   :  { %v13002_v4 = vor.u32 %v14625_v21, %v12999_v44  ;;  %v14623_v1 = vld [vmem:[#allocation13 + $0x1764] sm:$0xf]  ;;  %v12991_v42 = vld [vmem:[#allocation13 + $0x1768] sm:$0xf0]  ;;  %v14637_v44 = vld [vmem:[#allocation13 + $0x17d4] sm:$0xf] }
 0x46c   :  { %8234 = vmatpush.bf16.msra.mxu0 %v12722_v2  ;;  %8248 = vmatpush.bf16.msra.mxu1 %v12786_v25  ;;  %v14444_v2 = vld [vmem:[#allocation13 + $0x11c4] sm:$0xf0]  ;;  %v12695_v25 = vld [vmem:[#allocation13 + $0x1518] sm:$0xf0] }
 0x46d   :  { %6960 = vmatpush.bf16.msra.mxu3 %v12286_v58  ;;  %v12270_v18 = vor.u32 %v14444_v2, %v12269_v20  ;;  %v12698_v22 = vor.u32 %v14549_v26, %v12695_v25  ;;  %v14442_v58 = vld [vmem:[#allocation13 + $0x11b4] sm:$0xf0]  ;;  %v7182_v20 = vunpack.c.l.b16 %v1704_v32  ;;  %v12754_v2 = vor.u32 %v14563_v7, %v12751_v33  ;;  %v14621_v7 = vld [vmem:[#allocation13 + $0x1754] sm:$0xf]  ;;  %v12983_v33 = vld [vmem:[#allocation13 + $0x1758] sm:$0xf0] }
 0x46e   :  { %6951 = vmatpush.bf16.msra.mxu2 %v12182_v9  ;;  %v12262_v62 = vor.u32 %v14442_v58, %v12261_v6  ;;  %v14641_v9 = vld [vmem:[#allocation13 + $0x17f4] sm:$0xf]  ;;  %v13055_v6 = vld [vmem:[#allocation13 + $0x17e8] sm:$0xf0]  ;;  %v12245_v58 = vld [vmem:[#allocation13 + $0x1190] sm:$0xf]  ;;  %v12994_v32 = vor.u32 %v14623_v1, %v12991_v42 }
 0x46f   :  { %v16602_v26 = vld [vmem:[#allocation71_spill] sm:$0xff]  ;;  %v12246_v21 = vor.u32 %v14438_v63, %v12245_v58  ;;  %v16603_v1 = vld [vmem:[#allocation52_spill] sm:$0xff]  ;;  %v14512_v63 = vld [vmem:[#allocation13 + $0x13e4] sm:$0xf0] }
 0x470   :  { %8235 = vmatpush.bf16.msra.mxu0 %v12714_v52  ;;  %8249 = vmatpush.bf16.msra.mxu1 %v12778_v45  ;;  %v1703_v52 = vpack.c.bf16 %v1685_v59, %v1685_v59  ;;  %v12687_v45 = vld [vmem:[#allocation13 + $0x1508] sm:$0xf0]  ;;  %v14440_v59 = vld [vmem:[#allocation13 + $0x11a4] sm:$0xf0]  ;;  %v1612_v42 = vadd.f32 %v16073_v43, %v16603_v1  ;;  %v12541_v58 = vld [vmem:[#allocation13 + $0x13e0] sm:$0xf] }
 0x471   :  { %6961 = vmatpush.bf16.msra.mxu3 %v12278_v37  ;;  %v13063_v37 = vld [vmem:[#allocation13 + $0x17f8] sm:$0xf0]  ;;  %v12690_v54 = vor.u32 %v14547_v55, %v12687_v45  ;;  %v14492_v55 = vld [vmem:[#allocation13 + $0x1344] sm:$0xf0] }
 0x472   :  { %6952 = vmatpush.bf16.msra.mxu2 %v12174_v29  ;;  %v7181_v27 = vunpack.c.l.b16 %v1703_v52  ;;  %v13066_v25 = vor.u32 %v14641_v9, %v13063_v37  ;;  %v12237_v9 = vld [vmem:[#allocation13 + $0x1180] sm:$0xf]  ;;  %v14436_v37 = vld [vmem:[#allocation13 + $0x1184] sm:$0xf0] }
 0x474   :  { %8236 = vmatpush.bf16.msra.mxu0 %v12706_v15  ;;  %8250 = vmatpush.bf16.msra.mxu1 %v12770_v23  ;;  %v12253_v15 = vld [vmem:[#allocation13 + $0x11a0] sm:$0xf]  ;;  %v12469_v23 = vld [vmem:[#allocation13 + $0x1350] sm:$0xf]  ;;  %v16143_v3 = vpack.c.b16 %v7182_v20, %v7181_v27  ;;  %v14514_v20 = vld [vmem:[#allocation13 + $0x13f4] sm:$0xf0] }
 0x475   :  { %6962 = vmatpush.bf16.msra.mxu3 %v12270_v18  ;;  %6953 = vmatmul.bf16.vlgmr.msra.gmra.mxu2 %v16602_v26  ;;  %v12254_v29 = vor.u32 %v14440_v59, %v12253_v15  ;;  %v14639_v18 = vld [vmem:[#allocation13 + $0x17e4] sm:$0xf]  ;;  %v12986_v15 = vor.u32 %v14621_v7, %v12983_v33  ;;  %v14490_v59 = vld [vmem:[#allocation13 + $0x1334] sm:$0xf0]  ;;  %v12549_v27 = vld [vmem:[#allocation13 + $0x13f0] sm:$0xf] }
 0x476   :  { %7001 = vmatpush.bf16.msrb.mxu2 %v12486_v19  ;;  %v4950_v19 = vpop.f32.mrf.mxu3  ;;  %v13058_v45 = vor.u32 %v14639_v18, %v13055_v6  ;;  %v12550_v18 = vor.u32 %v14514_v20, %v12549_v27  ;;  %v12445_v6 = vld [vmem:[#allocation13 + $0x1320] sm:$0xf]  ;;  %v13031_v7 = vld [vmem:[#allocation13 + $0x17b8] sm:$0xf0]  ;;  %v16604_v33 = vld [vmem:[#allocation53_spill] sm:$0xff] }
 0x477   :  { %v16146_v52 = vadd.f32 %v4950_v19, %v16136_v38  ;;  %v14615_v20 = vld [vmem:[#allocation13 + $0x1724] sm:$0xf] }
 0x478   :  { %8237 = vmatpush.bf16.msra.mxu0 %v12698_v22  ;;  %8251 = vmatpush.bf16.msra.mxu1 %v12762_v34  ;;  %v12470_v22 = vor.u32 %v14494_v14, %v12469_v23  ;;  %v12461_v34 = vld [vmem:[#allocation13 + $0x1340] sm:$0xf]  ;;  %v12975_v23 = vld [vmem:[#allocation13 + $0x1748] sm:$0xf0]  ;;  %v12238_v14 = vor.u32 %v14436_v37, %v12237_v9  ;;  %v14486_v37 = vld [vmem:[#allocation13 + $0x1314] sm:$0xf0] }
 0x479   :  { %6963 = vmatpush.bf16.msra.mxu3 %v12262_v62  ;;  %v13047_v62 = vld [vmem:[#allocation13 + $0x17d8] sm:$0xf0]  ;;  %v12462_v38 = vor.u32 %v14492_v55, %v12461_v34  ;;  %v14617_v34 = vld [vmem:[#allocation13 + $0x1734] sm:$0xf] }
 0x47a   :  { %7002 = vmatpush.bf16.msrb.mxu2 %v12478_v5  ;;  %v12453_v5 = vld [vmem:[#allocation13 + $0x1330] sm:$0xf]  ;;  %v12967_v55 = vld [vmem:[#allocation13 + $0x1738] sm:$0xf0] }
 0x47b   :  { %v12970_v9 = vor.u32 %v14617_v34, %v12967_v55  ;;  %v14629_v34 = vld [vmem:[#allocation13 + $0x1794] sm:$0xf]  ;;  %v13015_v55 = vld [vmem:[#allocation13 + $0x1798] sm:$0xf0] }
 0x47c   :  { %8238 = vmatpush.bf16.msra.mxu0 %v12690_v54  ;;  %8252 = vmatpush.bf16.msra.mxu1 %v12754_v2  ;;  %v16150_v54 = vpop.f32.mrf.mxu2  ;;  %v13050_v2 = vor.u32 %v14637_v44, %v13047_v62  ;;  %v12542_v44 = vor.u32 %v14512_v63, %v12541_v58  ;;  %v12437_v62 = vld [vmem:[#allocation13 + $0x1310] sm:$0xf]  ;;  %v12167_v58 = vld [vmem:[#allocation13 + $0x10f8] sm:$0xf0]  ;;  %v14613_v63 = vld [vmem:[#allocation13 + $0x1714] sm:$0xf] }
 0x47d   :  { %6964 = vmatpush.bf16.msra.mxu3 %v12254_v29  ;;  %v12454_v29 = vor.u32 %v14490_v59, %v12453_v5  ;;  %v12533_v5 = vld [vmem:[#allocation13 + $0x13d0] sm:$0xf]  ;;  %v12438_v1 = vor.u32 %v14486_v37, %v12437_v62  ;;  %v14506_v62 = vld [vmem:[#allocation13 + $0x13b4] sm:$0xf0] }
 0x47e   :  { %7003 = vmatpush.bf16.msrb.mxu2 %v12470_v22  ;;  %v14488_v22 = vld [vmem:[#allocation13 + $0x1324] sm:$0xf0] }
 0x47f   :  { %8239 = vmatmul.bf16.vlgmr.msra.gmra.mxu0 %v16143_v3  ;;  %8253 = vmatmul.bf16.vlgmr.msra.gmra.mxu1 %v16097_v24  ;;  %v13039_v24 = vld [vmem:[#allocation13 + $0x17c8] sm:$0xf0]  ;;  %v12446_v43 = vor.u32 %v14488_v22, %v12445_v6  ;;  %v12525_v6 = vld [vmem:[#allocation13 + $0x13c0] sm:$0xf]  ;;  %v14417_v22 = vld [vmem:[#allocation13 + $0x10f4] sm:$0xf] }
 0x480   :  { %8287 = vmatpush.bf16.msrb.mxu0 %v13002_v4  ;;  %8301 = vmatpush.bf16.msrb.mxu1 %v13066_v25  ;;  %v14619_v4 = vld [vmem:[#allocation13 + $0x1744] sm:$0xf] }
 0x481   :  { %6965 = vmatpush.bf16.msra.mxu3 %v12246_v21  ;;  %v14635_v25 = vld [vmem:[#allocation13 + $0x17c4] sm:$0xf]  ;;  %v12978_v19 = vor.u32 %v14619_v4, %v12975_v23  ;;  %v1666_v21 = vadd.f32 %v16604_v33, %v1612_v42  ;;  %v13023_v23 = vld [vmem:[#allocation13 + $0x17a8] sm:$0xf0]  ;;  %v12517_v33 = vld [vmem:[#allocation13 + $0x13b0] sm:$0xf] }
 0x482   :  { %7004 = vmatpush.bf16.msrb.mxu2 %v12462_v38  ;;  %v14631_v4 = vld [vmem:[#allocation13 + $0x17a4] sm:$0xf] }
 0x484   :  { %8288 = vmatpush.bf16.msrb.mxu0 %v12994_v32  ;;  %8302 = vmatpush.bf16.msrb.mxu1 %v13058_v45  ;;  %v13042_v32 = vor.u32 %v14635_v25, %v13039_v24  ;;  %v14633_v45 = vld [vmem:[#allocation13 + $0x17b4] sm:$0xf]  ;;  %v5808_v38 = vpop.f32.mrf.mxu2  ;;  %v1694_v24 = vmax.f32 %v1666_v21, 0.0  ;;  %v16160_v21 = vpop.f32.mrf.mxu3 }
 0x485   :  { %6966 = vmatpush.bf16.msra.mxu3 %v12238_v14  ;;  %v16156_v59 = vadd.f32 %v5808_v38, %v15971_v40  ;;  %v13034_v27 = vor.u32 %v14633_v45, %v13031_v7  ;;  %v16605_v14 = vld [vmem:[#allocation51_spill] sm:$0xff]  ;;  %v14415_v38 = vld [vmem:[#allocation13 + $0x10e4] sm:$0xf] }
 0x486   :  { %7005 = vmatpush.bf16.msrb.mxu2 %v12454_v29  ;;  %v1693_v25 = vmax.f32 %v16605_v14, 0.0  ;;  %v12429_v29 = vld [vmem:[#allocation13 + $0x1300] sm:$0xf]  ;;  %v14690_v14 = vld [vmem:[#allocation13 + $0x1974] sm:$0xf0] }
 0x488   :  { %8289 = vmatpush.bf16.msrb.mxu0 %v12986_v15  ;;  %8303 = vmatpush.bf16.msrb.mxu1 %v13050_v2  ;;  %v14510_v15 = vld [vmem:[#allocation13 + $0x13d4] sm:$0xf0]  ;;  %v12959_v2 = vld [vmem:[#allocation13 + $0x1728] sm:$0xf0]  ;;  %v1711_v37 = vpack.c.bf16 %v1693_v25, %v1693_v25  ;;  %v14504_v25 = vld [vmem:[#allocation13 + $0x13a4] sm:$0xf0] }
 0x489   :  { %7015 = vmatpush.bf16.msrb.mxu3 %v12550_v18  ;;  %v12534_v42 = vor.u32 %v14510_v15, %v12533_v5  ;;  %v14484_v18 = vld [vmem:[#allocation13 + $0x1304] sm:$0xf0]  ;;  %v12962_v40 = vor.u32 %v14615_v20, %v12959_v2  ;;  %v1712_v5 = vpack.c.bf16 %v1694_v24, %v1694_v24  ;;  %v13018_v15 = vor.u32 %v14629_v34, %v13015_v55  ;;  %v12943_v20 = vld [vmem:[#allocation13 + $0x1708] sm:$0xf0]  ;;  %v14627_v2 = vld [vmem:[#allocation13 + $0x1784] sm:$0xf] }
 0x48a   :  { %6967 = vmatmul.bf16.vlgmr.msra.gmra.mxu3 %v16576_v12  ;;  %7006 = vmatpush.bf16.msrb.mxu2 %v12446_v43  ;;  %v13026_v12 = vor.u32 %v14631_v4, %v13023_v23  ;;  %v12430_v45 = vor.u32 %v14484_v18, %v12429_v29  ;;  %v12170_v43 = vor.u32 %v14417_v22, %v12167_v58  ;;  %v13007_v4 = vld [vmem:[#allocation13 + $0x1788] sm:$0xf0]  ;;  %v13253_v23 = vld [vmem:[#allocation13 + $0x1970] sm:$0xf]  ;;  %v14706_v29 = vld [vmem:[#allocation13 + $0x19f4] sm:$0xf0]  ;;  %v7205_v24 = vunpack.c.l.b16 %v1711_v37 }
 0x48b   :  { %v13010_v22 = vor.u32 %v14627_v2, %v13007_v4  ;;  %v14413_v58 = vld [vmem:[#allocation13 + $0x10d4] sm:$0xf]  ;;  %v13245_v34 = vld [vmem:[#allocation13 + $0x1960] sm:$0xf]  ;;  %v14688_v55 = vld [vmem:[#allocation13 + $0x1964] sm:$0xf0] }
 0x48c   :  { %8290 = vmatpush.bf16.msrb.mxu0 %v12978_v19  ;;  %8304 = vmatpush.bf16.msrb.mxu1 %v13042_v32  ;;  %v14508_v19 = vld [vmem:[#allocation13 + $0x13c4] sm:$0xf0]  ;;  %v12951_v32 = vld [vmem:[#allocation13 + $0x1718] sm:$0xf0]  ;;  %v13237_v2 = vld [vmem:[#allocation13 + $0x1950] sm:$0xf] }
 0x48d   :  { %7016 = vmatpush.bf16.msrb.mxu3 %v12542_v44  ;;  %v12526_v7 = vor.u32 %v14508_v19, %v12525_v6  ;;  %v12954_v44 = vor.u32 %v14613_v63, %v12951_v32  ;;  %v12509_v6 = vld [vmem:[#allocation13 + $0x13a0] sm:$0xf]  ;;  %v7206_v19 = vunpack.c.l.b16 %v1712_v5  ;;  %v12151_v63 = vld [vmem:[#allocation13 + $0x10d8] sm:$0xf0]  ;;  %v13246_v5 = vor.u32 %v14688_v55, %v13245_v34  ;;  %v14686_v4 = vld [vmem:[#allocation13 + $0x1954] sm:$0xf0] }
 0x48e   :  { %7007 = vmatpush.bf16.msrb.mxu2 %v12438_v1  ;;  %v12518_v1 = vor.u32 %v14506_v62, %v12517_v33  ;;  %v14704_v33 = vld [vmem:[#allocation13 + $0x19e4] sm:$0xf0]  ;;  %v12501_v62 = vld [vmem:[#allocation13 + $0x1390] sm:$0xf] }
 0x490   :  { %8291 = vmatpush.bf16.msrb.mxu0 %v12970_v9  ;;  %8305 = vmatpush.bf16.msrb.mxu1 %v13034_v27  ;;  %v12159_v9 = vld [vmem:[#allocation13 + $0x10e8] sm:$0xf0]  ;;  %v14611_v27 = vld [vmem:[#allocation13 + $0x1704] sm:$0xf] }
 0x491   :  { %7017 = vmatpush.bf16.msrb.mxu3 %v12534_v42  ;;  %v13317_v42 = vld [vmem:[#allocation13 + $0x19f0] sm:$0xf]  ;;  %v12162_v18 = vor.u32 %v14415_v38, %v12159_v9  ;;  %v14502_v38 = vld [vmem:[#allocation13 + $0x1394] sm:$0xf0]  ;;  %v16163_v9 = vpack.c.b16 %v7206_v19, %v7205_v24  ;;  %v14433_v24 = vld [vmem:[#allocation13 + $0x1174] sm:$0xf] }
 0x492   :  { %7008 = vmatpush.bf16.msrb.mxu2 %v12430_v45  ;;  %v13318_v32 = vor.u32 %v14706_v29, %v13317_v42  ;;  %v12510_v45 = vor.u32 %v14504_v25, %v12509_v6  ;;  %v14500_v29 = vld [vmem:[#allocation13 + $0x1384] sm:$0xf0]  ;;  %v13238_v6 = vor.u32 %v14686_v4, %v13237_v2  ;;  %v12135_v25 = vld [vmem:[#allocation13 + $0x10b8] sm:$0xf0]  ;;  %v14698_v2 = vld [vmem:[#allocation13 + $0x19b4] sm:$0xf0] }
 0x493   :  { %v12231_v19 = vld [vmem:[#allocation13 + $0x1178] sm:$0xf0] }
 0x494   :  { %8292 = vmatpush.bf16.msrb.mxu0 %v12962_v40  ;;  %8306 = vmatpush.bf16.msrb.mxu1 %v13026_v12  ;;  %v12946_v40 = vor.u32 %v14611_v27, %v12943_v20  ;;  %v13254_v12 = vor.u32 %v14690_v14, %v13253_v23  ;;  %v12143_v27 = vld [vmem:[#allocation13 + $0x10c8] sm:$0xf0]  ;;  %v12502_v23 = vor.u32 %v14502_v38, %v12501_v62  ;;  %v13301_v14 = vld [vmem:[#allocation13 + $0x19d0] sm:$0xf]  ;;  %v14431_v38 = vld [vmem:[#allocation13 + $0x1164] sm:$0xf] }
 0x495   :  { %7018 = vmatpush.bf16.msrb.mxu3 %v12526_v7  ;;  %7009 = vmatmul.bf16.vlgmr.msrb.gmra.mxu2 %v15719_v56  ;;  %v13309_v7 = vld [vmem:[#allocation13 + $0x19e0] sm:$0xf]  ;;  %v12127_v62 = vld [vmem:[#allocation13 + $0x10a8] sm:$0xf0] }
 0x496   :  { %7057 = vmatpush.bf16.msra.mxu2 %v12170_v43  ;;  %v5822_v43 = vpop.f32.mrf.mxu3  ;;  %v13310_v20 = vor.u32 %v14704_v33, %v13309_v7  ;;  %v14407_v7 = vld [vmem:[#allocation13 + $0x10a4] sm:$0xf]  ;;  %v16171_v33 = vld [vmem:[#allocation12 + $0x5] ss:$0 sm:$0xff] }
 0x497   :  { %v5823_v37 = vadd.f32 %v5822_v43, %v16156_v59  ;;  %v12493_v59 = vld [vmem:[#allocation13 + $0x1380] sm:$0xf]  ;;  %v1861_v43 = vadd.f32 %v16171_v33, %v15733_v36 }
 0x498   :  { %8293 = vmatpush.bf16.msrb.mxu0 %v12954_v44  ;;  %8307 = vmatpush.bf16.msrb.mxu1 %v13018_v15  ;;  %v12154_v44 = vor.u32 %v14413_v58, %v12151_v63  ;;  %v14411_v15 = vld [vmem:[#allocation13 + $0x10c4] sm:$0xf]  ;;  %v14684_v58 = vld [vmem:[#allocation13 + $0x1944] sm:$0xf0]  ;;  %v12494_v63 = vor.u32 %v14500_v29, %v12493_v59  ;;  %v12119_v29 = vld [vmem:[#allocation13 + $0x1098] sm:$0xf0] }
 0x499   :  { %7019 = vmatpush.bf16.msrb.mxu3 %v12518_v1  ;;  %v14702_v1 = vld [vmem:[#allocation13 + $0x19d4] sm:$0xf0]  ;;  %v12146_v42 = vor.u32 %v14411_v15, %v12143_v27  ;;  %v5837_v34 = vadd.f32 %v16001_v48, %v5823_v37  ;;  %v13221_v27 = vld [vmem:[#allocation13 + $0x1930] sm:$0xf]  ;;  %v1910_v48 = vadd.f32 %v15746_v53, %v1861_v43  ;;  %v12423_v43 = vld [vmem:[#allocation13 + $0x12f8] sm:$0xf0] }
 0x49a   :  { %7058 = vmatpush.bf16.msra.mxu2 %v12162_v18  ;;  %v14409_v18 = vld [vmem:[#allocation13 + $0x10b4] sm:$0xf]  ;;  %v13285_v37 = vld [vmem:[#allocation13 + $0x19b0] sm:$0xf] }
 0x49b   :  { %v12138_v55 = vor.u32 %v14409_v18, %v12135_v25  ;;  %v5851_v4 = vadd.f32 %v16003_v17, %v5837_v34  ;;  %v14429_v18 = vld [vmem:[#allocation13 + $0x1154] sm:$0xf]  ;;  %v13286_v25 = vor.u32 %v14698_v2, %v13285_v37  ;;  %v14680_v17 = vld [vmem:[#allocation13 + $0x1924] sm:$0xf0] }
 0x49c   :  { %8294 = vmatpush.bf16.msrb.mxu0 %v12946_v40  ;;  %8308 = vmatpush.bf16.msrb.mxu1 %v13010_v22  ;;  %v16168_v40 = vpop.f32.mrf.mxu2  ;;  %v13302_v22 = vor.u32 %v14702_v1, %v13301_v14  ;;  %v14405_v14 = vld [vmem:[#allocation13 + $0x1094] sm:$0xf]  ;;  %v1866_v1 = vadd.f32 %v16171_v33, %v15744_v0 }
 0x49d   :  { %7020 = vmatpush.bf16.msrb.mxu3 %v12510_v45  ;;  %v12234_v45 = vor.u32 %v14433_v24, %v12231_v19  ;;  %v13213_v24 = vld [vmem:[#allocation13 + $0x1920] sm:$0xf]  ;;  %v12122_v0 = vor.u32 %v14405_v14, %v12119_v29  ;;  %v14425_v2 = vld [vmem:[#allocation13 + $0x1134] sm:$0xf]  ;;  %v12199_v14 = vld [vmem:[#allocation13 + $0x1138] sm:$0xf0] }
 0x49e   :  { %7059 = vmatpush.bf16.msra.mxu2 %v12154_v44  ;;  %v1915_v19 = vadd.f32 %v15760_v28, %v1866_v1  ;;  %v13214_v34 = vor.u32 %v14680_v17, %v13213_v24  ;;  %v14479_v1 = vld [vmem:[#allocation13 + $0x12e4] sm:$0xf]  ;;  %v14692_v24 = vld [vmem:[#allocation13 + $0x1984] sm:$0xf0]  ;;  %v13509_v17 = vld [vmem:[#allocation13 + $0x1b70] sm:$0xf] }
 0x49f   :  { %8295 = vmatmul.bf16.vlgmr.msrb.gmra.mxu0 %v16163_v9  ;;  %8309 = vmatmul.bf16.vlgmr.msrb.gmra.mxu1 %v16122_v49  ;;  %v14700_v49 = vld [vmem:[#allocation13 + $0x19c4] sm:$0xf0] }
 0x4a0   :  { %9163 = vmatpush.bf16.msra.mxu0 %v13254_v12  ;;  %9177 = vmatpush.bf16.msra.mxu1 %v13318_v32  ;;  %v13229_v12 = vld [vmem:[#allocation13 + $0x1940] sm:$0xf]  ;;  %v1950_v28 = vmax.f32 %v1915_v19, 0.0  ;;  %v14754_v19 = vld [vmem:[#allocation13 + $0x1b74] sm:$0xf0] }
 0x4a1   :  { %7021 = vmatpush.bf16.msrb.mxu3 %v12502_v23  ;;  %v13293_v32 = vld [vmem:[#allocation13 + $0x19c0] sm:$0xf]  ;;  %v13230_v44 = vor.u32 %v14684_v58, %v13229_v12  ;;  %v12130_v23 = vor.u32 %v14407_v7, %v12127_v62  ;;  %v14696_v12 = vld [vmem:[#allocation13 + $0x19a4] sm:$0xf0]  ;;  %v1948_v58 = vmax.f32 %v1910_v48, 0.0 }
 0x4a2   :  { %7060 = vmatpush.bf16.msra.mxu2 %v12146_v42  ;;  %v13294_v15 = vor.u32 %v14700_v49, %v13293_v32  ;;  %v14403_v32 = vld [vmem:[#allocation13 + $0x1084] sm:$0xf]  ;;  %v12111_v49 = vld [vmem:[#allocation13 + $0x1088] sm:$0xf0]  ;;  %v14481_v7 = vld [vmem:[#allocation13 + $0x12f4] sm:$0xf] }
 0x4a3   :  { %v14678_v62 = vld [vmem:[#allocation13 + $0x1914] sm:$0xf0]  ;;  %v12114_v48 = vor.u32 %v14403_v32, %v12111_v49 }
 0x4a4   :  { %9164 = vmatpush.bf16.msra.mxu0 %v13246_v5  ;;  %9178 = vmatpush.bf16.msra.mxu1 %v13310_v20  ;;  %v12223_v5 = vld [vmem:[#allocation13 + $0x1168] sm:$0xf0]  ;;  %v14682_v20 = vld [vmem:[#allocation13 + $0x1934] sm:$0xf0]  ;;  %v5864_v42 = vpop.f32.mrf.mxu2 }
 0x4a5   :  { %7022 = vmatpush.bf16.msrb.mxu3 %v12494_v63  ;;  %v12226_v36 = vor.u32 %v14431_v38, %v12223_v5  ;;  %v13222_v59 = vor.u32 %v14682_v20, %v13221_v27  ;;  %v16179_v53 = vadd.f32 %v5864_v42, %v5851_v4  ;;  %v13269_v38 = vld [vmem:[#allocation13 + $0x1990] sm:$0xf]  ;;  %v14694_v5 = vld [vmem:[#allocation13 + $0x1994] sm:$0xf0]  ;;  %v16185_v4 = vpop.f32.mrf.mxu3  ;;  %v12415_v42 = vld [vmem:[#allocation13 + $0x12e8] sm:$0xf0] }
 0x4a6   :  { %7061 = vmatpush.bf16.msra.mxu2 %v12138_v55  ;;  %v14427_v55 = vld [vmem:[#allocation13 + $0x1144] sm:$0xf]  ;;  %v16606_v27 = vld [vmem:[#allocation79_spill] sm:$0xff]  ;;  %v13270_v29 = vor.u32 %v14694_v5, %v13269_v38  ;;  %v12418_v49 = vor.u32 %v14479_v1, %v12415_v42  ;;  %v13501_v38 = vld [vmem:[#allocation13 + $0x1b60] sm:$0xf] }
 0x4a7   :  { %v1949_v20 = vmax.f32 %v16606_v27, 0.0  ;;  %v14752_v5 = vld [vmem:[#allocation13 + $0x1b64] sm:$0xf0] }
 0x4a8   :  { %9165 = vmatpush.bf16.msra.mxu0 %v13238_v6  ;;  %9179 = vmatpush.bf16.msra.mxu1 %v13302_v22  ;;  %v12215_v6 = vld [vmem:[#allocation13 + $0x1158] sm:$0xf0]  ;;  %v13277_v22 = vld [vmem:[#allocation13 + $0x19a0] sm:$0xf] }
 0x4a9   :  { %7071 = vmatpush.bf16.msra.mxu3 %v12234_v45  ;;  %v12218_v63 = vor.u32 %v14429_v18, %v12215_v6  ;;  %v12207_v45 = vld [vmem:[#allocation13 + $0x1148] sm:$0xf0]  ;;  %v13197_v18 = vld [vmem:[#allocation13 + $0x1900] sm:$0xf]  ;;  %v1965_v32 = vpack.c.bf16 %v1949_v20, %v1949_v20 }
 0x4aa   :  { %7023 = vmatmul.bf16.vlgmr.msrb.gmra.mxu3 %v15725_v46  ;;  %7062 = vmatpush.bf16.msra.mxu2 %v12130_v23  ;;  %v13278_v46 = vor.u32 %v14696_v12, %v13277_v22  ;;  %v12210_v37 = vor.u32 %v14427_v55, %v12207_v45  ;;  %v12426_v23 = vor.u32 %v14481_v7, %v12423_v43  ;;  %v13261_v6 = vld [vmem:[#allocation13 + $0x1980] sm:$0xf]  ;;  %v12191_v55 = vld [vmem:[#allocation13 + $0x1128] sm:$0xf0]  ;;  %v14477_v43 = vld [vmem:[#allocation13 + $0x12d4] sm:$0xf] }
 0x4ab   :  { %v12202_v12 = vor.u32 %v14425_v2, %v12199_v14  ;;  %v13262_v7 = vor.u32 %v14692_v24, %v13261_v6  ;;  %v13565_v20 = vld [vmem:[#allocation13 + $0x1be0] sm:$0xf]  ;;  %v12183_v14 = vld [vmem:[#allocation13 + $0x1118] sm:$0xf0]  ;;  %v13493_v6 = vld [vmem:[#allocation13 + $0x1b50] sm:$0xf] }
 0x4ac   :  { %9166 = vmatpush.bf16.msra.mxu0 %v13230_v44  ;;  %9180 = vmatpush.bf16.msra.mxu1 %v13294_v15  ;;  %v13205_v44 = vld [vmem:[#allocation13 + $0x1910] sm:$0xf]  ;;  %v1947_v15 = vmax.f32 %v15742_v8, 0.0  ;;  %v14676_v8 = vld [vmem:[#allocation13 + $0x1904] sm:$0xf0] }
 0x4ad   :  { %7072 = vmatpush.bf16.msra.mxu3 %v12226_v36  ;;  %v13206_v36 = vor.u32 %v14678_v62, %v13205_v44  ;;  %v12407_v44 = vld [vmem:[#allocation13 + $0x12d8] sm:$0xf0]  ;;  %v5878_v2 = vpop.f32.mrf.mxu3 }
 0x4ae   :  { %7063 = vmatpush.bf16.msra.mxu2 %v12122_v0  ;;  %v1963_v22 = vpack.c.bf16 %v1947_v15, %v1947_v15  ;;  %v13573_v0 = vld [vmem:[#allocation13 + $0x1bf0] sm:$0xf]  ;;  %v5879_v42 = vadd.f32 %v5878_v2, %v16179_v53  ;;  %v14766_v53 = vld [vmem:[#allocation13 + $0x1bd4] sm:$0xf0] }
 0x4af   :  { %v13477_v2 = vld [vmem:[#allocation13 + $0x1b30] sm:$0xf] }
 0x4b0   :  { %9167 = vmatpush.bf16.msra.mxu0 %v13222_v59  ;;  %9181 = vmatpush.bf16.msra.mxu1 %v13286_v25  ;;  %v1964_v59 = vpack.c.bf16 %v1948_v58, %v1948_v58  ;;  %v1966_v25 = vpack.c.bf16 %v1950_v28, %v1950_v28  ;;  %v13198_v58 = vor.u32 %v14676_v8, %v13197_v18  ;;  %v8349_v15 = vunpack.c.l.b16 %v1963_v22 }
 0x4b1   :  { %7073 = vmatpush.bf16.msra.mxu3 %v12218_v63  ;;  %v14770_v63 = vld [vmem:[#allocation13 + $0x1bf4] sm:$0xf0]  ;;  %v16194_v24 = vadd.f32 %v5879_v42, %v16063_v13  ;;  %v14497_v13 = vld [vmem:[#allocation13 + $0x1374] sm:$0xf] }
 0x4b2   :  { %7064 = vmatpush.bf16.msra.mxu2 %v12114_v48  ;;  %v8350_v45 = vunpack.c.l.b16 %v1964_v59  ;;  %v8356_v62 = vunpack.c.l.b16 %v1966_v25  ;;  %v13574_v28 = vor.u32 %v14770_v63, %v13573_v0  ;;  %v14768_v48 = vld [vmem:[#allocation13 + $0x1be4] sm:$0xf0]  ;;  %v14475_v59 = vld [vmem:[#allocation13 + $0x12c4] sm:$0xf]  ;;  %v14750_v25 = vld [vmem:[#allocation13 + $0x1b54] sm:$0xf0] }
 0x4b3   :  { %v13566_v8 = vor.u32 %v14768_v48, %v13565_v20  ;;  %v12175_v0 = vld [vmem:[#allocation13 + $0x1108] sm:$0xf0]  ;;  %v14473_v63 = vld [vmem:[#allocation13 + $0x12b4] sm:$0xf]  ;;  %v1881_v48 = vadd.f32 %v16171_v33, %v15791_v11 }
 0x4b4   :  { %9168 = vmatpush.bf16.msra.mxu0 %v13214_v34  ;;  %9182 = vmatpush.bf16.msra.mxu1 %v13278_v46  ;;  %v14423_v34 = vld [vmem:[#allocation13 + $0x1124] sm:$0xf]  ;;  %v13510_v46 = vor.u32 %v14754_v19, %v13509_v17  ;;  %v16188_v1 = vpack.c.b16 %v8350_v45, %v8349_v15  ;;  %v13557_v19 = vld [vmem:[#allocation13 + $0x1bd0] sm:$0xf]  ;;  %v13485_v45 = vld [vmem:[#allocation13 + $0x1b40] sm:$0xf] }
 0x4b5   :  { %7074 = vmatpush.bf16.msra.mxu3 %v12210_v37  ;;  %7065 = vmatmul.bf16.vlgmr.msra.gmra.mxu2 %v16558_v41  ;;  %v12194_v27 = vor.u32 %v14423_v34, %v12191_v55  ;;  %v8355_v37 = vunpack.c.l.b16 %v1965_v32  ;;  %v13502_v41 = vor.u32 %v14752_v5, %v13501_v38  ;;  %v16198_v32 = vpop.f32.mrf.mxu2  ;;  %v12487_v34 = vld [vmem:[#allocation13 + $0x1378] sm:$0xf0]  ;;  %v13558_v55 = vor.u32 %v14766_v53, %v13557_v19  ;;  %v14471_v38 = vld [vmem:[#allocation13 + $0x12a4] sm:$0xf]  ;;  %v12383_v15 = vld [vmem:[#allocation13 + $0x12a8] sm:$0xf0] }
 0x4b6   :  { %7113 = vmatpush.bf16.msrb.mxu2 %v12426_v23  ;;  %v12410_v23 = vor.u32 %v14477_v43, %v12407_v44  ;;  %v13549_v43 = vld [vmem:[#allocation13 + $0x1bc0] sm:$0xf]  ;;  %v14764_v44 = vld [vmem:[#allocation13 + $0x1bc4] sm:$0xf0]  ;;  %v12479_v20 = vld [vmem:[#allocation13 + $0x1368] sm:$0xf0]  ;;  %v1930_v42 = vadd.f32 %v15818_v30, %v1881_v48 }
 0x4b7   :  { %v16191_v18 = vpack.c.b16 %v8356_v62, %v8355_v37  ;;  %v13550_v37 = vor.u32 %v14764_v44, %v13549_v43  ;;  %v14493_v19 = vld [vmem:[#allocation13 + $0x1354] sm:$0xf]  ;;  %v12471_v53 = vld [vmem:[#allocation13 + $0x1358] sm:$0xf0]  ;;  %v12463_v43 = vld [vmem:[#allocation13 + $0x1348] sm:$0xf0] }
 0x4b8   :  { %9169 = vmatpush.bf16.msra.mxu0 %v13206_v36  ;;  %9183 = vmatpush.bf16.msra.mxu1 %v13270_v29  ;;  %v14421_v36 = vld [vmem:[#allocation13 + $0x1114] sm:$0xf]  ;;  %v12399_v29 = vld [vmem:[#allocation13 + $0x12c8] sm:$0xf0]  ;;  %v12677_v44 = vld [vmem:[#allocation13 + $0x14f0] sm:$0xf] }
 0x4b9   :  { %7075 = vmatpush.bf16.msra.mxu3 %v12202_v12  ;;  %v12186_v17 = vor.u32 %v14421_v36, %v12183_v14  ;;  %v12402_v22 = vor.u32 %v14475_v59, %v12399_v29  ;;  %v14419_v12 = vld [vmem:[#allocation13 + $0x1104] sm:$0xf]  ;;  %v13541_v36 = vld [vmem:[#allocation13 + $0x1bb0] sm:$0xf]  ;;  %v14762_v14 = vld [vmem:[#allocation13 + $0x1bb4] sm:$0xf0] }
 0x4ba   :  { %7114 = vmatpush.bf16.msrb.mxu2 %v12418_v49  ;;  %v13494_v49 = vor.u32 %v14750_v25, %v13493_v6  ;;  %v14469_v29 = vld [vmem:[#allocation13 + $0x1294] sm:$0xf]  ;;  %v13542_v30 = vor.u32 %v14762_v14, %v13541_v36 }
 0x4bb   :  { %v14489_v14 = vld [vmem:[#allocation13 + $0x1334] sm:$0xf] }
 0x4bc   :  { %9170 = vmatpush.bf16.msra.mxu0 %v13198_v58  ;;  %9184 = vmatpush.bf16.msra.mxu1 %v13262_v7  ;;  %v12391_v58 = vld [vmem:[#allocation13 + $0x12b8] sm:$0xf0]  ;;  %v14748_v7 = vld [vmem:[#allocation13 + $0x1b44] sm:$0xf0] }
 0x4bd   :  { %7076 = vmatpush.bf16.msra.mxu3 %v12194_v27  ;;  %v12394_v62 = vor.u32 %v14473_v63, %v12391_v58  ;;  %v13486_v5 = vor.u32 %v14748_v7, %v13485_v45  ;;  %v14495_v27 = vld [vmem:[#allocation13 + $0x1364] sm:$0xf]  ;;  %v5920_v25 = vpop.f32.mrf.mxu2  ;;  %v16608_v63 = vld [vmem:[#allocation96_spill] sm:$0xff]  ;;  %v12367_v7 = vld [vmem:[#allocation13 + $0x1288] sm:$0xf0] }
 0x4be   :  { %7115 = vmatpush.bf16.msrb.mxu2 %v12410_v23  ;;  %v14746_v23 = vld [vmem:[#allocation13 + $0x1b34] sm:$0xf0]  ;;  %v12482_v59 = vor.u32 %v14495_v27, %v12479_v20  ;;  %v13533_v58 = vld [vmem:[#allocation13 + $0x1ba0] sm:$0xf]  ;;  %v14467_v45 = vld [vmem:[#allocation13 + $0x1284] sm:$0xf] }
 0x4bf   :  { %9171 = vmatmul.bf16.vlgmr.msra.gmra.mxu0 %v16188_v1  ;;  %9185 = vmatmul.bf16.vlgmr.msra.gmra.mxu1 %v16191_v18  ;;  %v13478_v11 = vor.u32 %v14746_v23, %v13477_v2  ;;  %v14758_v27 = vld [vmem:[#allocation13 + $0x1b94] sm:$0xf0]  ;;  %v16609_v20 = vld [vmem:[#allocation88_spill] sm:$0xff]  ;;  %v12370_v23 = vor.u32 %v14467_v45, %v12367_v7  ;;  %v14487_v7 = vld [vmem:[#allocation13 + $0x1324] sm:$0xf] }
 0x4c0   :  { %9219 = vmatpush.bf16.msrb.mxu0 %v13510_v46  ;;  %9233 = vmatpush.bf16.msrb.mxu1 %v13574_v28  ;;  %v12178_v46 = vor.u32 %v14419_v12, %v12175_v0  ;;  %v12490_v28 = vor.u32 %v14497_v13, %v12487_v34  ;;  %v13469_v12 = vld [vmem:[#allocation13 + $0x1b20] sm:$0xf]  ;;  %v14744_v0 = vld [vmem:[#allocation13 + $0x1b24] sm:$0xf0]  ;;  %v1955_v48 = vmax.f32 %v16609_v20, 0.0 }
 0x4c1   :  { %7077 = vmatpush.bf16.msra.mxu3 %v12186_v17  ;;  %v12375_v17 = vld [vmem:[#allocation13 + $0x1298] sm:$0xf0]  ;;  %v14760_v13 = vld [vmem:[#allocation13 + $0x1ba4] sm:$0xf0] }
 0x4c2   :  { %7116 = vmatpush.bf16.msrb.mxu2 %v12402_v22  ;;  %v16206_v22 = vadd.f32 %v5920_v25, %v16024_v47  ;;  %v12378_v34 = vor.u32 %v14469_v29, %v12375_v17  ;;  %v13470_v47 = vor.u32 %v14744_v0, %v13469_v12  ;;  %v12455_v29 = vld [vmem:[#allocation13 + $0x1338] sm:$0xf0]  ;;  %v13453_v17 = vld [vmem:[#allocation13 + $0x1b00] sm:$0xf]  ;;  %v14756_v12 = vld [vmem:[#allocation13 + $0x1b84] sm:$0xf0] }
 0x4c3   :  { %v14689_v0 = vld [vmem:[#allocation13 + $0x1974] sm:$0xf] }
 0x4c4   :  { %9220 = vmatpush.bf16.msrb.mxu0 %v13502_v41  ;;  %9234 = vmatpush.bf16.msrb.mxu1 %v13566_v8  ;;  %v12386_v41 = vor.u32 %v14471_v38, %v12383_v15  ;;  %v16607_v8 = vld [vmem:[#allocation91_spill] sm:$0xff]  ;;  %v13525_v15 = vld [vmem:[#allocation13 + $0x1b90] sm:$0xf] }
 0x4c5   :  { %7078 = vmatpush.bf16.msra.mxu3 %v12178_v46  ;;  %v1886_v6 = vadd.f32 %v16171_v33, %v16607_v8  ;;  %v1956_v33 = vmax.f32 %v1930_v42, 0.0  ;;  %v14491_v46 = vld [vmem:[#allocation13 + $0x1344] sm:$0xf]  ;;  %v14742_v38 = vld [vmem:[#allocation13 + $0x1b14] sm:$0xf0]  ;;  %v16212_v42 = vpop.f32.mrf.mxu3 }
 0x4c6   :  { %7117 = vmatpush.bf16.msrb.mxu2 %v12394_v62  ;;  %v14546_v62 = vld [vmem:[#allocation13 + $0x14f4] sm:$0xf0]  ;;  %v12466_v36 = vor.u32 %v14491_v46, %v12463_v43  ;;  %v12669_v8 = vld [vmem:[#allocation13 + $0x14e0] sm:$0xf] }
 0x4c7   :  { %v1972_v25 = vpack.c.bf16 %v1956_v33, %v1956_v33 }
 0x4c8   :  { %9221 = vmatpush.bf16.msrb.mxu0 %v13494_v49  ;;  %9235 = vmatpush.bf16.msrb.mxu1 %v13558_v55  ;;  %v1935_v49 = vadd.f32 %v16608_v63, %v1886_v6  ;;  %v12474_v55 = vor.u32 %v14493_v19, %v12471_v53  ;;  %v14544_v6 = vld [vmem:[#allocation13 + $0x14e4] sm:$0xf0]  ;;  %v13517_v53 = vld [vmem:[#allocation13 + $0x1b80] sm:$0xf]  ;;  %v13255_v63 = vld [vmem:[#allocation13 + $0x1978] sm:$0xf0] }
 0x4c9   :  { %7127 = vmatpush.bf16.msrb.mxu3 %v12490_v28  ;;  %v13461_v28 = vld [vmem:[#allocation13 + $0x1b10] sm:$0xf]  ;;  %v14740_v19 = vld [vmem:[#allocation13 + $0x1b04] sm:$0xf0]  ;;  %v12670_v45 = vor.u32 %v14544_v6, %v12669_v8  ;;  %v8374_v46 = vunpack.c.l.b16 %v1972_v25  ;;  %v13518_v43 = vor.u32 %v14756_v12, %v13517_v53  ;;  %v12653_v8 = vld [vmem:[#allocation13 + $0x14c0] sm:$0xf] }
 0x4ca   :  { %7079 = vmatmul.bf16.vlgmr.msra.gmra.mxu3 %v16602_v26  ;;  %7118 = vmatpush.bf16.msrb.mxu2 %v12386_v41  ;;  %v13534_v26 = vor.u32 %v14760_v13, %v13533_v58  ;;  %v12678_v41 = vor.u32 %v14546_v62, %v12677_v44  ;;  %v12458_v58 = vor.u32 %v14489_v14, %v12455_v29  ;;  %v14705_v13 = vld [vmem:[#allocation13 + $0x19f4] sm:$0xf]  ;;  %v14542_v62 = vld [vmem:[#allocation13 + $0x14d4] sm:$0xf0]  ;;  %v14540_v6 = vld [vmem:[#allocation13 + $0x14c4] sm:$0xf0] }
 0x4cb   :  { %v13454_v33 = vor.u32 %v14740_v19, %v13453_v17  ;;  %v13258_v44 = vor.u32 %v14689_v0, %v13255_v63  ;;  %v14485_v14 = vld [vmem:[#allocation13 + $0x1314] sm:$0xf]  ;;  %v13239_v19 = vld [vmem:[#allocation13 + $0x1958] sm:$0xf0] }
 0x4cc   :  { %9222 = vmatpush.bf16.msrb.mxu0 %v13486_v5  ;;  %9236 = vmatpush.bf16.msrb.mxu1 %v13550_v37  ;;  %v1958_v5 = vmax.f32 %v1935_v49, 0.0  ;;  %v16610_v37 = vld [vmem:[#allocation92_spill] sm:$0xff]  ;;  %v1971_v49 = vpack.c.bf16 %v1955_v48, %v1955_v48  ;;  %v14703_v48 = vld [vmem:[#allocation13 + $0x19e4] sm:$0xf]  ;;  %v14685_v17 = vld [vmem:[#allocation13 + $0x1954] sm:$0xf] }
 0x4cd   :  { %7128 = vmatpush.bf16.msrb.mxu3 %v12482_v59  ;;  %v1957_v2 = vmax.f32 %v16610_v37, 0.0  ;;  %v13462_v59 = vor.u32 %v14742_v38, %v13461_v28  ;;  %v13311_v37 = vld [vmem:[#allocation13 + $0x19e8] sm:$0xf0]  ;;  %v13303_v12 = vld [vmem:[#allocation13 + $0x19d8] sm:$0xf0] }
 0x4ce   :  { %7119 = vmatpush.bf16.msrb.mxu2 %v12378_v34  ;;  %v13319_v34 = vld [vmem:[#allocation13 + $0x19f8] sm:$0xf0] }
 0x4cf   :  { %v13322_v38 = vor.u32 %v14705_v13, %v13319_v34  ;;  %v16221_v0 = vld [vmem:[#allocation12 + $0x4] ss:$0 sm:$0xff]  ;;  %v12431_v13 = vld [vmem:[#allocation13 + $0x1308] sm:$0xf0]  ;;  %v12645_v34 = vld [vmem:[#allocation13 + $0x14b0] sm:$0xf] }
 0x4d0   :  { %9223 = vmatpush.bf16.msrb.mxu0 %v13478_v11  ;;  %9237 = vmatpush.bf16.msrb.mxu1 %v13542_v30  ;;  %v13526_v11 = vor.u32 %v14758_v27, %v13525_v15  ;;  %v1974_v30 = vpack.c.bf16 %v1958_v5, %v1958_v5  ;;  %v14687_v5 = vld [vmem:[#allocation13 + $0x1964] sm:$0xf]  ;;  %v13247_v15 = vld [vmem:[#allocation13 + $0x1968] sm:$0xf0]  ;;  %v8373_v27 = vunpack.c.l.b16 %v1971_v49  ;;  %v12654_v49 = vor.u32 %v14540_v6, %v12653_v8 }
 0x4d1   :  { %7129 = vmatpush.bf16.msrb.mxu3 %v12474_v55  ;;  %v1973_v55 = vpack.c.bf16 %v1957_v2, %v1957_v2  ;;  %v16613_v8 = vld [vmem:[#allocation30_spill] sm:$0xff] }
 0x4d2   :  { %7120 = vmatpush.bf16.msrb.mxu2 %v12370_v23  ;;  %v8380_v28 = vunpack.c.l.b16 %v1974_v30  ;;  %v5934_v23 = vpop.f32.mrf.mxu3  ;;  %v14701_v30 = vld [vmem:[#allocation13 + $0x19d4] sm:$0xf]  ;;  %v1683_v6 = vmax.f32 %v16613_v8, 0.0 }
 0x4d3   :  { %v8379_v2 = vunpack.c.l.b16 %v1973_v55  ;;  %v5935_v29 = vadd.f32 %v5934_v23, %v16206_v22  ;;  %v16611_v22 = vld [vmem:[#allocation31_spill] sm:$0xff]  ;;  %v16226_v55 = vpop.f32.mrf.mxu2  ;;  %v12733_v23 = vld [vmem:[#allocation13 + $0x1560] sm:$0xf] }
 0x4d4   :  { %9224 = vmatpush.bf16.msrb.mxu0 %v13470_v47  ;;  %9238 = vmatpush.bf16.msrb.mxu1 %v13534_v26  ;;  %v12447_v47 = vld [vmem:[#allocation13 + $0x1328] sm:$0xf0]  ;;  %v12661_v26 = vld [vmem:[#allocation13 + $0x14d0] sm:$0xf]  ;;  %v1587_v63 = vadd.f32 %v16221_v0, %v16611_v22 }
 0x4d5   :  { %7130 = vmatpush.bf16.msrb.mxu3 %v12466_v36  ;;  %7121 = vmatmul.bf16.vlgmr.msrb.gmra.mxu2 %v15711_v57  ;;  %v12450_v20 = vor.u32 %v14487_v7, %v12447_v47  ;;  %v12662_v36 = vor.u32 %v14542_v62, %v12661_v26  ;;  %v13250_v57 = vor.u32 %v14687_v5, %v13247_v15  ;;  %v12741_v7 = vld [vmem:[#allocation13 + $0x1570] sm:$0xf]  ;;  %v14562_v47 = vld [vmem:[#allocation13 + $0x1574] sm:$0xf0]  ;;  %v14699_v62 = vld [vmem:[#allocation13 + $0x19c4] sm:$0xf] }
 0x4d6   :  { %8091 = vmatpush.bf16.msra.mxu2 %v12678_v41  ;;  %v12439_v41 = vld [vmem:[#allocation13 + $0x1318] sm:$0xf0]  ;;  %v16218_v25 = vpack.c.b16 %v8380_v28, %v8379_v2  ;;  %v13295_v28 = vld [vmem:[#allocation13 + $0x19c8] sm:$0xf0]  ;;  %v5949_v15 = vadd.f32 %v16057_v61, %v5935_v29  ;;  %v14536_v2 = vld [vmem:[#allocation13 + $0x14a4] sm:$0xf0] }
 0x4d7   :  { %v12442_v53 = vor.u32 %v14485_v14, %v12439_v41  ;;  %v13298_v14 = vor.u32 %v14699_v62, %v13295_v28  ;;  %v14681_v41 = vld [vmem:[#allocation13 + $0x1934] sm:$0xf] }
 0x4d8   :  { %9225 = vmatpush.bf16.msrb.mxu0 %v13462_v59  ;;  %9239 = vmatpush.bf16.msrb.mxu1 %v13526_v11  ;;  %v16215_v59 = vpack.c.b16 %v8374_v46, %v8373_v27  ;;  %v13314_v11 = vor.u32 %v14703_v48, %v13311_v37  ;;  %v13306_v46 = vor.u32 %v14701_v30, %v13303_v12  ;;  %v12637_v48 = vld [vmem:[#allocation13 + $0x14a0] sm:$0xf]  ;;  %v12629_v30 = vld [vmem:[#allocation13 + $0x1490] sm:$0xf] }
 0x4d9   :  { %7131 = vmatpush.bf16.msrb.mxu3 %v12458_v58  ;;  %v14483_v58 = vld [vmem:[#allocation13 + $0x1304] sm:$0xf]  ;;  %v5963_v61 = vadd.f32 %v16059_v31, %v5949_v15  ;;  %v12638_v29 = vor.u32 %v14536_v2, %v12637_v48  ;;  %v12933_v15 = vld [vmem:[#allocation13 + $0x16f0] sm:$0xf]  ;;  %v13207_v48 = vld [vmem:[#allocation13 + $0x1918] sm:$0xf0] }
 0x4da   :  { %8092 = vmatpush.bf16.msra.mxu2 %v12670_v45  ;;  %v13242_v45 = vor.u32 %v14685_v17, %v13239_v19  ;;  %v12434_v26 = vor.u32 %v14483_v58, %v12431_v13  ;;  %v13287_v17 = vld [vmem:[#allocation13 + $0x19b8] sm:$0xf0]  ;;  %v14558_v58 = vld [vmem:[#allocation13 + $0x1554] sm:$0xf0]  ;;  %v16235_v8 = vpop.f32.mrf.mxu3 }
 0x4db   :  { %v5976_v12 = vpop.f32.mrf.mxu2  ;;  %v13271_v2 = vld [vmem:[#allocation13 + $0x1998] sm:$0xf0] }
 0x4dc   :  { %9226 = vmatpush.bf16.msrb.mxu0 %v13454_v33  ;;  %9240 = vmatpush.bf16.msrb.mxu1 %v13518_v43  ;;  %v14538_v33 = vld [vmem:[#allocation13 + $0x14b4] sm:$0xf0]  ;;  %v14683_v43 = vld [vmem:[#allocation13 + $0x1944] sm:$0xf]  ;;  %v16232_v13 = vadd.f32 %v5976_v12, %v5963_v61  ;;  %v14608_v61 = vld [vmem:[#allocation13 + $0x16e4] sm:$0xf0] }
 0x4dd   :  { %7132 = vmatpush.bf16.msrb.mxu3 %v12450_v20  ;;  %v12646_v27 = vor.u32 %v14538_v33, %v12645_v34  ;;  %v12742_v20 = vor.u32 %v14562_v47, %v12741_v7  ;;  %v13215_v33 = vld [vmem:[#allocation13 + $0x1928] sm:$0xf0]  ;;  %v14695_v7 = vld [vmem:[#allocation13 + $0x19a4] sm:$0xf] }
 0x4de   :  { %8093 = vmatpush.bf16.msra.mxu2 %v12662_v36  ;;  %v14560_v36 = vld [vmem:[#allocation13 + $0x1564] sm:$0xf0]  ;;  %v13279_v47 = vld [vmem:[#allocation13 + $0x19a8] sm:$0xf0]  ;;  %v14691_v12 = vld [vmem:[#allocation13 + $0x1984] sm:$0xf] }
 0x4df   :  { %9227 = vmatmul.bf16.vlgmr.msrb.gmra.mxu0 %v16215_v59  ;;  %9241 = vmatmul.bf16.vlgmr.msrb.gmra.mxu1 %v16218_v25 }
 0x4e0   :  { %9275 = vmatpush.bf16.msra.mxu0 %v13258_v44  ;;  %9289 = vmatpush.bf16.msra.mxu1 %v13322_v38  ;;  %v13231_v44 = vld [vmem:[#allocation13 + $0x1948] sm:$0xf0]  ;;  %v16612_v38 = vld [vmem:[#allocation32_spill] sm:$0xff] }
 0x4e1   :  { %7133 = vmatpush.bf16.msrb.mxu3 %v12442_v53  ;;  %v1641_v5 = vadd.f32 %v16612_v38, %v1587_v63  ;;  %v13234_v37 = vor.u32 %v14683_v43, %v13231_v44  ;;  %v12734_v53 = vor.u32 %v14560_v36, %v12733_v23  ;;  %v14534_v63 = vld [vmem:[#allocation13 + $0x1494] sm:$0xf0]  ;;  %v12621_v43 = vld [vmem:[#allocation13 + $0x1480] sm:$0xf]  ;;  %v14532_v44 = vld [vmem:[#allocation13 + $0x1484] sm:$0xf0] }
 0x4e2   :  { %8094 = vmatpush.bf16.msra.mxu2 %v12654_v49  ;;  %v12725_v49 = vld [vmem:[#allocation13 + $0x1550] sm:$0xf]  ;;  %v12630_v31 = vor.u32 %v14534_v63, %v12629_v30  ;;  %v12717_v38 = vld [vmem:[#allocation13 + $0x1540] sm:$0xf]  ;;  %v12622_v23 = vor.u32 %v14532_v44, %v12621_v43  ;;  %v13199_v30 = vld [vmem:[#allocation13 + $0x1908] sm:$0xf0] }
 0x4e3   :  { %v1684_v19 = vmax.f32 %v1641_v5, 0.0  ;;  %v14556_v5 = vld [vmem:[#allocation13 + $0x1544] sm:$0xf0]  ;;  %v14753_v63 = vld [vmem:[#allocation13 + $0x1b74] sm:$0xf] }
 0x4e4   :  { %9276 = vmatpush.bf16.msra.mxu0 %v13250_v57  ;;  %9290 = vmatpush.bf16.msra.mxu1 %v13314_v11  ;;  %v13223_v57 = vld [vmem:[#allocation13 + $0x1938] sm:$0xf0]  ;;  %v14697_v11 = vld [vmem:[#allocation13 + $0x19b4] sm:$0xf]  ;;  %v12718_v36 = vor.u32 %v14556_v5, %v12717_v38  ;;  %v14751_v38 = vld [vmem:[#allocation13 + $0x1b64] sm:$0xf] }
 0x4e5   :  { %7134 = vmatpush.bf16.msrb.mxu3 %v12434_v26  ;;  %v13226_v22 = vor.u32 %v14681_v41, %v13223_v57  ;;  %v13290_v34 = vor.u32 %v14697_v11, %v13287_v17  ;;  %v1701_v26 = vpack.c.bf16 %v1683_v6, %v1683_v6  ;;  %v1702_v62 = vpack.c.bf16 %v1684_v19, %v1684_v19  ;;  %v14554_v17 = vld [vmem:[#allocation13 + $0x1534] sm:$0xf0]  ;;  %v12925_v19 = vld [vmem:[#allocation13 + $0x16e0] sm:$0xf]  ;;  %v13503_v5 = vld [vmem:[#allocation13 + $0x1b68] sm:$0xf0] }
 0x4e6   :  { %8095 = vmatpush.bf16.msra.mxu2 %v12646_v27  ;;  %v14610_v27 = vld [vmem:[#allocation13 + $0x16f4] sm:$0xf0] }
 0x4e7   :  { %v7175_v41 = vunpack.c.l.b16 %v1701_v26  ;;  %v7176_v57 = vunpack.c.l.b16 %v1702_v62  ;;  %v12934_v6 = vor.u32 %v14610_v27, %v12933_v15  ;;  %v12917_v26 = vld [vmem:[#allocation13 + $0x16d0] sm:$0xf]  ;;  %v14606_v62 = vld [vmem:[#allocation13 + $0x16d4] sm:$0xf0]  ;;  %v13567_v27 = vld [vmem:[#allocation13 + $0x1be8] sm:$0xf0] }
 0x4e8   :  { %9277 = vmatpush.bf16.msra.mxu0 %v13242_v45  ;;  %9291 = vmatpush.bf16.msra.mxu1 %v13306_v46  ;;  %v14679_v45 = vld [vmem:[#allocation13 + $0x1924] sm:$0xf]  ;;  %v12726_v46 = vor.u32 %v14558_v58, %v12725_v49  ;;  %v13511_v49 = vld [vmem:[#allocation13 + $0x1b78] sm:$0xf0] }
 0x4e9   :  { %8105 = vmatpush.bf16.msra.mxu3 %v12742_v20  ;;  %v13218_v28 = vor.u32 %v14679_v45, %v13215_v33  ;;  %v14677_v20 = vld [vmem:[#allocation13 + $0x1914] sm:$0xf]  ;;  %v13575_v45 = vld [vmem:[#allocation13 + $0x1bf8] sm:$0xf0]  ;;  %v16237_v33 = vpack.c.b16 %v7176_v57, %v7175_v41  ;;  %v13514_v44 = vor.u32 %v14753_v63, %v13511_v49  ;;  %v14604_v41 = vld [vmem:[#allocation13 + $0x16c4] sm:$0xf0]  ;;  %v16248_v49 = vpop.f32.mrf.mxu2 }
 0x4ea   :  { %7135 = vmatmul.bf16.vlgmr.msrb.gmra.mxu3 %v15719_v56  ;;  %8096 = vmatpush.bf16.msra.mxu2 %v12638_v29  ;;  %v13282_v56 = vor.u32 %v14695_v7, %v13279_v47  ;;  %v13210_v11 = vor.u32 %v14677_v20, %v13207_v48  ;;  %v12926_v7 = vor.u32 %v14608_v61, %v12925_v19  ;;  %v14765_v61 = vld [vmem:[#allocation13 + $0x1bd4] sm:$0xf]  ;;  %v12901_v63 = vld [vmem:[#allocation13 + $0x16b0] sm:$0xf] }
 0x4eb   :  { %v12918_v48 = vor.u32 %v14606_v62, %v12917_v26 }
 0x4ec   :  { %9278 = vmatpush.bf16.msra.mxu0 %v13234_v37  ;;  %9292 = vmatpush.bf16.msra.mxu1 %v13298_v14  ;;  %v14693_v37 = vld [vmem:[#allocation13 + $0x1994] sm:$0xf]  ;;  %v12709_v14 = vld [vmem:[#allocation13 + $0x1530] sm:$0xf] }
 0x4ed   :  { %8106 = vmatpush.bf16.msra.mxu3 %v12734_v53  ;;  %v13274_v29 = vor.u32 %v14693_v37, %v13271_v2  ;;  %v14675_v53 = vld [vmem:[#allocation13 + $0x1904] sm:$0xf]  ;;  %v12710_v58 = vor.u32 %v14554_v17, %v12709_v14  ;;  %v5990_v20 = vpop.f32.mrf.mxu3  ;;  %v12693_v37 = vld [vmem:[#allocation13 + $0x1510] sm:$0xf]  ;;  %v14550_v2 = vld [vmem:[#allocation13 + $0x1514] sm:$0xf0] }
 0x4ee   :  { %8097 = vmatpush.bf16.msra.mxu2 %v12630_v31  ;;  %v13202_v47 = vor.u32 %v14675_v53, %v13199_v30  ;;  %v12701_v31 = vld [vmem:[#allocation13 + $0x1520] sm:$0xf]  ;;  %v12694_v19 = vor.u32 %v14550_v2, %v12693_v37  ;;  %v16614_v53 = vld [vmem:[#allocation49_spill] sm:$0xff]  ;;  %v14761_v37 = vld [vmem:[#allocation13 + $0x1bb4] sm:$0xf] }
 0x4ef   :  { %v12909_v14 = vld [vmem:[#allocation13 + $0x16c0] sm:$0xf]  ;;  %v13543_v2 = vld [vmem:[#allocation13 + $0x1bb8] sm:$0xf0] }
 0x4f0   :  { %9279 = vmatpush.bf16.msra.mxu0 %v13226_v22  ;;  %9293 = vmatpush.bf16.msra.mxu1 %v13290_v34  ;;  %v13263_v22 = vld [vmem:[#allocation13 + $0x1988] sm:$0xf0]  ;;  %v14769_v34 = vld [vmem:[#allocation13 + $0x1bf4] sm:$0xf]  ;;  %v12910_v30 = vor.u32 %v14604_v41, %v12909_v14 }
 0x4f1   :  { %8107 = vmatpush.bf16.msra.mxu3 %v12726_v46  ;;  %v14552_v46 = vld [vmem:[#allocation13 + $0x1524] sm:$0xf0]  ;;  %v13266_v43 = vor.u32 %v14691_v12, %v13263_v22  ;;  %v12685_v12 = vld [vmem:[#allocation13 + $0x1500] sm:$0xf] }
 0x4f2   :  { %8098 = vmatpush.bf16.msra.mxu2 %v12622_v23  ;;  %v12702_v15 = vor.u32 %v14552_v46, %v12701_v31  ;;  %v5991_v23 = vadd.f32 %v5990_v20, %v16232_v13  ;;  %v1607_v13 = vadd.f32 %v16221_v0, %v16614_v53  ;;  %v14548_v22 = vld [vmem:[#allocation13 + $0x1504] sm:$0xf0]  ;;  %v14763_v46 = vld [vmem:[#allocation13 + $0x1bc4] sm:$0xf]  ;;  %v14745_v20 = vld [vmem:[#allocation13 + $0x1b34] sm:$0xf] }
 0x4f3   :  { %v12686_v31 = vor.u32 %v14548_v22, %v12685_v12  ;;  %v14622_v53 = vld [vmem:[#allocation13 + $0x1754] sm:$0xf0]  ;;  %v14743_v12 = vld [vmem:[#allocation13 + $0x1b24] sm:$0xf]  ;;  %v13471_v22 = vld [vmem:[#allocation13 + $0x1b28] sm:$0xf0] }
 0x4f4   :  { %9280 = vmatpush.bf16.msra.mxu0 %v13218_v28  ;;  %9294 = vmatpush.bf16.msra.mxu1 %v13282_v56  ;;  %v13578_v28 = vor.u32 %v14769_v34, %v13575_v45  ;;  %v14767_v56 = vld [vmem:[#allocation13 + $0x1be4] sm:$0xf]  ;;  %v16242_v17 = vadd.f32 %v5991_v23, %v16146_v52  ;;  %v12997_v34 = vld [vmem:[#allocation13 + $0x1770] sm:$0xf]  ;;  %v16616_v23 = vld [vmem:[#allocation48_spill] sm:$0xff] }
 0x4f5   :  { %8108 = vmatpush.bf16.msra.mxu3 %v12718_v36  ;;  %8099 = vmatmul.bf16.vlgmr.msra.gmra.mxu2 %v16237_v33  ;;  %v13506_v36 = vor.u32 %v14751_v38, %v13503_v5  ;;  %v13570_v57 = vor.u32 %v14767_v56, %v13567_v27  ;;  %v14600_v5 = vld [vmem:[#allocation13 + $0x16a4] sm:$0xf0] }
 0x4f6   :  { %8147 = vmatpush.bf16.msrb.mxu2 %v12934_v6  ;;  %v14749_v6 = vld [vmem:[#allocation13 + $0x1b54] sm:$0xf]  ;;  %v14624_v56 = vld [vmem:[#allocation13 + $0x1764] sm:$0xf0] }
 0x4f8   :  { %9281 = vmatpush.bf16.msra.mxu0 %v13210_v11  ;;  %9295 = vmatpush.bf16.msra.mxu1 %v13274_v29  ;;  %v13495_v11 = vld [vmem:[#allocation13 + $0x1b58] sm:$0xf0] }
 0x4f9   :  { %8109 = vmatpush.bf16.msra.mxu3 %v12710_v58  ;;  %v13559_v29 = vld [vmem:[#allocation13 + $0x1bd8] sm:$0xf0]  ;;  %v13498_v52 = vor.u32 %v14749_v6, %v13495_v11  ;;  %v14602_v58 = vld [vmem:[#allocation13 + $0x16b4] sm:$0xf0]  ;;  %v12885_v6 = vld [vmem:[#allocation13 + $0x1690] sm:$0xf]  ;;  %v6954_v11 = vpop.f32.mrf.mxu2 }
 0x4fa   :  { %8148 = vmatpush.bf16.msrb.mxu2 %v12926_v7  ;;  %v13562_v45 = vor.u32 %v14765_v61, %v13559_v29  ;;  %v14747_v7 = vld [vmem:[#allocation13 + $0x1b44] sm:$0xf]  ;;  %v12902_v26 = vor.u32 %v14602_v58, %v12901_v63  ;;  %v14598_v61 = vld [vmem:[#allocation13 + $0x1694] sm:$0xf0]  ;;  %v12981_v29 = vld [vmem:[#allocation13 + $0x1750] sm:$0xf] }
 0x4fb   :  { %v14759_v63 = vld [vmem:[#allocation13 + $0x1ba4] sm:$0xf]  ;;  %v12886_v58 = vor.u32 %v14598_v61, %v12885_v6 }
 0x4fc   :  { %9282 = vmatpush.bf16.msra.mxu0 %v13202_v47  ;;  %9296 = vmatpush.bf16.msra.mxu1 %v13266_v43  ;;  %v13487_v47 = vld [vmem:[#allocation13 + $0x1b48] sm:$0xf0]  ;;  %v14755_v6 = vld [vmem:[#allocation13 + $0x1b84] sm:$0xf] }
 0x4fd   :  { %8110 = vmatpush.bf16.msra.mxu3 %v12702_v15  ;;  %v16615_v43 = vld [vmem:[#allocation50_spill] sm:$0xff]  ;;  %v13490_v38 = vor.u32 %v14747_v7, %v13487_v47  ;;  %v12989_v15 = vld [vmem:[#allocation13 + $0x1760] sm:$0xf] }
 0x4fe   :  { %8149 = vmatpush.bf16.msrb.mxu2 %v12918_v48  ;;  %v13479_v48 = vld [vmem:[#allocation13 + $0x1b38] sm:$0xf0] }
 0x4ff   :  { %9283 = vmatmul.bf16.vlgmr.msra.gmra.mxu0 %v16188_v1  ;;  %9297 = vmatmul.bf16.vlgmr.msra.gmra.mxu1 %v16191_v18  ;;  %v14626_v1 = vld [vmem:[#allocation13 + $0x1774] sm:$0xf0]  ;;  %v13551_v18 = vld [vmem:[#allocation13 + $0x1bc8] sm:$0xf0] }
 0x500   :  { %9331 = vmatpush.bf16.msrb.mxu0 %v13514_v44  ;;  %9345 = vmatpush.bf16.msrb.mxu1 %v13578_v28  ;;  %v1661_v44 = vadd.f32 %v16615_v43, %v1607_v13  ;;  %v12998_v62 = vor.u32 %v14626_v1, %v12997_v34  ;;  %v12893_v28 = vld [vmem:[#allocation13 + $0x16a0] sm:$0xf]  ;;  %v13554_v27 = vor.u32 %v14763_v46, %v13551_v18  ;;  %v14620_v46 = vld [vmem:[#allocation13 + $0x1744] sm:$0xf0]  ;;  %v13189_v18 = vld [vmem:[#allocation13 + $0x18f0] sm:$0xf] }
 0x501   :  { %8111 = vmatpush.bf16.msra.mxu3 %v12694_v19  ;;  %v12894_v41 = vor.u32 %v14600_v5, %v12893_v28  ;;  %v13482_v19 = vor.u32 %v14745_v20, %v13479_v48  ;;  %v16253_v13 = vadd.f32 %v6954_v11, %v16085_v39  ;;  %v12982_v34 = vor.u32 %v14622_v53, %v12981_v29  ;;  %v12877_v1 = vld [vmem:[#allocation13 + $0x1680] sm:$0xf]  ;;  %v14674_v43 = vld [vmem:[#allocation13 + $0x18f4] sm:$0xf0]  ;;  %v13527_v28 = vld [vmem:[#allocation13 + $0x1b98] sm:$0xf0] }
 0x502   :  { %8150 = vmatpush.bf16.msrb.mxu2 %v12910_v30  ;;  %v1692_v14 = vmax.f32 %v1661_v44, 0.0  ;;  %v13546_v30 = vor.u32 %v14761_v37, %v13543_v2  ;;  %v12973_v39 = vld [vmem:[#allocation13 + $0x1740] sm:$0xf]  ;;  %v14741_v44 = vld [vmem:[#allocation13 + $0x1b14] sm:$0xf]  ;;  %v13190_v20 = vor.u32 %v14674_v43, %v13189_v18  ;;  %v16264_v18 = vpop.f32.mrf.mxu1  ;;  %v16617_v43 = vld [vmem:[#allocation62_spill] sm:$0xff] }
 0x503   :  { %v12974_v5 = vor.u32 %v14620_v46, %v12973_v39  ;;  %v12965_v37 = vld [vmem:[#allocation13 + $0x1730] sm:$0xf]  ;;  %v14618_v2 = vld [vmem:[#allocation13 + $0x1734] sm:$0xf0]  ;;  %v13519_v11 = vld [vmem:[#allocation13 + $0x1b88] sm:$0xf0] }
 0x504   :  { %9332 = vmatpush.bf16.msrb.mxu0 %v13506_v36  ;;  %9346 = vmatpush.bf16.msrb.mxu1 %v13570_v57  ;;  %v1691_v36 = vmax.f32 %v16616_v23, 0.0  ;;  %v12990_v57 = vor.u32 %v14624_v56, %v12989_v15  ;;  %v1710_v47 = vpack.c.bf16 %v1692_v14, %v1692_v14  ;;  %v13181_v23 = vld [vmem:[#allocation13 + $0x18e0] sm:$0xf]  ;;  %v14672_v14 = vld [vmem:[#allocation13 + $0x18e4] sm:$0xf0] }
 0x505   :  { %8112 = vmatpush.bf16.msra.mxu3 %v12686_v31  ;;  %v13474_v31 = vor.u32 %v14743_v12, %v13471_v22  ;;  %v13182_v29 = vor.u32 %v14672_v14, %v13181_v23  ;;  %v14616_v12 = vld [vmem:[#allocation13 + $0x1724] sm:$0xf0]  ;;  %v13522_v22 = vor.u32 %v14755_v6, %v13519_v11  ;;  %v13165_v39 = vld [vmem:[#allocation13 + $0x18c0] sm:$0xf]  ;;  %v14543_v14 = vld [vmem:[#allocation13 + $0x14e4] sm:$0xf] }
 0x506   :  { %8151 = vmatpush.bf16.msrb.mxu2 %v12902_v26  ;;  %v1709_v7 = vpack.c.bf16 %v1691_v36, %v1691_v36  ;;  %v13463_v26 = vld [vmem:[#allocation13 + $0x1b18] sm:$0xf0]  ;;  %v7200_v56 = vunpack.c.l.b16 %v1710_v47  ;;  %v14614_v47 = vld [vmem:[#allocation13 + $0x1714] sm:$0xf0]  ;;  %v14668_v46 = vld [vmem:[#allocation13 + $0x18c4] sm:$0xf0] }
 0x507   :  { %v13466_v48 = vor.u32 %v14741_v44, %v13463_v26  ;;  %v1627_v44 = vadd.f32 %v16221_v0, %v16617_v43  ;;  %v13166_v26 = vor.u32 %v14668_v46, %v13165_v39  ;;  %v14660_v46 = vld [vmem:[#allocation13 + $0x1884] sm:$0xf0]  ;;  %v12655_v43 = vld [vmem:[#allocation13 + $0x14c8] sm:$0xf0] }
 0x508   :  { %9333 = vmatpush.bf16.msrb.mxu0 %v13498_v52  ;;  %9347 = vmatpush.bf16.msrb.mxu1 %v13562_v45  ;;  %v13535_v52 = vld [vmem:[#allocation13 + $0x1ba8] sm:$0xf0]  ;;  %v14596_v45 = vld [vmem:[#allocation13 + $0x1684] sm:$0xf0]  ;;  %v7199_v15 = vunpack.c.l.b16 %v1709_v7  ;;  %v12949_v7 = vld [vmem:[#allocation13 + $0x1710] sm:$0xf] }
 0x509   :  { %8161 = vmatpush.bf16.msrb.mxu3 %v12998_v62  ;;  %v14757_v62 = vld [vmem:[#allocation13 + $0x1b94] sm:$0xf] }
 0x50a   :  { %8113 = vmatmul.bf16.vlgmr.msra.gmra.mxu3 %v16143_v3  ;;  %8152 = vmatpush.bf16.msrb.mxu2 %v12894_v41  ;;  %v13538_v3 = vor.u32 %v14759_v63, %v13535_v52  ;;  %v13530_v36 = vor.u32 %v14757_v62, %v13527_v28  ;;  %v14739_v41 = vld [vmem:[#allocation13 + $0x1b04] sm:$0xf]  ;;  %v16258_v61 = vpack.c.b16 %v7200_v56, %v7199_v15  ;;  %v13173_v63 = vld [vmem:[#allocation13 + $0x18d0] sm:$0xf]  ;;  %v14670_v52 = vld [vmem:[#allocation13 + $0x18d4] sm:$0xf0]  ;;  %v6996_v11 = vpop.f32.mrf.mxu1 }
 0x50b   :  { %v12941_v62 = vld [vmem:[#allocation13 + $0x1700] sm:$0xf]  ;;  %v14612_v28 = vld [vmem:[#allocation13 + $0x1704] sm:$0xf0]  ;;  %v14545_v15 = vld [vmem:[#allocation13 + $0x14f4] sm:$0xf] }
 0x50c   :  { %9334 = vmatpush.bf16.msrb.mxu0 %v13490_v38  ;;  %9348 = vmatpush.bf16.msrb.mxu1 %v13554_v27  ;;  %v12878_v38 = vor.u32 %v14596_v45, %v12877_v1  ;;  %v16256_v27 = vpop.f32.mrf.mxu3  ;;  %v13174_v45 = vor.u32 %v14670_v52, %v13173_v63  ;;  %v12679_v56 = vld [vmem:[#allocation13 + $0x14f8] sm:$0xf0]  ;;  %v14662_v63 = vld [vmem:[#allocation13 + $0x1894] sm:$0xf0]  ;;  %v14541_v52 = vld [vmem:[#allocation13 + $0x14d4] sm:$0xf] }
 0x50d   :  { %8162 = vmatpush.bf16.msrb.mxu3 %v12990_v57  ;;  %v13455_v57 = vld [vmem:[#allocation13 + $0x1b08] sm:$0xf0]  ;;  %v12682_v0 = vor.u32 %v14545_v15, %v12679_v56  ;;  %v14537_v56 = vld [vmem:[#allocation13 + $0x14b4] sm:$0xf] }
 0x50e   :  { %8153 = vmatpush.bf16.msrb.mxu2 %v12886_v58  ;;  %v13458_v53 = vor.u32 %v14739_v41, %v13455_v57  ;;  %v16261_v58 = vpop.f32.mrf.mxu0  ;;  %v12671_v41 = vld [vmem:[#allocation13 + $0x14e8] sm:$0xf0]  ;;  %v16619_v57 = vld [vmem:[#allocation60_spill] sm:$0xff] }
 0x50f   :  { %v1699_v6 = vmax.f32 %v16619_v57, 0.0 }
 0x510   :  { %9335 = vmatpush.bf16.msrb.mxu0 %v13482_v19  ;;  %9349 = vmatpush.bf16.msrb.mxu1 %v13546_v30  ;;  %v12966_v19 = vor.u32 %v14618_v2, %v12965_v37  ;;  %v12957_v30 = vld [vmem:[#allocation13 + $0x1720] sm:$0xf]  ;;  %v16618_v37 = vld [vmem:[#allocation63_spill] sm:$0xff] }
 0x511   :  { %8163 = vmatpush.bf16.msrb.mxu3 %v12982_v34  ;;  %v12958_v34 = vor.u32 %v14616_v12, %v12957_v30  ;;  %v12674_v30 = vor.u32 %v14543_v14, %v12671_v41  ;;  %v13141_v12 = vld [vmem:[#allocation13 + $0x1890] sm:$0xf]  ;;  %v14535_v14 = vld [vmem:[#allocation13 + $0x14a4] sm:$0xf]  ;;  %v12639_v41 = vld [vmem:[#allocation13 + $0x14a8] sm:$0xf0] }
 0x512   :  { %8154 = vmatpush.bf16.msrb.mxu2 %v12878_v38  ;;  %v13157_v38 = vld [vmem:[#allocation13 + $0x18b0] sm:$0xf] }
 0x514   :  { %9336 = vmatpush.bf16.msrb.mxu0 %v13474_v31  ;;  %9350 = vmatpush.bf16.msrb.mxu1 %v13538_v3  ;;  %v6968_v1 = vpop.f32.mrf.mxu3  ;;  %v12950_v3 = vor.u32 %v14614_v47, %v12949_v7  ;;  %v13133_v47 = vld [vmem:[#allocation13 + $0x1880] sm:$0xf] }
 0x515   :  { %8164 = vmatpush.bf16.msrb.mxu3 %v12974_v5  ;;  %8155 = vmatmul.bf16.vlgmr.msrb.gmra.mxu2 %v16258_v61  ;;  %v6969_v31 = vadd.f32 %v6968_v1, %v16253_v13  ;;  %v6956_v13 = vpop.f32.mrf.mxu2  ;;  %v14666_v5 = vld [vmem:[#allocation13 + $0x18b4] sm:$0xf0] }
 0x516   :  { %8203 = vmatpush.bf16.msra.mxu2 %v13190_v20  ;;  %v6982_v20 = vpop.f32.mrf.mxu0  ;;  %v13158_v23 = vor.u32 %v14666_v5, %v13157_v38 }
 0x517   :  { %v6983_v2 = vadd.f32 %v6982_v20, %v6969_v31  ;;  %v1717_v31 = vpack.c.bf16 %v1699_v6, %v1699_v6  ;;  %v12647_v20 = vld [vmem:[#allocation13 + $0x14b8] sm:$0xf0]  ;;  %v14589_v6 = vld [vmem:[#allocation13 + $0x1654] sm:$0xf] }
 0x518   :  { %9337 = vmatpush.bf16.msrb.mxu0 %v13466_v48  ;;  %9351 = vmatpush.bf16.msrb.mxu1 %v13530_v36  ;;  %v12942_v48 = vor.u32 %v14612_v28, %v12941_v62  ;;  %v13149_v36 = vld [vmem:[#allocation13 + $0x18a0] sm:$0xf]  ;;  %v13134_v62 = vor.u32 %v14660_v46, %v13133_v47  ;;  %v14585_v46 = vld [vmem:[#allocation13 + $0x1634] sm:$0xf] }
 0x519   :  { %8165 = vmatpush.bf16.msrb.mxu3 %v12966_v19  ;;  %v7223_v38 = vunpack.c.l.b16 %v1717_v31  ;;  %v14531_v31 = vld [vmem:[#allocation13 + $0x1484] sm:$0xf] }
 0x51a   :  { %8204 = vmatpush.bf16.msra.mxu2 %v13182_v29  ;;  %v6997_v29 = vadd.f32 %v6996_v11, %v6983_v2  ;;  %v12855_v11 = vld [vmem:[#allocation13 + $0x1658] sm:$0xf0] }
 0x51c   :  { %9338 = vmatpush.bf16.msrb.mxu0 %v13458_v53  ;;  %9352 = vmatpush.bf16.msrb.mxu1 %v13522_v22  ;;  %v6970_v15 = vpop.f32.mrf.mxu3 }
 0x51d   :  { %8166 = vmatpush.bf16.msrb.mxu3 %v12958_v34  ;;  %v7010_v22 = vpop.f32.mrf.mxu2  ;;  %v12663_v34 = vld [vmem:[#allocation13 + $0x14d8] sm:$0xf0] }
 0x51e   :  { %8205 = vmatpush.bf16.msra.mxu2 %v13174_v45  ;;  %v7011_v1 = vadd.f32 %v7010_v22, %v6997_v29  ;;  %v13142_v45 = vor.u32 %v14662_v63, %v13141_v12  ;;  %v12666_v7 = vor.u32 %v14541_v52, %v12663_v34  ;;  %v6984_v2 = vpop.f32.mrf.mxu0  ;;  %v12631_v29 = vld [vmem:[#allocation13 + $0x1498] sm:$0xf0]  ;;  %v14587_v12 = vld [vmem:[#allocation13 + $0x1644] sm:$0xf]  ;;  %v12847_v22 = vld [vmem:[#allocation13 + $0x1648] sm:$0xf0] }
 0x51f   :  { %9339 = vmatmul.bf16.vlgmr.msrb.gmra.mxu0 %v16215_v59  ;;  %9353 = vmatmul.bf16.vlgmr.msrb.gmra.mxu1 %v16218_v25  ;;  %v1681_v59 = vadd.f32 %v16618_v37, %v1627_v44  ;;  %v14664_v25 = vld [vmem:[#allocation13 + $0x18a4] sm:$0xf0]  ;;  %v14593_v44 = vld [vmem:[#allocation13 + $0x1674] sm:$0xf]  ;;  %v14591_v37 = vld [vmem:[#allocation13 + $0x1664] sm:$0xf]  ;;  %v12850_v47 = vor.u32 %v14587_v12, %v12847_v22 }
 0x520   :  { %v13150_v53 = vor.u32 %v14664_v25, %v13149_v36  ;;  %v14601_v12 = vld [vmem:[#allocation13 + $0x16b4] sm:$0xf]  ;;  %v12903_v22 = vld [vmem:[#allocation13 + $0x16b8] sm:$0xf0] }
 0x521   :  { %8167 = vmatpush.bf16.msrb.mxu3 %v12950_v3  ;;  %v1700_v19 = vmax.f32 %v1681_v59, 0.0  ;;  %v14539_v3 = vld [vmem:[#allocation13 + $0x14c4] sm:$0xf]  ;;  %v12863_v59 = vld [vmem:[#allocation13 + $0x1668] sm:$0xf0] }
 0x522   :  { %8206 = vmatpush.bf16.msra.mxu2 %v13166_v26  ;;  %v12871_v26 = vld [vmem:[#allocation13 + $0x1678] sm:$0xf0]  ;;  %v12658_v28 = vor.u32 %v14539_v3, %v12655_v43  ;;  %v12866_v25 = vor.u32 %v14591_v37, %v12863_v59  ;;  %v12927_v37 = vld [vmem:[#allocation13 + $0x16e8] sm:$0xf0] }
 0x523   :  { %v1718_v39 = vpack.c.bf16 %v1700_v19, %v1700_v19  ;;  %v12858_v19 = vor.u32 %v14589_v6, %v12855_v11  ;;  %v12839_v43 = vld [vmem:[#allocation13 + $0x1638] sm:$0xf0]  ;;  %v12815_v6 = vld [vmem:[#allocation13 + $0x1608] sm:$0xf0]  ;;  %v14603_v11 = vld [vmem:[#allocation13 + $0x16c4] sm:$0xf] }
 0x525   :  { %8168 = vmatpush.bf16.msrb.mxu3 %v12942_v48  ;;  %v7224_v5 = vunpack.c.l.b16 %v1718_v39  ;;  %v6943_v48 = vadd.f32 %v16264_v18, %v16261_v58  ;;  %v12642_v58 = vor.u32 %v14535_v14, %v12639_v41  ;;  %v12623_v39 = vld [vmem:[#allocation13 + $0x1488] sm:$0xf0] }
 0x526   :  { %8207 = vmatpush.bf16.msra.mxu2 %v13158_v23  ;;  %v7038_v63 = vpop.f32.mrf.mxu0 }
 0x527   :  { %v6957_v23 = vadd.f32 %v6956_v13, %v6943_v48  ;;  %v16275_v36 = vpack.c.b16 %v7224_v5, %v7223_v38  ;;  %v14533_v13 = vld [vmem:[#allocation13 + $0x1494] sm:$0xf]  ;;  %v12842_v5 = vor.u32 %v14585_v46, %v12839_v43  ;;  %v14607_v48 = vld [vmem:[#allocation13 + $0x16e4] sm:$0xf]  ;;  %v13111_v46 = vld [vmem:[#allocation13 + $0x1858] sm:$0xf0] }
 0x528   :  { %8169 = vmatmul.bf16.vlgmr.msrb.gmra.mxu3 %v16163_v9  ;;  %v12874_v9 = vor.u32 %v14593_v44, %v12871_v26  ;;  %v12634_v34 = vor.u32 %v14533_v13, %v12631_v29  ;;  %v14609_v44 = vld [vmem:[#allocation13 + $0x16f4] sm:$0xf]  ;;  %v12935_v26 = vld [vmem:[#allocation13 + $0x16f8] sm:$0xf0] }
 0x529   :  { %8217 = vmatpush.bf16.msra.mxu3 %v12682_v0  ;;  %v12650_v0 = vor.u32 %v14537_v56, %v12647_v20  ;;  %v6971_v57 = vadd.f32 %v6970_v15, %v6957_v23  ;;  %v12938_v15 = vor.u32 %v14609_v44, %v12935_v26  ;;  %v12831_v20 = vld [vmem:[#allocation13 + $0x1628] sm:$0xf0]  ;;  %v12823_v23 = vld [vmem:[#allocation13 + $0x1618] sm:$0xf0] }
 0x52a   :  { %8208 = vmatpush.bf16.msra.mxu2 %v13150_v53 }
 0x52b   :  { %v6985_v53 = vadd.f32 %v6984_v2, %v6971_v57  ;;  %v12930_v2 = vor.u32 %v14607_v48, %v12927_v37  ;;  %v14579_v57 = vld [vmem:[#allocation13 + $0x1604] sm:$0xf] }
 0x52c   :  { %v12818_v29 = vor.u32 %v14579_v57, %v12815_v6 }
 0x52d   :  { %8218 = vmatpush.bf16.msra.mxu3 %v12674_v30  ;;  %v7024_v18 = vpop.f32.mrf.mxu3 }
 0x52e   :  { %8209 = vmatpush.bf16.msra.mxu2 %v13142_v45  ;;  %v7025_v30 = vadd.f32 %v7024_v18, %v7011_v1  ;;  %v6998_v45 = vpop.f32.mrf.mxu1  ;;  %v14657_v18 = vld [vmem:[#allocation13 + $0x1874] sm:$0xf] }
 0x52f   :  { %v6999_v3 = vadd.f32 %v6998_v45, %v6985_v53 }
 0x530   :  { %v7039_v52 = vadd.f32 %v7038_v63, %v7025_v30  ;;  %v14655_v63 = vld [vmem:[#allocation13 + $0x1864] sm:$0xf] }
 0x531   :  { %8219 = vmatpush.bf16.msra.mxu3 %v12666_v7  ;;  %v7012_v7 = vpop.f32.mrf.mxu2 }
 0x532   :  { %8210 = vmatpush.bf16.msra.mxu2 %v13134_v62  ;;  %v16279_v62 = vadd.f32 %v7039_v52, %v16194_v24  ;;  %v7013_v1 = vadd.f32 %v7012_v7, %v6999_v3  ;;  %v14581_v24 = vld [vmem:[#allocation13 + $0x1614] sm:$0xf]  ;;  %v14599_v7 = vld [vmem:[#allocation13 + $0x16a4] sm:$0xf] }
 0x533   :  { %v12826_v14 = vor.u32 %v14581_v24, %v12823_v23  ;;  %v13095_v23 = vld [vmem:[#allocation13 + $0x1838] sm:$0xf0] }
 0x535   :  { %8220 = vmatpush.bf16.msra.mxu3 %v12658_v28  ;;  %8211 = vmatmul.bf16.vlgmr.msra.gmra.mxu2 %v16275_v36  ;;  %v12626_v28 = vor.u32 %v14531_v31, %v12623_v39  ;;  %v7026_v38 = vpop.f32.mrf.mxu3  ;;  %v16284_v31 = vpop.f32.mrf.mxu0  ;;  %v14653_v39 = vld [vmem:[#allocation13 + $0x1854] sm:$0xf] }
 0x536   :  { %8259 = vmatpush.bf16.msrb.mxu2 %v12874_v9  ;;  %v14583_v9 = vld [vmem:[#allocation13 + $0x1624] sm:$0xf]  ;;  %v16281_v56 = vadd.f32 %v7026_v38, %v7013_v1  ;;  %v7052_v13 = vpop.f32.mrf.mxu1  ;;  %v13114_v26 = vor.u32 %v14653_v39, %v13111_v46  ;;  %v14597_v1 = vld [vmem:[#allocation13 + $0x1694] sm:$0xf] }
 0x537   :  { %v12834_v59 = vor.u32 %v14583_v9, %v12831_v20  ;;  %v13103_v9 = vld [vmem:[#allocation13 + $0x1848] sm:$0xf0] }
 0x539   :  { %8221 = vmatpush.bf16.msra.mxu3 %v12650_v0  ;;  %v14605_v0 = vld [vmem:[#allocation13 + $0x16d4] sm:$0xf]  ;;  %v7066_v52 = vpop.f32.mrf.mxu2 }
 0x53a   :  { %8260 = vmatpush.bf16.msrb.mxu2 %v12866_v25  ;;  %v12919_v25 = vld [vmem:[#allocation13 + $0x16d8] sm:$0xf0]  ;;  %v7067_v3 = vadd.f32 %v7066_v52, %v7052_v13 }
 0x53b   :  { %v12922_v41 = vor.u32 %v14605_v0, %v12919_v25  ;;  %v14673_v0 = vld [vmem:[#allocation13 + $0x18f4] sm:$0xf]  ;;  %v13191_v25 = vld [vmem:[#allocation13 + $0x18f8] sm:$0xf0] }
 0x53d   :  { %8222 = vmatpush.bf16.msra.mxu3 %v12642_v58  ;;  %v12911_v58 = vld [vmem:[#allocation13 + $0x16c8] sm:$0xf0]  ;;  %v7094_v24 = vpop.f32.mrf.mxu0 }
 0x53e   :  { %8261 = vmatpush.bf16.msrb.mxu2 %v12858_v19  ;;  %v13127_v19 = vld [vmem:[#allocation13 + $0x1878] sm:$0xf0]  ;;  %v12914_v53 = vor.u32 %v14603_v11, %v12911_v58  ;;  %v7054_v38 = vpop.f32.mrf.mxu1  ;;  %v13194_v58 = vor.u32 %v14673_v0, %v13191_v25 }
 0x53f   :  { %v13130_v30 = vor.u32 %v14657_v18, %v13127_v19  ;;  %v14647_v18 = vld [vmem:[#allocation13 + $0x1824] sm:$0xf] }
 0x541   :  { %8223 = vmatpush.bf16.msra.mxu3 %v12634_v34  ;;  %v12906_v34 = vor.u32 %v14601_v12, %v12903_v22  ;;  %v7068_v48 = vpop.f32.mrf.mxu2 }
 0x542   :  { %8262 = vmatpush.bf16.msrb.mxu2 %v12850_v47  ;;  %v12895_v47 = vld [vmem:[#allocation13 + $0x16a8] sm:$0xf0] }
 0x543   :  { %v12898_v43 = vor.u32 %v14599_v7, %v12895_v47  ;;  %v13175_v7 = vld [vmem:[#allocation13 + $0x18d8] sm:$0xf0] }
 0x545   :  { %8224 = vmatpush.bf16.msra.mxu3 %v12626_v28  ;;  %v12887_v28 = vld [vmem:[#allocation13 + $0x1698] sm:$0xf0]  ;;  %v7096_v39 = vpop.f32.mrf.mxu0 }
 0x546   :  { %8263 = vmatpush.bf16.msrb.mxu2 %v12842_v5  ;;  %v12890_v20 = vor.u32 %v14597_v1, %v12887_v28  ;;  %v7108_v19 = vpop.f32.mrf.mxu1  ;;  %v14667_v1 = vld [vmem:[#allocation13 + $0x18c4] sm:$0xf]  ;;  %v13167_v28 = vld [vmem:[#allocation13 + $0x18c8] sm:$0xf0] }
 0x548   :  { %8225 = vmatmul.bf16.vlgmr.msra.gmra.mxu3 %v16237_v33  ;;  %v13119_v33 = vld [vmem:[#allocation13 + $0x1868] sm:$0xf0] }
 0x549   :  { %8273 = vmatpush.bf16.msrb.mxu3 %v12938_v15  ;;  %v13122_v45 = vor.u32 %v14655_v63, %v13119_v33  ;;  %v14651_v15 = vld [vmem:[#allocation13 + $0x1844] sm:$0xf]  ;;  %v14645_v33 = vld [vmem:[#allocation13 + $0x1814] sm:$0xf] }
 0x54a   :  { %8264 = vmatpush.bf16.msrb.mxu2 %v12834_v59  ;;  %v13106_v37 = vor.u32 %v14651_v15, %v13103_v9  ;;  %v14595_v59 = vld [vmem:[#allocation13 + $0x1684] sm:$0xf] }
 0x54d   :  { %8274 = vmatpush.bf16.msrb.mxu3 %v12930_v2  ;;  %v7080_v44 = vpop.f32.mrf.mxu3  ;;  %v12879_v2 = vld [vmem:[#allocation13 + $0x1688] sm:$0xf0] }
 0x54e   :  { %8265 = vmatpush.bf16.msrb.mxu2 %v12826_v14  ;;  %v7081_v5 = vadd.f32 %v7080_v44, %v7067_v3  ;;  %v7069_v14 = vadd.f32 %v7068_v48, %v7054_v38  ;;  %v14643_v44 = vld [vmem:[#allocation13 + $0x1804] sm:$0xf]  ;;  %v13381_v38 = vld [vmem:[#allocation13 + $0x1a70] sm:$0xf]  ;;  %v7110_v15 = vpop.f32.mrf.mxu1  ;;  %v13170_v48 = vor.u32 %v14667_v1, %v13167_v28 }
 0x54f   :  { %v16621_v28 = vld [vmem:[#allocation65_spill] sm:$0xff] }
 0x550   :  { %v7095_v57 = vadd.f32 %v7094_v24, %v7081_v5  ;;  %v14722_v5 = vld [vmem:[#allocation13 + $0x1a74] sm:$0xf0]  ;;  %v13373_v24 = vld [vmem:[#allocation13 + $0x1a60] sm:$0xf] }
 0x551   :  { %8275 = vmatpush.bf16.msrb.mxu3 %v12922_v41  ;;  %v12882_v41 = vor.u32 %v14595_v59, %v12879_v2  ;;  %v14665_v59 = vld [vmem:[#allocation13 + $0x18b4] sm:$0xf]  ;;  %v13159_v2 = vld [vmem:[#allocation13 + $0x18b8] sm:$0xf0] }
 0x552   :  { %8266 = vmatpush.bf16.msrb.mxu2 %v12818_v29  ;;  %v13087_v29 = vld [vmem:[#allocation13 + $0x1828] sm:$0xf0]  ;;  %v7109_v12 = vadd.f32 %v7108_v19, %v7095_v57  ;;  %v13162_v0 = vor.u32 %v14665_v59, %v13159_v2  ;;  %v13365_v57 = vld [vmem:[#allocation13 + $0x1a50] sm:$0xf]  ;;  %v14661_v19 = vld [vmem:[#allocation13 + $0x1894] sm:$0xf] }
 0x553   :  { %v13090_v22 = vor.u32 %v14647_v18, %v13087_v29  ;;  %v14712_v2 = vld [vmem:[#allocation13 + $0x1a24] sm:$0xf0] }
 0x555   :  { %8276 = vmatpush.bf16.msrb.mxu3 %v12914_v53  ;;  %8267 = vmatmul.bf16.vlgmr.msrb.gmra.mxu2 %v16100_v35  ;;  %v14649_v35 = vld [vmem:[#allocation13 + $0x1834] sm:$0xf]  ;;  %v7082_v6 = vpop.f32.mrf.mxu3  ;;  %v14671_v53 = vld [vmem:[#allocation13 + $0x18e4] sm:$0xf] }
 0x556   :  { %8315 = vmatpush.bf16.msra.mxu2 %v13130_v30  ;;  %v13098_v11 = vor.u32 %v14649_v35, %v13095_v23  ;;  %v7083_v13 = vadd.f32 %v7082_v6, %v7069_v14  ;;  %v13183_v30 = vld [vmem:[#allocation13 + $0x18e8] sm:$0xf0]  ;;  %v14720_v23 = vld [vmem:[#allocation13 + $0x1a64] sm:$0xf0]  ;;  %v14663_v14 = vld [vmem:[#allocation13 + $0x18a4] sm:$0xf] }
 0x557   :  { %v13186_v63 = vor.u32 %v14671_v53, %v13183_v30  ;;  %v13374_v25 = vor.u32 %v14720_v23, %v13373_v24  ;;  %v14718_v6 = vld [vmem:[#allocation13 + $0x1a54] sm:$0xf0]  ;;  %v13357_v53 = vld [vmem:[#allocation13 + $0x1a40] sm:$0xf]  ;;  %v14716_v30 = vld [vmem:[#allocation13 + $0x1a44] sm:$0xf0] }
 0x558   :  { %v7122_v52 = vpop.f32.mrf.mxu2  ;;  %v7097_v46 = vadd.f32 %v7096_v39, %v7083_v13  ;;  %v13366_v18 = vor.u32 %v14718_v6, %v13365_v57  ;;  %v13143_v13 = vld [vmem:[#allocation13 + $0x1898] sm:$0xf0]  ;;  %v14714_v39 = vld [vmem:[#allocation13 + $0x1a34] sm:$0xf0]  ;;  %v13437_v24 = vld [vmem:[#allocation13 + $0x1ae0] sm:$0xf] }
 0x559   :  { %8277 = vmatpush.bf16.msrb.mxu3 %v12906_v34  ;;  %v13079_v34 = vld [vmem:[#allocation13 + $0x1818] sm:$0xf0]  ;;  %v7123_v47 = vadd.f32 %v7122_v52, %v7109_v12  ;;  %v7150_v12 = vpop.f32.mrf.mxu0  ;;  %v13358_v52 = vor.u32 %v14716_v30, %v13357_v53  ;;  %v14736_v23 = vld [vmem:[#allocation13 + $0x1ae4] sm:$0xf0]  ;;  %v13333_v57 = vld [vmem:[#allocation13 + $0x1a10] sm:$0xf] }
 0x55a   :  { %8316 = vmatpush.bf16.msra.mxu2 %v13122_v45  ;;  %v14669_v45 = vld [vmem:[#allocation13 + $0x18d4] sm:$0xf]  ;;  %v13082_v3 = vor.u32 %v14645_v33, %v13079_v34  ;;  %v7111_v9 = vadd.f32 %v7110_v15, %v7097_v46  ;;  %v7164_v33 = vpop.f32.mrf.mxu1  ;;  %v14659_v34 = vld [vmem:[#allocation13 + $0x1884] sm:$0xf]  ;;  %v13445_v46 = vld [vmem:[#allocation13 + $0x1af0] sm:$0xf] }
 0x55b   :  { %v16623_v15 = vld [vmem:[#allocation83_spill] sm:$0xff] }
 0x55c   :  { %v14710_v6 = vld [vmem:[#allocation13 + $0x1a14] sm:$0xf0] }
 0x55d   :  { %8278 = vmatpush.bf16.msrb.mxu3 %v12898_v43  ;;  %v13178_v43 = vor.u32 %v14669_v45, %v13175_v7  ;;  %v13135_v45 = vld [vmem:[#allocation13 + $0x1888] sm:$0xf0]  ;;  %v13334_v30 = vor.u32 %v14710_v6, %v13333_v57  ;;  %v14728_v57 = vld [vmem:[#allocation13 + $0x1aa4] sm:$0xf0] }
 0x55e   :  { %8317 = vmatpush.bf16.msra.mxu2 %v13114_v26  ;;  %v13071_v26 = vld [vmem:[#allocation13 + $0x1808] sm:$0xf0] }
 0x561   :  { %8279 = vmatpush.bf16.msrb.mxu3 %v12890_v20  ;;  %v13074_v20 = vor.u32 %v14643_v44, %v13071_v26  ;;  %v16620_v44 = vld [vmem:[#allocation80_spill] sm:$0xff]  ;;  %v13138_v26 = vor.u32 %v14659_v34, %v13135_v45  ;;  %v14732_v34 = vld [vmem:[#allocation13 + $0x1ac4] sm:$0xf0]  ;;  %v13637_v45 = vld [vmem:[#allocation13 + $0x1c70] sm:$0xf]  ;;  %v16314_v6 = vpop.f32.mrf.mxu0 }
 0x562   :  { %8318 = vmatpush.bf16.msra.mxu2 %v13106_v37  ;;  %v7124_v37 = vpop.f32.mrf.mxu2 }
 0x563   :  { %v7125_v35 = vadd.f32 %v7124_v37, %v7111_v9 }
 0x565   :  { %8280 = vmatpush.bf16.msrb.mxu3 %v12882_v41  ;;  %v13151_v41 = vld [vmem:[#allocation13 + $0x18a8] sm:$0xf0] }
 0x566   :  { %8319 = vmatpush.bf16.msra.mxu2 %v13098_v11  ;;  %v13154_v11 = vor.u32 %v14663_v14, %v13151_v41  ;;  %v13438_v41 = vor.u32 %v14736_v23, %v13437_v24  ;;  %v16632_v24 = vld [vmem:[#allocation26_spill] sm:$0xff] }
 0x568   :  { %8281 = vmatmul.bf16.vlgmr.msrb.gmra.mxu3 %v16258_v61  ;;  %v13382_v61 = vor.u32 %v14722_v5, %v13381_v38  ;;  %v16622_v38 = vld [vmem:[#allocation66_spill] sm:$0xff] }
 0x569   :  { %8329 = vmatpush.bf16.msra.mxu3 %v13194_v58  ;;  %v3349_v5 = vadd.f32 %v16622_v38, %v16621_v28  ;;  %v14730_v28 = vld [vmem:[#allocation13 + $0x1ab4] sm:$0xf0]  ;;  %v16629_v38 = vld [vmem:[#allocation82_spill] sm:$0xff] }
 0x56a   :  { %8320 = vmatpush.bf16.msra.mxu2 %v13090_v22 }
 0x56d   :  { %8330 = vmatpush.bf16.msra.mxu3 %v13186_v63  ;;  %v7136_v58 = vpop.f32.mrf.mxu3  ;;  %v13146_v63 = vor.u32 %v14661_v19, %v13143_v13 }
 0x56e   :  { %8321 = vmatpush.bf16.msra.mxu2 %v13082_v3  ;;  %v7137_v29 = vadd.f32 %v7136_v58, %v7123_v47  ;;  %v14738_v3 = vld [vmem:[#allocation13 + $0x1af4] sm:$0xf0] }
 0x56f   :  { %v13446_v37 = vor.u32 %v14738_v3, %v13445_v46  ;;  %v14734_v58 = vld [vmem:[#allocation13 + $0x1ad4] sm:$0xf0] }
 0x570   :  { %v7151_v22 = vadd.f32 %v7150_v12, %v7137_v29  ;;  %v16627_v29 = vld [vmem:[#allocation72_spill] sm:$0xff] }
 0x571   :  { %8331 = vmatpush.bf16.msra.mxu3 %v13178_v43  ;;  %v16289_v43 = vld [vmem:[#allocation12 + $0x5] ss:$0 sm:$0xff] }
 0x572   :  { %8322 = vmatpush.bf16.msra.mxu2 %v13074_v20  ;;  %v7165_v7 = vadd.f32 %v7164_v33, %v7151_v22  ;;  %v1871_v47 = vadd.f32 %v16289_v43, %v16620_v44  ;;  %v13325_v22 = vld [vmem:[#allocation13 + $0x1a00] sm:$0xf]  ;;  %v14708_v33 = vld [vmem:[#allocation13 + $0x1a04] sm:$0xf0] }
 0x574   :  { %v16294_v1 = vadd.f32 %v7165_v7, %v16242_v17  ;;  %v1920_v9 = vadd.f32 %v16623_v15, %v1871_v47  ;;  %v16630_v15 = vld [vmem:[#allocation103_spill] sm:$0xff] }
 0x575   :  { %8332 = vmatpush.bf16.msra.mxu3 %v13170_v48  ;;  %8323 = vmatmul.bf16.vlgmr.msra.gmra.mxu2 %v16125_v10  ;;  %v13349_v10 = vld [vmem:[#allocation13 + $0x1a30] sm:$0xf]  ;;  %v7138_v20 = vpop.f32.mrf.mxu3 }
 0x576   :  { %9191 = vmatpush.bf16.msrb.mxu2 %v13382_v61  ;;  %v13350_v48 = vor.u32 %v14714_v39, %v13349_v10  ;;  %v13341_v61 = vld [vmem:[#allocation13 + $0x1a20] sm:$0xf]  ;;  %v16299_v59 = vadd.f32 %v7138_v20, %v7125_v35  ;;  %v1952_v17 = vmax.f32 %v1920_v9, 0.0  ;;  %v16626_v35 = vld [vmem:[#allocation81_spill] sm:$0xff]  ;;  %v14786_v10 = vld [vmem:[#allocation13 + $0x1c74] sm:$0xf0] }
 0x577   :  { %v13342_v14 = vor.u32 %v14712_v2, %v13341_v61  ;;  %v1951_v13 = vmax.f32 %v16626_v35, 0.0  ;;  %v16628_v39 = vld [vmem:[#allocation73_spill] sm:$0xff]  ;;  %v13638_v47 = vor.u32 %v14786_v10, %v13637_v45  ;;  %v13629_v20 = vld [vmem:[#allocation13 + $0x1c60] sm:$0xf]  ;;  %v16631_v61 = vld [vmem:[#allocation87_spill] sm:$0xff] }
 0x578   :  { %v14780_v45 = vld [vmem:[#allocation13 + $0x1c44] sm:$0xf0] }
 0x579   :  { %8333 = vmatpush.bf16.msra.mxu3 %v13162_v0  ;;  %v16624_v0 = vld [vmem:[#allocation68_spill] sm:$0xff]  ;;  %v1967_v7 = vpack.c.bf16 %v1951_v13, %v1951_v13 }
 0x57a   :  { %9192 = vmatpush.bf16.msrb.mxu2 %v13374_v25  ;;  %v3363_v25 = vadd.f32 %v16624_v0, %v3349_v5  ;;  %v1876_v5 = vadd.f32 %v16289_v43, %v16629_v38  ;;  %v8100_v0 = vpop.f32.mrf.mxu2 }
 0x57c   :  { %v1925_v2 = vadd.f32 %v16631_v61, %v1876_v5  ;;  %v14778_v5 = vld [vmem:[#allocation13 + $0x1c34] sm:$0xf0]  ;;  %v16637_v61 = vld [vmem:[#allocation74_spill] sm:$0xff] }
 0x57d   :  { %8334 = vmatpush.bf16.msra.mxu3 %v13154_v11  ;;  %v13429_v11 = vld [vmem:[#allocation13 + $0x1ad0] sm:$0xf] }
 0x57e   :  { %9193 = vmatpush.bf16.msrb.mxu2 %v13366_v18  ;;  %v16625_v18 = vld [vmem:[#allocation69_spill] sm:$0xff]  ;;  %v13430_v12 = vor.u32 %v14734_v58, %v13429_v11  ;;  %v13621_v11 = vld [vmem:[#allocation13 + $0x1c50] sm:$0xf]  ;;  %v14782_v58 = vld [vmem:[#allocation13 + $0x1c54] sm:$0xf0] }
 0x57f   :  { %v3377_v19 = vadd.f32 %v16625_v18, %v3363_v25  ;;  %v1954_v18 = vmax.f32 %v1925_v2, 0.0 }
 0x581   :  { %8335 = vmatpush.bf16.msra.mxu3 %v13146_v63  ;;  %v3391_v53 = vadd.f32 %v16627_v29, %v3377_v19  ;;  %v1968_v63 = vpack.c.bf16 %v1952_v17, %v1952_v17  ;;  %v16633_v19 = vld [vmem:[#allocation77_spill] sm:$0xff]  ;;  %v1970_v10 = vpack.c.bf16 %v1954_v18, %v1954_v18  ;;  %v16639_v18 = vld [vmem:[#allocation27_spill] sm:$0xff] }
 0x582   :  { %9194 = vmatpush.bf16.msrb.mxu2 %v13358_v52  ;;  %v13421_v52 = vld [vmem:[#allocation13 + $0x1ac0] sm:$0xf]  ;;  %v8102_v38 = vpop.f32.mrf.mxu2 }
 0x583   :  { %v3405_v46 = vadd.f32 %v16628_v39, %v3391_v53  ;;  %v13422_v3 = vor.u32 %v14732_v34, %v13421_v52  ;;  %v8362_v44 = vunpack.c.l.b16 %v1968_v63  ;;  %v13622_v53 = vor.u32 %v14782_v58, %v13621_v11  ;;  %v13613_v34 = vld [vmem:[#allocation13 + $0x1c40] sm:$0xf] }
 0x584   :  { %v13597_v11 = vld [vmem:[#allocation13 + $0x1c20] sm:$0xf] }
 0x585   :  { %8336 = vmatpush.bf16.msra.mxu3 %v13138_v26  ;;  %v13413_v26 = vld [vmem:[#allocation13 + $0x1ab0] sm:$0xf]  ;;  %v3419_v9 = vadd.f32 %v16630_v15, %v3405_v46 }
 0x586   :  { %9195 = vmatpush.bf16.msrb.mxu2 %v13350_v48  ;;  %v14784_v48 = vld [vmem:[#allocation13 + $0x1c64] sm:$0xf0]  ;;  %v13414_v25 = vor.u32 %v14730_v28, %v13413_v26  ;;  %v8128_v28 = vpop.f32.mrf.mxu0  ;;  %v13701_v15 = vld [vmem:[#allocation13 + $0x1cf0] sm:$0xf] }
 0x587   :  { %v3433_v23 = vadd.f32 %v16632_v24, %v3419_v9  ;;  %v14802_v9 = vld [vmem:[#allocation13 + $0x1cf4] sm:$0xf0] }
 0x588   :  { %8337 = vmatmul.bf16.vlgmr.msra.gmra.mxu3 %v16275_v36  ;;  %v13326_v36 = vor.u32 %v14708_v33, %v13325_v22  ;;  %v16634_v22 = vld [vmem:[#allocation84_spill] sm:$0xff]  ;;  %v16319_v33 = vpop.f32.mrf.mxu1 }
 0x589   :  { %9205 = vmatpush.bf16.msrb.mxu3 %v13446_v37  ;;  %v8361_v37 = vunpack.c.l.b16 %v1967_v7  ;;  %v3447_v35 = vadd.f32 %v16633_v19, %v3433_v23  ;;  %v1953_v63 = vmax.f32 %v16634_v22, 0.0  ;;  %v16635_v7 = vld [vmem:[#allocation78_spill] sm:$0xff]  ;;  %v16638_v23 = vld [vmem:[#allocation101_spill] sm:$0xff] }
 0x58a   :  { %9196 = vmatpush.bf16.msrb.mxu2 %v13342_v14  ;;  %v13630_v14 = vor.u32 %v14784_v48, %v13629_v20  ;;  %v16636_v20 = vld [vmem:[#allocation95_spill] sm:$0xff] }
 0x58b   :  { %v16312_v17 = vpack.c.b16 %v8362_v44, %v8361_v37  ;;  %v3461_v39 = vadd.f32 %v16635_v7, %v3447_v35  ;;  %v14724_v44 = vld [vmem:[#allocation13 + $0x1a84] sm:$0xf0]  ;;  %v1969_v26 = vpack.c.bf16 %v1953_v63, %v1953_v63  ;;  %v1891_v48 = vadd.f32 %v16289_v43, %v16636_v20 }
 0x58c   :  { %v8368_v37 = vunpack.c.l.b16 %v1970_v10  ;;  %v16640_v10 = vld [vmem:[#allocation98_spill] sm:$0xff] }
 0x58d   :  { %9206 = vmatpush.bf16.msrb.mxu3 %v13438_v41  ;;  %v13405_v41 = vld [vmem:[#allocation13 + $0x1aa0] sm:$0xf]  ;;  %v8114_v29 = vpop.f32.mrf.mxu3  ;;  %v3475_v2 = vadd.f32 %v16637_v61, %v3461_v39  ;;  %v8367_v58 = vunpack.c.l.b16 %v1969_v26  ;;  %v14772_v61 = vld [vmem:[#allocation13 + $0x1c04] sm:$0xf0] }
 0x58e   :  { %9197 = vmatpush.bf16.msrb.mxu2 %v13334_v30  ;;  %v13406_v13 = vor.u32 %v14728_v57, %v13405_v41  ;;  %v13397_v30 = vld [vmem:[#allocation13 + $0x1a90] sm:$0xf]  ;;  %v8115_v52 = vadd.f32 %v8114_v29, %v8100_v0  ;;  %v1940_v0 = vadd.f32 %v16638_v23, %v1891_v48  ;;  %v13702_v57 = vor.u32 %v14802_v9, %v13701_v15  ;;  %v14776_v29 = vld [vmem:[#allocation13 + $0x1c24] sm:$0xf0]  ;;  %v13581_v9 = vld [vmem:[#allocation13 + $0x1c00] sm:$0xf] }
 0x58f   :  { %v3489_v19 = vadd.f32 %v16639_v18, %v3475_v2  ;;  %v16642_v48 = vld [vmem:[#allocation99_spill] sm:$0xff]  ;;  %v13677_v2 = vld [vmem:[#allocation13 + $0x1cc0] sm:$0xf] }
 0x590   :  { %v8142_v35 = vpop.f32.mrf.mxu1  ;;  %v1960_v22 = vmax.f32 %v1940_v0, 0.0  ;;  %v14721_v23 = vld [vmem:[#allocation13 + $0x1a74] sm:$0xf]  ;;  %v13383_v0 = vld [vmem:[#allocation13 + $0x1a78] sm:$0xf0] }
 0x591   :  { %9207 = vmatpush.bf16.msrb.mxu3 %v13430_v12  ;;  %v14726_v12 = vld [vmem:[#allocation13 + $0x1a94] sm:$0xf0]  ;;  %v4631_v7 = vadd.f32 %v16640_v10, %v3489_v19  ;;  %v13375_v10 = vld [vmem:[#allocation13 + $0x1a68] sm:$0xf0] }
 0x592   :  { %9198 = vmatpush.bf16.msrb.mxu2 %v13326_v36  ;;  %v13398_v46 = vor.u32 %v14726_v12, %v13397_v30  ;;  %v13614_v36 = vor.u32 %v14780_v45, %v13613_v34  ;;  %v14800_v30 = vld [vmem:[#allocation13 + $0x1ce4] sm:$0xf0]  ;;  %v16327_v12 = vpack.c.b16 %v8368_v37, %v8367_v58  ;;  %v13589_v45 = vld [vmem:[#allocation13 + $0x1c10] sm:$0xf]  ;;  %v1976_v20 = vpack.c.bf16 %v1960_v22, %v1960_v22 }
 0x593   :  { %v4645_v37 = vadd.f32 %v16642_v48, %v4631_v7  ;;  %v13582_v58 = vor.u32 %v14772_v61, %v13581_v9  ;;  %v16649_v48 = vld [vmem:[#allocation115_spill] sm:$0xff] }
 0x594   :  { %v8386_v19 = vunpack.c.l.b16 %v1976_v20  ;;  %v16648_v20 = vld [vmem:[#allocation114_spill] sm:$0xff] }
 0x595   :  { %9208 = vmatpush.bf16.msrb.mxu3 %v13422_v3  ;;  %9199 = vmatmul.bf16.vlgmr.msrb.gmra.mxu2 %v16312_v17  ;;  %v13389_v3 = vld [vmem:[#allocation13 + $0x1a80] sm:$0xf] }
 0x596   :  { %9247 = vmatpush.bf16.msra.mxu2 %v13638_v47  ;;  %v13605_v47 = vld [vmem:[#allocation13 + $0x1c30] sm:$0xf]  ;;  %v13390_v24 = vor.u32 %v14724_v44, %v13389_v3  ;;  %v14798_v3 = vld [vmem:[#allocation13 + $0x1cd4] sm:$0xf0] }
 0x597   :  { %v13606_v41 = vor.u32 %v14778_v5, %v13605_v47  ;;  %v16641_v47 = vld [vmem:[#allocation97_spill] sm:$0xff] }
 0x598   :  { %v8156_v39 = vpop.f32.mrf.mxu2  ;;  %v1959_v26 = vmax.f32 %v16641_v47, 0.0 }
 0x599   :  { %9209 = vmatpush.bf16.msrb.mxu3 %v13414_v25  ;;  %v8129_v25 = vadd.f32 %v8128_v28, %v8115_v52  ;;  %v13598_v52 = vor.u32 %v14776_v29, %v13597_v11  ;;  %v8130_v28 = vpop.f32.mrf.mxu0  ;;  %v13669_v29 = vld [vmem:[#allocation13 + $0x1cb0] sm:$0xf] }
 0x59a   :  { %9248 = vmatpush.bf16.msra.mxu2 %v13630_v14  ;;  %v8116_v14 = vpop.f32.mrf.mxu3 }
 0x59b   :  { %v8143_v63 = vadd.f32 %v8142_v35, %v8129_v25  ;;  %v1975_v25 = vpack.c.bf16 %v1959_v26, %v1959_v26  ;;  %v13661_v26 = vld [vmem:[#allocation13 + $0x1ca0] sm:$0xf] }
 0x59d   :  { %9210 = vmatpush.bf16.msrb.mxu3 %v13406_v13  ;;  %v8117_v13 = vadd.f32 %v8116_v14, %v8102_v38  ;;  %v8157_v44 = vadd.f32 %v8156_v39, %v8143_v63  ;;  %v16643_v14 = vld [vmem:[#allocation119_spill] sm:$0xff]  ;;  %v8385_v7 = vunpack.c.l.b16 %v1975_v25  ;;  %v16646_v39 = vld [vmem:[#allocation25_spill] sm:$0xff] }
 0x59e   :  { %9249 = vmatpush.bf16.msra.mxu2 %v13622_v53  ;;  %v13693_v53 = vld [vmem:[#allocation13 + $0x1ce0] sm:$0xf]  ;;  %v16645_v63 = vld [vmem:[#allocation35_spill] sm:$0xff] }
 0x59f   :  { %v13694_v34 = vor.u32 %v14800_v30, %v13693_v53  ;;  %v8131_v38 = vadd.f32 %v8130_v28, %v8117_v13  ;;  %v13386_v13 = vor.u32 %v14721_v23, %v13383_v0  ;;  %v14794_v53 = vld [vmem:[#allocation13 + $0x1cb4] sm:$0xf0]  ;;  %v16644_v30 = vld [vmem:[#allocation100_spill] sm:$0xff]  ;;  %v14792_v28 = vld [vmem:[#allocation13 + $0x1ca4] sm:$0xf0] }
 0x5a0   :  { %v8158_v35 = vpop.f32.mrf.mxu2  ;;  %v1896_v22 = vadd.f32 %v16289_v43, %v16644_v30  ;;  %v14717_v43 = vld [vmem:[#allocation13 + $0x1a54] sm:$0xf]  ;;  %v13662_v61 = vor.u32 %v14792_v28, %v13661_v26  ;;  %v13653_v0 = vld [vmem:[#allocation13 + $0x1c90] sm:$0xf]  ;;  %v14790_v25 = vld [vmem:[#allocation13 + $0x1c94] sm:$0xf0] }
 0x5a1   :  { %9211 = vmatpush.bf16.msrb.mxu3 %v13398_v46  ;;  %v14774_v46 = vld [vmem:[#allocation13 + $0x1c14] sm:$0xf0]  ;;  %v16654_v28 = vld [vmem:[#allocation117_spill] sm:$0xff] }
 0x5a2   :  { %9250 = vmatpush.bf16.msra.mxu2 %v13614_v36  ;;  %v13685_v36 = vld [vmem:[#allocation13 + $0x1cd0] sm:$0xf]  ;;  %v13590_v5 = vor.u32 %v14774_v46, %v13589_v45  ;;  %v14719_v45 = vld [vmem:[#allocation13 + $0x1a64] sm:$0xf]  ;;  %v1945_v46 = vadd.f32 %v16646_v39, %v1896_v22 }
 0x5a3   :  { %v13686_v15 = vor.u32 %v14798_v3, %v13685_v36  ;;  %v13670_v36 = vor.u32 %v14794_v53, %v13669_v29  ;;  %v16338_v3 = vpack.c.b16 %v8386_v19, %v8385_v7  ;;  %v13378_v47 = vor.u32 %v14719_v45, %v13375_v10  ;;  %v14715_v19 = vld [vmem:[#allocation13 + $0x1a44] sm:$0xf]  ;;  %v16652_v53 = vld [vmem:[#allocation38_spill] sm:$0xff]  ;;  %v13645_v45 = vld [vmem:[#allocation13 + $0x1c80] sm:$0xf] }
 0x5a4   :  { %v1962_v9 = vmax.f32 %v1945_v46, 0.0  ;;  %v14788_v10 = vld [vmem:[#allocation13 + $0x1c84] sm:$0xf0]  ;;  %v14713_v7 = vld [vmem:[#allocation13 + $0x1a34] sm:$0xf] }
 0x5a5   :  { %9212 = vmatpush.bf16.msrb.mxu3 %v13390_v24  ;;  %v14796_v24 = vld [vmem:[#allocation13 + $0x1cc4] sm:$0xf0]  ;;  %v16653_v46 = vld [vmem:[#allocation47_spill] sm:$0xff] }
 0x5a6   :  { %9251 = vmatpush.bf16.msra.mxu2 %v13606_v41  ;;  %v4659_v41 = vadd.f32 %v16643_v14, %v4645_v37  ;;  %v13678_v18 = vor.u32 %v14796_v24, %v13677_v2  ;;  %v5797_v37 = vadd.f32 %v16649_v48, %v16648_v20  ;;  %v8184_v2 = vpop.f32.mrf.mxu0  ;;  %v16650_v14 = vld [vmem:[#allocation102_spill] sm:$0xff]  ;;  %v1978_v29 = vpack.c.bf16 %v1962_v9, %v1962_v9  ;;  %v14711_v20 = vld [vmem:[#allocation13 + $0x1a24] sm:$0xf] }
 0x5a8   :  { %9213 = vmatmul.bf16.vlgmr.msrb.gmra.mxu3 %v16327_v12  ;;  %v8392_v26 = vunpack.c.l.b16 %v1978_v29  ;;  %v14709_v29 = vld [vmem:[#allocation13 + $0x1a14] sm:$0xf] }
 0x5a9   :  { %9261 = vmatpush.bf16.msra.mxu3 %v13702_v57  ;;  %v8144_v57 = vpop.f32.mrf.mxu1 }
 0x5aa   :  { %9252 = vmatpush.bf16.msra.mxu2 %v13598_v52  ;;  %v8145_v11 = vadd.f32 %v8144_v57, %v8131_v38  ;;  %v4673_v52 = vadd.f32 %v16645_v63, %v4659_v41  ;;  %v16647_v38 = vld [vmem:[#allocation104_spill] sm:$0xff]  ;;  %v1961_v41 = vmax.f32 %v16650_v14, 0.0  ;;  %v16651_v57 = vld [vmem:[#allocation105_spill] sm:$0xff]  ;;  %v13654_v63 = vor.u32 %v14790_v25, %v13653_v0  ;;  %v13439_v25 = vld [vmem:[#allocation13 + $0x1ae8] sm:$0xf0] }
 0x5ab   :  { %v8170_v24 = vpop.f32.mrf.mxu3  ;;  %v14735_v0 = vld [vmem:[#allocation13 + $0x1ae4] sm:$0xf] }
 0x5ac   :  { %v1977_v39 = vpack.c.bf16 %v1961_v41, %v1961_v41 }
 0x5ad   :  { %9262 = vmatpush.bf16.msra.mxu3 %v13694_v34  ;;  %v8159_v34 = vadd.f32 %v8158_v35, %v8145_v11  ;;  %v13359_v35 = vld [vmem:[#allocation13 + $0x1a48] sm:$0xf0] }
 0x5ae   :  { %9253 = vmatpush.bf16.msra.mxu2 %v13590_v5  ;;  %v4687_v5 = vadd.f32 %v16647_v38, %v4673_v52  ;;  %v13362_v52 = vor.u32 %v14715_v19, %v13359_v35  ;;  %v8391_v48 = vunpack.c.l.b16 %v1977_v39  ;;  %v8186_v14 = vpop.f32.mrf.mxu0  ;;  %v13442_v35 = vor.u32 %v14735_v0, %v13439_v25  ;;  %v16658_v39 = vld [vmem:[#allocation61_spill] sm:$0xff]  ;;  %v13631_v25 = vld [vmem:[#allocation13 + $0x1c68] sm:$0xf0] }
 0x5af   :  { %v14783_v0 = vld [vmem:[#allocation13 + $0x1c64] sm:$0xf] }
 0x5b0   :  { %v4701_v11 = vadd.f32 %v16651_v57, %v4687_v5  ;;  %v13646_v5 = vor.u32 %v14788_v10, %v13645_v45  ;;  %v16352_v41 = vpack.c.b16 %v8392_v26, %v8391_v48  ;;  %v16656_v57 = vld [vmem:[#allocation118_spill] sm:$0xff]  ;;  %v13431_v45 = vld [vmem:[#allocation13 + $0x1ad8] sm:$0xf0]  ;;  %v14731_v26 = vld [vmem:[#allocation13 + $0x1ac4] sm:$0xf] }
 0x5b1   :  { %9263 = vmatpush.bf16.msra.mxu3 %v13686_v15  ;;  %v13367_v15 = vld [vmem:[#allocation13 + $0x1a58] sm:$0xf0] }
 0x5b2   :  { %9254 = vmatpush.bf16.msra.mxu2 %v13582_v58  ;;  %v13370_v23 = vor.u32 %v14717_v43, %v13367_v15  ;;  %v5811_v58 = vadd.f32 %v16168_v40, %v5797_v37  ;;  %v4715_v30 = vadd.f32 %v16652_v53, %v4701_v11  ;;  %v13351_v40 = vld [vmem:[#allocation13 + $0x1a38] sm:$0xf0]  ;;  %v16655_v37 = vld [vmem:[#allocation75_spill] sm:$0xff]  ;;  %v16657_v53 = vld [vmem:[#allocation106_spill] sm:$0xff] }
 0x5b3   :  { %v13354_v15 = vor.u32 %v14713_v7, %v13351_v40 }
 0x5b4   :  { %v5825_v22 = vadd.f32 %v16185_v4, %v5811_v58  ;;  %v8172_v4 = vpop.f32.mrf.mxu3 }
 0x5b5   :  { %9264 = vmatpush.bf16.msra.mxu3 %v13678_v18  ;;  %9255 = vmatmul.bf16.vlgmr.msra.gmra.mxu2 %v16338_v3  ;;  %v8171_v18 = vadd.f32 %v8170_v24, %v8157_v44  ;;  %v14737_v44 = vld [vmem:[#allocation13 + $0x1af4] sm:$0xf]  ;;  %v8173_v24 = vadd.f32 %v8172_v4, %v8159_v34 }
 0x5b6   :  { %9303 = vmatpush.bf16.msrb.mxu2 %v13386_v13  ;;  %v8198_v13 = vpop.f32.mrf.mxu1  ;;  %v5839_v38 = vadd.f32 %v16654_v28, %v5825_v22  ;;  %v13423_v28 = vld [vmem:[#allocation13 + $0x1ac8] sm:$0xf0]  ;;  %v14785_v4 = vld [vmem:[#allocation13 + $0x1c74] sm:$0xf] }
 0x5b7   :  { %v8185_v43 = vadd.f32 %v8184_v2, %v8171_v18  ;;  %v8187_v58 = vadd.f32 %v8186_v14, %v8173_v24 }
 0x5b8   :  { %v5853_v11 = vadd.f32 %v16656_v57, %v5839_v38  ;;  %v8212_v22 = vpop.f32.mrf.mxu2  ;;  %v16659_v38 = vld [vmem:[#allocation41_spill] sm:$0xff] }
 0x5b9   :  { %9265 = vmatpush.bf16.msra.mxu3 %v13670_v36  ;;  %v4729_v36 = vadd.f32 %v16653_v46, %v4715_v30  ;;  %v8199_v18 = vadd.f32 %v8198_v13, %v8185_v43  ;;  %v7041_v43 = vadd.f32 %v16284_v31, %v16281_v56  ;;  %v13634_v31 = vor.u32 %v14783_v0, %v13631_v25  ;;  %v14727_v57 = vld [vmem:[#allocation13 + $0x1aa4] sm:$0xf] }
 0x5ba   :  { %9304 = vmatpush.bf16.msrb.mxu2 %v13378_v47  ;;  %v13447_v47 = vld [vmem:[#allocation13 + $0x1af8] sm:$0xf0]  ;;  %v5867_v34 = vadd.f32 %v16198_v32, %v5853_v11  ;;  %v14707_v32 = vld [vmem:[#allocation13 + $0x1a04] sm:$0xf]  ;;  %v13407_v11 = vld [vmem:[#allocation13 + $0x1aa8] sm:$0xf0] }
 0x5bb   :  { %v13450_v9 = vor.u32 %v14737_v44, %v13447_v47  ;;  %v8213_v7 = vadd.f32 %v8212_v22, %v8199_v18  ;;  %v13327_v47 = vld [vmem:[#allocation13 + $0x1a08] sm:$0xf0]  ;;  %v16660_v18 = vld [vmem:[#allocation85_spill] sm:$0xff]  ;;  %v16662_v22 = vld [vmem:[#allocation28_spill] sm:$0xff] }
 0x5bd   :  { %9266 = vmatpush.bf16.msra.mxu3 %v13662_v61  ;;  %v4743_v61 = vadd.f32 %v16655_v37, %v4729_v36  ;;  %v5881_v36 = vadd.f32 %v16212_v42, %v5867_v34  ;;  %v16361_v13 = vadd.f32 %v8213_v7, %v16279_v62  ;;  %v13330_v42 = vor.u32 %v14707_v32, %v13327_v47  ;;  %v14729_v37 = vld [vmem:[#allocation13 + $0x1ab4] sm:$0xf]  ;;  %v13399_v34 = vld [vmem:[#allocation13 + $0x1a98] sm:$0xf0]  ;;  %v8240_v32 = vpop.f32.mrf.mxu0 }
 0x5be   :  { %9305 = vmatpush.bf16.msrb.mxu2 %v13370_v23  ;;  %v13343_v23 = vld [vmem:[#allocation13 + $0x1a28] sm:$0xf0]  ;;  %v8200_v2 = vpop.f32.mrf.mxu1  ;;  %v13426_v62 = vor.u32 %v14731_v26, %v13423_v28  ;;  %v13607_v47 = vld [vmem:[#allocation13 + $0x1c38] sm:$0xf0]  ;;  %v14801_v26 = vld [vmem:[#allocation13 + $0x1cf4] sm:$0xf] }
 0x5bf   :  { %v13346_v19 = vor.u32 %v14711_v20, %v13343_v23  ;;  %v4757_v30 = vadd.f32 %v16657_v53, %v4743_v61  ;;  %v8201_v10 = vadd.f32 %v8200_v2, %v8187_v58  ;;  %v13415_v61 = vld [vmem:[#allocation13 + $0x1ab8] sm:$0xf0]  ;;  %v14781_v58 = vld [vmem:[#allocation13 + $0x1c54] sm:$0xf] }
 0x5c0   :  { %v8214_v20 = vpop.f32.mrf.mxu2  ;;  %v13418_v56 = vor.u32 %v14729_v37, %v13415_v61  ;;  %v13623_v2 = vld [vmem:[#allocation13 + $0x1c58] sm:$0xf0]  ;;  %v13695_v37 = vld [vmem:[#allocation13 + $0x1ce8] sm:$0xf0] }
 0x5c1   :  { %9267 = vmatpush.bf16.msra.mxu3 %v13654_v63  ;;  %v13335_v63 = vld [vmem:[#allocation13 + $0x1a18] sm:$0xf0]  ;;  %v4771_v46 = vadd.f32 %v16658_v39, %v4757_v30  ;;  %v8215_v23 = vadd.f32 %v8214_v20, %v8201_v10  ;;  %v13626_v53 = vor.u32 %v14781_v58, %v13623_v2  ;;  %v14725_v30 = vld [vmem:[#allocation13 + $0x1a94] sm:$0xf]  ;;  %v16663_v10 = vld [vmem:[#allocation110_spill] sm:$0xff] }
 0x5c2   :  { %9306 = vmatpush.bf16.msrb.mxu2 %v13362_v52  ;;  %v14733_v52 = vld [vmem:[#allocation13 + $0x1ad4] sm:$0xf]  ;;  %v13338_v40 = vor.u32 %v14709_v29, %v13335_v63  ;;  %v13410_v29 = vor.u32 %v14727_v57, %v13407_v11  ;;  %v13703_v28 = vld [vmem:[#allocation13 + $0x1cf8] sm:$0xf0]  ;;  %v13599_v20 = vld [vmem:[#allocation13 + $0x1c28] sm:$0xf0] }
 0x5c3   :  { %v13434_v44 = vor.u32 %v14733_v52, %v13431_v45  ;;  %v14779_v52 = vld [vmem:[#allocation13 + $0x1c44] sm:$0xf]  ;;  %v13615_v45 = vld [vmem:[#allocation13 + $0x1c48] sm:$0xf0]  ;;  %v13591_v2 = vld [vmem:[#allocation13 + $0x1c18] sm:$0xf0] }
 0x5c4   :  { %v16665_v61 = vld [vmem:[#allocation90_spill] sm:$0xff] }
 0x5c5   :  { %9268 = vmatpush.bf16.msra.mxu3 %v13646_v5  ;;  %v4785_v5 = vadd.f32 %v16659_v38, %v4771_v46  ;;  %v13402_v46 = vor.u32 %v14725_v30, %v13399_v34  ;;  %v16664_v38 = vld [vmem:[#allocation89_spill] sm:$0xff]  ;;  %v8242_v30 = vpop.f32.mrf.mxu0 }
 0x5c6   :  { %9307 = vmatpush.bf16.msrb.mxu2 %v13354_v15  ;;  %v13639_v15 = vld [vmem:[#allocation13 + $0x1c78] sm:$0xf0] }
 0x5c7   :  { %v13642_v48 = vor.u32 %v14785_v4, %v13639_v15 }
 0x5c8   :  { %9269 = vmatmul.bf16.vlgmr.msra.gmra.mxu3 %v16352_v41 }
 0x5c9   :  { %9317 = vmatpush.bf16.msrb.mxu3 %v13450_v9  ;;  %v5997_v9 = vadd.f32 %v5881_v36, %v4785_v5  ;;  %v14723_v36 = vld [vmem:[#allocation13 + $0x1a84] sm:$0xf] }
 0x5ca   :  { %9308 = vmatpush.bf16.msrb.mxu2 %v13346_v19  ;;  %v16661_v19 = vld [vmem:[#allocation86_spill] sm:$0xff] }
 0x5cb   :  { %v7171_v24 = vadd.f32 %v7041_v43, %v5997_v9  ;;  %v8226_v39 = vpop.f32.mrf.mxu3  ;;  %v13706_v9 = vor.u32 %v14801_v26, %v13703_v28  ;;  %v16669_v28 = vld [vmem:[#allocation94_spill] sm:$0xff] }
 0x5cc   :  { %v8241_v4 = vadd.f32 %v8240_v32, %v8226_v39  ;;  %v16668_v39 = vld [vmem:[#allocation93_spill] sm:$0xff]  ;;  %v14793_v32 = vld [vmem:[#allocation13 + $0x1cb4] sm:$0xf] }
 0x5cd   :  { %9318 = vmatpush.bf16.msrb.mxu3 %v13442_v35  ;;  %v16366_v14 = vadd.f32 %v8215_v23, %v7171_v24  ;;  %v3517_v35 = vadd.f32 %v16661_v19, %v16660_v18  ;;  %v14797_v18 = vld [vmem:[#allocation13 + $0x1cd4] sm:$0xf]  ;;  %v13687_v19 = vld [vmem:[#allocation13 + $0x1cd8] sm:$0xf0] }
 0x5ce   :  { %9309 = vmatpush.bf16.msrb.mxu2 %v13338_v40  ;;  %v13391_v40 = vld [vmem:[#allocation13 + $0x1a88] sm:$0xf0] }
 0x5cf   :  { %v3531_v63 = vadd.f32 %v16662_v22, %v3517_v35  ;;  %v13394_v43 = vor.u32 %v14723_v36, %v13391_v40 }
 0x5d1   :  { %9319 = vmatpush.bf16.msrb.mxu3 %v13434_v44  ;;  %v3545_v7 = vadd.f32 %v16663_v10, %v3531_v63  ;;  %v14777_v44 = vld [vmem:[#allocation13 + $0x1c34] sm:$0xf]  ;;  %v13690_v63 = vor.u32 %v14797_v18, %v13687_v19  ;;  %v14795_v10 = vld [vmem:[#allocation13 + $0x1cc4] sm:$0xf] }
 0x5d2   :  { %9310 = vmatpush.bf16.msrb.mxu2 %v13330_v42  ;;  %v13610_v15 = vor.u32 %v14777_v44, %v13607_v47  ;;  %v14775_v42 = vld [vmem:[#allocation13 + $0x1c24] sm:$0xf]  ;;  %v13671_v47 = vld [vmem:[#allocation13 + $0x1cb8] sm:$0xf0] }
 0x5d3   :  { %v3559_v5 = vadd.f32 %v16664_v38, %v3545_v7  ;;  %v13602_v0 = vor.u32 %v14775_v42, %v13599_v20  ;;  %v8228_v11 = vpop.f32.mrf.mxu3  ;;  %v13679_v7 = vld [vmem:[#allocation13 + $0x1cc8] sm:$0xf0]  ;;  %v16671_v42 = vld [vmem:[#allocation116_spill] sm:$0xff] }
 0x5d4   :  { %v8243_v34 = vadd.f32 %v8242_v30, %v8228_v11  ;;  %v16673_v11 = vld [vmem:[#allocation108_spill] sm:$0xff] }
 0x5d5   :  { %9320 = vmatpush.bf16.msrb.mxu3 %v13426_v62  ;;  %9311 = vmatmul.bf16.vlgmr.msrb.gmra.mxu2 %v16312_v17  ;;  %v13618_v17 = vor.u32 %v14779_v52, %v13615_v45  ;;  %v8254_v62 = vpop.f32.mrf.mxu1  ;;  %v3573_v24 = vadd.f32 %v16665_v61, %v3559_v5  ;;  %v14771_v52 = vld [vmem:[#allocation13 + $0x1c04] sm:$0xf]  ;;  %v13583_v45 = vld [vmem:[#allocation13 + $0x1c08] sm:$0xf0]  ;;  %v13674_v5 = vor.u32 %v14793_v32, %v13671_v47  ;;  %v13655_v61 = vld [vmem:[#allocation13 + $0x1c98] sm:$0xf0] }
 0x5d6   :  { %9359 = vmatpush.bf16.msra.mxu2 %v13642_v48  ;;  %v14799_v48 = vld [vmem:[#allocation13 + $0x1ce4] sm:$0xf]  ;;  %v8255_v23 = vadd.f32 %v8254_v62, %v8241_v4  ;;  %v13586_v40 = vor.u32 %v14771_v52, %v13583_v45 }
 0x5d7   :  { %v13698_v25 = vor.u32 %v14799_v48, %v13695_v37  ;;  %v14789_v37 = vld [vmem:[#allocation13 + $0x1c94] sm:$0xf] }
 0x5d8   :  { %v8268_v58 = vpop.f32.mrf.mxu2 }
 0x5d9   :  { %9321 = vmatpush.bf16.msrb.mxu3 %v13418_v56  ;;  %v14773_v56 = vld [vmem:[#allocation13 + $0x1c14] sm:$0xf]  ;;  %v8269_v35 = vadd.f32 %v8268_v58, %v8255_v23 }
 0x5da   :  { %9360 = vmatpush.bf16.msra.mxu2 %v13634_v31  ;;  %v16666_v31 = vld [vmem:[#allocation111_spill] sm:$0xff]  ;;  %v13594_v22 = vor.u32 %v14773_v56, %v13591_v2  ;;  %v14787_v56 = vld [vmem:[#allocation13 + $0x1c84] sm:$0xf] }
 0x5db   :  { %v3587_v57 = vadd.f32 %v16666_v31, %v3573_v24  ;;  %v16672_v23 = vld [vmem:[#allocation107_spill] sm:$0xff]  ;;  %v13647_v31 = vld [vmem:[#allocation13 + $0x1c88] sm:$0xf0] }
 0x5dc   :  { %v13650_v2 = vor.u32 %v14787_v56, %v13647_v31  ;;  %v14804_v31 = vld [vmem:[#allocation16 + $0x8] sm:$0xff] }
 0x5dd   :  { %9322 = vmatpush.bf16.msrb.mxu3 %v13410_v29  ;;  %v16667_v29 = vld [vmem:[#allocation112_spill] sm:$0xff] }
 0x5de   :  { %9361 = vmatpush.bf16.msra.mxu2 %v13626_v53  ;;  %v3601_v53 = vadd.f32 %v16667_v29, %v3587_v57  ;;  %v8296_v57 = vpop.f32.mrf.mxu0 }
 0x5e0   :  { %v8270_v44 = vpop.f32.mrf.mxu2 }
 0x5e1   :  { %9323 = vmatpush.bf16.msrb.mxu3 %v13402_v46  ;;  %v3615_v46 = vadd.f32 %v16668_v39, %v3601_v53 }
 0x5e2   :  { %9362 = vmatpush.bf16.msra.mxu2 %v13618_v17  ;;  %v8256_v17 = vpop.f32.mrf.mxu1 }
 0x5e3   :  { %v8257_v36 = vadd.f32 %v8256_v17, %v8243_v34  ;;  %v3629_v38 = vadd.f32 %v16669_v28, %v3615_v46 }
 0x5e5   :  { %9324 = vmatpush.bf16.msrb.mxu3 %v13394_v43  ;;  %v8271_v26 = vadd.f32 %v8270_v44, %v8257_v36  ;;  %v16670_v43 = vld [vmem:[#allocation113_spill] sm:$0xff] }
 0x5e6   :  { %9363 = vmatpush.bf16.msra.mxu2 %v13610_v15  ;;  %v3643_v4 = vadd.f32 %v16670_v43, %v3629_v38  ;;  %v14791_v15 = vld [vmem:[#allocation13 + $0x1ca4] sm:$0xf]  ;;  %v8298_v45 = vpop.f32.mrf.mxu0  ;;  %v16679_v38 = vld [vmem:[#allocation67_spill] sm:$0xff]  ;;  %v16680_v43 = vld [vmem:[#allocation76_spill] sm:$0xff] }
 0x5e8   :  { %9325 = vmatmul.bf16.vlgmr.msrb.gmra.mxu3 %v16327_v12  ;;  %v13682_v12 = vor.u32 %v14795_v10, %v13679_v7  ;;  %v3657_v62 = vadd.f32 %v16671_v42, %v3643_v4  ;;  %v16675_v10 = vld [vmem:[#allocation34_spill] sm:$0xff]  ;;  %v16676_v7 = vld [vmem:[#allocation44_spill] sm:$0xff] }
 0x5e9   :  { %9373 = vmatpush.bf16.msra.mxu3 %v13706_v9  ;;  %v13663_v9 = vld [vmem:[#allocation13 + $0x1ca8] sm:$0xf0]  ;;  %v5909_v39 = vadd.f32 %v16676_v7, %v16675_v10 }
 0x5ea   :  { %9364 = vmatpush.bf16.msra.mxu2 %v13602_v0  ;;  %v13666_v20 = vor.u32 %v14791_v15, %v13663_v9  ;;  %v4799_v0 = vadd.f32 %v16672_v23, %v3657_v62  ;;  %v8310_v29 = vpop.f32.mrf.mxu1  ;;  %v16681_v9 = vld [vmem:[#allocation70_spill] sm:$0xff] }
 0x5eb   :  { %v8282_v48 = vpop.f32.mrf.mxu3  ;;  %v5923_v36 = vadd.f32 %v16226_v55, %v5909_v39 }
 0x5ec   :  { %v8283_v24 = vadd.f32 %v8282_v48, %v8269_v35  ;;  %v4813_v58 = vadd.f32 %v16673_v11, %v4799_v0 }
 0x5ed   :  { %9374 = vmatpush.bf16.msra.mxu3 %v13698_v25  ;;  %v13658_v25 = vor.u32 %v14789_v37, %v13655_v61 }
 0x5ee   :  { %9365 = vmatpush.bf16.msra.mxu2 %v13594_v22  ;;  %v4827_v18 = vadd.f32 %v16104_v60, %v4813_v58  ;;  %v16674_v22 = vld [vmem:[#allocation29_spill] sm:$0xff] }
 0x5ef   :  { %v16677_v60 = vld [vmem:[#allocation109_spill] sm:$0xff] }
 0x5f0   :  { %v4841_v30 = vadd.f32 %v16119_v16, %v4827_v18  ;;  %v14803_v58 = vld [vmem:[#allocation16] sm:$0xff] }
 0x5f1   :  { %9375 = vmatpush.bf16.msra.mxu3 %v13690_v63 }
 0x5f2   :  { %9366 = vmatpush.bf16.msra.mxu2 %v13586_v40  ;;  %v4855_v63 = vadd.f32 %v16674_v22, %v4841_v30  ;;  %v8312_v40 = vpop.f32.mrf.mxu1 }
 0x5f3   :  { %v8284_v19 = vpop.f32.mrf.mxu3 }
 0x5f4   :  { %v8285_v53 = vadd.f32 %v8284_v19, %v8271_v26  ;;  %v4869_v17 = vadd.f32 %v16677_v60, %v4855_v63 }
 0x5f5   :  { %9376 = vmatpush.bf16.msra.mxu3 %v13682_v12  ;;  %9367 = vmatmul.bf16.vlgmr.msra.gmra.mxu2 %v16338_v3  ;;  %v8297_v3 = vadd.f32 %v8296_v57, %v8283_v24  ;;  %v5937_v12 = vadd.f32 %v16235_v8, %v5923_v36 }
 0x5f6   :  { %v8299_v46 = vadd.f32 %v8298_v45, %v8285_v53  ;;  %v4883_v16 = vadd.f32 %v16129_v51, %v4869_v17  ;;  %v7153_v51 = vadd.f32 %v16314_v6, %v16299_v59  ;;  %v14809_v59 = vld [vmem:[#allocation16 + $0x30] sm:$0xff]  ;;  %v9172_v6 = vpop.f32.mrf.mxu0 }
 0x5f7   :  { %v8311_v35 = vadd.f32 %v8310_v29, %v8297_v3 }
 0x5f8   :  { %v8324_v34 = vpop.f32.mrf.mxu2  ;;  %v8313_v44 = vadd.f32 %v8312_v40, %v8299_v46  ;;  %v4897_v47 = vadd.f32 %v16140_v50, %v4883_v16  ;;  %v7167_v37 = vadd.f32 %v16319_v33, %v7153_v51  ;;  %v16412_v16 = vld [vmem:[#allocation15] sm:$0x3]  ;;  %v14815_v51 = vld [vmem:[#allocation16 + $0x60] sm:$0xff] }
 0x5f9   :  { %9377 = vmatpush.bf16.msra.mxu3 %v13674_v5  ;;  %v8325_v52 = vadd.f32 %v8324_v34, %v8311_v35 }
 0x5fa   :  { %v4911_v5 = vadd.f32 %v16679_v38, %v4897_v47  ;;  %v9186_v56 = vpop.f32.mrf.mxu1  ;;  %v9393_v47 = vperm.slane %v16412_v16, 0 }
 0x5fb   :  { %v9187_v3 = vadd.f32 %v9186_v56, %v9172_v6 }
 0x5fc   :  { %v4925_v42 = vadd.f32 %v16681_v9, %v4911_v5  ;;  %v14818_v5 = vld [vmem:[#allocation16 + $0x78] sm:$0xff] }
 0x5fd   :  { %9378 = vmatpush.bf16.msra.mxu3 %v13666_v20  ;;  %9553 = vmatpush.bf16.msra.mxu1 %v14818_v5 }
 0x5fe   :  { %v4939_v62 = vadd.f32 %v16150_v54, %v4925_v42  ;;  %v14808_v54 = vld [vmem:[#allocation16 + $0x28] sm:$0xff]  ;;  %v9174_v57 = vpop.f32.mrf.mxu0  ;;  %v14817_v42 = vld [vmem:[#allocation16 + $0x70] sm:$0xff] }
 0x600   :  { %v8326_v32 = vpop.f32.mrf.mxu2  ;;  %v4953_v48 = vadd.f32 %v16160_v21, %v4939_v62  ;;  %v14805_v21 = vld [vmem:[#allocation16 + $0x10] sm:$0xff] }
 0x601   :  { %9379 = vmatpush.bf16.msra.mxu3 %v13658_v25  ;;  %v8327_v26 = vadd.f32 %v8326_v32, %v8313_v44  ;;  %v14810_v25 = vld [vmem:[#allocation16 + $0x38] sm:$0xff]  ;;  %9554 = vmatpush.bf16.msra.mxu1 %v14817_v42  ;;  %v14813_v62 = vld [vmem:[#allocation16 + $0x50] sm:$0xff] }
 0x602   :  { %9539 = vmatpush.bf16.msra.mxu0 %v14810_v25 }
 0x605   :  { %9380 = vmatpush.bf16.msra.mxu3 %v13650_v2  ;;  %v9188_v2 = vpop.f32.mrf.mxu1 }
 0x606   :  { %9540 = vmatpush.bf16.msra.mxu0 %v14809_v59  ;;  %v9228_v29 = vpop.f32.mrf.mxu0  ;;  %v9189_v35 = vadd.f32 %v9188_v2, %v9174_v57 }
 0x608   :  { %9381 = vmatmul.bf16.vlgmr.msra.gmra.mxu3 %v16352_v41  ;;  %v16678_v41 = vld [vmem:[#allocation40_spill] sm:$0xff] }
 0x609   :  { %v5951_v28 = vadd.f32 %v16678_v41, %v5937_v12 }
 0x60a   :  { %9541 = vmatpush.bf16.msra.mxu0 %v14808_v54 }
 0x60b   :  { %v5965_v4 = vadd.f32 %v16680_v43, %v5951_v28  ;;  %v8338_v15 = vpop.f32.mrf.mxu3 }
 0x60c   :  { %v8339_v8 = vadd.f32 %v8338_v15, %v8325_v52 }
 0x60d   :  { %v5979_v55 = vadd.f32 %v16248_v49, %v5965_v4  ;;  %v9242_v34 = vpop.f32.mrf.mxu1 }
 0x60e   :  { %v16406_v20 = vadd.f32 %v8339_v8, %v16294_v1  ;;  %v14806_v1 = vld [vmem:[#allocation16 + $0x18] sm:$0xff]  ;;  %v9230_v7 = vpop.f32.mrf.mxu0 }
 0x60f   :  { %v5993_v50 = vadd.f32 %v16256_v27, %v5979_v55  ;;  %v14807_v27 = vld [vmem:[#allocation16 + $0x20] sm:$0xff]  ;;  %v14816_v55 = vld [vmem:[#allocation16 + $0x68] sm:$0xff] }
 0x610   :  { %9542 = vmatpush.bf16.msra.mxu0 %v14807_v27  ;;  %9555 = vmatpush.bf16.msra.mxu1 %v14816_v55 }
 0x611   :  { %v5998_v61 = vadd.f32 %v5993_v50, %v4953_v48 }
 0x613   :  { %v8340_v24 = vpop.f32.mrf.mxu3  ;;  %v7172_v23 = vadd.f32 %v7167_v37, %v5998_v61 }
 0x614   :  { %v8341_v0 = vadd.f32 %v8340_v24, %v8327_v26  ;;  %9543 = vmatpush.bf16.msra.mxu0 %v14806_v1  ;;  %9556 = vmatpush.bf16.msra.mxu1 %v14815_v51  ;;  %v14811_v24 = vld [vmem:[#allocation16 + $0x40] sm:$0xff] }
 0x615   :  { %v9244_v36 = vpop.f32.mrf.mxu1 }
 0x616   :  { %v16410_v49 = vadd.f32 %v8341_v0, %v7172_v23  ;;  %v9284_v8 = vpop.f32.mrf.mxu0 }
 0x618   :  { %v9200_v33 = vpop.f32.mrf.mxu2  ;;  %9544 = vmatpush.bf16.msra.mxu0 %v14805_v21 }
 0x619   :  { %v9201_v19 = vadd.f32 %v9200_v33, %v9187_v3 }
 0x61c   :  { %9545 = vmatpush.bf16.msra.mxu0 %v14804_v31 }
 0x61d   :  { %v9298_v50 = vpop.f32.mrf.mxu1 }
 0x61e   :  { %v9286_v37 = vpop.f32.mrf.mxu0  ;;  %v9299_v25 = vadd.f32 %v9298_v50, %v9284_v8 }
 0x620   :  { %9546 = vmatpush.bf16.msra.mxu0 %v14803_v58  ;;  %v9202_v18 = vpop.f32.mrf.mxu2 }
 0x621   :  { %v9203_v63 = vadd.f32 %v9202_v18, %v9189_v35 }
 0x625   :  { %v9300_v23 = vpop.f32.mrf.mxu1 }
 0x626   :  { %v9340_v54 = vpop.f32.mrf.mxu0  ;;  %v9301_v6 = vadd.f32 %v9300_v23, %v9286_v37 }
 0x62b   :  { %v9214_v11 = vpop.f32.mrf.mxu3 }
 0x62c   :  { %v9215_v53 = vadd.f32 %v9214_v11, %v9201_v19 }
 0x62d   :  { %v9354_v21 = vpop.f32.mrf.mxu1 }
 0x62e   :  { %v9229_v52 = vadd.f32 %v9228_v29, %v9215_v53  ;;  %v9342_v58 = vpop.f32.mrf.mxu0 }
 0x630   :  { %v9243_v10 = vadd.f32 %v9242_v34, %v9229_v52 }
 0x633   :  { %v9216_v30 = vpop.f32.mrf.mxu3 }
 0x634   :  { %v9217_v45 = vadd.f32 %v9216_v30, %v9203_v63 }
 0x635   :  { %v9356_v29 = vpop.f32.mrf.mxu1 }
 0x636   :  { %v9231_v46 = vadd.f32 %v9230_v7, %v9217_v45 }
 0x638   :  { %v9256_v22 = vpop.f32.mrf.mxu2  ;;  %v9245_v12 = vadd.f32 %v9244_v36, %v9231_v46  ;;  %v14840_v36 = vld [vmem:[#allocation18] ss:$0 sm:$0xff] }
 0x639   :  { %v9257_v60 = vadd.f32 %v9256_v22, %v9243_v10  ;;  %v9394_v22 = vperm.slane %v16412_v16, 1 }
 0x640   :  { %v9258_v40 = vpop.f32.mrf.mxu2 }
 0x641   :  { %v9259_v44 = vadd.f32 %v9258_v40, %v9245_v12 }
 0x64b   :  { %v9270_v39 = vpop.f32.mrf.mxu3 }
 0x64c   :  { %v9271_v17 = vadd.f32 %v9270_v39, %v9257_v60 }
 0x64e   :  { %v9387_v32 = vadd.f32 %v9271_v17, %v16361_v13  ;;  %v14814_v13 = vld [vmem:[#allocation16 + $0x58] sm:$0xff] }
 0x64f   :  { %9557 = vmatpush.bf16.msra.mxu1 %v14814_v13 }
 0x650   :  { %v9397_v28 = vadd.f32 %v9393_v47, %v9387_v32 }
 0x652   :  { %v9401_v4 = vmax.f32 %v9397_v28, 0.0 }
 0x653   :  { %v9272_v26 = vpop.f32.mrf.mxu3  ;;  %9558 = vmatpush.bf16.msra.mxu1 %v14813_v62 }
 0x654   :  { %v9273_v41 = vadd.f32 %v9272_v26, %v9259_v44 }
 0x656   :  { %v9389_v38 = vadd.f32 %v9273_v41, %v16366_v14  ;;  %v14812_v14 = vld [vmem:[#allocation16 + $0x48] sm:$0xff] }
 0x657   :  { %9559 = vmatpush.bf16.msra.mxu1 %v14812_v14 }
 0x658   :  { %v9399_v43 = vadd.f32 %v9393_v47, %v9389_v38  ;;  %v9312_v48 = vpop.f32.mrf.mxu2 }
 0x659   :  { %v9313_v59 = vadd.f32 %v9312_v48, %v9299_v25 }
 0x65a   :  { %v9403_v15 = vmax.f32 %v9399_v43, 0.0 }
 0x65b   :  { %9560 = vmatpush.bf16.msra.mxu1 %v14811_v24 }
 0x65c   :  { %v9405_v9 = vpack.c.bf16 %v9403_v15, %v9401_v4 }
 0x65e   :  { %9547 = vmatmul.bf16.vlgmr.msra.gmra.mxu0 %v9405_v9 }
 0x660   :  { %v9314_v0 = vpop.f32.mrf.mxu2 }
 0x661   :  { %v9315_v33 = vadd.f32 %v9314_v0, %v9301_v6 }
 0x66b   :  { %v9326_v61 = vpop.f32.mrf.mxu3 }
 0x66c   :  { %v9327_v27 = vadd.f32 %v9326_v61, %v9313_v59 }
 0x66e   :  { %v9341_v31 = vadd.f32 %v9340_v54, %v9327_v27 }
 0x670   :  { %v9355_v11 = vadd.f32 %v9354_v21, %v9341_v31 }
 0x673   :  { %v9328_v1 = vpop.f32.mrf.mxu3 }
 0x674   :  { %v9329_v57 = vadd.f32 %v9328_v1, %v9315_v33 }
 0x676   :  { %v9343_v18 = vadd.f32 %v9342_v58, %v9329_v57 }
 0x678   :  { %v9368_v56 = vpop.f32.mrf.mxu2  ;;  %v9357_v30 = vadd.f32 %v9356_v29, %v9343_v18 }
 0x679   :  { %v9369_v3 = vadd.f32 %v9368_v56, %v9355_v11 }
 0x680   :  { %v9370_v53 = vpop.f32.mrf.mxu2 }
 0x681   :  { %v9371_v35 = vadd.f32 %v9370_v53, %v9357_v30 }
 0x68b   :  { %v9382_v2 = vpop.f32.mrf.mxu3 }
 0x68c   :  { %v9383_v19 = vadd.f32 %v9382_v2, %v9369_v3 }
 0x68e   :  { %v9388_v34 = vadd.f32 %v9383_v19, %v16406_v20 }
 0x690   :  { %v9398_v45 = vadd.f32 %v9394_v22, %v9388_v34 }
 0x692   :  { %v9402_v39 = vmax.f32 %v9398_v45, 0.0 }
 0x693   :  { %v9384_v63 = vpop.f32.mrf.mxu3 }
 0x694   :  { %v9385_v52 = vadd.f32 %v9384_v63, %v9371_v35 }
 0x696   :  { %v9390_v10 = vadd.f32 %v9385_v52, %v16410_v49 }
 0x698   :  { %v9400_v7 = vadd.f32 %v9394_v22, %v9390_v10 }
 0x69a   :  { %v9404_v46 = vmax.f32 %v9400_v7, 0.0 }
 0x69c   :  { %v9406_v60 = vpack.c.bf16 %v9404_v46, %v9402_v39 }
 0x69e   :  { %9561 = vmatmul.bf16.vlgmr.msra.gmra.mxu1 %v9406_v60 }
 0x6db   :  { %v9548_v17 = vpop.f32.mrf.mxu0 }
 0x6dc   :  { %v9549_v40 = vadd.f32 %v14840_v36, %v9548_v17 }
 0x6e3   :  { %v9550_v20 = vpop.f32.mrf.mxu0 }
 0x6e4   :  { %v9551_v16 = vadd.f32 %v14840_v36, %v9550_v20 }
 0x71b   :  { %v9562_v12 = vpop.f32.mrf.mxu1 }
 0x71c   :  { %v9563_v44 = vadd.f32 %v9562_v12, %v9549_v40 }
 0x71e   :  { %9567 = vst [vmem:[%s16439_s13] sm:$0xff] %v9563_v44 }
 0x723   :  { %v9564_v32 = vpop.f32.mrf.mxu1 }
 0x724   :  { %v9565_v47 = vadd.f32 %v9564_v32, %v9551_v16 }
 0x726   :  { %9568 = vst [vmem:[%s16439_s13 + $0x8] sm:$0xff] %v9565_v47 }
 0x727   :  { %9573 = vsyncpa [#allocation3], 1 }
 0x728   :  { %9574 = vsyncpa [#allocation5], 1 }
 0x729   :  { %9575 = vsyncpa [#allocation8], 1 }
 0x72a   :  { %9576 = vsyncpa [#allocation11], 1 }
 0x72b   :  { %9577 = vsyncpa [#allocation14], 1 }
 0x72c   :  { %9578 = vsyncpa [#allocation17], 1 }

</bundles_post_ra>
